<compile_context>
chip_gen: v7x
topology: tpu7x:2x2x1
jax: 0.10.0
libtpu: 0.0.40
codegen_flags: <defaults>
</compile_context>

<pallas_src>
import functools
import math

import jax
import jax.numpy as jnp
from jax.experimental import pallas as pl
from jax.experimental.pallas import tpu as pltpu


VMEM = pl.BlockSpec(memory_space=pltpu.MemorySpace.VMEM)
LN_EPS = 1e-12  # HF ViT layer_norm_eps


# ----------------------------- in-kernel helpers ----------------------------

def _layernorm(x, g, b, eps=LN_EPS):
    x = x.astype(jnp.float32)
    mu = jnp.mean(x, axis=-1, keepdims=True)
    xc = x - mu
    var = jnp.mean(xc * xc, axis=-1, keepdims=True)
    inv = jax.lax.rsqrt(var + eps)
    return xc * inv * g + b


def _gelu_tanh(x):
    # tanh-form GELU: one EUP tanh + a handful of VALU ops (vs ~13 VALU ops +
    # exp + divide for the erf form).  ~1e-3 max deviation from exact GELU.
    c = math.sqrt(2.0 / math.pi)
    return 0.5 * x * (1.0 + jnp.tanh(c * (x + 0.044715 * x * x * x)))


# ----------------------------- Pallas kernels -------------------------------

def _patch_embed_kernel(x_ref, w_ref, b_ref, o_ref):
    # Conv2d(3, hidden, patch, patch) folded into a per-patch matmul.
    y = jnp.dot(x_ref[...], w_ref[...], preferred_element_type=jnp.float32)
    o_ref[...] = (y + b_ref[...]).astype(o_ref.dtype)


def _encoder_kernel(x_ref,
                    ln1_g_ref, ln1_b_ref, wqkv_ref, bqkv_ref, wo_ref, bo_ref,
                    ln2_g_ref, ln2_b_ref, w1_ref, b1_ref, w2_ref, b2_ref,
                    lnf_g_ref, lnf_b_ref, down_w_ref, down_b_ref, o_ref,
                    *, num_layers, batch, seq, seq_real, heads):
    """Whole pre-LN ViT encoder + final LN + downsize_linear, fused."""
    x = x_ref[...].astype(jnp.float32)               # (B*S, D) residual, f32
    rows, D = x.shape
    Dh = D // heads

    # Padded key positions (index >= seq_real) must never be attended to.
    key_mask = (jax.lax.broadcasted_iota(
        jnp.int32, (heads * batch, seq, seq), 2) < seq_real)

    def split_heads(x2d):
        # (B*S, H*Dh) -> (H*B, S, Dh).  Head split via lane-tile-aligned
        # static slices + a major-axis concat (pure vreg selection); this is
        # the layout-safe equivalent of reshape(B,S,H,Dh).transpose(0,2,1,3).
        parts = [x2d[:, h * Dh:(h + 1) * Dh].reshape(batch, seq, Dh)
                 for h in range(heads)]
        return jnp.concatenate(parts, axis=0)

    def merge_heads(x3d):
        # (H*B, S, Dh) -> (B*S, H*Dh); lane-aligned inverse of split_heads.
        parts = [x3d[h * batch:(h + 1) * batch].reshape(rows, Dh)
                 for h in range(heads)]
        return jnp.concatenate(parts, axis=1)

    for l in range(num_layers):
        # ---- attention: LN1 + fused QKV + batched-head MHSA + proj + residual
        ln1 = _layernorm(x, ln1_g_ref[l], ln1_b_ref[l])
        qkv = jnp.dot(ln1.astype(jnp.bfloat16), wqkv_ref[l],
                      preferred_element_type=jnp.float32) + bqkv_ref[l]
        q = split_heads(qkv[:, 0 * D:1 * D]).astype(jnp.bfloat16)
        k = split_heads(qkv[:, 1 * D:2 * D]).astype(jnp.bfloat16)
        v = split_heads(qkv[:, 2 * D:3 * D]).astype(jnp.bfloat16)

        # One batched einsum over ALL heads (batch dim = H*B); the 1/sqrt(Dh)
        # scale is folded into Wq at init time.
        s = jnp.einsum('bqd,bkd->bqk', q, k,
                       preferred_element_type=jnp.float32)
        s = jnp.where(key_mask, s, jnp.float32(-1e30))
        s = s - jnp.max(s, axis=-1, keepdims=True)
        p = jnp.exp(s)
        p = p * pl.reciprocal(jnp.sum(p, axis=-1, keepdims=True), approx=True)
        ctx = jnp.einsum('bqk,bkd->bqd', p.astype(jnp.bfloat16), v,
                         preferred_element_type=jnp.float32)   # (H*B, S, Dh)

        ctx2d = merge_heads(ctx).astype(jnp.bfloat16)          # (B*S, D)
        # Single output projection with full-D contraction (vs H x Dh before).
        x = x + jnp.dot(ctx2d, wo_ref[l],
                        preferred_element_type=jnp.float32) + bo_ref[l]

        # ---- MLP: LN2 + Linear + GELU + Linear + residual -------------------
        ln2 = _layernorm(x, ln2_g_ref[l], ln2_b_ref[l])
        h1 = jnp.dot(ln2.astype(jnp.bfloat16), w1_ref[l],
                     preferred_element_type=jnp.float32) + b1_ref[l]
        h1 = _gelu_tanh(h1)
        x = x + jnp.dot(h1.astype(jnp.bfloat16), w2_ref[l],
                        preferred_element_type=jnp.float32) + b2_ref[l]

    # ---- final LayerNorm (= last_hidden_state) + downsize_linear ------------
    ln_f = _layernorm(x, lnf_g_ref[...], lnf_b_ref[...])
    y = jnp.dot(ln_f.astype(jnp.bfloat16), down_w_ref[...],
                preferred_element_type=jnp.float32) + down_b_ref[...]
    o_ref[...] = y.astype(o_ref.dtype)


# ----------------------------- wrappers --------------------------------------

def pallas_patch_embed(x, w, b):
    return pl.pallas_call(
        _patch_embed_kernel,
        out_shape=jax.ShapeDtypeStruct((x.shape[0], w.shape[1]), jnp.bfloat16),
        in_specs=[VMEM, VMEM, VMEM],
        out_specs=VMEM,
    )(x, w, b)


def pallas_encoder(xf, params, *, num_layers, batch, seq, seq_real, heads):
    kern = functools.partial(_encoder_kernel, num_layers=num_layers,
                             batch=batch, seq=seq, seq_real=seq_real,
                             heads=heads)
    d_model = params['down_w'].shape[1]
    return pl.pallas_call(
        kern,
        out_shape=jax.ShapeDtypeStruct((xf.shape[0], d_model), jnp.float32),
        in_specs=[VMEM] * 17,
        out_specs=VMEM,
        compiler_params=pltpu.CompilerParams(
            vmem_limit_bytes=64 * 1024 * 1024),  # v7x-safe scoped-VMEM ceiling
    )(xf,
      params['ln1_g'], params['ln1_b'], params['wqkv'], params['bqkv'],
      params['wo'], params['bo'], params['ln2_g'], params['ln2_b'],
      params['w1'], params['b1'], params['w2'], params['b2'],
      params['lnf_g'], params['lnf_b'], params['down_w'], params['down_b'])


# ----------------------------- parameters ------------------------------------

def init_params(key, *, hidden, num_layers, mlp_dim, patch, channels,
                seq_len, d_model, heads):
    keys = iter(jax.random.split(key, 4 + num_layers * 6))

    def w(shape, scale=0.02):
        return scale * jax.random.normal(next(keys), shape, dtype=jnp.float32)

    dh = hidden // heads
    attn_scale = 1.0 / math.sqrt(dh)

    ln1_g, ln1_b, wqkv, bqkv, wo, bo = [], [], [], [], [], []
    ln2_g, ln2_b, w1, b1, w2, b2 = [], [], [], [], [], []
    for _ in range(num_layers):
        wq = w((hidden, hidden)) * attn_scale     # fold 1/sqrt(Dh) into Wq
        wk = w((hidden, hidden))
        wv = w((hidden, hidden))
        wqkv.append(jnp.concatenate([wq, wk, wv], axis=1))
        bqkv.append(jnp.zeros((1, 3 * hidden), jnp.float32))
        wo.append(w((hidden, hidden)))
        bo.append(jnp.zeros((1, hidden), jnp.float32))
        ln1_g.append(jnp.ones((1, hidden), jnp.float32))
        ln1_b.append(jnp.zeros((1, hidden), jnp.float32))
        ln2_g.append(jnp.ones((1, hidden), jnp.float32))
        ln2_b.append(jnp.zeros((1, hidden), jnp.float32))
        w1.append(w((hidden, mlp_dim)))
        b1.append(jnp.zeros((1, mlp_dim), jnp.float32))
        w2.append(w((mlp_dim, hidden)))
        b2.append(jnp.zeros((1, hidden), jnp.float32))

    return {
        # Conv2d(3, hidden, patch, patch) folded into a (C*p*p, hidden) matmul.
        'patch_w': w((channels * patch * patch, hidden)).astype(jnp.bfloat16),
        'patch_b': jnp.zeros((1, hidden), jnp.float32),
        'cls': w((1, 1, hidden)),
        'pos': w((1, seq_len, hidden)),
        # per-layer params stacked along a leading layer dim (resident in VMEM)
        'ln1_g': jnp.stack(ln1_g), 'ln1_b': jnp.stack(ln1_b),
        'wqkv': jnp.stack(wqkv).astype(jnp.bfloat16), 'bqkv': jnp.stack(bqkv),
        'wo': jnp.stack(wo).astype(jnp.bfloat16), 'bo': jnp.stack(bo),
        'ln2_g': jnp.stack(ln2_g), 'ln2_b': jnp.stack(ln2_b),
        'w1': jnp.stack(w1).astype(jnp.bfloat16), 'b1': jnp.stack(b1),
        'w2': jnp.stack(w2).astype(jnp.bfloat16), 'b2': jnp.stack(b2),
        'lnf_g': jnp.ones((1, hidden), jnp.float32),
        'lnf_b': jnp.zeros((1, hidden), jnp.float32),
        # downsize_linear: Linear(hidden -> d_model)
        'down_w': w((hidden, d_model)).astype(jnp.bfloat16),
        'down_b': jnp.zeros((1, d_model), jnp.float32),
    }


# ----------------------------- model ------------------------------------------

def img_embedding_forward(params, data, *, patch, heads):
    """data: NCHW float32 (B, 3, H, W) -> (B, num_patches + 1, d_model)."""
    B, C, H, W = data.shape
    p = patch
    h, w = H // p, W // p
    L = h * w
    S_real = L + 1
    S_pad = ((S_real + 7) // 8) * 8      # pad tokens to a sublane multiple
    D = params['patch_w'].shape[1]
    num_layers = params['wqkv'].shape[0]

    # --- patchify glue on bf16 (cheaper HBM round trip than f32) -------------
    x = data.astype(jnp.bfloat16).reshape(B, C, h, p, w, p)
    x = jnp.transpose(x, (0, 2, 4, 1, 3, 5)).reshape(B * L, C * p * p)
    tokens = pallas_patch_embed(x, params['patch_w'], params['patch_b'])

    # --- CLS token + position embeddings + pad to S_pad (XLA glue) -----------
    tokens = tokens.astype(jnp.float32).reshape(B, L, D)
    cls = jnp.broadcast_to(params['cls'], (B, 1, D))
    seq = jnp.concatenate([cls, tokens], axis=1) + params['pos']
    seq = jnp.pad(seq, ((0, 0), (0, S_pad - S_real), (0, 0)))
    xf = seq.reshape(B * S_pad, D).astype(jnp.bfloat16)   # bf16 residual carry

    # --- whole encoder + final LN + downsize_linear in ONE fused kernel ------
    emb = pallas_encoder(xf, params, num_layers=num_layers, batch=B,
                         seq=S_pad, seq_real=S_real, heads=heads)
    emb = emb.reshape(B, S_pad, -1)
    return emb[:, :S_real, :]


# ----------------------------- main ------------------------------------------

if __name__ == "__main__":
    # Small stand-in hyperparameters (ViT-base would be hidden=768, 12 layers,
    # 12 heads, 224x224 images).  Dh = 128 keeps every head slice/concat
    # lane-tile aligned.
    B, C, IMG = 2, 3, 32
    PATCH = 16
    HIDDEN = 256
    HEADS = 2
    LAYERS = 2
    D_MODEL = 128
    NUM_PATCHES = (IMG // PATCH) ** 2          # 4
    SEQ = NUM_PATCHES + 1                      # +1 CLS token -> 5

    key = jax.random.PRNGKey(0)
    kp, kd = jax.random.split(key)
    params = init_params(kp, hidden=HIDDEN, num_layers=LAYERS,
                         mlp_dim=4 * HIDDEN, patch=PATCH, channels=C,
                         seq_len=SEQ, d_model=D_MODEL, heads=HEADS)
    data = jax.random.normal(kd, (B, C, IMG, IMG), dtype=jnp.float32)

    fwd = jax.jit(lambda d: img_embedding_forward(params, d,
                                                  patch=PATCH, heads=HEADS))
    out = jax.block_until_ready(fwd(data))

    assert out.shape == (B, SEQ, D_MODEL), out.shape
    assert out.dtype == jnp.float32
    assert bool(jnp.all(jnp.isfinite(out)))
    print("KERNEL_OK")
</pallas_src>

<mosaic_0001>
module attributes {stable_mosaic.version = 11 : i64} {
  func.func @_patch_embed_kernel(%arg0: memref<8x768xbf16, #tpu.memory_space<vmem>>, %arg1: memref<768x256xbf16, #tpu.memory_space<vmem>>, %arg2: memref<1x256xf32, #tpu.memory_space<vmem>>, %arg3: memref<8x256xbf16, #tpu.memory_space<vmem>>) attributes {dimension_semantics = [], scalar_prefetch = 0 : i64, scratch_operands = 0 : i64, tpu.core_type = #tpu.core_type<tc>} {
    %c0 = arith.constant 0 : index
    %c0_0 = arith.constant 0 : index
    %0 = vector.load %arg0[%c0, %c0_0] : memref<8x768xbf16, #tpu.memory_space<vmem>>, vector<8x768xbf16>
    %c0_1 = arith.constant 0 : index
    %c0_2 = arith.constant 0 : index
    %1 = vector.load %arg1[%c0_1, %c0_2] : memref<768x256xbf16, #tpu.memory_space<vmem>>, vector<768x256xbf16>
    %cst = arith.constant dense<0.000000e+00> : vector<8x256xf32>
    %2 = tpu.matmul %0, %1, %cst {dimension_numbers = #tpu.dot_dimension_numbers<[1], [0], [0], [1], [0, 0, 1, 1], [], []>} : vector<8x768xbf16>, vector<768x256xbf16>, vector<8x256xf32> -> vector<8x256xf32>
    %c0_3 = arith.constant 0 : index
    %c0_4 = arith.constant 0 : index
    %3 = vector.load %arg2[%c0_3, %c0_4] : memref<1x256xf32, #tpu.memory_space<vmem>>, vector<1x256xf32>
    %4 = vector.broadcast %3 : vector<1x256xf32> to vector<8x256xf32>
    %5 = arith.addf %2, %4 : vector<8x256xf32>
    %6 = arith.truncf %5 : vector<8x256xf32> to vector<8x256xbf16>
    %c0_5 = arith.constant 0 : index
    %c0_6 = arith.constant 0 : index
    %7 = vector.load %arg3[%c0_5, %c0_6] : memref<8x256xbf16, #tpu.memory_space<vmem>>, vector<8x256xbf16>
    tpu.vector_store %arg3[%c0_5, %c0_6], %6 {strides = array<i32>} : memref<8x256xbf16, #tpu.memory_space<vmem>>, vector<8x256xbf16>,
    return
  }
}

module attributes {stable_mosaic.version = 11 : i64} {
  func.func @_encoder_kernel(%arg0: memref<16x256xbf16, #tpu.memory_space<vmem>>, %arg1: memref<2x1x256xf32, #tpu.memory_space<vmem>>, %arg2: memref<2x1x256xf32, #tpu.memory_space<vmem>>, %arg3: memref<2x256x768xbf16, #tpu.memory_space<vmem>>, %arg4: memref<2x1x768xf32, #tpu.memory_space<vmem>>, %arg5: memref<2x256x256xbf16, #tpu.memory_space<vmem>>, %arg6: memref<2x1x256xf32, #tpu.memory_space<vmem>>, %arg7: memref<2x1x256xf32, #tpu.memory_space<vmem>>, %arg8: memref<2x1x256xf32, #tpu.memory_space<vmem>>, %arg9: memref<2x256x1024xbf16, #tpu.memory_space<vmem>>, %arg10: memref<2x1x1024xf32, #tpu.memory_space<vmem>>, %arg11: memref<2x1024x256xbf16, #tpu.memory_space<vmem>>, %arg12: memref<2x1x256xf32, #tpu.memory_space<vmem>>, %arg13: memref<1x256xf32, #tpu.memory_space<vmem>>, %arg14: memref<1x256xf32, #tpu.memory_space<vmem>>, %arg15: memref<256x128xbf16, #tpu.memory_space<vmem>>, %arg16: memref<1x128xf32, #tpu.memory_space<vmem>>, %arg17: memref<16x128xf32, #tpu.memory_space<vmem>>) attributes {dimension_semantics = [], scalar_prefetch = 0 : i64, scratch_operands = 0 : i64, tpu.core_type = #tpu.core_type<tc>} {
    %c0 = arith.constant 0 : index
    %c0_0 = arith.constant 0 : index
    %0 = vector.load %arg0[%c0, %c0_0] : memref<16x256xbf16, #tpu.memory_space<vmem>>, vector<16x256xbf16>
    %1 = arith.extf %0 : vector<16x256xbf16> to vector<16x256xf32>
    %2 = tpu.iota {dimensions = array<i32: 2>} : vector<4x8x8xi32>
    %c5_i32 = arith.constant 5 : i32
    %3 = vector.broadcast %c5_i32 : i32 to vector<4x8x8xi32>
    %4 = arith.cmpi slt, %2, %3 : vector<4x8x8xi32>
    %c0_1 = arith.constant 0 : index
    %c0_2 = arith.constant 0 : index
    %c0_3 = arith.constant 0 : index
    %5 = vector.load %arg1[%c0_1, %c0_2, %c0_3] : memref<2x1x256xf32, #tpu.memory_space<vmem>>, vector<1x1x256xf32>
    %6 = vector.shape_cast %5 : vector<1x1x256xf32> to vector<1x256xf32>
    %c0_4 = arith.constant 0 : index
    %c0_5 = arith.constant 0 : index
    %c0_6 = arith.constant 0 : index
    %7 = vector.load %arg2[%c0_4, %c0_5, %c0_6] : memref<2x1x256xf32, #tpu.memory_space<vmem>>, vector<1x1x256xf32>
    %8 = vector.shape_cast %7 : vector<1x1x256xf32> to vector<1x256xf32>
    %cst = arith.constant dense<0.000000e+00> : vector<16xf32>
    %9 = vector.multi_reduction <add>, %1, %cst [1] : vector<16x256xf32> to vector<16xf32>
    %10 = vector.shape_cast %9 : vector<16xf32> to vector<16x1xf32>
    %cst_7 = arith.constant 2.560000e+02 : f32
    %11 = vector.broadcast %cst_7 : f32 to vector<16x1xf32>
    %12 = arith.divf %10, %11 : vector<16x1xf32>
    %13 = vector.broadcast %12 : vector<16x1xf32> to vector<16x256xf32>
    %14 = arith.subf %1, %13 : vector<16x256xf32>
    %15 = arith.mulf %14, %14 : vector<16x256xf32>
    %cst_8 = arith.constant dense<0.000000e+00> : vector<16xf32>
    %16 = vector.multi_reduction <add>, %15, %cst_8 [1] : vector<16x256xf32> to vector<16xf32>
    %17 = vector.shape_cast %16 : vector<16xf32> to vector<16x1xf32>
    %cst_9 = arith.constant 2.560000e+02 : f32
    %18 = vector.broadcast %cst_9 : f32 to vector<16x1xf32>
    %19 = arith.divf %17, %18 : vector<16x1xf32>
    %cst_10 = arith.constant 9.99999996E-13 : f32
    %20 = vector.broadcast %cst_10 : f32 to vector<16x1xf32>
    %21 = arith.addf %19, %20 : vector<16x1xf32>
    %22 = math.rsqrt %21 : vector<16x1xf32>
    %23 = vector.broadcast %22 : vector<16x1xf32> to vector<16x256xf32>
    %24 = arith.mulf %14, %23 : vector<16x256xf32>
    %25 = vector.broadcast %6 : vector<1x256xf32> to vector<16x256xf32>
    %26 = arith.mulf %24, %25 : vector<16x256xf32>
    %27 = vector.broadcast %8 : vector<1x256xf32> to vector<16x256xf32>
    %28 = arith.addf %26, %27 : vector<16x256xf32>
    %29 = arith.truncf %28 : vector<16x256xf32> to vector<16x256xbf16>
    %c0_11 = arith.constant 0 : index
    %c0_12 = arith.constant 0 : index
    %c0_13 = arith.constant 0 : index
    %30 = vector.load %arg3[%c0_11, %c0_12, %c0_13] : memref<2x256x768xbf16, #tpu.memory_space<vmem>>, vector<1x256x768xbf16>
    %31 = vector.shape_cast %30 : vector<1x256x768xbf16> to vector<256x768xbf16>
    %cst_14 = arith.constant dense<0.000000e+00> : vector<16x768xf32>
    %32 = tpu.matmul %29, %31, %cst_14 {dimension_numbers = #tpu.dot_dimension_numbers<[1], [0], [0], [1], [0, 0, 1, 1], [], []>} : vector<16x256xbf16>, vector<256x768xbf16>, vector<16x768xf32> -> vector<16x768xf32>
    %c0_15 = arith.constant 0 : index
    %c0_16 = arith.constant 0 : index
    %c0_17 = arith.constant 0 : index
    %33 = vector.load %arg4[%c0_15, %c0_16, %c0_17] : memref<2x1x768xf32, #tpu.memory_space<vmem>>, vector<1x1x768xf32>
    %34 = vector.shape_cast %33 : vector<1x1x768xf32> to vector<1x768xf32>
    %35 = vector.broadcast %34 : vector<1x768xf32> to vector<16x768xf32>
    %36 = arith.addf %32, %35 : vector<16x768xf32>
    %37 = vector.extract_strided_slice %36 {offsets = [0, 0], sizes = [16, 256], strides = [1, 1]} : vector<16x768xf32> to vector<16x256xf32>
    %38 = vector.extract_strided_slice %37 {offsets = [0, 0], sizes = [16, 128], strides = [1, 1]} : vector<16x256xf32> to vector<16x128xf32>
    %39 = vector.shape_cast %38 : vector<16x128xf32> to vector<2x8x128xf32>
    %40 = vector.extract_strided_slice %37 {offsets = [0, 128], sizes = [16, 128], strides = [1, 1]} : vector<16x256xf32> to vector<16x128xf32>
    %41 = vector.shape_cast %40 : vector<16x128xf32> to vector<2x8x128xf32>
    %42 = tpu.concatenate %39, %41 in 0 : vector<2x8x128xf32>, vector<2x8x128xf32> -> vector<4x8x128xf32>
    %43 = arith.truncf %42 : vector<4x8x128xf32> to vector<4x8x128xbf16>
    %44 = vector.extract_strided_slice %36 {offsets = [0, 256], sizes = [16, 256], strides = [1, 1]} : vector<16x768xf32> to vector<16x256xf32>
    %45 = vector.extract_strided_slice %44 {offsets = [0, 0], sizes = [16, 128], strides = [1, 1]} : vector<16x256xf32> to vector<16x128xf32>
    %46 = vector.shape_cast %45 : vector<16x128xf32> to vector<2x8x128xf32>
    %47 = vector.extract_strided_slice %44 {offsets = [0, 128], sizes = [16, 128], strides = [1, 1]} : vector<16x256xf32> to vector<16x128xf32>
    %48 = vector.shape_cast %47 : vector<16x128xf32> to vector<2x8x128xf32>
    %49 = tpu.concatenate %46, %48 in 0 : vector<2x8x128xf32>, vector<2x8x128xf32> -> vector<4x8x128xf32>
    %50 = arith.truncf %49 : vector<4x8x128xf32> to vector<4x8x128xbf16>
    %51 = vector.extract_strided_slice %36 {offsets = [0, 512], sizes = [16, 256], strides = [1, 1]} : vector<16x768xf32> to vector<16x256xf32>
    %52 = vector.extract_strided_slice %51 {offsets = [0, 0], sizes = [16, 128], strides = [1, 1]} : vector<16x256xf32> to vector<16x128xf32>
    %53 = vector.shape_cast %52 : vector<16x128xf32> to vector<2x8x128xf32>
    %54 = vector.extract_strided_slice %51 {offsets = [0, 128], sizes = [16, 128], strides = [1, 1]} : vector<16x256xf32> to vector<16x128xf32>
    %55 = vector.shape_cast %54 : vector<16x128xf32> to vector<2x8x128xf32>
    %56 = tpu.concatenate %53, %55 in 0 : vector<2x8x128xf32>, vector<2x8x128xf32> -> vector<4x8x128xf32>
    %57 = arith.truncf %56 : vector<4x8x128xf32> to vector<4x8x128xbf16>
    "tpu.trace_start"() <{level = 10 : i32, message = "bqd,bkd->bqk"}> : () -> ()
    %cst_18 = arith.constant dense<0.000000e+00> : vector<4x8x8xf32>
    %58 = tpu.matmul %43, %50, %cst_18 {dimension_numbers = #tpu.dot_dimension_numbers<[2], [2], [1], [1], [0, 0, 0, 1, 1, 1], [0], [0]>} : vector<4x8x128xbf16>, vector<4x8x128xbf16>, vector<4x8x8xf32> -> vector<4x8x8xf32>
    %cst_19 = arith.constant -1.000000e+30 : f32
    "tpu.trace_stop"() : () -> ()
    %59 = vector.broadcast %cst_19 : f32 to vector<4x8x8xf32>
    %60 = arith.select %4, %58, %59 : vector<4x8x8xi1>, vector<4x8x8xf32>
    %cst_20 = arith.constant dense<0xFF800000> : vector<4x8xf32>
    %61 = vector.multi_reduction <maximumf>, %60, %cst_20 [2] : vector<4x8x8xf32> to vector<4x8xf32>
    %62 = vector.shape_cast %61 : vector<4x8xf32> to vector<4x8x1xf32>
    %63 = vector.broadcast %62 : vector<4x8x1xf32> to vector<4x8x8xf32>
    %64 = arith.subf %60, %63 : vector<4x8x8xf32>
    %65 = math.exp %64 : vector<4x8x8xf32>
    %cst_21 = arith.constant dense<0.000000e+00> : vector<4x8xf32>
    %66 = vector.multi_reduction <add>, %65, %cst_21 [2] : vector<4x8x8xf32> to vector<4x8xf32>
    %67 = vector.shape_cast %66 : vector<4x8xf32> to vector<4x8x1xf32>
    %68 = tpu.reciprocal %67 {approx = true} : vector<4x8x1xf32> -> vector<4x8x1xf32>
    %69 = vector.broadcast %68 : vector<4x8x1xf32> to vector<4x8x8xf32>
    %70 = arith.mulf %65, %69 : vector<4x8x8xf32>
    %71 = arith.truncf %70 : vector<4x8x8xf32> to vector<4x8x8xbf16>
    "tpu.trace_start"() <{level = 10 : i32, message = "bqk,bkd->bqd"}> : () -> ()
    %cst_22 = arith.constant dense<0.000000e+00> : vector<4x8x128xf32>
    %72 = tpu.matmul %71, %57, %cst_22 {dimension_numbers = #tpu.dot_dimension_numbers<[2], [1], [1], [2], [0, 0, 0, 1, 1, 2], [0], [0]>} : vector<4x8x8xbf16>, vector<4x8x128xbf16>, vector<4x8x128xf32> -> vector<4x8x128xf32>
    "tpu.trace_stop"() : () -> ()
    %73 = vector.extract_strided_slice %72 {offsets = [0, 0, 0], sizes = [2, 8, 128], strides = [1, 1, 1]} : vector<4x8x128xf32> to vector<2x8x128xf32>
    %74 = vector.shape_cast %73 : vector<2x8x128xf32> to vector<16x128xf32>
    %75 = vector.extract_strided_slice %72 {offsets = [2, 0, 0], sizes = [2, 8, 128], strides = [1, 1, 1]} : vector<4x8x128xf32> to vector<2x8x128xf32>
    %76 = vector.shape_cast %75 : vector<2x8x128xf32> to vector<16x128xf32>
    %77 = tpu.concatenate %74, %76 in 1 : vector<16x128xf32>, vector<16x128xf32> -> vector<16x256xf32>
    %78 = arith.truncf %77 : vector<16x256xf32> to vector<16x256xbf16>
    %c0_23 = arith.constant 0 : index
    %c0_24 = arith.constant 0 : index
    %c0_25 = arith.constant 0 : index
    %79 = vector.load %arg5[%c0_23, %c0_24, %c0_25] : memref<2x256x256xbf16, #tpu.memory_space<vmem>>, vector<1x256x256xbf16>
    %80 = vector.shape_cast %79 : vector<1x256x256xbf16> to vector<256x256xbf16>
    %cst_26 = arith.constant dense<0.000000e+00> : vector<16x256xf32>
    %81 = tpu.matmul %78, %80, %cst_26 {dimension_numbers = #tpu.dot_dimension_numbers<[1], [0], [0], [1], [0, 0, 1, 1], [], []>} : vector<16x256xbf16>, vector<256x256xbf16>, vector<16x256xf32> -> vector<16x256xf32>
    %82 = arith.addf %1, %81 : vector<16x256xf32>
    %c0_27 = arith.constant 0 : index
    %c0_28 = arith.constant 0 : index
    %c0_29 = arith.constant 0 : index
    %83 = vector.load %arg6[%c0_27, %c0_28, %c0_29] : memref<2x1x256xf32, #tpu.memory_space<vmem>>, vector<1x1x256xf32>
    %84 = vector.shape_cast %83 : vector<1x1x256xf32> to vector<1x256xf32>
    %85 = vector.broadcast %84 : vector<1x256xf32> to vector<16x256xf32>
    %86 = arith.addf %82, %85 : vector<16x256xf32>
    %c0_30 = arith.constant 0 : index
    %c0_31 = arith.constant 0 : index
    %c0_32 = arith.constant 0 : index
    %87 = vector.load %arg7[%c0_30, %c0_31, %c0_32] : memref<2x1x256xf32, #tpu.memory_space<vmem>>, vector<1x1x256xf32>
    %88 = vector.shape_cast %87 : vector<1x1x256xf32> to vector<1x256xf32>
    %c0_33 = arith.constant 0 : index
    %c0_34 = arith.constant 0 : index
    %c0_35 = arith.constant 0 : index
    %89 = vector.load %arg8[%c0_33, %c0_34, %c0_35] : memref<2x1x256xf32, #tpu.memory_space<vmem>>, vector<1x1x256xf32>
    %90 = vector.shape_cast %89 : vector<1x1x256xf32> to vector<1x256xf32>
    %cst_36 = arith.constant dense<0.000000e+00> : vector<16xf32>
    %91 = vector.multi_reduction <add>, %86, %cst_36 [1] : vector<16x256xf32> to vector<16xf32>
    %92 = vector.shape_cast %91 : vector<16xf32> to vector<16x1xf32>
    %cst_37 = arith.constant 2.560000e+02 : f32
    %93 = vector.broadcast %cst_37 : f32 to vector<16x1xf32>
    %94 = arith.divf %92, %93 : vector<16x1xf32>
    %95 = vector.broadcast %94 : vector<16x1xf32> to vector<16x256xf32>
    %96 = arith.subf %86, %95 : vector<16x256xf32>
    %97 = arith.mulf %96, %96 : vector<16x256xf32>
    %cst_38 = arith.constant dense<0.000000e+00> : vector<16xf32>
    %98 = vector.multi_reduction <add>, %97, %cst_38 [1] : vector<16x256xf32> to vector<16xf32>
    %99 = vector.shape_cast %98 : vector<16xf32> to vector<16x1xf32>
    %cst_39 = arith.constant 2.560000e+02 : f32
    %100 = vector.broadcast %cst_39 : f32 to vector<16x1xf32>
    %101 = arith.divf %99, %100 : vector<16x1xf32>
    %cst_40 = arith.constant 9.99999996E-13 : f32
    %102 = vector.broadcast %cst_40 : f32 to vector<16x1xf32>
    %103 = arith.addf %101, %102 : vector<16x1xf32>
    %104 = math.rsqrt %103 : vector<16x1xf32>
    %105 = vector.broadcast %104 : vector<16x1xf32> to vector<16x256xf32>
    %106 = arith.mulf %96, %105 : vector<16x256xf32>
    %107 = vector.broadcast %88 : vector<1x256xf32> to vector<16x256xf32>
    %108 = arith.mulf %106, %107 : vector<16x256xf32>
    %109 = vector.broadcast %90 : vector<1x256xf32> to vector<16x256xf32>
    %110 = arith.addf %108, %109 : vector<16x256xf32>
    %111 = arith.truncf %110 : vector<16x256xf32> to vector<16x256xbf16>
    %c0_41 = arith.constant 0 : index
    %c0_42 = arith.constant 0 : index
    %c0_43 = arith.constant 0 : index
    %112 = vector.load %arg9[%c0_41, %c0_42, %c0_43] : memref<2x256x1024xbf16, #tpu.memory_space<vmem>>, vector<1x256x1024xbf16>
    %113 = vector.shape_cast %112 : vector<1x256x1024xbf16> to vector<256x1024xbf16>
    %cst_44 = arith.constant dense<0.000000e+00> : vector<16x1024xf32>
    %114 = tpu.matmul %111, %113, %cst_44 {dimension_numbers = #tpu.dot_dimension_numbers<[1], [0], [0], [1], [0, 0, 1, 1], [], []>} : vector<16x256xbf16>, vector<256x1024xbf16>, vector<16x1024xf32> -> vector<16x1024xf32>
    %c0_45 = arith.constant 0 : index
    %c0_46 = arith.constant 0 : index
    %c0_47 = arith.constant 0 : index
    %115 = vector.load %arg10[%c0_45, %c0_46, %c0_47] : memref<2x1x1024xf32, #tpu.memory_space<vmem>>, vector<1x1x1024xf32>
    %116 = vector.shape_cast %115 : vector<1x1x1024xf32> to vector<1x1024xf32>
    %117 = vector.broadcast %116 : vector<1x1024xf32> to vector<16x1024xf32>
    %118 = arith.addf %114, %117 : vector<16x1024xf32>
    %cst_48 = arith.constant 5.000000e-01 : f32
    %119 = vector.broadcast %cst_48 : f32 to vector<16x1024xf32>
    %120 = arith.mulf %119, %118 : vector<16x1024xf32>
    %cst_49 = arith.constant 4.471500e-02 : f32
    %121 = vector.broadcast %cst_49 : f32 to vector<16x1024xf32>
    %122 = arith.mulf %121, %118 : vector<16x1024xf32>
    %123 = arith.mulf %122, %118 : vector<16x1024xf32>
    %124 = arith.mulf %123, %118 : vector<16x1024xf32>
    %125 = arith.addf %118, %124 : vector<16x1024xf32>
    %cst_50 = arith.constant 0.797884583 : f32
    %126 = vector.broadcast %cst_50 : f32 to vector<16x1024xf32>
    %127 = arith.mulf %126, %125 : vector<16x1024xf32>
    %128 = math.tanh %127 : vector<16x1024xf32>
    %cst_51 = arith.constant 1.000000e+00 : f32
    %129 = vector.broadcast %cst_51 : f32 to vector<16x1024xf32>
    %130 = arith.addf %129, %128 : vector<16x1024xf32>
    %131 = arith.mulf %120, %130 : vector<16x1024xf32>
    %132 = arith.truncf %131 : vector<16x1024xf32> to vector<16x1024xbf16>
    %c0_52 = arith.constant 0 : index
    %c0_53 = arith.constant 0 : index
    %c0_54 = arith.constant 0 : index
    %133 = vector.load %arg11[%c0_52, %c0_53, %c0_54] : memref<2x1024x256xbf16, #tpu.memory_space<vmem>>, vector<1x1024x256xbf16>
    %134 = vector.shape_cast %133 : vector<1x1024x256xbf16> to vector<1024x256xbf16>
    %cst_55 = arith.constant dense<0.000000e+00> : vector<16x256xf32>
    %135 = tpu.matmul %132, %134, %cst_55 {dimension_numbers = #tpu.dot_dimension_numbers<[1], [0], [0], [1], [0, 0, 1, 1], [], []>} : vector<16x1024xbf16>, vector<1024x256xbf16>, vector<16x256xf32> -> vector<16x256xf32>
    %136 = arith.addf %86, %135 : vector<16x256xf32>
    %c0_56 = arith.constant 0 : index
    %c0_57 = arith.constant 0 : index
    %c0_58 = arith.constant 0 : index
    %137 = vector.load %arg12[%c0_56, %c0_57, %c0_58] : memref<2x1x256xf32, #tpu.memory_space<vmem>>, vector<1x1x256xf32>
    %138 = vector.shape_cast %137 : vector<1x1x256xf32> to vector<1x256xf32>
    %139 = vector.broadcast %138 : vector<1x256xf32> to vector<16x256xf32>
    %140 = arith.addf %136, %139 : vector<16x256xf32>
    %c1 = arith.constant 1 : index
    %c0_59 = arith.constant 0 : index
    %c0_60 = arith.constant 0 : index
    %141 = vector.load %arg1[%c1, %c0_59, %c0_60] : memref<2x1x256xf32, #tpu.memory_space<vmem>>, vector<1x1x256xf32>
    %142 = vector.shape_cast %141 : vector<1x1x256xf32> to vector<1x256xf32>
    %c1_61 = arith.constant 1 : index
    %c0_62 = arith.constant 0 : index
    %c0_63 = arith.constant 0 : index
    %143 = vector.load %arg2[%c1_61, %c0_62, %c0_63] : memref<2x1x256xf32, #tpu.memory_space<vmem>>, vector<1x1x256xf32>
    %144 = vector.shape_cast %143 : vector<1x1x256xf32> to vector<1x256xf32>
    %cst_64 = arith.constant dense<0.000000e+00> : vector<16xf32>
    %145 = vector.multi_reduction <add>, %140, %cst_64 [1] : vector<16x256xf32> to vector<16xf32>
    %146 = vector.shape_cast %145 : vector<16xf32> to vector<16x1xf32>
    %cst_65 = arith.constant 2.560000e+02 : f32
    %147 = vector.broadcast %cst_65 : f32 to vector<16x1xf32>
    %148 = arith.divf %146, %147 : vector<16x1xf32>
    %149 = vector.broadcast %148 : vector<16x1xf32> to vector<16x256xf32>
    %150 = arith.subf %140, %149 : vector<16x256xf32>
    %151 = arith.mulf %150, %150 : vector<16x256xf32>
    %cst_66 = arith.constant dense<0.000000e+00> : vector<16xf32>
    %152 = vector.multi_reduction <add>, %151, %cst_66 [1] : vector<16x256xf32> to vector<16xf32>
    %153 = vector.shape_cast %152 : vector<16xf32> to vector<16x1xf32>
    %cst_67 = arith.constant 2.560000e+02 : f32
    %154 = vector.broadcast %cst_67 : f32 to vector<16x1xf32>
    %155 = arith.divf %153, %154 : vector<16x1xf32>
    %cst_68 = arith.constant 9.99999996E-13 : f32
    %156 = vector.broadcast %cst_68 : f32 to vector<16x1xf32>
    %157 = arith.addf %155, %156 : vector<16x1xf32>
    %158 = math.rsqrt %157 : vector<16x1xf32>
    %159 = vector.broadcast %158 : vector<16x1xf32> to vector<16x256xf32>
    %160 = arith.mulf %150, %159 : vector<16x256xf32>
    %161 = vector.broadcast %142 : vector<1x256xf32> to vector<16x256xf32>
    %162 = arith.mulf %160, %161 : vector<16x256xf32>
    %163 = vector.broadcast %144 : vector<1x256xf32> to vector<16x256xf32>
    %164 = arith.addf %162, %163 : vector<16x256xf32>
    %165 = arith.truncf %164 : vector<16x256xf32> to vector<16x256xbf16>
    %c1_69 = arith.constant 1 : index
    %c0_70 = arith.constant 0 : index
    %c0_71 = arith.constant 0 : index
    %166 = vector.load %arg3[%c1_69, %c0_70, %c0_71] : memref<2x256x768xbf16, #tpu.memory_space<vmem>>, vector<1x256x768xbf16>
    %167 = vector.shape_cast %166 : vector<1x256x768xbf16> to vector<256x768xbf16>
    %cst_72 = arith.constant dense<0.000000e+00> : vector<16x768xf32>
    %168 = tpu.matmul %165, %167, %cst_72 {dimension_numbers = #tpu.dot_dimension_numbers<[1], [0], [0], [1], [0, 0, 1, 1], [], []>} : vector<16x256xbf16>, vector<256x768xbf16>, vector<16x768xf32> -> vector<16x768xf32>
    %c1_73 = arith.constant 1 : index
    %c0_74 = arith.constant 0 : index
    %c0_75 = arith.constant 0 : index
    %169 = vector.load %arg4[%c1_73, %c0_74, %c0_75] : memref<2x1x768xf32, #tpu.memory_space<vmem>>, vector<1x1x768xf32>
    %170 = vector.shape_cast %169 : vector<1x1x768xf32> to vector<1x768xf32>
    %171 = vector.broadcast %170 : vector<1x768xf32> to vector<16x768xf32>
    %172 = arith.addf %168, %171 : vector<16x768xf32>
    %173 = vector.extract_strided_slice %172 {offsets = [0, 0], sizes = [16, 256], strides = [1, 1]} : vector<16x768xf32> to vector<16x256xf32>
    %174 = vector.extract_strided_slice %173 {offsets = [0, 0], sizes = [16, 128], strides = [1, 1]} : vector<16x256xf32> to vector<16x128xf32>
    %175 = vector.shape_cast %174 : vector<16x128xf32> to vector<2x8x128xf32>
    %176 = vector.extract_strided_slice %173 {offsets = [0, 128], sizes = [16, 128], strides = [1, 1]} : vector<16x256xf32> to vector<16x128xf32>
    %177 = vector.shape_cast %176 : vector<16x128xf32> to vector<2x8x128xf32>
    %178 = tpu.concatenate %175, %177 in 0 : vector<2x8x128xf32>, vector<2x8x128xf32> -> vector<4x8x128xf32>
    %179 = arith.truncf %178 : vector<4x8x128xf32> to vector<4x8x128xbf16>
    %180 = vector.extract_strided_slice %172 {offsets = [0, 256], sizes = [16, 256], strides = [1, 1]} : vector<16x768xf32> to vector<16x256xf32>
    %181 = vector.extract_strided_slice %180 {offsets = [0, 0], sizes = [16, 128], strides = [1, 1]} : vector<16x256xf32> to vector<16x128xf32>
    %182 = vector.shape_cast %181 : vector<16x128xf32> to vector<2x8x128xf32>
    %183 = vector.extract_strided_slice %180 {offsets = [0, 128], sizes = [16, 128], strides = [1, 1]} : vector<16x256xf32> to vector<16x128xf32>
    %184 = vector.shape_cast %183 : vector<16x128xf32> to vector<2x8x128xf32>
    %185 = tpu.concatenate %182, %184 in 0 : vector<2x8x128xf32>, vector<2x8x128xf32> -> vector<4x8x128xf32>
    %186 = arith.truncf %185 : vector<4x8x128xf32> to vector<4x8x128xbf16>
    %187 = vector.extract_strided_slice %172 {offsets = [0, 512], sizes = [16, 256], strides = [1, 1]} : vector<16x768xf32> to vector<16x256xf32>
    %188 = vector.extract_strided_slice %187 {offsets = [0, 0], sizes = [16, 128], strides = [1, 1]} : vector<16x256xf32> to vector<16x128xf32>
    %189 = vector.shape_cast %188 : vector<16x128xf32> to vector<2x8x128xf32>
    %190 = vector.extract_strided_slice %187 {offsets = [0, 128], sizes = [16, 128], strides = [1, 1]} : vector<16x256xf32> to vector<16x128xf32>
    %191 = vector.shape_cast %190 : vector<16x128xf32> to vector<2x8x128xf32>
    %192 = tpu.concatenate %189, %191 in 0 : vector<2x8x128xf32>, vector<2x8x128xf32> -> vector<4x8x128xf32>
    %193 = arith.truncf %192 : vector<4x8x128xf32> to vector<4x8x128xbf16>
    "tpu.trace_start"() <{level = 10 : i32, message = "bqd,bkd->bqk"}> : () -> ()
    %cst_76 = arith.constant dense<0.000000e+00> : vector<4x8x8xf32>
    %194 = tpu.matmul %179, %186, %cst_76 {dimension_numbers = #tpu.dot_dimension_numbers<[2], [2], [1], [1], [0, 0, 0, 1, 1, 1], [0], [0]>} : vector<4x8x128xbf16>, vector<4x8x128xbf16>, vector<4x8x8xf32> -> vector<4x8x8xf32>
    %cst_77 = arith.constant -1.000000e+30 : f32
    "tpu.trace_stop"() : () -> ()
    %195 = vector.broadcast %cst_77 : f32 to vector<4x8x8xf32>
    %196 = arith.select %4, %194, %195 : vector<4x8x8xi1>, vector<4x8x8xf32>
    %cst_78 = arith.constant dense<0xFF800000> : vector<4x8xf32>
    %197 = vector.multi_reduction <maximumf>, %196, %cst_78 [2] : vector<4x8x8xf32> to vector<4x8xf32>
    %198 = vector.shape_cast %197 : vector<4x8xf32> to vector<4x8x1xf32>
    %199 = vector.broadcast %198 : vector<4x8x1xf32> to vector<4x8x8xf32>
    %200 = arith.subf %196, %199 : vector<4x8x8xf32>
    %201 = math.exp %200 : vector<4x8x8xf32>
    %cst_79 = arith.constant dense<0.000000e+00> : vector<4x8xf32>
    %202 = vector.multi_reduction <add>, %201, %cst_79 [2] : vector<4x8x8xf32> to vector<4x8xf32>
    %203 = vector.shape_cast %202 : vector<4x8xf32> to vector<4x8x1xf32>
    %204 = tpu.reciprocal %203 {approx = true} : vector<4x8x1xf32> -> vector<4x8x1xf32>
    %205 = vector.broadcast %204 : vector<4x8x1xf32> to vector<4x8x8xf32>
    %206 = arith.mulf %201, %205 : vector<4x8x8xf32>
    %207 = arith.truncf %206 : vector<4x8x8xf32> to vector<4x8x8xbf16>
    "tpu.trace_start"() <{level = 10 : i32, message = "bqk,bkd->bqd"}> : () -> ()
    %cst_80 = arith.constant dense<0.000000e+00> : vector<4x8x128xf32>
    %208 = tpu.matmul %207, %193, %cst_80 {dimension_numbers = #tpu.dot_dimension_numbers<[2], [1], [1], [2], [0, 0, 0, 1, 1, 2], [0], [0]>} : vector<4x8x8xbf16>, vector<4x8x128xbf16>, vector<4x8x128xf32> -> vector<4x8x128xf32>
    "tpu.trace_stop"() : () -> ()
    %209 = vector.extract_strided_slice %208 {offsets = [0, 0, 0], sizes = [2, 8, 128], strides = [1, 1, 1]} : vector<4x8x128xf32> to vector<2x8x128xf32>
    %210 = vector.shape_cast %209 : vector<2x8x128xf32> to vector<16x128xf32>
    %211 = vector.extract_strided_slice %208 {offsets = [2, 0, 0], sizes = [2, 8, 128], strides = [1, 1, 1]} : vector<4x8x128xf32> to vector<2x8x128xf32>
    %212 = vector.shape_cast %211 : vector<2x8x128xf32> to vector<16x128xf32>
    %213 = tpu.concatenate %210, %212 in 1 : vector<16x128xf32>, vector<16x128xf32> -> vector<16x256xf32>
    %214 = arith.truncf %213 : vector<16x256xf32> to vector<16x256xbf16>
    %c1_81 = arith.constant 1 : index
    %c0_82 = arith.constant 0 : index
    %c0_83 = arith.constant 0 : index
    %215 = vector.load %arg5[%c1_81, %c0_82, %c0_83] : memref<2x256x256xbf16, #tpu.memory_space<vmem>>, vector<1x256x256xbf16>
    %216 = vector.shape_cast %215 : vector<1x256x256xbf16> to vector<256x256xbf16>
    %cst_84 = arith.constant dense<0.000000e+00> : vector<16x256xf32>
    %217 = tpu.matmul %214, %216, %cst_84 {dimension_numbers = #tpu.dot_dimension_numbers<[1], [0], [0], [1], [0, 0, 1, 1], [], []>} : vector<16x256xbf16>, vector<256x256xbf16>, vector<16x256xf32> -> vector<16x256xf32>
    %218 = arith.addf %140, %217 : vector<16x256xf32>
    %c1_85 = arith.constant 1 : index
    %c0_86 = arith.constant 0 : index
    %c0_87 = arith.constant 0 : index
    %219 = vector.load %arg6[%c1_85, %c0_86, %c0_87] : memref<2x1x256xf32, #tpu.memory_space<vmem>>, vector<1x1x256xf32>
    %220 = vector.shape_cast %219 : vector<1x1x256xf32> to vector<1x256xf32>
    %221 = vector.broadcast %220 : vector<1x256xf32> to vector<16x256xf32>
    %222 = arith.addf %218, %221 : vector<16x256xf32>
    %c1_88 = arith.constant 1 : index
    %c0_89 = arith.constant 0 : index
    %c0_90 = arith.constant 0 : index
    %223 = vector.load %arg7[%c1_88, %c0_89, %c0_90] : memref<2x1x256xf32, #tpu.memory_space<vmem>>, vector<1x1x256xf32>
    %224 = vector.shape_cast %223 : vector<1x1x256xf32> to vector<1x256xf32>
    %c1_91 = arith.constant 1 : index
    %c0_92 = arith.constant 0 : index
    %c0_93 = arith.constant 0 : index
    %225 = vector.load %arg8[%c1_91, %c0_92, %c0_93] : memref<2x1x256xf32, #tpu.memory_space<vmem>>, vector<1x1x256xf32>
    %226 = vector.shape_cast %225 : vector<1x1x256xf32> to vector<1x256xf32>
    %cst_94 = arith.constant dense<0.000000e+00> : vector<16xf32>
    %227 = vector.multi_reduction <add>, %222, %cst_94 [1] : vector<16x256xf32> to vector<16xf32>
    %228 = vector.shape_cast %227 : vector<16xf32> to vector<16x1xf32>
    %cst_95 = arith.constant 2.560000e+02 : f32
    %229 = vector.broadcast %cst_95 : f32 to vector<16x1xf32>
    %230 = arith.divf %228, %229 : vector<16x1xf32>
    %231 = vector.broadcast %230 : vector<16x1xf32> to vector<16x256xf32>
    %232 = arith.subf %222, %231 : vector<16x256xf32>
    %233 = arith.mulf %232, %232 : vector<16x256xf32>
    %cst_96 = arith.constant dense<0.000000e+00> : vector<16xf32>
    %234 = vector.multi_reduction <add>, %233, %cst_96 [1] : vector<16x256xf32> to vector<16xf32>
    %235 = vector.shape_cast %234 : vector<16xf32> to vector<16x1xf32>
    %cst_97 = arith.constant 2.560000e+02 : f32
    %236 = vector.broadcast %cst_97 : f32 to vector<16x1xf32>
    %237 = arith.divf %235, %236 : vector<16x1xf32>
    %cst_98 = arith.constant 9.99999996E-13 : f32
    %238 = vector.broadcast %cst_98 : f32 to vector<16x1xf32>
    %239 = arith.addf %237, %238 : vector<16x1xf32>
    %240 = math.rsqrt %239 : vector<16x1xf32>
    %241 = vector.broadcast %240 : vector<16x1xf32> to vector<16x256xf32>
    %242 = arith.mulf %232, %241 : vector<16x256xf32>
    %243 = vector.broadcast %224 : vector<1x256xf32> to vector<16x256xf32>
    %244 = arith.mulf %242, %243 : vector<16x256xf32>
    %245 = vector.broadcast %226 : vector<1x256xf32> to vector<16x256xf32>
    %246 = arith.addf %244, %245 : vector<16x256xf32>
    %247 = arith.truncf %246 : vector<16x256xf32> to vector<16x256xbf16>
    %c1_99 = arith.constant 1 : index
    %c0_100 = arith.constant 0 : index
    %c0_101 = arith.constant 0 : index
    %248 = vector.load %arg9[%c1_99, %c0_100, %c0_101] : memref<2x256x1024xbf16, #tpu.memory_space<vmem>>, vector<1x256x1024xbf16>
    %249 = vector.shape_cast %248 : vector<1x256x1024xbf16> to vector<256x1024xbf16>
    %cst_102 = arith.constant dense<0.000000e+00> : vector<16x1024xf32>
    %250 = tpu.matmul %247, %249, %cst_102 {dimension_numbers = #tpu.dot_dimension_numbers<[1], [0], [0], [1], [0, 0, 1, 1], [], []>} : vector<16x256xbf16>, vector<256x1024xbf16>, vector<16x1024xf32> -> vector<16x1024xf32>
    %c1_103 = arith.constant 1 : index
    %c0_104 = arith.constant 0 : index
    %c0_105 = arith.constant 0 : index
    %251 = vector.load %arg10[%c1_103, %c0_104, %c0_105] : memref<2x1x1024xf32, #tpu.memory_space<vmem>>, vector<1x1x1024xf32>
    %252 = vector.shape_cast %251 : vector<1x1x1024xf32> to vector<1x1024xf32>
    %253 = vector.broadcast %252 : vector<1x1024xf32> to vector<16x1024xf32>
    %254 = arith.addf %250, %253 : vector<16x1024xf32>
    %cst_106 = arith.constant 5.000000e-01 : f32
    %255 = vector.broadcast %cst_106 : f32 to vector<16x1024xf32>
    %256 = arith.mulf %255, %254 : vector<16x1024xf32>
    %cst_107 = arith.constant 4.471500e-02 : f32
    %257 = vector.broadcast %cst_107 : f32 to vector<16x1024xf32>
    %258 = arith.mulf %257, %254 : vector<16x1024xf32>
    %259 = arith.mulf %258, %254 : vector<16x1024xf32>
    %260 = arith.mulf %259, %254 : vector<16x1024xf32>
    %261 = arith.addf %254, %260 : vector<16x1024xf32>
    %cst_108 = arith.constant 0.797884583 : f32
    %262 = vector.broadcast %cst_108 : f32 to vector<16x1024xf32>
    %263 = arith.mulf %262, %261 : vector<16x1024xf32>
    %264 = math.tanh %263 : vector<16x1024xf32>
    %cst_109 = arith.constant 1.000000e+00 : f32
    %265 = vector.broadcast %cst_109 : f32 to vector<16x1024xf32>
    %266 = arith.addf %265, %264 : vector<16x1024xf32>
    %267 = arith.mulf %256, %266 : vector<16x1024xf32>
    %268 = arith.truncf %267 : vector<16x1024xf32> to vector<16x1024xbf16>
    %c1_110 = arith.constant 1 : index
    %c0_111 = arith.constant 0 : index
    %c0_112 = arith.constant 0 : index
    %269 = vector.load %arg11[%c1_110, %c0_111, %c0_112] : memref<2x1024x256xbf16, #tpu.memory_space<vmem>>, vector<1x1024x256xbf16>
    %270 = vector.shape_cast %269 : vector<1x1024x256xbf16> to vector<1024x256xbf16>
    %cst_113 = arith.constant dense<0.000000e+00> : vector<16x256xf32>
    %271 = tpu.matmul %268, %270, %cst_113 {dimension_numbers = #tpu.dot_dimension_numbers<[1], [0], [0], [1], [0, 0, 1, 1], [], []>} : vector<16x1024xbf16>, vector<1024x256xbf16>, vector<16x256xf32> -> vector<16x256xf32>
    %272 = arith.addf %222, %271 : vector<16x256xf32>
    %c1_114 = arith.constant 1 : index
    %c0_115 = arith.constant 0 : index
    %c0_116 = arith.constant 0 : index
    %273 = vector.load %arg12[%c1_114, %c0_115, %c0_116] : memref<2x1x256xf32, #tpu.memory_space<vmem>>, vector<1x1x256xf32>
    %274 = vector.shape_cast %273 : vector<1x1x256xf32> to vector<1x256xf32>
    %275 = vector.broadcast %274 : vector<1x256xf32> to vector<16x256xf32>
    %276 = arith.addf %272, %275 : vector<16x256xf32>
    %c0_117 = arith.constant 0 : index
    %c0_118 = arith.constant 0 : index
    %277 = vector.load %arg13[%c0_117, %c0_118] : memref<1x256xf32, #tpu.memory_space<vmem>>, vector<1x256xf32>
    %c0_119 = arith.constant 0 : index
    %c0_120 = arith.constant 0 : index
    %278 = vector.load %arg14[%c0_119, %c0_120] : memref<1x256xf32, #tpu.memory_space<vmem>>, vector<1x256xf32>
    %cst_121 = arith.constant dense<0.000000e+00> : vector<16xf32>
    %279 = vector.multi_reduction <add>, %276, %cst_121 [1] : vector<16x256xf32> to vector<16xf32>
    %280 = vector.shape_cast %279 : vector<16xf32> to vector<16x1xf32>
    %cst_122 = arith.constant 2.560000e+02 : f32
    %281 = vector.broadcast %cst_122 : f32 to vector<16x1xf32>
    %282 = arith.divf %280, %281 : vector<16x1xf32>
    %283 = vector.broadcast %282 : vector<16x1xf32> to vector<16x256xf32>
    %284 = arith.subf %276, %283 : vector<16x256xf32>
    %285 = arith.mulf %284, %284 : vector<16x256xf32>
    %cst_123 = arith.constant dense<0.000000e+00> : vector<16xf32>
    %286 = vector.multi_reduction <add>, %285, %cst_123 [1] : vector<16x256xf32> to vector<16xf32>
    %287 = vector.shape_cast %286 : vector<16xf32> to vector<16x1xf32>
    %cst_124 = arith.constant 2.560000e+02 : f32
    %288 = vector.broadcast %cst_124 : f32 to vector<16x1xf32>
    %289 = arith.divf %287, %288 : vector<16x1xf32>
    %cst_125 = arith.constant 9.99999996E-13 : f32
    %290 = vector.broadcast %cst_125 : f32 to vector<16x1xf32>
    %291 = arith.addf %289, %290 : vector<16x1xf32>
    %292 = math.rsqrt %291 : vector<16x1xf32>
    %293 = vector.broadcast %292 : vector<16x1xf32> to vector<16x256xf32>
    %294 = arith.mulf %284, %293 : vector<16x256xf32>
    %295 = vector.broadcast %277 : vector<1x256xf32> to vector<16x256xf32>
    %296 = arith.mulf %294, %295 : vector<16x256xf32>
    %297 = vector.broadcast %278 : vector<1x256xf32> to vector<16x256xf32>
    %298 = arith.addf %296, %297 : vector<16x256xf32>
    %299 = arith.truncf %298 : vector<16x256xf32> to vector<16x256xbf16>
    %c0_126 = arith.constant 0 : index
    %c0_127 = arith.constant 0 : index
    %300 = vector.load %arg15[%c0_126, %c0_127] : memref<256x128xbf16, #tpu.memory_space<vmem>>, vector<256x128xbf16>
    %cst_128 = arith.constant dense<0.000000e+00> : vector<16x128xf32>
    %301 = tpu.matmul %299, %300, %cst_128 {dimension_numbers = #tpu.dot_dimension_numbers<[1], [0], [0], [1], [0, 0, 1, 1], [], []>} : vector<16x256xbf16>, vector<256x128xbf16>, vector<16x128xf32> -> vector<16x128xf32>
    %c0_129 = arith.constant 0 : index
    %c0_130 = arith.constant 0 : index
    %302 = vector.load %arg16[%c0_129, %c0_130] : memref<1x128xf32, #tpu.memory_space<vmem>>, vector<1x128xf32>
    %303 = vector.broadcast %302 : vector<1x128xf32> to vector<16x128xf32>
    %304 = arith.addf %301, %303 : vector<16x128xf32>
    %c0_131 = arith.constant 0 : index
    %c0_132 = arith.constant 0 : index
    %305 = vector.load %arg17[%c0_131, %c0_132] : memref<16x128xf32, #tpu.memory_space<vmem>>, vector<16x128xf32>
    tpu.vector_store %arg17[%c0_131, %c0_132], %304 {strides = array<i32>} : memref<16x128xf32, #tpu.memory_space<vmem>>, vector<16x128xf32>,
    return
  }
}

</mosaic_0001>

<bundles_post_ra>
// kernel: _lambda_.2
= control target key start
LH: loop header
LB: loop body
LE: loop exit
PB: predicated region body
PF: predicated region fallthrough
CT: control target
= control target key end

     0   :  { %s1359_s1 = inlined_call_operand.vmem [shape: bf16[768,256], index: 1, kind: input, shape index: {}]   ;;  %s1360_s0 = inlined_call_operand.vmem [shape: bf16[8,768], index: 0, kind: input, shape index: {}]   ;;  %s1361_s2 = inlined_call_operand.vmem [shape: f32[1,256], index: 2, kind: input, shape index: {}]   ;;  %s1362_s3 = inlined_call_operand.vmem [shape: bf16[8,256], index: 3, kind: output, shape index: {}]  }
   0x1   :  { %v874_v0 = vld [vmem:[%s1359_s1 + $0x104] ss:$8 sps:$4 sm:$0xff]   ;;  %v876_v1 = vld [vmem:[%s1359_s1 + $0x100] ss:$8 sps:$4 sm:$0xff]   ;;  %v877_v2 = vld [vmem:[%s1359_s1 + $0x114] ss:$8 sps:$4 sm:$0xff]  }
   0x2   :  { %667 = vmatprep.subr.bf16.mxu0 %v874_v0  ;;  %v879_v3 = vld [vmem:[%s1359_s1 + $0x110] ss:$8 sps:$4 sm:$0xff]   ;;  %v880_v4 = vld [vmem:[%s1359_s1 + $0x124] ss:$8 sps:$4 sm:$0xff]   ;;  %v882_v5 = vld [vmem:[%s1359_s1 + $0x120] ss:$8 sps:$4 sm:$0xff]  }
   0x3   :  { %668 = vmatpush1.bf16.msra.mxu0 %v876_v1  ;;  %v883_v6 = vld [vmem:[%s1359_s1 + $0x134] ss:$8 sps:$4 sm:$0xff]   ;;  %v885_v7 = vld [vmem:[%s1359_s1 + $0x130] ss:$8 sps:$4 sm:$0xff]   ;;  %v886_v8 = vld [vmem:[%s1359_s1 + $0x144] ss:$8 sps:$4 sm:$0xff]  }
   0x4   :  { %669 = vmatprep.subr.bf16.mxu0 %v877_v2  ;;  %v888_v9 = vld [vmem:[%s1359_s1 + $0x140] ss:$8 sps:$4 sm:$0xff]   ;;  %v889_v10 = vld [vmem:[%s1359_s1 + $0x154] ss:$8 sps:$4 sm:$0xff]   ;;  %v891_v11 = vld [vmem:[%s1359_s1 + $0x150] ss:$8 sps:$4 sm:$0xff]  }
   0x5   :  { %v892_v12 = vld [vmem:[%s1359_s1 + $0x164] ss:$8 sps:$4 sm:$0xff]   ;;  %v921_v14 = vld [vmem:[%s1359_s1] ss:$8 sps:$4 sm:$0xff]   ;;  %v895_v16 = vld [vmem:[%s1359_s1 + $0x174] ss:$8 sps:$4 sm:$0xff]  }
   0x6   :  { %v919_v13 = vld [vmem:[%s1359_s1 + $0x4] ss:$8 sps:$4 sm:$0xff]   ;;  %v894_v15 = vld [vmem:[%s1359_s1 + $0x160] ss:$8 sps:$4 sm:$0xff]   ;;  %v925_v17 = vld [vmem:[%s1359_s1 + $0x14] ss:$8 sps:$4 sm:$0xff]  }
   0x7   :  { %670 = vmatpush1.bf16.msra.mxu0 %v879_v3  ;;  %626 = vmatprep.subr.bf16.mxu1 %v919_v13  ;;  %v927_v18 = vld [vmem:[%s1359_s1 + $0x10] ss:$8 sps:$4 sm:$0xff]   ;;  %v1104_v19 = vld [vmem:[%s1360_s0 + $0x8] sm:$0xff]  ;;  %v939_v25 = vld [vmem:[%s1359_s1 + $0x34] ss:$8 sps:$4 sm:$0xff]  }
   0x8   :  { %671 = vmatprep.subr.bf16.mxu0 %v880_v4  ;;  %627 = vmatpush1.bf16.msra.mxu1 %v921_v14  ;;  %v765_v20 = vcombine.high %v1104_v19, %v1104_v19  ;;  %v897_v21 = vld [vmem:[%s1359_s1 + $0x170] ss:$8 sps:$4 sm:$0xff]   ;;  %v933_v22 = vld [vmem:[%s1359_s1 + $0x24] ss:$8 sps:$4 sm:$0xff]   ;;  %v935_v23 = vld [vmem:[%s1359_s1 + $0x20] ss:$8 sps:$4 sm:$0xff]   ;;  %v764_v58 = vcombine.low %v1104_v19, %v1104_v19 }
   0x9   :  { %628 = vmatprep.subr.bf16.mxu1 %v925_v17  ;;  %v898_v24 = vld [vmem:[%s1359_s1 + $0x184] ss:$8 sps:$4 sm:$0xff]   ;;  %v900_v26 = vld [vmem:[%s1359_s1 + $0x180] ss:$8 sps:$4 sm:$0xff]   ;;  %v901_v27 = vld [vmem:[%s1359_s1 + $0x194] ss:$8 sps:$4 sm:$0xff]  }
   0xa   :  { %699 = vmatprep.mubr.bf16.mxu0 %v765_v20  ;;  %v941_v28 = vld [vmem:[%s1359_s1 + $0x30] ss:$8 sps:$4 sm:$0xff]   ;;  %v945_v29 = vld [vmem:[%s1359_s1 + $0x44] ss:$8 sps:$4 sm:$0xff]   ;;  %v947_v32 = vld [vmem:[%s1359_s1 + $0x40] ss:$8 sps:$4 sm:$0xff]  }
   0xb   :  { %672 = vmatpush1.bf16.msra.mxu0 %v882_v5  ;;  %v903_v30 = vld [vmem:[%s1359_s1 + $0x190] ss:$8 sps:$4 sm:$0xff]   ;;  %v904_v31 = vld [vmem:[%s1359_s1 + $0x1a4] ss:$8 sps:$4 sm:$0xff]   ;;  %v951_v33 = vld [vmem:[%s1359_s1 + $0x54] ss:$8 sps:$4 sm:$0xff]  }
   0xc   :  { %673 = vmatprep.subr.bf16.mxu0 %v883_v6  ;;  %629 = vmatpush1.bf16.msra.mxu1 %v927_v18  ;;  %v906_v34 = vld [vmem:[%s1359_s1 + $0x1a0] ss:$8 sps:$4 sm:$0xff]   ;;  %v907_v35 = vld [vmem:[%s1359_s1 + $0x1b4] ss:$8 sps:$4 sm:$0xff]   ;;  %v953_v36 = vld [vmem:[%s1359_s1 + $0x50] ss:$8 sps:$4 sm:$0xff]  }
   0xd   :  { %630 = vmatprep.subr.bf16.mxu1 %v933_v22  ;;  %v957_v37 = vld [vmem:[%s1359_s1 + $0x64] ss:$8 sps:$4 sm:$0xff]   ;;  %v909_v38 = vld [vmem:[%s1359_s1 + $0x1b0] ss:$8 sps:$4 sm:$0xff]   ;;  %v959_v40 = vld [vmem:[%s1359_s1 + $0x60] ss:$8 sps:$4 sm:$0xff]  }
   0xe   :  { %v910_v39 = vld [vmem:[%s1359_s1 + $0x1c4] ss:$8 sps:$4 sm:$0xff]   ;;  %v963_v41 = vld [vmem:[%s1359_s1 + $0x74] ss:$8 sps:$4 sm:$0xff]   ;;  %v912_v42 = vld [vmem:[%s1359_s1 + $0x1c0] ss:$8 sps:$4 sm:$0xff]  }
   0xf   :  { %674 = vmatpush1.bf16.msra.mxu0 %v885_v7  ;;  %v913_v43 = vld [vmem:[%s1359_s1 + $0x1d4] ss:$8 sps:$4 sm:$0xff]   ;;  %v965_v44 = vld [vmem:[%s1359_s1 + $0x70] ss:$8 sps:$4 sm:$0xff]   ;;  %v969_v45 = vld [vmem:[%s1359_s1 + $0x84] ss:$8 sps:$4 sm:$0xff]  }
  0x10   :  { %675 = vmatprep.subr.bf16.mxu0 %v886_v8  ;;  %631 = vmatpush1.bf16.msra.mxu1 %v935_v23  ;;  %v915_v46 = vld [vmem:[%s1359_s1 + $0x1d0] ss:$8 sps:$4 sm:$0xff]   ;;  %v916_v47 = vld [vmem:[%s1359_s1 + $0x1e4] ss:$8 sps:$4 sm:$0xff]   ;;  %v971_v48 = vld [vmem:[%s1359_s1 + $0x80] ss:$8 sps:$4 sm:$0xff]  }
  0x11   :  { %632 = vmatprep.subr.bf16.mxu1 %v939_v25  ;;  %v975_v49 = vld [vmem:[%s1359_s1 + $0x94] ss:$8 sps:$4 sm:$0xff]   ;;  %v918_v50 = vld [vmem:[%s1359_s1 + $0x1e0] ss:$8 sps:$4 sm:$0xff]   ;;  %v977_v52 = vld [vmem:[%s1359_s1 + $0x90] ss:$8 sps:$4 sm:$0xff]  }
  0x12   :  { %v922_v51 = vld [vmem:[%s1359_s1 + $0x1f4] ss:$8 sps:$4 sm:$0xff]   ;;  %v981_v53 = vld [vmem:[%s1359_s1 + $0xa4] ss:$8 sps:$4 sm:$0xff]   ;;  %v924_v54 = vld [vmem:[%s1359_s1 + $0x1f0] ss:$8 sps:$4 sm:$0xff]  }
  0x13   :  { %676 = vmatpush1.bf16.msra.mxu0 %v888_v9  ;;  %v932_v55 = vld [vmem:[%s1359_s1 + $0x204] ss:$8 sps:$4 sm:$0xff]   ;;  %v983_v56 = vld [vmem:[%s1359_s1 + $0xa0] ss:$8 sps:$4 sm:$0xff]   ;;  %v987_v57 = vld [vmem:[%s1359_s1 + $0xb4] ss:$8 sps:$4 sm:$0xff]  }
  0x14   :  { %677 = vmatprep.subr.bf16.mxu0 %v889_v10  ;;  %633 = vmatpush1.bf16.msra.mxu1 %v941_v28  ;;  %v930_v59 = vld [vmem:[%s1359_s1 + $0x200] ss:$8 sps:$4 sm:$0xff]   ;;  %v989_v60 = vld [vmem:[%s1359_s1 + $0xb0] ss:$8 sps:$4 sm:$0xff]   ;;  %v938_v62 = vld [vmem:[%s1359_s1 + $0x214] ss:$8 sps:$4 sm:$0xff]  }
  0x15   :  { %634 = vmatprep.subr.bf16.mxu1 %v945_v29  ;;  %v14_v61 = vld [vmem:[%s1360_s0] sm:$0xff]  ;;  %v1239_v1 = vld [vmem:[%s1360_s0 + $0x10] sm:$0xff] }
  0x16   :  { %v993_v63 = vld [vmem:[%s1359_s1 + $0xc4] ss:$8 sps:$4 sm:$0xff]   ;;  %v763_v0 = vcombine.high %v14_v61, %v14_v61  ;;  %v767_v2 = vcombine.high %v1239_v1, %v1239_v1  ;;  %v936_v3 = vld [vmem:[%s1359_s1 + $0x210] ss:$8 sps:$4 sm:$0xff]   ;;  %v995_v4 = vld [vmem:[%s1359_s1 + $0xc0] ss:$8 sps:$4 sm:$0xff]   ;;  %v762_v18 = vcombine.low %v14_v61, %v14_v61 }
  0x17   :  { %678 = vmatpush1.bf16.msra.mxu0 %v891_v11  ;;  %v944_v5 = vld [vmem:[%s1359_s1 + $0x224] ss:$8 sps:$4 sm:$0xff]   ;;  %v999_v6 = vld [vmem:[%s1359_s1 + $0xd4] ss:$8 sps:$4 sm:$0xff]   ;;  %v942_v7 = vld [vmem:[%s1359_s1 + $0x220] ss:$8 sps:$4 sm:$0xff]  }
  0x18   :  { %679 = vmatprep.subr.bf16.mxu0 %v892_v12  ;;  %635 = vmatpush1.bf16.msra.mxu1 %v947_v32  ;;  %v1001_v8 = vld [vmem:[%s1359_s1 + $0xd0] ss:$8 sps:$4 sm:$0xff]   ;;  %v950_v9 = vld [vmem:[%s1359_s1 + $0x234] ss:$8 sps:$4 sm:$0xff]   ;;  %v1005_v10 = vld [vmem:[%s1359_s1 + $0xe4] ss:$8 sps:$4 sm:$0xff]  }
  0x19   :  { %636 = vmatprep.subr.bf16.mxu1 %v951_v33  ;;  %658 = vmatprep.mubr.bf16.mxu1 %v763_v0  ;;  %v948_v11 = vld [vmem:[%s1359_s1 + $0x230] ss:$8 sps:$4 sm:$0xff]   ;;  %v1007_v12 = vld [vmem:[%s1359_s1 + $0xe0] ss:$8 sps:$4 sm:$0xff]   ;;  %v956_v13 = vld [vmem:[%s1359_s1 + $0x244] ss:$8 sps:$4 sm:$0xff]  }
  0x1a   :  { %v1011_v14 = vld [vmem:[%s1359_s1 + $0xf4] ss:$8 sps:$4 sm:$0xff]   ;;  %v960_v19 = vld [vmem:[%s1359_s1 + $0x250] ss:$8 sps:$4 sm:$0xff]   ;;  %v968_v20 = vld [vmem:[%s1359_s1 + $0x264] ss:$8 sps:$4 sm:$0xff]  }
  0x1b   :  { %680 = vmatpush1.bf16.msra.mxu0 %v894_v15  ;;  %v954_v15 = vld [vmem:[%s1359_s1 + $0x240] ss:$8 sps:$4 sm:$0xff]   ;;  %v962_v17 = vld [vmem:[%s1359_s1 + $0x254] ss:$8 sps:$4 sm:$0xff]   ;;  %v972_v23 = vld [vmem:[%s1359_s1 + $0x270] ss:$8 sps:$4 sm:$0xff]  }
  0x1c   :  { %681 = vmatprep.subr.bf16.mxu0 %v895_v16  ;;  %637 = vmatpush1.bf16.msra.mxu1 %v953_v36  ;;  %v1013_v16 = vld [vmem:[%s1359_s1 + $0xf0] ss:$8 sps:$4 sm:$0xff]   ;;  %v974_v22 = vld [vmem:[%s1359_s1 + $0x274] ss:$8 sps:$4 sm:$0xff]   ;;  %v978_v25 = vld [vmem:[%s1359_s1 + $0x280] ss:$8 sps:$4 sm:$0xff]  }
  0x1d   :  { %638 = vmatprep.subr.bf16.mxu1 %v957_v37  ;;  %v992_v28 = vld [vmem:[%s1359_s1 + $0x2a4] ss:$8 sps:$4 sm:$0xff]   ;;  %v990_v29 = vld [vmem:[%s1359_s1 + $0x2a0] ss:$8 sps:$4 sm:$0xff]  }
  0x1e   :  { %v1004_v32 = vld [vmem:[%s1359_s1 + $0x2c4] ss:$8 sps:$4 sm:$0xff]   ;;  %v1002_v33 = vld [vmem:[%s1359_s1 + $0x2c0] ss:$8 sps:$4 sm:$0xff]  }
  0x1f   :  { %682 = vmatpush1.bf16.msra.mxu0 %v897_v21  ;;  %v966_v21 = vld [vmem:[%s1359_s1 + $0x260] ss:$8 sps:$4 sm:$0xff]   ;;  %v1016_v36 = vld [vmem:[%s1359_s1 + $0x2e4] ss:$8 sps:$4 sm:$0xff]  }
  0x20   :  { %683 = vmatprep.subr.bf16.mxu0 %v898_v24  ;;  %639 = vmatpush1.bf16.msra.mxu1 %v959_v40  ;;  %v980_v24 = vld [vmem:[%s1359_s1 + $0x284] ss:$8 sps:$4 sm:$0xff]   ;;  %v1014_v37 = vld [vmem:[%s1359_s1 + $0x2e0] ss:$8 sps:$4 sm:$0xff]   ;;  %v766_v40 = vcombine.low %v1239_v1, %v1239_v1 }
  0x21   :  { %640 = vmatprep.subr.bf16.mxu1 %v963_v41 }
  0x23   :  { %684 = vmatpush1.bf16.msra.mxu0 %v900_v26  ;;  %v986_v26 = vld [vmem:[%s1359_s1 + $0x294] ss:$8 sps:$4 sm:$0xff]  }
  0x24   :  { %685 = vmatprep.subr.bf16.mxu0 %v901_v27  ;;  %641 = vmatpush1.bf16.msra.mxu1 %v965_v44  ;;  %v984_v27 = vld [vmem:[%s1359_s1 + $0x290] ss:$8 sps:$4 sm:$0xff]  }
  0x25   :  { %642 = vmatprep.subr.bf16.mxu1 %v969_v45  ;;  %v115_v45 = vlaneseq }
  0x27   :  { %686 = vmatpush1.bf16.msra.mxu0 %v903_v30  ;;  %v998_v30 = vld [vmem:[%s1359_s1 + $0x2b4] ss:$8 sps:$4 sm:$0xff]  }
  0x28   :  { %687 = vmatprep.subr.bf16.mxu0 %v904_v31  ;;  %643 = vmatpush1.bf16.msra.mxu1 %v971_v48  ;;  %v996_v31 = vld [vmem:[%s1359_s1 + $0x2b0] ss:$8 sps:$4 sm:$0xff]   ;;  %v113_v48 = vld [vmem:[%s1361_s2] sm:$0x3] }
  0x29   :  { %644 = vmatprep.subr.bf16.mxu1 %v975_v49 }
  0x2b   :  { %688 = vmatpush1.bf16.msra.mxu0 %v906_v34  ;;  %v1010_v34 = vld [vmem:[%s1359_s1 + $0x2d4] ss:$8 sps:$4 sm:$0xff]  }
  0x2c   :  { %689 = vmatprep.subr.bf16.mxu0 %v907_v35  ;;  %645 = vmatpush1.bf16.msra.mxu1 %v977_v52  ;;  %v1008_v35 = vld [vmem:[%s1359_s1 + $0x2d0] ss:$8 sps:$4 sm:$0xff]  }
  0x2d   :  { %646 = vmatprep.subr.bf16.mxu1 %v981_v53 }
  0x2f   :  { %690 = vmatpush1.bf16.msra.mxu0 %v909_v38  ;;  %v1021_v38 = vld [vmem:[%s1359_s1 + $0x2f4] ss:$8 sps:$4 sm:$0xff]  }
  0x30   :  { %691 = vmatprep.subr.bf16.mxu0 %v910_v39  ;;  %647 = vmatpush1.bf16.msra.mxu1 %v983_v56  ;;  %v1019_v39 = vld [vmem:[%s1359_s1 + $0x2f0] ss:$8 sps:$4 sm:$0xff]  }
  0x31   :  { %648 = vmatprep.subr.bf16.mxu1 %v987_v57 }
  0x33   :  { %692 = vmatpush1.bf16.msra.mxu0 %v912_v42 }
  0x34   :  { %693 = vmatprep.subr.bf16.mxu0 %v913_v43  ;;  %649 = vmatpush1.bf16.msra.mxu1 %v989_v60 }
  0x35   :  { %650 = vmatprep.subr.bf16.mxu1 %v993_v63 }
  0x37   :  { %694 = vmatpush1.bf16.msra.mxu0 %v915_v46  ;;  %v116_v46 = vshrl.u32 %v115_v45, 7 }
  0x38   :  { %695 = vmatprep.subr.bf16.mxu0 %v916_v47  ;;  %651 = vmatpush1.bf16.msra.mxu1 %v995_v4 }
  0x39   :  { %652 = vmatprep.subr.bf16.mxu1 %v999_v6  ;;  %v117_v47 = vsub.s32 0, %v116_v46  ;;  %v121_v49 = vsub.s32 1, %v116_v46 }
  0x3b   :  { %696 = vmatpush1.bf16.msra.mxu0 %v918_v50  ;;  %v118_v50 = vrot.slane %v113_v48, %v117_v47 }
  0x3c   :  { %697 = vmatprep.subr.bf16.mxu0 %v922_v51  ;;  %653 = vmatpush1.bf16.msra.mxu1 %v1001_v8  ;;  %v122_v51 = vrot.slane %v113_v48, %v121_v49 }
  0x3d   :  { %654 = vmatprep.subr.bf16.mxu1 %v1005_v10 }
  0x3f   :  { %698 = vmatpush1.bf16.msra.mxu0 %v924_v54 }
  0x40   :  { %708 = vmatprep.subr.bf16.mxu0 %v932_v55  ;;  %655 = vmatpush1.bf16.msra.mxu1 %v1007_v12 }
  0x41   :  { %656 = vmatprep.subr.bf16.mxu1 %v1011_v14 }
  0x42   :  { %700 = vmatmul.mubr.bf16.vlgmr.msra.gmra.mrb[0].mxu0 %v764_v58 }
  0x43   :  { %709 = vmatpush1.bf16.msra.mxu0 %v930_v59  ;;  %740 = vmatprep.mubr.bf16.mxu0 %v767_v2 }
  0x44   :  { %710 = vmatprep.subr.bf16.mxu0 %v938_v62  ;;  %657 = vmatpush1.bf16.msra.mxu1 %v1013_v16 }
  0x47   :  { %711 = vmatpush1.bf16.msra.mxu0 %v936_v3  ;;  %659 = vmatmul.mubr.bf16.vlgmr.msra.gmra.mrb[0].mxu1 %v762_v18 }
  0x48   :  { %712 = vmatprep.subr.bf16.mxu0 %v944_v5 }
  0x4b   :  { %713 = vmatpush1.bf16.msra.mxu0 %v942_v7 }
  0x4c   :  { %714 = vmatprep.subr.bf16.mxu0 %v950_v9 }
  0x4f   :  { %715 = vmatpush1.bf16.msra.mxu0 %v948_v11 }
  0x50   :  { %716 = vmatprep.subr.bf16.mxu0 %v956_v13 }
  0x53   :  { %717 = vmatpush1.bf16.msra.mxu0 %v954_v15 }
  0x54   :  { %718 = vmatprep.subr.bf16.mxu0 %v962_v17 }
  0x57   :  { %719 = vmatpush1.bf16.msra.mxu0 %v960_v19 }
  0x58   :  { %720 = vmatprep.subr.bf16.mxu0 %v968_v20 }
  0x5b   :  { %721 = vmatpush1.bf16.msra.mxu0 %v966_v21 }
  0x5c   :  { %722 = vmatprep.subr.bf16.mxu0 %v974_v22 }
  0x5f   :  { %723 = vmatpush1.bf16.msra.mxu0 %v972_v23 }
  0x60   :  { %724 = vmatprep.subr.bf16.mxu0 %v980_v24 }
  0x63   :  { %725 = vmatpush1.bf16.msra.mxu0 %v978_v25 }
  0x64   :  { %726 = vmatprep.subr.bf16.mxu0 %v986_v26 }
  0x67   :  { %727 = vmatpush1.bf16.msra.mxu0 %v984_v27 }
  0x68   :  { %728 = vmatprep.subr.bf16.mxu0 %v992_v28 }
  0x6b   :  { %729 = vmatpush1.bf16.msra.mxu0 %v990_v29 }
  0x6c   :  { %730 = vmatprep.subr.bf16.mxu0 %v998_v30 }
  0x6f   :  { %731 = vmatpush1.bf16.msra.mxu0 %v996_v31 }
  0x70   :  { %732 = vmatprep.subr.bf16.mxu0 %v1004_v32 }
  0x73   :  { %733 = vmatpush1.bf16.msra.mxu0 %v1002_v33 }
  0x74   :  { %734 = vmatprep.subr.bf16.mxu0 %v1010_v34 }
  0x77   :  { %735 = vmatpush1.bf16.msra.mxu0 %v1008_v35 }
  0x78   :  { %736 = vmatprep.subr.bf16.mxu0 %v1016_v36 }
  0x7b   :  { %737 = vmatpush1.bf16.msra.mxu0 %v1014_v37 }
  0x7c   :  { %738 = vmatprep.subr.bf16.mxu0 %v1021_v38 }
  0x7f   :  { %739 = vmatpush1.bf16.msra.mxu0 %v1019_v39 }
  0x82   :  { %741 = vmatmul.mubr.bf16.vlgmr.msra.gmra.mrb[0].mxu0 %v766_v40 }
 0x11a   :  { %v660_v41 = vpop.f32.mrb[0].mxu1 }
 0x11b   :  { %v662_v42 = vpop.f32.mrb[1].mxu1  ;;  %v661_v52 = vadd.f32 %v660_v41, %v118_v50 }
 0x11c   :  { %v664_v43 = vpop.f32.mrb[2].mxu1  ;;  %v663_v53 = vadd.f32 %v662_v42, %v122_v51 }
 0x11d   :  { %v665_v44 = vpop.f32.mrb[3].mxu1 }
 0x155   :  { %v742_v54 = vpop.f32.mrb[0].mxu0 }
 0x156   :  { %v867_v55 = vadd.f32 %v742_v54, %v661_v52  ;;  %v744_v56 = vpop.f32.mrb[1].mxu0 }
 0x157   :  { %v869_v57 = vadd.f32 %v744_v56, %v663_v53  ;;  %v746_v58 = vpop.f32.mrb[2].mxu0 }
 0x158   :  { %v747_v59 = vpop.f32.mrb[3].mxu0 }
 0x159   :  { %v865_v60 = vpack.c.bf16 %v869_v57, %v867_v55 }
 0x15b   :  { %757 = vst [vmem:[%s1362_s3] sm:$0xff] %v865_v60 }

// kernel: _lambda_.3
= control target key start
LH: loop header
LB: loop body
LE: loop exit
PB: predicated region body
PF: predicated region fallthrough
CT: control target
= control target key end

     0   :  { %s11204_s0 = inlined_call_operand.hbm [shape: bf16[16,256], index: 0, kind: input, shape index: {}]   ;;  %s11205_s1 = inlined_call_operand.hbm [shape: f32[2,1,256], index: 1, kind: input, shape index: {}, may-alias: {1,7}]   ;;  %s11206_s2 = inlined_call_operand.hbm [shape: f32[2,1,256], index: 2, kind: input, shape index: {}, may-alias: {2,6,8,12}]   ;;  %s11207_s3 = inlined_call_operand.hbm [shape: bf16[2,256,768], index: 3, kind: input, shape index: {}]   ;;  %s11208_s4 = inlined_call_operand.hbm [shape: f32[2,1,768], index: 4, kind: input, shape index: {}]   ;;  %s11209_s5 = inlined_call_operand.hbm [shape: bf16[2,256,256], index: 5, kind: input, shape index: {}]   ;;  %s11210_s6 = inlined_call_operand.hbm [shape: f32[2,1,256], index: 6, kind: input, shape index: {}, may-alias: {2,6,8,12}]   ;;  %s11211_s7 = inlined_call_operand.hbm [shape: f32[2,1,256], index: 7, kind: input, shape index: {}, may-alias: {1,7}]   ;;  %s11212_s8 = inlined_call_operand.hbm [shape: f32[2,1,256], index: 8, kind: input, shape index: {}, may-alias: {2,6,8,12}]   ;;  %s11213_s9 = inlined_call_operand.hbm [shape: bf16[2,256,1024], index: 9, kind: input, shape index: {}]   ;;  %s11214_s10 = inlined_call_operand.hbm [shape: f32[2,1,1024], index: 10, kind: input, shape index: {}]   ;;  %s11215_s11 = inlined_call_operand.hbm [shape: bf16[2,1024,256], index: 11, kind: input, shape index: {}]   ;;  %s11216_s12 = inlined_call_operand.hbm [shape: f32[2,1,256], index: 12, kind: input, shape index: {}, may-alias: {2,6,8,12}]   ;;  %s11217_s13 = inlined_call_operand.hbm [shape: f32[1,256], index: 13, kind: input, shape index: {}]   ;;  %s11218_s14 = inlined_call_operand.hbm [shape: f32[1,256], index: 14, kind: input, shape index: {}]   ;;  %s11219_s15 = inlined_call_operand.hbm [shape: bf16[256,128], index: 15, kind: input, shape index: {}]   ;;  %s11220_s16 = inlined_call_operand.hbm [shape: f32[1,128], index: 16, kind: input, shape index: {}]   ;;  %s11221_s17 = inlined_call_operand.hbm [shape: f32[16,128], index: 17, kind: output, shape index: {}]  }
   0x1   :  { %11229 = sst [smem:[#allocation40_spill]] %s11204_s0 }
   0x2   :  { %11230 = sst [smem:[#allocation41_spill]] %s11205_s1 }
   0x3   :  { %11231 = sst [smem:[#allocation42_spill]] %s11221_s17 }
   0x4   :  { %22 = vsyncpa [#allocation3], 0 }
   0x5   :  { %23 = vsyncpa [#allocation6], 0 }
   0x6   :  { %24 = vsyncpa [#allocation9], 0 }
   0x7   :  { %25 = vsyncpa [#allocation12], 0 }
   0x8   :  { %26 = vsyncpa [#allocation15], 0 }
   0x9   :  { %27 = vsyncpa [#allocation18], 0 }
   0xa   :  { %28 = vsyncpa [#allocation21], 0 }
   0xb   :  { %29 = vsyncpa [#allocation24], 0 }
   0xc   :  { %30 = vsyncpa [#allocation27], 0 }
   0xd   :  { %31 = vsyncpa [#allocation4], 0  ;;  %s10145_s24 = smov [#allocation5]   ;;  %s11232_s28 = sld [smem:[#allocation41_spill]] }
   0xe   :  { %s49_s25 = sshll.u32 %s10145_s24, 4  ;;  %s50_s25 = int_to_ptr.vmem [resolvable:$true] %s49_s25 }
  0x13   :  { %s9729_s29 = scalar_lea.hbm %s11232_s28, 64 }
  0x14   :  { %p9730_p0 = scmp.ne.s32.totalorder %s11232_s28, %s9729_s29  ;;  %p9733_p1 = scmp.lt.u32.totalorder %s9729_s29, %s11232_s28 }
  0x16   :  { %p9735_p2 = pnand %p9733_p1, %p9730_p0 }
  0x18   :  { %9738 = shalt.err (!%p9735_p2)
}
  0x19   :  { %s9739_s1 = scalar_lea.vmem %s50_s25, 64  ;;  %p9744_p4 = scmp.lt.s32.totalorder %s50_s25, %s50_s25 }
  0x1a   :  { %p9740_p3 = scmp.ne.s32.totalorder %s50_s25, %s9739_s1  ;;  %p9745_p5 = scmp.lt.s32.totalorder %s9739_s1, %s9739_s1 }
  0x1c   :  { %p9746_p6 = por %p9745_p5, %p9744_p4 }
  0x1e   :  { %p9747_p7 = pnand %p9746_p6, %p9740_p3 }
  0x20   :  { %9750 = shalt.err (!%p9747_p7)
}
  0x21   :  { %s11225_s20 = smov 32   ;;  %s11227_s21 = smov 2  }
  0x22   :  { %55 = dma.hbm_to_vmem [thread:$0]  %s11232_s28, 64, %s50_s25, [#allocation6], %s11225_s20, %s11225_s20, %s11227_s21  }
  0x23   :  { %s10148_s24 = smov [#allocation8]   ;;  %s9751_s0 = scalar_lea.hbm %s11207_s3, 24576 }
  0x24   :  { %s73_s26 = sshll.u32 %s10148_s24, 4  ;;  %p9752_p8 = scmp.ne.s32.totalorder %s11207_s3, %s9751_s0  ;;  %s74_s26 = int_to_ptr.vmem [resolvable:$true] %s73_s26 }
  0x25   :  { %p9755_p9 = scmp.lt.u32.totalorder %s9751_s0, %s11207_s3 }
  0x27   :  { %p9757_p10 = pnand %p9755_p9, %p9752_p8 }
  0x29   :  { %9760 = shalt.err (!%p9757_p10)
}
  0x2a   :  { %s9761_s17 = scalar_lea.vmem %s74_s26, 24576  ;;  %p9766_p12 = scmp.lt.s32.totalorder %s74_s26, %s74_s26 }
  0x2b   :  { %p9762_p11 = scmp.ne.s32.totalorder %s74_s26, %s9761_s17  ;;  %p9767_p13 = scmp.lt.s32.totalorder %s9761_s17, %s9761_s17 }
  0x2d   :  { %p9768_p0 = por %p9767_p13, %p9766_p12 }
  0x2f   :  { %p9769_p1 = pnand %p9768_p0, %p9762_p11 }
  0x31   :  { %9772 = shalt.err (!%p9769_p1)
}
  0x32   :  { %s10149_s25 = smov 384   ;;  %s10150_s28 = smov 24  }
  0x33   :  { %79 = dma.hbm_to_vmem [thread:$0]  %s11207_s3, 24576, %s74_s26, [#allocation9], %s10149_s25, %s10149_s25, %s10150_s28  }
  0x34   :  { %s10151_s24 = smov [#allocation11]   ;;  %s10152_s29 = smov [#allocation14]  }
  0x35   :  { %s97_s27 = sshll.u32 %s10151_s24, 4  ;;  %s121_s30 = sshll.u32 %s10152_s29, 4  ;;  %s98_s27 = int_to_ptr.vmem [resolvable:$true] %s97_s27  ;;  %s10293_s30 = int_to_ptr.vmem [resolvable:$true] %s121_s30 }
  0x36   :  { %s9773_s17 = scalar_lea.hbm %s11209_s5, 8192 }
  0x37   :  { %p9774_p2 = scmp.ne.s32.totalorder %s11209_s5, %s9773_s17  ;;  %p9777_p3 = scmp.lt.u32.totalorder %s9773_s17, %s11209_s5 }
  0x39   :  { %p9779_p4 = pnand %p9777_p3, %p9774_p2 }
  0x3b   :  { %9782 = shalt.err (!%p9779_p4)
}
  0x3c   :  { %s9783_s3 = scalar_lea.vmem %s98_s27, 8192  ;;  %p9788_p6 = scmp.lt.s32.totalorder %s98_s27, %s98_s27 }
  0x3d   :  { %p9784_p5 = scmp.ne.s32.totalorder %s98_s27, %s9783_s3  ;;  %p9789_p7 = scmp.lt.s32.totalorder %s9783_s3, %s9783_s3 }
  0x3f   :  { %p9790_p8 = por %p9789_p7, %p9788_p6 }
  0x41   :  { %p9791_p9 = pnand %p9790_p8, %p9784_p5 }
  0x43   :  { %9794 = shalt.err (!%p9791_p9)
}
  0x44   :  { %s10153_s26 = smov 128   ;;  %s10154_s25 = smov 8  }
  0x45   :  { %103 = dma.hbm_to_vmem [thread:$0]  %s11209_s5, 8192, %s98_s27, [#allocation12], %s10153_s26, %s10153_s26, %s10154_s25  }
  0x46   :  { %s9795_s23 = scalar_lea.hbm %s11211_s7, 64 }
  0x47   :  { %p9796_p10 = scmp.ne.s32.totalorder %s11211_s7, %s9795_s23  ;;  %p9799_p11 = scmp.lt.u32.totalorder %s9795_s23, %s11211_s7 }
  0x49   :  { %p9801_p12 = pnand %p9799_p11, %p9796_p10 }
  0x4b   :  { %9804 = shalt.err (!%p9801_p12)
}
  0x4c   :  { %s9805_s17 = scalar_lea.vmem %s10293_s30, 64  ;;  %p9810_p0 = scmp.lt.s32.totalorder %s10293_s30, %s10293_s30 }
  0x4d   :  { %p9806_p13 = scmp.ne.s32.totalorder %s10293_s30, %s9805_s17  ;;  %p9811_p1 = scmp.lt.s32.totalorder %s9805_s17, %s9805_s17 }
  0x4f   :  { %p9812_p2 = por %p9811_p1, %p9810_p0 }
  0x51   :  { %p9813_p3 = pnand %p9812_p2, %p9806_p13 }
  0x53   :  { %9816 = shalt.err (!%p9813_p3)
}
  0x54   :  { %s11233_s5 = smov 2   ;;  %s11234_s27 = smov 32  }
  0x55   :  { %127 = dma.hbm_to_vmem [thread:$0]  %s11211_s7, 64, %s10293_s30, [#allocation15], %s11234_s27, %s11234_s27, %s11233_s5  }
  0x56   :  { %s10155_s3 = smov [#allocation17]   ;;  %s10156_s22 = smov [#allocation20]  }
  0x57   :  { %s145_s28 = sshll.u32 %s10155_s3, 4  ;;  %s169_s20 = sshll.u32 %s10156_s22, 4  ;;  %s146_s28 = int_to_ptr.vmem [resolvable:$true] %s145_s28  ;;  %s170_s20 = int_to_ptr.vmem [resolvable:$true] %s169_s20 }
  0x58   :  { %s9817_s24 = scalar_lea.hbm %s11213_s9, 32768 }
  0x59   :  { %p9818_p4 = scmp.ne.s32.totalorder %s11213_s9, %s9817_s24  ;;  %p9821_p5 = scmp.lt.u32.totalorder %s9817_s24, %s11213_s9 }
  0x5b   :  { %p9823_p6 = pnand %p9821_p5, %p9818_p4 }
  0x5d   :  { %9826 = shalt.err (!%p9823_p6)
}
  0x5e   :  { %s9827_s7 = scalar_lea.vmem %s146_s28, 32768  ;;  %p9832_p8 = scmp.lt.s32.totalorder %s146_s28, %s146_s28 }
  0x5f   :  { %p9828_p7 = scmp.ne.s32.totalorder %s146_s28, %s9827_s7  ;;  %p9833_p9 = scmp.lt.s32.totalorder %s9827_s7, %s9827_s7 }
  0x61   :  { %p9834_p10 = por %p9833_p9, %p9832_p8 }
  0x63   :  { %p9835_p11 = pnand %p9834_p10, %p9828_p7 }
  0x65   :  { %9838 = shalt.err (!%p9835_p11)
}
  0x66   :  { %s10157_s30 = smov 512   ;;  %s9839_s21 = scalar_lea.hbm %s11215_s11, 32768 }
  0x67   :  { %151 = dma.hbm_to_vmem [thread:$0]  %s11213_s9, 32768, %s146_s28, [#allocation18], %s10157_s30, %s10157_s30, %s11234_s27  }
  0x68   :  { %p9840_p12 = scmp.ne.s32.totalorder %s11215_s11, %s9839_s21  ;;  %p9843_p13 = scmp.lt.u32.totalorder %s9839_s21, %s11215_s11 }
  0x6a   :  { %p9845_p0 = pnand %p9843_p13, %p9840_p12 }
  0x6c   :  { %9848 = shalt.err (!%p9845_p0)
}
  0x6d   :  { %s9849_s18 = scalar_lea.vmem %s170_s20, 32768  ;;  %p9854_p2 = scmp.lt.s32.totalorder %s170_s20, %s170_s20 }
  0x6e   :  { %p9850_p1 = scmp.ne.s32.totalorder %s170_s20, %s9849_s18  ;;  %p9855_p3 = scmp.lt.s32.totalorder %s9849_s18, %s9849_s18 }
  0x70   :  { %p9856_p4 = por %p9855_p3, %p9854_p2 }
  0x72   :  { %p9857_p5 = pnand %p9856_p4, %p9850_p1 }
  0x74   :  { %9860 = shalt.err (!%p9857_p5)
}
  0x75   :  { %175 = dma.hbm_to_vmem [thread:$0]  %s11215_s11, 32768, %s170_s20, [#allocation21], %s10153_s26, %s10153_s26, %s10154_s25  }
  0x76   :  { %s10158_s17 = smov [#allocation23]   ;;  %s10159_s30 = smov [#allocation26]  }
  0x77   :  { %s194_s7 = sshll.u32 %s10158_s17, 4  ;;  %s213_s19 = sshll.u32 %s10159_s30, 4  ;;  %s195_s7 = int_to_ptr.vmem [resolvable:$true] %s194_s7  ;;  %s214_s19 = int_to_ptr.vmem [resolvable:$true] %s213_s19 }
  0x78   :  { %s9861_s22 = scalar_lea.hbm %s11217_s13, 32 }
  0x79   :  { %p9862_p6 = scmp.ne.s32.totalorder %s11217_s13, %s9861_s22  ;;  %p9865_p7 = scmp.lt.u32.totalorder %s9861_s22, %s11217_s13 }
  0x7b   :  { %p9867_p8 = pnand %p9865_p7, %p9862_p6 }
  0x7d   :  { %9870 = shalt.err (!%p9867_p8)
}
  0x7e   :  { %s9871_s11 = scalar_lea.vmem %s195_s7, 32  ;;  %p9876_p10 = scmp.lt.s32.totalorder %s195_s7, %s195_s7 }
  0x7f   :  { %p9872_p9 = scmp.ne.s32.totalorder %s195_s7, %s9871_s11  ;;  %p9877_p11 = scmp.lt.s32.totalorder %s9871_s11, %s9871_s11 }
  0x81   :  { %p9878_p12 = por %p9877_p11, %p9876_p10 }
  0x83   :  { %p9879_p13 = pnand %p9878_p12, %p9872_p9 }
  0x85   :  { %9882 = shalt.err (!%p9879_p13)
}
  0x86   :  { %197 = dma.hbm_to_vmem [thread:$0]  %s11217_s13, 32, %s195_s7, [#allocation24]  }
  0x87   :  { %s9883_s28 = scalar_lea.hbm %s11219_s15, 2048 }
  0x88   :  { %p9884_p0 = scmp.ne.s32.totalorder %s11219_s15, %s9883_s28  ;;  %p9887_p1 = scmp.lt.u32.totalorder %s9883_s28, %s11219_s15 }
  0x8a   :  { %p9889_p2 = pnand %p9887_p1, %p9884_p0 }
  0x8c   :  { %9892 = shalt.err (!%p9889_p2)
}
  0x8d   :  { %s9893_s22 = scalar_lea.vmem %s214_s19, 2048  ;;  %p9898_p4 = scmp.lt.s32.totalorder %s214_s19, %s214_s19 }
  0x8e   :  { %p9894_p3 = scmp.ne.s32.totalorder %s214_s19, %s9893_s22  ;;  %p9899_p5 = scmp.lt.s32.totalorder %s9893_s22, %s9893_s22 }
  0x90   :  { %p9900_p6 = por %p9899_p5, %p9898_p4 }
  0x92   :  { %p9901_p7 = pnand %p9900_p6, %p9894_p3 }
  0x94   :  { %9904 = shalt.err (!%p9901_p7)
}
  0x95   :  { %s10160_s13 = smov 64   ;;  %s10161_s7 = smov 4  }
  0x96   :  { %219 = dma.hbm_to_vmem [thread:$0]  %s11219_s15, 2048, %s214_s19, [#allocation27], %s10160_s13, %s10160_s13, %s10161_s7  }
  0x97   :  { %s10162_s24 = smov [#allocation2]   ;;  %s10163_s11 = smov [#allocation7]  }
  0x98   :  { %s37_s29 = sshll.u32 %s10162_s24, 4  ;;  %s61_s20 = sshll.u32 %s10163_s11, 4  ;;  %s38_s29 = int_to_ptr.vmem [resolvable:$true] %s37_s29  ;;  %s62_s20 = int_to_ptr.vmem [resolvable:$true] %s61_s20 }
  0x99   :  { %s11235_s9 = sld [smem:[#allocation40_spill]] }
  0x9f   :  { %s9905_s28 = scalar_lea.hbm %s11235_s9, 256 }
  0xa0   :  { %p9906_p8 = scmp.ne.s32.totalorder %s11235_s9, %s9905_s28  ;;  %p9909_p9 = scmp.lt.u32.totalorder %s9905_s28, %s11235_s9 }
  0xa2   :  { %p9911_p10 = pnand %p9909_p9, %p9906_p8 }
  0xa4   :  { %9914 = shalt.err (!%p9911_p10)
}
  0xa5   :  { %s9915_s15 = scalar_lea.vmem %s38_s29, 256  ;;  %p9920_p12 = scmp.lt.s32.totalorder %s38_s29, %s38_s29 }
  0xa6   :  { %p9916_p11 = scmp.ne.s32.totalorder %s38_s29, %s9915_s15  ;;  %p9921_p13 = scmp.lt.s32.totalorder %s9915_s15, %s9915_s15 }
  0xa8   :  { %p9922_p0 = por %p9921_p13, %p9920_p12 }
  0xaa   :  { %p9923_p1 = pnand %p9922_p0, %p9916_p11 }
  0xac   :  { %9926 = shalt.err (!%p9923_p1)
}
  0xad   :  { %43 = dma.hbm_to_vmem [thread:$0]  %s11235_s9, 256, %s38_s29, [#allocation3], %s10153_s26, %s10153_s26, %s10154_s25  }
  0xae   :  { %s9927_s21 = scalar_lea.hbm %s11206_s2, 64 }
  0xaf   :  { %p9928_p2 = scmp.ne.s32.totalorder %s11206_s2, %s9927_s21  ;;  %p9931_p3 = scmp.lt.u32.totalorder %s9927_s21, %s11206_s2 }
  0xb1   :  { %p9933_p4 = pnand %p9931_p3, %p9928_p2 }
  0xb3   :  { %9936 = shalt.err (!%p9933_p4)
}
  0xb4   :  { %s9937_s18 = scalar_lea.vmem %s62_s20, 64  ;;  %p9942_p6 = scmp.lt.s32.totalorder %s62_s20, %s62_s20 }
  0xb5   :  { %p9938_p5 = scmp.ne.s32.totalorder %s62_s20, %s9937_s18  ;;  %p9943_p7 = scmp.lt.s32.totalorder %s9937_s18, %s9937_s18 }
  0xb7   :  { %p9944_p8 = por %p9943_p7, %p9942_p6 }
  0xb9   :  { %p9945_p9 = pnand %p9944_p8, %p9938_p5 }
  0xbb   :  { %9948 = shalt.err (!%p9945_p9)
}
  0xbc   :  { %67 = dma.hbm_to_vmem [thread:$0]  %s11206_s2, 64, %s62_s20, [#allocation6], %s11234_s27, %s11234_s27, %s11233_s5  }
  0xbd   :  { %s10164_s28 = smov [#allocation10]   ;;  %s9949_s3 = scalar_lea.hbm %s11208_s4, 192 }
  0xbe   :  { %s85_s17 = sshll.u32 %s10164_s28, 4  ;;  %p9950_p10 = scmp.ne.s32.totalorder %s11208_s4, %s9949_s3  ;;  %s86_s17 = int_to_ptr.vmem [resolvable:$true] %s85_s17 }
  0xbf   :  { %p9953_p11 = scmp.lt.u32.totalorder %s9949_s3, %s11208_s4 }
  0xc1   :  { %p9955_p12 = pnand %p9953_p11, %p9950_p10 }
  0xc3   :  { %9958 = shalt.err (!%p9955_p12)
}
  0xc4   :  { %s9959_s7 = scalar_lea.vmem %s86_s17, 192  ;;  %p9964_p0 = scmp.lt.s32.totalorder %s86_s17, %s86_s17 }
  0xc5   :  { %p9960_p13 = scmp.ne.s32.totalorder %s86_s17, %s9959_s7  ;;  %p9965_p1 = scmp.lt.s32.totalorder %s9959_s7, %s9959_s7 }
  0xc7   :  { %p9966_p2 = por %p9965_p1, %p9964_p0 }
  0xc9   :  { %p9967_p3 = pnand %p9966_p2, %p9960_p13 }
  0xcb   :  { %9970 = shalt.err (!%p9967_p3)
}
  0xcc   :  { %s10165_s2 = smov 96   ;;  %s10166_s20 = smov 6  }
  0xcd   :  { %91 = dma.hbm_to_vmem [thread:$0]  %s11208_s4, 192, %s86_s17, [#allocation9], %s10165_s2, %s10165_s2, %s10166_s20  }
  0xce   :  { %s10167_s24 = smov [#allocation13]   ;;  %s10168_s0 = smov [#allocation16]  }
  0xcf   :  { %s109_s11 = sshll.u32 %s10167_s24, 4  ;;  %s133_s18 = sshll.u32 %s10168_s0, 4  ;;  %s110_s11 = int_to_ptr.vmem [resolvable:$true] %s109_s11  ;;  %s10424_s18 = int_to_ptr.vmem [resolvable:$true] %s133_s18 }
  0xd0   :  { %s9971_s28 = scalar_lea.hbm %s11210_s6, 64 }
  0xd1   :  { %p9972_p4 = scmp.ne.s32.totalorder %s11210_s6, %s9971_s28  ;;  %p9975_p5 = scmp.lt.u32.totalorder %s9971_s28, %s11210_s6 }
  0xd3   :  { %p9977_p6 = pnand %p9975_p5, %p9972_p4 }
  0xd5   :  { %9980 = shalt.err (!%p9977_p6)
}
  0xd6   :  { %s9981_s4 = scalar_lea.vmem %s110_s11, 64  ;;  %p9986_p8 = scmp.lt.s32.totalorder %s110_s11, %s110_s11 }
  0xd7   :  { %p9982_p7 = scmp.ne.s32.totalorder %s110_s11, %s9981_s4  ;;  %p9987_p9 = scmp.lt.s32.totalorder %s9981_s4, %s9981_s4 }
  0xd9   :  { %p9988_p10 = por %p9987_p9, %p9986_p8 }
  0xdb   :  { %p9989_p11 = pnand %p9988_p10, %p9982_p7 }
  0xdd   :  { %9992 = shalt.err (!%p9989_p11)
}
  0xde   :  { %115 = dma.hbm_to_vmem [thread:$0]  %s11210_s6, 64, %s110_s11, [#allocation12], %s11234_s27, %s11234_s27, %s11233_s5  }
  0xdf   :  { %s9993_s7 = scalar_lea.hbm %s11212_s8, 64 }
  0xe0   :  { %p9994_p12 = scmp.ne.s32.totalorder %s11212_s8, %s9993_s7  ;;  %p9997_p13 = scmp.lt.u32.totalorder %s9993_s7, %s11212_s8 }
  0xe2   :  { %p9999_p0 = pnand %p9997_p13, %p9994_p12 }
  0xe4   :  { %10002 = shalt.err (!%p9999_p0)
}
  0xe5   :  { %s10003_s24 = scalar_lea.vmem %s10424_s18, 64  ;;  %p10008_p2 = scmp.lt.s32.totalorder %s10424_s18, %s10424_s18 }
  0xe6   :  { %p10004_p1 = scmp.ne.s32.totalorder %s10424_s18, %s10003_s24  ;;  %p10009_p3 = scmp.lt.s32.totalorder %s10003_s24, %s10003_s24 }
  0xe8   :  { %p10010_p4 = por %p10009_p3, %p10008_p2 }
  0xea   :  { %p10011_p5 = pnand %p10010_p4, %p10004_p1 }
  0xec   :  { %10014 = shalt.err (!%p10011_p5)
}
  0xed   :  { %139 = dma.hbm_to_vmem [thread:$0]  %s11212_s8, 64, %s10424_s18, [#allocation15], %s11234_s27, %s11234_s27, %s11233_s5  }
  0xee   :  { %s10169_s0 = smov [#allocation19]   ;;  %s10170_s9 = smov [#allocation22]  }
  0xef   :  { %s157_s29 = sshll.u32 %s10169_s0, 4  ;;  %s181_s28 = sshll.u32 %s10170_s9, 4  ;;  %s158_s29 = int_to_ptr.vmem [resolvable:$true] %s157_s29  ;;  %s10461_s28 = int_to_ptr.vmem [resolvable:$true] %s181_s28 }
  0xf0   :  { %s10015_s3 = scalar_lea.hbm %s11214_s10, 256 }
  0xf1   :  { %p10016_p6 = scmp.ne.s32.totalorder %s11214_s10, %s10015_s3  ;;  %p10019_p7 = scmp.lt.u32.totalorder %s10015_s3, %s11214_s10 }
  0xf3   :  { %p10021_p8 = pnand %p10019_p7, %p10016_p6 }
  0xf5   :  { %10024 = shalt.err (!%p10021_p8)
}
  0xf6   :  { %s10025_s8 = scalar_lea.vmem %s158_s29, 256  ;;  %p10030_p10 = scmp.lt.s32.totalorder %s158_s29, %s158_s29 }
  0xf7   :  { %p10026_p9 = scmp.ne.s32.totalorder %s158_s29, %s10025_s8  ;;  %p10031_p11 = scmp.lt.s32.totalorder %s10025_s8, %s10025_s8 }
  0xf9   :  { %p10032_p12 = por %p10031_p11, %p10030_p10 }
  0xfb   :  { %p10033_p13 = pnand %p10032_p12, %p10026_p9 }
  0xfd   :  { %10036 = shalt.err (!%p10033_p13)
}
  0xfe   :  { %163 = dma.hbm_to_vmem [thread:$0]  %s11214_s10, 256, %s158_s29, [#allocation18], %s10153_s26, %s10153_s26, %s10154_s25  }
  0xff   :  { %s10037_s2 = scalar_lea.hbm %s11216_s12, 64 }
 0x100   :  { %p10038_p0 = scmp.ne.s32.totalorder %s11216_s12, %s10037_s2  ;;  %p10041_p1 = scmp.lt.u32.totalorder %s10037_s2, %s11216_s12 }
 0x102   :  { %p10043_p2 = pnand %p10041_p1, %p10038_p0 }
 0x104   :  { %10046 = shalt.err (!%p10043_p2)
}
 0x105   :  { %s10047_s6 = scalar_lea.vmem %s10461_s28, 64  ;;  %p10052_p4 = scmp.lt.s32.totalorder %s10461_s28, %s10461_s28 }
 0x106   :  { %p10048_p3 = scmp.ne.s32.totalorder %s10461_s28, %s10047_s6  ;;  %p10053_p5 = scmp.lt.s32.totalorder %s10047_s6, %s10047_s6 }
 0x108   :  { %p10054_p6 = por %p10053_p5, %p10052_p4 }
 0x10a   :  { %p10055_p7 = pnand %p10054_p6, %p10048_p3 }
 0x10c   :  { %10058 = shalt.err (!%p10055_p7)
}
 0x10d   :  { %187 = dma.hbm_to_vmem [thread:$0]  %s11216_s12, 64, %s10461_s28, [#allocation21], %s11234_s27, %s11234_s27, %s11233_s5  }
 0x10e   :  { %s10171_s0 = smov [#allocation25]   ;;  %s10172_s9 = smov [#allocation28]  }
 0x10f   :  { %s204_s29 = sshll.u32 %s10171_s0, 4  ;;  %s226_s30 = sshll.u32 %s10172_s9, 4  ;;  %s205_s29 = int_to_ptr.vmem [resolvable:$true] %s204_s29  ;;  %s227_s30 = int_to_ptr.vmem [resolvable:$true] %s226_s30 }
 0x110   :  { %s10059_s15 = scalar_lea.hbm %s11218_s14, 32 }
 0x111   :  { %p10060_p8 = scmp.ne.s32.totalorder %s11218_s14, %s10059_s15  ;;  %p10063_p9 = scmp.lt.u32.totalorder %s10059_s15, %s11218_s14 }
 0x113   :  { %p10065_p10 = pnand %p10063_p9, %p10060_p8 }
 0x115   :  { %10068 = shalt.err (!%p10065_p10)
}
 0x116   :  { %s10069_s12 = scalar_lea.vmem %s205_s29, 32  ;;  %p10074_p12 = scmp.lt.s32.totalorder %s205_s29, %s205_s29 }
 0x117   :  { %p10070_p11 = scmp.ne.s32.totalorder %s205_s29, %s10069_s12  ;;  %p10075_p13 = scmp.lt.s32.totalorder %s10069_s12, %s10069_s12 }
 0x119   :  { %p10076_p0 = por %p10075_p13, %p10074_p12 }
 0x11b   :  { %p10077_p1 = pnand %p10076_p0, %p10070_p11 }
 0x11d   :  { %10080 = shalt.err (!%p10077_p1)
}
 0x11e   :  { %207 = dma.hbm_to_vmem [thread:$0]  %s11218_s14, 32, %s205_s29, [#allocation24]  }
 0x11f   :  { %s10081_s22 = scalar_lea.hbm %s11220_s16, 16 }
 0x120   :  { %p10082_p2 = scmp.ne.s32.totalorder %s11220_s16, %s10081_s22  ;;  %p10085_p3 = scmp.lt.u32.totalorder %s10081_s22, %s11220_s16 }
 0x122   :  { %p10087_p4 = pnand %p10085_p3, %p10082_p2 }
 0x124   :  { %10090 = shalt.err (!%p10087_p4)
}
 0x125   :  { %s10091_s21 = scalar_lea.vmem %s227_s30, 16  ;;  %s10095_s23 = scalar_lea.vmem %s227_s30, 32 }
 0x126   :  { %p10092_p5 = scmp.ne.s32.totalorder %s227_s30, %s10091_s21  ;;  %p10096_p6 = scmp.lt.s32.totalorder %s227_s30, %s227_s30 }
 0x127   :  { %p10097_p7 = scmp.lt.s32.totalorder %s10095_s23, %s10091_s21 }
 0x129   :  { %p10098_p8 = por %p10097_p7, %p10096_p6 }
 0x12b   :  { %p10099_p9 = pnand %p10098_p8, %p10092_p5 }
 0x12d   :  { %10102 = shalt.err (!%p10099_p9)
}
 0x12e   :  { %229 = dma.hbm_to_vmem [thread:$0]  %s11220_s16, 16, %s227_s30, [#allocation27]  }
 0x12f   :  { %10125 = dma.done.wait [#allocation3], 256  }
 0x130   :  { %10126 = vsyncadd [#allocation3], 4294967040 }
 0x131   :  { %10127 = dma.done.wait [#allocation6], 128  }
 0x132   :  { %10128 = vsyncadd [#allocation6], 4294967168 }
 0x133   :  { %10129 = dma.done.wait [#allocation9], 24768  }
 0x134   :  { %10130 = vsyncadd [#allocation9], 4294942528 }
 0x135   :  { %10131 = dma.done.wait [#allocation12], 8256  }
 0x136   :  { %10132 = vsyncadd [#allocation12], 4294959040 }
 0x137   :  { %10133 = dma.done.wait [#allocation15], 128  }
 0x138   :  { %10134 = vsyncadd [#allocation15], 4294967168 }
 0x139   :  { %10135 = dma.done.wait [#allocation18], 33024  }
 0x13a   :  { %10136 = vsyncadd [#allocation18], 4294934272 }
 0x13b   :  { %10137 = dma.done.wait [#allocation21], 32832  }
 0x13c   :  { %10138 = vsyncadd [#allocation21], 4294934464 }
 0x13d   :  { %10139 = dma.done.wait [#allocation24], 64  }
 0x13e   :  { %10140 = vsyncadd [#allocation24], 4294967232 }
 0x13f   :  { %10141 = dma.done.wait [#allocation27], 2064  }
 0x140   :  { %10142 = vsyncadd [#allocation27], 4294965232  ;;  %v282_v0 = vld [vmem:[#allocation2] sm:$0xff]  ;;  %v283_v1 = vld [vmem:[#allocation2 + $0x8] sm:$0xff]  ;;  %v288_v59 = vlaneseq  ;;  %vm10174_vm0 = vmmov 0   ;;  %vm1323_vm1 = vcmask 1043456  }
 0x141   :  { %v10522_v2 = vunpack.c.l.bf16 %v282_v0  ;;  %v10524_v3 = vunpack.c.h.bf16 %v282_v0  ;;  %v10526_v4 = vunpack.c.l.bf16 %v283_v1  ;;  %v10528_v5 = vunpack.c.h.bf16 %v283_v1  ;;  %v8829_v8 = vld [vmem:[#allocation8 + $0x4] ss:$24 sps:$4 sm:$0xff]   ;;  %v8831_v9 = vld [vmem:[#allocation8] ss:$24 sps:$4 sm:$0xff]   ;;  %v8832_v10 = vld [vmem:[#allocation8 + $0x34] ss:$24 sps:$4 sm:$0xff]  }
 0x142   :  { %966 = vmatprep.subr.bf16.mxu0 %v8829_v8  ;;  %v8834_v11 = vld [vmem:[#allocation8 + $0x30] ss:$24 sps:$4 sm:$0xff]   ;;  %v8835_v12 = vld [vmem:[#allocation8 + $0x64] ss:$24 sps:$4 sm:$0xff]   ;;  %v8837_v13 = vld [vmem:[#allocation8 + $0x60] ss:$24 sps:$4 sm:$0xff]  }
 0x143   :  { %v293_v6 = vadd.f32 %v10524_v3, %v10522_v2  ;;  %v296_v7 = vadd.f32 %v10528_v5, %v10526_v4  ;;  %967 = vmatpush1.bf16.msra.mxu0 %v8831_v9  ;;  %v8838_v14 = vld [vmem:[#allocation8 + $0x94] ss:$24 sps:$4 sm:$0xff]   ;;  %v8840_v15 = vld [vmem:[#allocation8 + $0x90] ss:$24 sps:$4 sm:$0xff]   ;;  %v8841_v16 = vld [vmem:[#allocation8 + $0xc4] ss:$24 sps:$4 sm:$0xff]  }
 0x144   :  { %968 = vmatprep.subr.bf16.mxu0 %v8832_v10  ;;  %v8843_v17 = vld [vmem:[#allocation8 + $0xc0] ss:$24 sps:$4 sm:$0xff]   ;;  %v8844_v18 = vld [vmem:[#allocation8 + $0xf4] ss:$24 sps:$4 sm:$0xff]   ;;  %v8846_v19 = vld [vmem:[#allocation8 + $0xf0] ss:$24 sps:$4 sm:$0xff]  }
 0x145   :  { %294 = vadd.xlane.f32.xlu0 %v293_v6  ;;  %v8847_v20 = vld [vmem:[#allocation8 + $0x124] ss:$24 sps:$4 sm:$0xff]   ;;  %v8849_v21 = vld [vmem:[#allocation8 + $0x120] ss:$24 sps:$4 sm:$0xff]   ;;  %v8850_v22 = vld [vmem:[#allocation8 + $0x154] ss:$24 sps:$4 sm:$0xff]  }
 0x146   :  { %v8852_v23 = vld [vmem:[#allocation8 + $0x150] ss:$24 sps:$4 sm:$0xff]   ;;  %v8853_v24 = vld [vmem:[#allocation8 + $0x184] ss:$24 sps:$4 sm:$0xff]   ;;  %v8855_v25 = vld [vmem:[#allocation8 + $0x180] ss:$24 sps:$4 sm:$0xff]  }
 0x147   :  { %969 = vmatpush1.bf16.msra.mxu0 %v8834_v11  ;;  %v8856_v26 = vld [vmem:[#allocation8 + $0x1b4] ss:$24 sps:$4 sm:$0xff]   ;;  %v8858_v41 = vld [vmem:[#allocation8 + $0x1b0] ss:$24 sps:$4 sm:$0xff]   ;;  %v8859_v42 = vld [vmem:[#allocation8 + $0x1e4] ss:$24 sps:$4 sm:$0xff]  }
 0x148   :  { %970 = vmatprep.subr.bf16.mxu0 %v8835_v12  ;;  %v8861_v43 = vld [vmem:[#allocation8 + $0x1e0] ss:$24 sps:$4 sm:$0xff]   ;;  %v8862_v44 = vld [vmem:[#allocation8 + $0x214] ss:$24 sps:$4 sm:$0xff]   ;;  %v8864_v45 = vld [vmem:[#allocation8 + $0x210] ss:$24 sps:$4 sm:$0xff]  }
 0x149   :  { %297 = vadd.xlane.f32.xlu0 %v296_v7  ;;  %v8865_v46 = vld [vmem:[#allocation8 + $0x244] ss:$24 sps:$4 sm:$0xff]   ;;  %v8867_v47 = vld [vmem:[#allocation8 + $0x240] ss:$24 sps:$4 sm:$0xff]   ;;  %v8868_v48 = vld [vmem:[#allocation8 + $0x274] ss:$24 sps:$4 sm:$0xff]  }
 0x14a   :  { %v8870_v49 = vld [vmem:[#allocation8 + $0x270] ss:$24 sps:$4 sm:$0xff]   ;;  %v8871_v50 = vld [vmem:[#allocation8 + $0x2a4] ss:$24 sps:$4 sm:$0xff]   ;;  %v8873_v51 = vld [vmem:[#allocation8 + $0x2a0] ss:$24 sps:$4 sm:$0xff]  }
 0x14b   :  { %971 = vmatpush1.bf16.msra.mxu0 %v8837_v13  ;;  %v8874_v52 = vld [vmem:[#allocation8 + $0x2d4] ss:$24 sps:$4 sm:$0xff]   ;;  %v8876_v53 = vld [vmem:[#allocation8 + $0x2d0] ss:$24 sps:$4 sm:$0xff]   ;;  %v10539_v62 = vshrl.u32 %v288_v59, 7  ;;  %vm1271_vm3 = vcmask 64512  }
 0x14c   :  { %972 = vmatprep.subr.bf16.mxu0 %v8838_v14  ;;  %v8879_v54 = vld [vmem:[#allocation8 + $0xc] ss:$24 sps:$4 sm:$0xff]   ;;  %v291_v1 = vld [vmem:[#allocation5] sm:$0x3]  ;;  %v292_v7 = vld [vmem:[#allocation7] sm:$0x3] }
 0x14d   :  { %v10542_v63 = vsub.s32 1, %v10539_v62  ;;  %v10545_v0 = vsub.s32 0, %v10539_v62  ;;  %s10175_s16 = smov [#allocation29]  }
 0x14e   :  { %s7811_s6 = sshll.u32 %s10175_s16, 4  ;;  %s7812_s6 = int_to_ptr.vmem [resolvable:$true] %s7811_s6 }
 0x14f   :  { %973 = vmatpush1.bf16.msra.mxu0 %v8840_v15  ;;  %v334_v9 = vrot.slane %v291_v1, %v10542_v63  ;;  %v330_v11 = vrot.slane %v291_v1, %v10545_v0  ;;  %v349_v13 = vrot.slane %v292_v7, %v10542_v63  ;;  %v345_v14 = vrot.slane %v292_v7, %v10545_v0  ;;  %v8928_v1 = vld [vmem:[#allocation8 + $0x40] ss:$24 sps:$4 sm:$0xff]   ;;  %v8931_v7 = vld [vmem:[#allocation8 + $0x70] ss:$24 sps:$4 sm:$0xff]   ;;  %s10103_s10 = scalar_lea.vmem %s7812_s6, 256  ;;  %p10108_p11 = scmp.lt.s32.totalorder %s7812_s6, %s7812_s6 }
 0x150   :  { %974 = vmatprep.subr.bf16.mxu0 %v8841_v16  ;;  %p10104_p10 = scmp.ne.s32.totalorder %s7812_s6, %s10103_s10  ;;  %p10109_p12 = scmp.lt.s32.totalorder %s10103_s10, %s10103_s10 }
 0x152   :  { %p10110_p13 = por %p10109_p12, %p10108_p11 }
 0x153   :  { %975 = vmatpush1.bf16.msra.mxu0 %v8843_v17 }
 0x154   :  { %976 = vmatprep.subr.bf16.mxu0 %v8844_v18  ;;  %p10111_p0 = pnand %p10110_p13, %p10104_p10 }
 0x157   :  { %977 = vmatpush1.bf16.msra.mxu0 %v8846_v19 }
 0x158   :  { %978 = vmatprep.subr.bf16.mxu0 %v8847_v20 }
 0x15b   :  { %979 = vmatpush1.bf16.msra.mxu0 %v8849_v21 }
 0x15c   :  { %980 = vmatprep.subr.bf16.mxu0 %v8850_v22 }
 0x15f   :  { %981 = vmatpush1.bf16.msra.mxu0 %v8852_v23 }
 0x160   :  { %982 = vmatprep.subr.bf16.mxu0 %v8853_v24 }
 0x163   :  { %983 = vmatpush1.bf16.msra.mxu0 %v8855_v25 }
 0x164   :  { %984 = vmatprep.subr.bf16.mxu0 %v8856_v26  ;;  %v8877_v26 = vld [vmem:[#allocation8 + $0x8] ss:$24 sps:$4 sm:$0xff]  }
 0x167   :  { %985 = vmatpush1.bf16.msra.mxu0 %v8858_v41  ;;  %v8898_v41 = vld [vmem:[#allocation8 + $0x158] ss:$24 sps:$4 sm:$0xff]  }
 0x168   :  { %986 = vmatprep.subr.bf16.mxu0 %v8859_v42  ;;  %v8903_v42 = vld [vmem:[#allocation8 + $0x18c] ss:$24 sps:$4 sm:$0xff]  }
 0x16b   :  { %987 = vmatpush1.bf16.msra.mxu0 %v8861_v43  ;;  %v8901_v43 = vld [vmem:[#allocation8 + $0x188] ss:$24 sps:$4 sm:$0xff]  }
 0x16c   :  { %988 = vmatprep.subr.bf16.mxu0 %v8862_v44  ;;  %v8906_v44 = vld [vmem:[#allocation8 + $0x1bc] ss:$24 sps:$4 sm:$0xff]  }
 0x16f   :  { %989 = vmatpush1.bf16.msra.mxu0 %v8864_v45  ;;  %v8904_v45 = vld [vmem:[#allocation8 + $0x1b8] ss:$24 sps:$4 sm:$0xff]  }
 0x170   :  { %990 = vmatprep.subr.bf16.mxu0 %v8865_v46  ;;  %v8909_v46 = vld [vmem:[#allocation8 + $0x1ec] ss:$24 sps:$4 sm:$0xff]  }
 0x173   :  { %991 = vmatpush1.bf16.msra.mxu0 %v8867_v47  ;;  %v8907_v47 = vld [vmem:[#allocation8 + $0x1e8] ss:$24 sps:$4 sm:$0xff]  }
 0x174   :  { %992 = vmatprep.subr.bf16.mxu0 %v8868_v48  ;;  %v8912_v48 = vld [vmem:[#allocation8 + $0x21c] ss:$24 sps:$4 sm:$0xff]  }
 0x177   :  { %993 = vmatpush1.bf16.msra.mxu0 %v8870_v49  ;;  %v8910_v49 = vld [vmem:[#allocation8 + $0x218] ss:$24 sps:$4 sm:$0xff]  }
 0x178   :  { %994 = vmatprep.subr.bf16.mxu0 %v8871_v50  ;;  %v8915_v50 = vld [vmem:[#allocation8 + $0x24c] ss:$24 sps:$4 sm:$0xff]  }
 0x17b   :  { %995 = vmatpush1.bf16.msra.mxu0 %v8873_v51  ;;  %v8913_v51 = vld [vmem:[#allocation8 + $0x248] ss:$24 sps:$4 sm:$0xff]  }
 0x17c   :  { %996 = vmatprep.subr.bf16.mxu0 %v8874_v52  ;;  %v8918_v52 = vld [vmem:[#allocation8 + $0x27c] ss:$24 sps:$4 sm:$0xff]  }
 0x17f   :  { %997 = vmatpush1.bf16.msra.mxu0 %v8876_v53  ;;  %v8916_v53 = vld [vmem:[#allocation8 + $0x278] ss:$24 sps:$4 sm:$0xff]  }
 0x180   :  { %1009 = vmatprep.subr.bf16.mxu0 %v8879_v54  ;;  %v8921_v54 = vld [vmem:[#allocation8 + $0x2ac] ss:$24 sps:$4 sm:$0xff]  }
 0x1d2   :  { %v295_v27 = vpop.xlane.xlu0 %294 }
 0x1d3   :  { %v300_v28 = vmul.f32 0.00390625, %v295_v27 }
 0x1d5   :  { %v302_v29 = vsub.f32 %v10522_v2, %v300_v28  ;;  %v303_v30 = vsub.f32 %v10524_v3, %v300_v28  ;;  %v8882_v28 = vld [vmem:[#allocation8 + $0x3c] ss:$24 sps:$4 sm:$0xff]  }
 0x1d6   :  { %v298_v31 = vpop.xlane.xlu0 %297 }
 0x1d7   :  { %v301_v32 = vmul.f32 0.00390625, %v298_v31  ;;  %v306_v33 = vmul.f32 %v302_v29, %v302_v29  ;;  %v307_v34 = vmul.f32 %v303_v30, %v303_v30  ;;  %v8883_v31 = vld [vmem:[#allocation8 + $0x68] ss:$24 sps:$4 sm:$0xff]  }
 0x1d9   :  { %v304_v35 = vsub.f32 %v10526_v4, %v301_v32  ;;  %v305_v36 = vsub.f32 %v10528_v5, %v301_v32  ;;  %v310_v37 = vadd.f32 %v307_v34, %v306_v33  ;;  %v8888_v32 = vld [vmem:[#allocation8 + $0x9c] ss:$24 sps:$4 sm:$0xff]   ;;  %v8886_v33 = vld [vmem:[#allocation8 + $0x98] ss:$24 sps:$4 sm:$0xff]   ;;  %v8891_v34 = vld [vmem:[#allocation8 + $0xcc] ss:$24 sps:$4 sm:$0xff]  }
 0x1db   :  { %311 = vadd.xlane.f32.xlu1 %v310_v37  ;;  %v308_v38 = vmul.f32 %v304_v35, %v304_v35  ;;  %v309_v39 = vmul.f32 %v305_v36, %v305_v36  ;;  %v8892_v37 = vld [vmem:[#allocation8 + $0xf8] ss:$24 sps:$4 sm:$0xff]  }
 0x1dd   :  { %v313_v40 = vadd.f32 %v309_v39, %v308_v38  ;;  %v8897_v38 = vld [vmem:[#allocation8 + $0x12c] ss:$24 sps:$4 sm:$0xff]   ;;  %v8895_v39 = vld [vmem:[#allocation8 + $0x128] ss:$24 sps:$4 sm:$0xff]  }
 0x1df   :  { %314 = vadd.xlane.f32.xlu1 %v313_v40  ;;  %v8900_v40 = vld [vmem:[#allocation8 + $0x15c] ss:$24 sps:$4 sm:$0xff]  }
 0x268   :  { %v312_v55 = vpop.xlane.xlu1 %311 }
 0x269   :  { %v316_v56 = vmul.f32 0.00390625, %v312_v55  ;;  %v8919_v55 = vld [vmem:[#allocation8 + $0x2a8] ss:$24 sps:$4 sm:$0xff]  }
 0x26b   :  { %v318_v57 = vadd.f32 1e-12, %v316_v56  ;;  %v8924_v56 = vld [vmem:[#allocation8 + $0x2dc] ss:$24 sps:$4 sm:$0xff]  }
 0x26c   :  { %v315_v58 = vpop.xlane.xlu1 %314 }
 0x26d   :  { %9613 = vrsqrt.f32 %v318_v57  ;;  %v317_v60 = vmul.f32 0.00390625, %v315_v58  ;;  %v8922_v57 = vld [vmem:[#allocation8 + $0x2d8] ss:$24 sps:$4 sm:$0xff]   ;;  %v8927_v58 = vld [vmem:[#allocation8 + $0x14] ss:$24 sps:$4 sm:$0xff]  }
 0x26f   :  { %v319_v61 = vadd.f32 1e-12, %v317_v60  ;;  %v8925_v60 = vld [vmem:[#allocation8 + $0x10] ss:$24 sps:$4 sm:$0xff]  }
 0x271   :  { %9615 = vrsqrt.f32 %v319_v61  ;;  %v8930_v61 = vld [vmem:[#allocation8 + $0x44] ss:$24 sps:$4 sm:$0xff]  }
 0x277   :  { %v9614_v6 = vpop.eup %9613 }
 0x278   :  { %v323_v8 = vmul.f32 %v9614_v6, %v303_v30  ;;  %v322_v10 = vmul.f32 %v9614_v6, %v302_v29  ;;  %v8880_v29 = vld [vmem:[#allocation8 + $0x38] ss:$24 sps:$4 sm:$0xff]   ;;  %v8885_v30 = vld [vmem:[#allocation8 + $0x6c] ss:$24 sps:$4 sm:$0xff]  }
 0x279   :  { %v8933_v6 = vld [vmem:[#allocation8 + $0x74] ss:$24 sps:$4 sm:$0xff]  }
 0x27a   :  { %v338_v16 = vmul.f32 %v334_v9, %v323_v8  ;;  %v337_v18 = vmul.f32 %v330_v11, %v322_v10  ;;  %v8936_v8 = vld [vmem:[#allocation8 + $0xa4] ss:$24 sps:$4 sm:$0xff]   ;;  %v8939_v10 = vld [vmem:[#allocation8 + $0xd4] ss:$24 sps:$4 sm:$0xff]  }
 0x27b   :  { %v9616_v12 = vpop.eup %9615 }
 0x27c   :  { %v325_v15 = vmul.f32 %v9616_v12, %v305_v36  ;;  %v324_v17 = vmul.f32 %v9616_v12, %v304_v35  ;;  %v353_v21 = vadd.f32 %v349_v13, %v338_v16  ;;  %v352_v23 = vadd.f32 %v345_v14, %v337_v18  ;;  %v8889_v35 = vld [vmem:[#allocation8 + $0xc8] ss:$24 sps:$4 sm:$0xff]   ;;  %v8894_v36 = vld [vmem:[#allocation8 + $0xfc] ss:$24 sps:$4 sm:$0xff]  }
 0x27d   :  { %v8942_v12 = vld [vmem:[#allocation8 + $0x104] ss:$24 sps:$4 sm:$0xff]   ;;  %v8951_v18 = vld [vmem:[#allocation8 + $0x194] ss:$24 sps:$4 sm:$0xff]  }
 0x27e   :  { %v340_v19 = vmul.f32 %v334_v9, %v325_v15  ;;  %v339_v20 = vmul.f32 %v330_v11, %v324_v17  ;;  %v8934_v9 = vld [vmem:[#allocation8 + $0xa0] ss:$24 sps:$4 sm:$0xff]   ;;  %v8937_v11 = vld [vmem:[#allocation8 + $0xd0] ss:$24 sps:$4 sm:$0xff]   ;;  %v8948_v16 = vld [vmem:[#allocation8 + $0x164] ss:$24 sps:$4 sm:$0xff]  }
 0x27f   :  { %v8943_v15 = vld [vmem:[#allocation8 + $0x130] ss:$24 sps:$4 sm:$0xff]   ;;  %v8946_v17 = vld [vmem:[#allocation8 + $0x160] ss:$24 sps:$4 sm:$0xff]  }
 0x280   :  { %v355_v22 = vadd.f32 %v349_v13, %v340_v19  ;;  %v354_v24 = vadd.f32 %v345_v14, %v339_v20  ;;  %v8940_v13 = vld [vmem:[#allocation8 + $0x100] ss:$24 sps:$4 sm:$0xff]   ;;  %v8945_v14 = vld [vmem:[#allocation8 + $0x134] ss:$24 sps:$4 sm:$0xff]   ;;  %v8949_v19 = vld [vmem:[#allocation8 + $0x190] ss:$24 sps:$4 sm:$0xff]  }
 0x281   :  { %v8954_v20 = vld [vmem:[#allocation8 + $0x1c4] ss:$24 sps:$4 sm:$0xff]  }
 0x282   :  { %v10551_v25 = vpack.c.bf16 %v355_v22, %v353_v21  ;;  %v10553_v27 = vpack.c.bf16 %v354_v24, %v352_v23  ;;  %v8952_v21 = vld [vmem:[#allocation8 + $0x1c0] ss:$24 sps:$4 sm:$0xff]   ;;  %v8957_v22 = vld [vmem:[#allocation8 + $0x1f4] ss:$24 sps:$4 sm:$0xff]   ;;  %v8955_v23 = vld [vmem:[#allocation8 + $0x1f0] ss:$24 sps:$4 sm:$0xff]  }
 0x283   :  { %v8960_v24 = vld [vmem:[#allocation8 + $0x224] ss:$24 sps:$4 sm:$0xff]  }
 0x284   :  { %998 = vmatprep.mubr.bf16.mxu0 %v10551_v25 }
 0x285   :  { %999 = vmatmul.mubr.bf16.vlgmr.msra.gmra.mrb[0].mxu0 %v10553_v27 }
 0x286   :  { %1010 = vmatpush1.bf16.msra.mxu0 %v8877_v26  ;;  %1041 = vmatprep.mubr.bf16.mxu0 %v10551_v25  ;;  %v8963_v26 = vld [vmem:[#allocation8 + $0x254] ss:$24 sps:$4 sm:$0xff]  }
 0x287   :  { %1011 = vmatprep.subr.bf16.mxu0 %v8882_v28  ;;  %v8961_v28 = vld [vmem:[#allocation8 + $0x250] ss:$24 sps:$4 sm:$0xff]  }
 0x28a   :  { %1012 = vmatpush1.bf16.msra.mxu0 %v8880_v29  ;;  %v8966_v29 = vld [vmem:[#allocation8 + $0x284] ss:$24 sps:$4 sm:$0xff]  }
 0x28b   :  { %1013 = vmatprep.subr.bf16.mxu0 %v8885_v30  ;;  %v8964_v30 = vld [vmem:[#allocation8 + $0x280] ss:$24 sps:$4 sm:$0xff]  }
 0x28e   :  { %1014 = vmatpush1.bf16.msra.mxu0 %v8883_v31  ;;  %v8969_v31 = vld [vmem:[#allocation8 + $0x2b4] ss:$24 sps:$4 sm:$0xff]  }
 0x28f   :  { %1015 = vmatprep.subr.bf16.mxu0 %v8888_v32  ;;  %v8967_v32 = vld [vmem:[#allocation8 + $0x2b0] ss:$24 sps:$4 sm:$0xff]  }
 0x292   :  { %1016 = vmatpush1.bf16.msra.mxu0 %v8886_v33  ;;  %v8972_v33 = vld [vmem:[#allocation8 + $0x2e4] ss:$24 sps:$4 sm:$0xff]  }
 0x293   :  { %1017 = vmatprep.subr.bf16.mxu0 %v8891_v34  ;;  %v8970_v34 = vld [vmem:[#allocation8 + $0x2e0] ss:$24 sps:$4 sm:$0xff]  }
 0x296   :  { %1018 = vmatpush1.bf16.msra.mxu0 %v8889_v35  ;;  %v10173_v35 = vmov 0.0  }
 0x297   :  { %1019 = vmatprep.subr.bf16.mxu0 %v8894_v36  ;;  %8690 = vmatprep.subr.bf16.mxu1 %v10173_v35 }
 0x298   :  { %8692 = vmatprep.mubr.msk.bf16.mxu1 %vm10174_vm0, %v10173_v35 }
 0x29a   :  { %1020 = vmatpush1.bf16.msra.mxu0 %v8892_v37 }
 0x29b   :  { %1021 = vmatprep.subr.bf16.mxu0 %v8897_v38 }
 0x29e   :  { %1022 = vmatpush1.bf16.msra.mxu0 %v8895_v39 }
 0x29f   :  { %1023 = vmatprep.subr.bf16.mxu0 %v8900_v40  ;;  %v10568_v40 = vsub.s32 2, %v10539_v62 }
 0x2a2   :  { %1024 = vmatpush1.bf16.msra.mxu0 %v8898_v41  ;;  %v10573_v41 = vld [vmem:[#allocation10] sm:$0x3f] }
 0x2a3   :  { %1025 = vmatprep.subr.bf16.mxu0 %v8903_v42  ;;  %v467_v42 = vrot.slane %v10573_v41, %v10568_v40 }
 0x2a6   :  { %1026 = vmatpush1.bf16.msra.mxu0 %v8901_v43 }
 0x2a7   :  { %1027 = vmatprep.subr.bf16.mxu0 %v8906_v44 }
 0x2aa   :  { %1028 = vmatpush1.bf16.msra.mxu0 %v8904_v45 }
 0x2ab   :  { %1029 = vmatprep.subr.bf16.mxu0 %v8909_v46 }
 0x2ae   :  { %1030 = vmatpush1.bf16.msra.mxu0 %v8907_v47  ;;  %v459_v47 = vrot.slane %v10573_v41, %v10545_v0 }
 0x2af   :  { %1031 = vmatprep.subr.bf16.mxu0 %v8912_v48 }
 0x2b2   :  { %1032 = vmatpush1.bf16.msra.mxu0 %v8910_v49 }
 0x2b3   :  { %1033 = vmatprep.subr.bf16.mxu0 %v8915_v50  ;;  %v463_v50 = vrot.slane %v10573_v41, %v10542_v63 }
 0x2b6   :  { %1034 = vmatpush1.bf16.msra.mxu0 %v8913_v51 }
 0x2b7   :  { %1035 = vmatprep.subr.bf16.mxu0 %v8918_v52 }
 0x2ba   :  { %1036 = vmatpush1.bf16.msra.mxu0 %v8916_v53 }
 0x2bb   :  { %1037 = vmatprep.subr.bf16.mxu0 %v8921_v54 }
 0x2be   :  { %1038 = vmatpush1.bf16.msra.mxu0 %v8919_v55 }
 0x2bf   :  { %1039 = vmatprep.subr.bf16.mxu0 %v8924_v56 }
 0x2c2   :  { %1040 = vmatpush1.bf16.msra.mxu0 %v8922_v57 }
 0x2c3   :  { %1052 = vmatprep.subr.bf16.mxu0 %v8927_v58 }
 0x2c5   :  { %1042 = vmatmul.mubr.bf16.vlgmr.msra.gmra.mrb[4].mxu0 %v10553_v27 }
 0x2c6   :  { %1053 = vmatpush1.bf16.msra.mxu0 %v8925_v60  ;;  %1084 = vmatprep.mubr.bf16.mxu0 %v10551_v25  ;;  %v8958_v25 = vld [vmem:[#allocation8 + $0x220] ss:$24 sps:$4 sm:$0xff]  }
 0x2c7   :  { %1054 = vmatprep.subr.bf16.mxu0 %v8930_v61 }
 0x2ca   :  { %1055 = vmatpush1.bf16.msra.mxu0 %v8928_v1 }
 0x2cb   :  { %1056 = vmatprep.subr.bf16.mxu0 %v8933_v6 }
 0x2ce   :  { %1057 = vmatpush1.bf16.msra.mxu0 %v8931_v7 }
 0x2cf   :  { %1058 = vmatprep.subr.bf16.mxu0 %v8936_v8 }
 0x2d2   :  { %1059 = vmatpush1.bf16.msra.mxu0 %v8934_v9 }
 0x2d3   :  { %1060 = vmatprep.subr.bf16.mxu0 %v8939_v10  ;;  %v10593_v10 = vsub.s32 4, %v10539_v62 }
 0x2d6   :  { %1061 = vmatpush1.bf16.msra.mxu0 %v8937_v11  ;;  %v475_v11 = vrot.slane %v10573_v41, %v10593_v10 }
 0x2d7   :  { %1062 = vmatprep.subr.bf16.mxu0 %v8942_v12 }
 0x2da   :  { %1063 = vmatpush1.bf16.msra.mxu0 %v8940_v13 }
 0x2db   :  { %1064 = vmatprep.subr.bf16.mxu0 %v8945_v14 }
 0x2de   :  { %1065 = vmatpush1.bf16.msra.mxu0 %v8943_v15 }
 0x2df   :  { %1066 = vmatprep.subr.bf16.mxu0 %v8948_v16 }
 0x2e2   :  { %1067 = vmatpush1.bf16.msra.mxu0 %v8946_v17 }
 0x2e3   :  { %1068 = vmatprep.subr.bf16.mxu0 %v8951_v18 }
 0x2e6   :  { %1069 = vmatpush1.bf16.msra.mxu0 %v8949_v19 }
 0x2e7   :  { %1070 = vmatprep.subr.bf16.mxu0 %v8954_v20  ;;  %v10606_v20 = vand.u32 127, %v288_v59 }
 0x2e9   :  { %vm290_vm2 = vcmp.lt.s32.totalorder %v10606_v20, 5 }
 0x2ea   :  { %1071 = vmatpush1.bf16.msra.mxu0 %v8952_v21 }
 0x2eb   :  { %1072 = vmatprep.subr.bf16.mxu0 %v8957_v22 }
 0x2ee   :  { %1073 = vmatpush1.bf16.msra.mxu0 %v8955_v23 }
 0x2ef   :  { %1074 = vmatprep.subr.bf16.mxu0 %v8960_v24 }
 0x2f2   :  { %1075 = vmatpush1.bf16.msra.mxu0 %v8958_v25 }
 0x2f3   :  { %1076 = vmatprep.subr.bf16.mxu0 %v8963_v26 }
 0x2f6   :  { %1077 = vmatpush1.bf16.msra.mxu0 %v8961_v28 }
 0x2f7   :  { %1078 = vmatprep.subr.bf16.mxu0 %v8966_v29 }
 0x2fa   :  { %1079 = vmatpush1.bf16.msra.mxu0 %v8964_v30 }
 0x2fb   :  { %1080 = vmatprep.subr.bf16.mxu0 %v8969_v31 }
 0x2fe   :  { %1081 = vmatpush1.bf16.msra.mxu0 %v8967_v32 }
 0x2ff   :  { %1082 = vmatprep.subr.bf16.mxu0 %v8972_v33 }
 0x302   :  { %1083 = vmatpush1.bf16.msra.mxu0 %v8970_v34 }
 0x303   :  { %8678 = vmatprep.subr.bf16.mxu0 %v10173_v35 }
 0x305   :  { %1085 = vmatmul.mubr.bf16.vlgmr.msra.gmra.mrb[8].mxu0 %v10553_v27  ;;  %v10571_v27 = vsub.s32 3, %v10539_v62 }
 0x306   :  { %8680 = vmatprep.mubr.msk.bf16.mxu0 %vm10174_vm0, %v10173_v35 }
 0x307   :  { %v471_v43 = vrot.slane %v10573_v41, %v10571_v27 }
 0x358   :  { %v1000_v36 = vpop.f32.mrb[0].mxu0 }
 0x359   :  { %v1002_v37 = vpop.f32.mrb[1].mxu0  ;;  %v1001_v54 = vadd.f32 %v1000_v36, %v459_v47 }
 0x35a   :  { %v1004_v38 = vpop.f32.mrb[2].mxu0  ;;  %v1003_v55 = vadd.f32 %v1002_v37, %v463_v50 }
 0x35b   :  { %v1006_v39 = vpop.f32.mrb[3].mxu0  ;;  %v1095_v58 = vpack.c.bf16 %v1001_v54, %v1001_v54  ;;  %v1005_v6 = vadd.f32 %v1004_v38, %v459_v47 }
 0x35c   :  { %v1097_v60 = vpack.c.bf16 %v1003_v55, %v1003_v55  ;;  %v1007_v7 = vadd.f32 %v1006_v39, %v463_v50 }
 0x35d   :  { %v1096_v8 = vpack.c.bf16 %v1005_v6, %v1005_v6 }
 0x35e   :  { %v1098_v9 = vpack.c.bf16 %v1007_v7, %v1007_v7 }
 0x398   :  { %v1043_v44 = vpop.f32.mrb[4].mxu0 }
 0x399   :  { %v1044_v45 = vadd.f32 %v1043_v44, %v467_v42  ;;  %v1045_v46 = vpop.f32.mrb[5].mxu0 }
 0x39a   :  { %v1046_v48 = vadd.f32 %v1045_v46, %v471_v43  ;;  %v1047_v49 = vpop.f32.mrb[6].mxu0 }
 0x39b   :  { %v1099_v51 = vpack.c.bf16 %v1044_v45, %v1044_v45  ;;  %v1049_v52 = vpop.f32.mrb[7].mxu0  ;;  %v1048_v56 = vadd.f32 %v1047_v49, %v467_v42 }
 0x39c   :  { %v1101_v53 = vpack.c.bf16 %v1046_v48, %v1046_v48  ;;  %v1050_v57 = vadd.f32 %v1049_v52, %v471_v43 }
 0x39d   :  { %8679 = vmatpush3.bf16.xpose.msra.mxu0 %v1099_v51  ;;  %v1100_v61 = vpack.c.bf16 %v1048_v56, %v1048_v56 }
 0x39e   :  { %8691 = vmatpush3.bf16.xpose.msra.mxu1 %v1101_v53  ;;  %8684 = vmatprep.subr.bf16.mxu0 %v10173_v35  ;;  %v1102_v1 = vpack.c.bf16 %v1050_v57, %v1050_v57 }
 0x39f   :  { %8696 = vmatprep.subr.bf16.mxu1 %v10173_v35 }
 0x3a4   :  { %8681 = vmatmul.mubr.bf16.vlgmr.msra.gmra.mrb[12].mxu0 %v1095_v58 }
 0x3a5   :  { %8685 = vmatpush3.bf16.xpose.msra.mxu0 %v1100_v61  ;;  %8693 = vmatmul.mubr.bf16.vlgmr.msra.gmra.mrb[0].mxu1 %v1097_v60 }
 0x3a6   :  { %8697 = vmatpush3.bf16.xpose.msra.mxu1 %v1102_v1  ;;  %8686 = vmatprep.mubr.msk.bf16.mxu0 %vm10174_vm0, %v10173_v35 }
 0x3a7   :  { %8698 = vmatprep.mubr.msk.bf16.mxu1 %vm10174_vm0, %v10173_v35  ;;  %8702 = vmatprep.subr.bf16.mxu1 %v10173_v35 }
 0x3ac   :  { %8687 = vmatmul.mubr.bf16.vlgmr.msra.gmra.mrb[16].mxu0 %v1096_v8 }
 0x3ad   :  { %8699 = vmatmul.mubr.bf16.vlgmr.msra.gmra.mrb[4].mxu1 %v1098_v9 }
 0x3ae   :  { %8704 = vmatprep.mubr.msk.bf16.mxu1 %vm10174_vm0, %v10173_v35 }
 0x3d8   :  { %v1086_v12 = vpop.f32.mrb[8].mxu0 }
 0x3d9   :  { %v1087_v13 = vadd.f32 %v1086_v12, %v475_v11  ;;  %v10597_v14 = vpop.f32.mrb[9].mxu0 }
 0x3da   :  { %v1090_v15 = vpop.f32.mrb[10].mxu0 }
 0x3db   :  { %v1103_v16 = vpack.c.bf16 %v1087_v13, %v1087_v13  ;;  %v10599_v17 = vadd.f32 %v1090_v15, %v475_v11  ;;  %v10601_v18 = vpop.f32.mrb[11].mxu0  ;;  %v8973_v13 = vld [vmem:[#allocation11] ss:$8 sps:$4 sm:$0xff]   ;;  %v8975_v15 = vld [vmem:[#allocation11 + $0x4] ss:$8 sps:$4 sm:$0xff]  }
 0x3dc   :  { %1699 = vmatprep.subr.bf16.mxu0 %v8975_v15  ;;  %v9012_v15 = vld [vmem:[#allocation11 + $0xd0] ss:$8 sps:$4 sm:$0xff]  }
 0x3dd   :  { %v1325_v19 = vsel %vm1323_vm1, %v1103_v16, 0  ;;  %v8978_v16 = vld [vmem:[#allocation11 + $0x14] ss:$8 sps:$4 sm:$0xff]   ;;  %1700 = vmatpush1.bf16.msra.mxu0 %v8973_v13  ;;  %v9011_v13 = vld [vmem:[#allocation11 + $0xc4] ss:$8 sps:$4 sm:$0xff]  }
 0x3de   :  { %8703 = vmatpush3.bf16.msra.mxu1 %v1325_v19  ;;  %v8976_v19 = vld [vmem:[#allocation11 + $0x10] ss:$8 sps:$4 sm:$0xff]   ;;  %1701 = vmatprep.subr.bf16.mxu0 %v8978_v16  ;;  %v9015_v16 = vld [vmem:[#allocation11 + $0xe0] ss:$8 sps:$4 sm:$0xff]  }
 0x3df   :  { %8708 = vmatprep.subr.bf16.mxu1 %v10173_v35 }
 0x3e1   :  { %1702 = vmatpush1.bf16.msra.mxu0 %v8976_v19  ;;  %v9017_v19 = vld [vmem:[#allocation11 + $0xe4] ss:$8 sps:$4 sm:$0xff]  }
 0x477   :  { %v1141_v21 = vpop.f32.mrb[12].mxu0 }
 0x478   :  { %v1267_v22 = vsel %vm290_vm2, %v1141_v21, -1e+30  ;;  %v8682_v23 = vpop.f32.mrb[13].mxu0  ;;  %v1221_v24 = vpop.f32.mrb[0].mxu1  ;;  %v8981_v21 = vld [vmem:[#allocation11 + $0x24] ss:$8 sps:$4 sm:$0xff]  }
 0x479   :  { %v1144_v25 = vpop.f32.mrb[14].mxu0  ;;  %v8694_v26 = vpop.f32.mrb[1].mxu1  ;;  %v1272_v28 = vsel %vm1271_vm3, %v1267_v22, -inf  ;;  %v1269_v29 = vsel %vm290_vm2, %v1221_v24, -1e+30  ;;  %1703 = vmatprep.subr.bf16.mxu0 %v8981_v21 }
 0x47a   :  { %v1224_v30 = vpop.f32.mrb[2].mxu1  ;;  %1273 = vmax.xlane.f32.xlu0 %v1272_v28  ;;  %v8683_v59 = vpop.f32.mrb[15].mxu0  ;;  %v1278_v32 = vsel %vm1271_vm3, %v1269_v29, -inf  ;;  %v8984_v23 = vld [vmem:[#allocation11 + $0x34] ss:$8 sps:$4 sm:$0xff]  }
 0x47b   :  { %v8695_v31 = vpop.f32.mrb[3].mxu1  ;;  %v8982_v24 = vld [vmem:[#allocation11 + $0x30] ss:$8 sps:$4 sm:$0xff]   ;;  %v8987_v25 = vld [vmem:[#allocation11 + $0x44] ss:$8 sps:$4 sm:$0xff]  }
 0x47c   :  { %v8985_v26 = vld [vmem:[#allocation11 + $0x40] ss:$8 sps:$4 sm:$0xff]   ;;  %v8990_v28 = vld [vmem:[#allocation11 + $0x54] ss:$8 sps:$4 sm:$0xff]   ;;  %v8993_v30 = vld [vmem:[#allocation11 + $0x64] ss:$8 sps:$4 sm:$0xff]  }
 0x47d   :  { %v8991_v59 = vld [vmem:[#allocation11 + $0x60] ss:$8 sps:$4 sm:$0xff]   ;;  %v8996_v31 = vld [vmem:[#allocation11 + $0x74] ss:$8 sps:$4 sm:$0xff]  }
 0x47e   :  { %1279 = vmax.xlane.f32.xlu0 %v1278_v32  ;;  %v8994_v32 = vld [vmem:[#allocation11 + $0x70] ss:$8 sps:$4 sm:$0xff]   ;;  %v9020_v21 = vld [vmem:[#allocation11 + $0xf4] ss:$8 sps:$4 sm:$0xff]  }
 0x47f   :  { %v1181_v33 = vpop.f32.mrb[16].mxu0 }
 0x480   :  { %v1268_v34 = vsel %vm290_vm2, %v1181_v33, -1e+30  ;;  %v8688_v36 = vpop.f32.mrb[17].mxu0  ;;  %v1261_v37 = vpop.f32.mrb[4].mxu1  ;;  %v8999_v33 = vld [vmem:[#allocation11 + $0x84] ss:$8 sps:$4 sm:$0xff]  }
 0x481   :  { %v1184_v38 = vpop.f32.mrb[18].mxu0  ;;  %v8700_v39 = vpop.f32.mrb[5].mxu1  ;;  %v1275_v42 = vsel %vm1271_vm3, %v1268_v34, -inf  ;;  %v1270_v43 = vsel %vm290_vm2, %v1261_v37, -1e+30  ;;  %v10635_v37 = vsub.s32 5, %v10539_v62 }
 0x482   :  { %v1264_v44 = vpop.f32.mrb[6].mxu1  ;;  %1276 = vmax.xlane.f32.xlu1 %v1275_v42  ;;  %v8689_v45 = vpop.f32.mrb[19].mxu0  ;;  %v1281_v47 = vsel %vm1271_vm3, %v1270_v43, -inf }
 0x483   :  { %v8701_v46 = vpop.f32.mrb[7].mxu1  ;;  %v1104_v44 = vpack.c.bf16 %v10599_v17, %v10599_v17 }
 0x486   :  { %1282 = vmax.xlane.f32.xlu1 %v1281_v47 }
 0x507   :  { %v1274_v48 = vpop.xlane.xlu0 %1273 }
 0x508   :  { %v1284_v49 = vsub.f32 %v1267_v22, %v1274_v48  ;;  %v8979_v22 = vld [vmem:[#allocation11 + $0x20] ss:$8 sps:$4 sm:$0xff]   ;;  %v1371_v48 = vsel %vm1323_vm1, %v1104_v44, 0 }
 0x509   :  { %1704 = vmatpush1.bf16.msra.mxu0 %v8979_v22  ;;  %v9018_v22 = vld [vmem:[#allocation11 + $0xf0] ss:$8 sps:$4 sm:$0xff]  }
 0x50a   :  { %v1288_v50 = vmul.f32 1.442695, %v1284_v49  ;;  %1705 = vmatprep.subr.bf16.mxu0 %v8984_v23 }
 0x50b   :  { %v1280_v51 = vpop.xlane.xlu0 %1279 }
 0x50c   :  { %9617 = vpow2.f32 %v1288_v50  ;;  %v1286_v52 = vsub.f32 %v1269_v29, %v1280_v51  ;;  %v8988_v29 = vld [vmem:[#allocation11 + $0x50] ss:$8 sps:$4 sm:$0xff]  }
 0x50d   :  { %1706 = vmatpush1.bf16.msra.mxu0 %v8982_v24 }
 0x50e   :  { %v1292_v53 = vmul.f32 1.442695, %v1286_v52  ;;  %1707 = vmatprep.subr.bf16.mxu0 %v8987_v25 }
 0x50f   :  { %v1277_v54 = vpop.xlane.xlu1 %1276 }
 0x510   :  { %9619 = vpow2.f32 %v1292_v53  ;;  %v1285_v55 = vsub.f32 %v1268_v34, %v1277_v54  ;;  %v8997_v34 = vld [vmem:[#allocation11 + $0x80] ss:$8 sps:$4 sm:$0xff]  }
 0x511   :  { %1708 = vmatpush1.bf16.msra.mxu0 %v8985_v26 }
 0x512   :  { %v1290_v56 = vmul.f32 1.442695, %v1285_v55  ;;  %1709 = vmatprep.subr.bf16.mxu0 %v8990_v28 }
 0x513   :  { %v1283_v57 = vpop.xlane.xlu1 %1282 }
 0x514   :  { %9621 = vpow2.f32 %v1290_v56  ;;  %v1287_v58 = vsub.f32 %v1270_v43, %v1283_v57  ;;  %v479_v43 = vrot.slane %v10573_v41, %v10635_v37 }
 0x515   :  { %1710 = vmatpush1.bf16.msra.mxu0 %v8988_v29 }
 0x516   :  { %v9618_v60 = vpop.eup %9617  ;;  %v1294_v61 = vmul.f32 1.442695, %v1287_v58  ;;  %1711 = vmatprep.subr.bf16.mxu0 %v8993_v30  ;;  %v1089_v47 = vadd.f32 %v10597_v14, %v479_v43  ;;  %v1093_v53 = vadd.f32 %v10601_v18, %v479_v43 }
 0x517   :  { %v1296_v1 = vsel %vm1271_vm3, %v9618_v60, 0.0 }
 0x518   :  { %9623 = vpow2.f32 %v1294_v61  ;;  %1297 = vadd.xlane.f32.xlu0 %v1296_v1  ;;  %v1105_v50 = vpack.c.bf16 %v1089_v47, %v1089_v47  ;;  %v1106_v55 = vpack.c.bf16 %v1093_v53, %v1093_v53  ;;  %v9002_v61 = vld [vmem:[#allocation11 + $0x94] ss:$8 sps:$4 sm:$0xff]   ;;  %v9000_v1 = vld [vmem:[#allocation11 + $0x90] ss:$8 sps:$4 sm:$0xff]  }
 0x519   :  { %1712 = vmatpush1.bf16.msra.mxu0 %v8991_v59 }
 0x51a   :  { %v10622_v6 = vpop.eup %9619  ;;  %1713 = vmatprep.subr.bf16.mxu0 %v8996_v31  ;;  %v1417_v14 = vsel %vm1323_vm1, %v1105_v50, 0  ;;  %v1463_v58 = vsel %vm1323_vm1, %v1106_v55, 0 }
 0x51b   :  { %v1302_v7 = vsel %vm1271_vm3, %v10622_v6, 0.0 }
 0x51c   :  { %1303 = vadd.xlane.f32.xlu0 %v1302_v7  ;;  %v9005_v7 = vld [vmem:[#allocation11 + $0xa4] ss:$8 sps:$4 sm:$0xff]  }
 0x51d   :  { %1714 = vmatpush1.bf16.msra.mxu0 %v8994_v32 }
 0x51e   :  { %v10626_v8 = vpop.eup %9621  ;;  %1715 = vmatprep.subr.bf16.mxu0 %v8999_v33 }
 0x51f   :  { %v1299_v9 = vsel %vm1271_vm3, %v10626_v8, 0.0 }
 0x520   :  { %1300 = vadd.xlane.f32.xlu1 %v1299_v9  ;;  %v9006_v9 = vld [vmem:[#allocation11 + $0xb0] ss:$8 sps:$4 sm:$0xff]  }
 0x521   :  { %1716 = vmatpush1.bf16.msra.mxu0 %v8997_v34 }
 0x522   :  { %v10630_v11 = vpop.eup %9623  ;;  %1717 = vmatprep.subr.bf16.mxu0 %v9002_v61  ;;  %v1833_v61 = vld [vmem:[#allocation17 + $0x28] sm:$0xff] }
 0x523   :  { %v1305_v12 = vsel %vm1271_vm3, %v10630_v11, 0.0 }
 0x524   :  { %1306 = vadd.xlane.f32.xlu1 %v1305_v12  ;;  %v9009_v12 = vld [vmem:[#allocation11 + $0xc0] ss:$8 sps:$4 sm:$0xff]  }
 0x525   :  { %1718 = vmatpush1.bf16.msra.mxu0 %v9000_v1  ;;  %v1836_v1 = vld [vmem:[#allocation17 + $0x40] sm:$0xff] }
 0x526   :  { %1719 = vmatprep.subr.bf16.mxu0 %v9005_v7 }
 0x5a5   :  { %v1298_v36 = vpop.xlane.xlu0 %1297 }
 0x5a6   :  { %9625 = vrcp.f32 %v1298_v36 }
 0x5a9   :  { %v1304_v39 = vpop.xlane.xlu0 %1303 }
 0x5ad   :  { %v1301_v38 = vpop.xlane.xlu1 %1300 }
 0x5ae   :  { %9627 = vrcp.f32 %v1301_v38 }
 0x5af   :  { %9629 = vrcp.f32 %v1304_v39 }
 0x5b0   :  { %v9626_v42 = vpop.eup %9625 }
 0x5b1   :  { %v1312_v45 = vmul.f32 %v9626_v42, %v9618_v60  ;;  %v1307_v49 = vpop.xlane.xlu1 %1306 }
 0x5b2   :  { %9631 = vrcp.f32 %v1307_v49 }
 0x5b3   :  { %v1316_v46 = vpack.c.bf16 %v1312_v45, %v1312_v45  ;;  %v1746_v45 = vld [vmem:[#allocation13] sm:$0x3] }
 0x5b5   :  { %8705 = vmatmul.mubr.msk.bf16.vlgmr.msra.gmra.mrb[8].mxu1 %vm1271_vm3, %v1316_v46  ;;  %v1751_v46 = vrot.slane %v1746_v45, %v10545_v0 }
 0x5b6   :  { %8709 = vmatpush3.bf16.msra.mxu1 %v1371_v48  ;;  %8710 = vmatprep.mubr.msk.bf16.mxu1 %vm10174_vm0, %v10173_v35  ;;  %v1755_v48 = vrot.slane %v1746_v45, %v10542_v63  ;;  %v1868_v45 = vld [vmem:[#allocation17 + $0x140] sm:$0xff] }
 0x5b7   :  { %8714 = vmatprep.subr.bf16.mxu1 %v10173_v35 }
 0x5b8   :  { %v9628_v41 = vpop.eup %9627 }
 0x5b9   :  { %v1313_v17 = vmul.f32 %v9628_v41, %v10626_v8  ;;  %v9630_v52 = vpop.eup %9629  ;;  %v9008_v8 = vld [vmem:[#allocation11 + $0xb4] ss:$8 sps:$4 sm:$0xff]  }
 0x5ba   :  { %v1314_v54 = vmul.f32 %v9630_v52, %v10622_v6  ;;  %v9003_v6 = vld [vmem:[#allocation11 + $0xa0] ss:$8 sps:$4 sm:$0xff]  }
 0x5bb   :  { %v1317_v51 = vpack.c.bf16 %v1313_v17, %v1313_v17  ;;  %1720 = vmatpush1.bf16.msra.mxu0 %v9003_v6 }
 0x5bc   :  { %v1318_v56 = vpack.c.bf16 %v1314_v54, %v1314_v54  ;;  %v9632_v57 = vpop.eup %9631  ;;  %1721 = vmatprep.subr.bf16.mxu0 %v9008_v8 }
 0x5bd   :  { %8711 = vmatmul.mubr.msk.bf16.vlgmr.msra.gmra.mrb[12].mxu1 %vm1271_vm3, %v1317_v51  ;;  %v1315_v18 = vmul.f32 %v9632_v57, %v10630_v11  ;;  %v9014_v11 = vld [vmem:[#allocation11 + $0xd4] ss:$8 sps:$4 sm:$0xff]   ;;  %v1828_v57 = vld [vmem:[#allocation17] sm:$0xff] }
 0x5be   :  { %8715 = vmatpush3.bf16.msra.mxu1 %v1417_v14  ;;  %8716 = vmatprep.mubr.msk.bf16.mxu1 %vm10174_vm0, %v10173_v35 }
 0x5bf   :  { %8720 = vmatprep.subr.bf16.mxu1 %v10173_v35  ;;  %v1319_v60 = vpack.c.bf16 %v1315_v18, %v1315_v18  ;;  %1722 = vmatpush1.bf16.msra.mxu0 %v9006_v9  ;;  %v1837_v9 = vld [vmem:[#allocation17 + $0x48] sm:$0xff] }
 0x5c0   :  { %1723 = vmatprep.subr.bf16.mxu0 %v9011_v13  ;;  %v1844_v13 = vld [vmem:[#allocation17 + $0x80] sm:$0xff] }
 0x5c3   :  { %1724 = vmatpush1.bf16.msra.mxu0 %v9009_v12  ;;  %v1841_v12 = vld [vmem:[#allocation17 + $0x68] sm:$0xff] }
 0x5c4   :  { %1725 = vmatprep.subr.bf16.mxu0 %v9014_v11  ;;  %v7974_v11 = vcombine.high %v1837_v9, %v1841_v12 }
 0x5c5   :  { %8717 = vmatmul.mubr.msk.bf16.vlgmr.msra.gmra.mrb[16].mxu1 %vm1271_vm3, %v1318_v56 }
 0x5c6   :  { %8721 = vmatpush3.bf16.msra.mxu1 %v1463_v58  ;;  %8722 = vmatprep.mubr.msk.bf16.mxu1 %vm10174_vm0, %v10173_v35  ;;  %v1832_v58 = vld [vmem:[#allocation17 + $0x20] sm:$0xff] }
 0x5c7   :  { %1726 = vmatpush1.bf16.msra.mxu0 %v9012_v15  ;;  %v7963_v18 = vcombine.low %v1828_v57, %v1832_v58  ;;  %v1848_v15 = vld [vmem:[#allocation17 + $0xa0] sm:$0xff] }
 0x5c8   :  { %1727 = vmatprep.subr.bf16.mxu0 %v9017_v19  ;;  %v1849_v19 = vld [vmem:[#allocation17 + $0xa8] sm:$0xff] }
 0x5cb   :  { %1728 = vmatpush1.bf16.msra.mxu0 %v9015_v16  ;;  %v1845_v16 = vld [vmem:[#allocation17 + $0x88] sm:$0xff] }
 0x5cc   :  { %1729 = vmatprep.subr.bf16.mxu0 %v9020_v21 }
 0x5cd   :  { %8723 = vmatmul.mubr.msk.bf16.vlgmr.msra.gmra.mrb[20].mxu1 %vm1271_vm3, %v1319_v60  ;;  %v7964_v60 = vcombine.high %v1828_v57, %v1832_v58 }
 0x5cf   :  { %1730 = vmatpush1.bf16.msra.mxu0 %v9018_v22  ;;  %2638 = vmatprep.subr.bf16.mxu1 %v7964_v60  ;;  %v7973_v22 = vcombine.low %v1837_v9, %v1841_v12  ;;  %v1888_v60 = vld [vmem:[#allocation17 + $0x1e0] sm:$0xff] }
 0x5d0   :  { %2639 = vmatpush1.bf16.msra.mxu1 %v7963_v18  ;;  %v1884_v18 = vld [vmem:[#allocation17 + $0x1c0] sm:$0xff] }
 0x5d1   :  { %v1892_v9 = vld [vmem:[#allocation17 + $0x200] sm:$0xff] }
 0x5d2   :  { %v1896_v12 = vld [vmem:[#allocation17 + $0x220] sm:$0xff] }
 0x688   :  { %v1361_v23 = vpop.f32.mrb[8].mxu1 }
 0x689   :  { %v8706_v24 = vpop.f32.mrb[9].mxu1 }
 0x68a   :  { %v1364_v25 = vpop.f32.mrb[10].mxu1  ;;  %v7982_v24 = vcombine.high %v1845_v16, %v1849_v19 }
 0x68b   :  { %v8707_v26 = vpop.f32.mrb[11].mxu1  ;;  %v1852_v25 = vld [vmem:[#allocation17 + $0xc0] sm:$0xff] }
 0x68c   :  { %v1856_v26 = vld [vmem:[#allocation17 + $0xe0] sm:$0xff] }
 0x690   :  { %v1407_v28 = vpop.f32.mrb[12].mxu1 }
 0x691   :  { %v1505_v29 = vpack.c.bf16 %v1407_v28, %v1361_v23  ;;  %v8712_v30 = vpop.f32.mrb[13].mxu1  ;;  %v7980_v23 = vcombine.high %v1844_v13, %v1848_v15  ;;  %v1853_v28 = vld [vmem:[#allocation17 + $0xc8] sm:$0xff] }
 0x692   :  { %v1410_v59 = vpop.f32.mrb[14].mxu1  ;;  %v7979_v30 = vcombine.low %v1844_v13, %v1848_v15  ;;  %v1893_v13 = vld [vmem:[#allocation17 + $0x208] sm:$0xff]  ;;  %v8019_v15 = vcombine.low %v1884_v18, %v1888_v60 }
 0x693   :  { %v8713_v31 = vpop.f32.mrb[15].mxu1  ;;  %v7981_v59 = vcombine.low %v1845_v16, %v1849_v19  ;;  %v8028_v19 = vcombine.high %v1892_v9, %v1896_v12 }
 0x694   :  { %v7988_v31 = vcombine.high %v1852_v25, %v1856_v26 }
 0x698   :  { %v1453_v32 = vpop.f32.mrb[16].mxu1 }
 0x699   :  { %v8718_v33 = vpop.f32.mrb[17].mxu1 }
 0x69a   :  { %v1456_v34 = vpop.f32.mrb[18].mxu1  ;;  %v1860_v33 = vld [vmem:[#allocation17 + $0x100] sm:$0xff] }
 0x69b   :  { %v8719_v36 = vpop.f32.mrb[19].mxu1  ;;  %v1864_v34 = vld [vmem:[#allocation17 + $0x120] sm:$0xff] }
 0x69c   :  { %v1861_v36 = vld [vmem:[#allocation17 + $0x108] sm:$0xff] }
 0x6a0   :  { %v1499_v38 = vpop.f32.mrb[20].mxu1 }
 0x6a1   :  { %v1506_v39 = vpack.c.bf16 %v1499_v38, %v1453_v32  ;;  %v8724_v42 = vpop.f32.mrb[21].mxu1  ;;  %v1865_v38 = vld [vmem:[#allocation17 + $0x128] sm:$0xff] }
 0x6a2   :  { %v1502_v43 = vpop.f32.mrb[22].mxu1 }
 0x6a3   :  { %v8725_v44 = vpop.f32.mrb[23].mxu1  ;;  %1731 = vmatprep.mubr.bf16.mxu0 %v1506_v39  ;;  %v7987_v39 = vcombine.low %v1852_v25, %v1856_v26  ;;  %v7996_v43 = vcombine.high %v1860_v33, %v1864_v34  ;;  %v1905_v25 = vld [vmem:[#allocation17 + $0x268] sm:$0xff]  ;;  %v8027_v26 = vcombine.low %v1892_v9, %v1896_v12 }
 0x6a4   :  { %1732 = vmatmul.mubr.bf16.vlgmr.msra.gmra.mrb[20].mxu0 %v1505_v29  ;;  %v1857_v29 = vld [vmem:[#allocation17 + $0xe8] sm:$0xff]  ;;  %v7998_v44 = vcombine.high %v1861_v36, %v1865_v38 }
 0x6a5   :  { %v7990_v32 = vcombine.high %v1853_v28, %v1857_v29  ;;  %v7989_v42 = vcombine.low %v1853_v28, %v1857_v29  ;;  %v1929_v12 = vld [vmem:[#allocation17 + $0x328] sm:$0xff] }
 0x777   :  { %v1733_v47 = vpop.f32.mrb[20].mxu0 }
 0x778   :  { %v1742_v49 = vadd.f32 %v1733_v47, %v10522_v2  ;;  %v1735_v41 = vpop.f32.mrb[21].mxu0  ;;  %v1869_v47 = vld [vmem:[#allocation17 + $0x148] sm:$0xff] }
 0x779   :  { %v1743_v50 = vadd.f32 %v1735_v41, %v10524_v3  ;;  %v1737_v17 = vpop.f32.mrb[22].mxu0  ;;  %v7997_v41 = vcombine.low %v1861_v36, %v1865_v38 }
 0x77a   :  { %v10665_v51 = vadd.f32 %v1751_v46, %v1742_v49  ;;  %v1744_v52 = vadd.f32 %v1737_v17, %v10526_v4  ;;  %v1739_v14 = vpop.f32.mrb[23].mxu0  ;;  %v1829_v4 = vld [vmem:[#allocation17 + $0x8] sm:$0xff]  ;;  %v7995_v49 = vcombine.low %v1860_v33, %v1864_v34 }
 0x77b   :  { %v10668_v53 = vadd.f32 %v1755_v48, %v1743_v50  ;;  %v1745_v54 = vadd.f32 %v1739_v14, %v10528_v5  ;;  %v1840_v5 = vld [vmem:[#allocation17 + $0x60] sm:$0xff]  ;;  %v7965_v6 = vcombine.low %v1829_v4, %v1833_v61  ;;  %v7966_v7 = vcombine.high %v1829_v4, %v1833_v61  ;;  %v1885_v61 = vld [vmem:[#allocation17 + $0x1c8] sm:$0xff] }
 0x77c   :  { %v10671_v55 = vadd.f32 %v1751_v46, %v1744_v52  ;;  %v7972_v8 = vcombine.high %v1836_v1, %v1840_v5  ;;  %v7971_v21 = vcombine.low %v1836_v1, %v1840_v5  ;;  %v1872_v46 = vld [vmem:[#allocation17 + $0x160] sm:$0xff]  ;;  %v1889_v1 = vld [vmem:[#allocation17 + $0x1e8] sm:$0xff] }
 0x77d   :  { %v10673_v56 = vadd.f32 %v1755_v48, %v1745_v54  ;;  %v1764_v2 = vadd.f32 %v10668_v53, %v10665_v51  ;;  %2681 = vmatprep.subr.bf16.mxu0 %v7966_v7  ;;  %v1873_v48 = vld [vmem:[#allocation17 + $0x168] sm:$0xff]  ;;  %v8004_v50 = vcombine.high %v1868_v45, %v1872_v46  ;;  %v1876_v52 = vld [vmem:[#allocation17 + $0x180] sm:$0xff]  ;;  %v8020_v7 = vcombine.high %v1884_v18, %v1888_v60 }
 0x77e   :  { %2682 = vmatpush1.bf16.msra.mxu0 %v7965_v6  ;;  %2640 = vmatprep.subr.bf16.mxu1 %v7972_v8  ;;  %v8006_v17 = vcombine.high %v1869_v47, %v1873_v48  ;;  %v1880_v14 = vld [vmem:[#allocation17 + $0x1a0] sm:$0xff]  ;;  %v1877_v54 = vld [vmem:[#allocation17 + $0x188] sm:$0xff]  ;;  %v8005_v57 = vcombine.low %v1869_v47, %v1873_v48  ;;  %v8022_v8 = vcombine.high %v1885_v61, %v1889_v1 }
 0x77f   :  { %1765 = vadd.xlane.f32.xlu0 %v1764_v2  ;;  %v1767_v3 = vadd.f32 %v10673_v56, %v10671_v55  ;;  %2683 = vmatprep.subr.bf16.mxu0 %v7974_v11  ;;  %v1881_v2 = vld [vmem:[#allocation17 + $0x1a8] sm:$0xff]  ;;  %v8012_v58 = vcombine.high %v1876_v52, %v1880_v14  ;;  %v8011_v5 = vcombine.low %v1876_v52, %v1880_v14 }
 0x780   :  { %2641 = vmatpush1.bf16.msra.mxu1 %v7971_v21  ;;  %v8014_v4 = vcombine.high %v1877_v54, %v1881_v2  ;;  %v8013_v6 = vcombine.low %v1877_v54, %v1881_v2  ;;  %v1897_v11 = vld [vmem:[#allocation17 + $0x228] sm:$0xff]  ;;  %v8021_v16 = vcombine.low %v1885_v61, %v1889_v1 }
 0x781   :  { %1768 = vadd.xlane.f32.xlu1 %v1767_v3  ;;  %2642 = vmatprep.subr.bf16.mxu1 %v7980_v23  ;;  %v8003_v3 = vcombine.low %v1868_v45, %v1872_v46  ;;  %v8030_v21 = vcombine.high %v1893_v13, %v1897_v11  ;;  %v1904_v23 = vld [vmem:[#allocation17 + $0x260] sm:$0xff]  ;;  %v8029_v28 = vcombine.low %v1893_v13, %v1897_v11  ;;  %v1913_v14 = vld [vmem:[#allocation17 + $0x2a8] sm:$0xff] }
 0x782   :  { %2684 = vmatpush1.bf16.msra.mxu0 %v7973_v22  ;;  %v1900_v22 = vld [vmem:[#allocation17 + $0x240] sm:$0xff]  ;;  %v1921_v60 = vld [vmem:[#allocation17 + $0x2e8] sm:$0xff] }
 0x783   :  { %2685 = vmatprep.subr.bf16.mxu0 %v7982_v24  ;;  %v1901_v24 = vld [vmem:[#allocation17 + $0x248] sm:$0xff]  ;;  %v8036_v29 = vcombine.high %v1900_v22, %v1904_v23 }
 0x784   :  { %2643 = vmatpush1.bf16.msra.mxu1 %v7979_v30  ;;  %v8038_v30 = vcombine.high %v1901_v24, %v1905_v25 }
 0x785   :  { %2644 = vmatprep.subr.bf16.mxu1 %v7988_v31  ;;  %v8037_v31 = vcombine.low %v1901_v24, %v1905_v25 }
 0x786   :  { %2686 = vmatpush1.bf16.msra.mxu0 %v7981_v59  ;;  %v8035_v59 = vcombine.low %v1900_v22, %v1904_v23  ;;  %v1937_v23 = vld [vmem:[#allocation17 + $0x368] sm:$0xff] }
 0x787   :  { %2687 = vmatprep.subr.bf16.mxu0 %v7990_v32 }
 0x788   :  { %2645 = vmatpush1.bf16.msra.mxu1 %v7987_v39 }
 0x789   :  { %2646 = vmatprep.subr.bf16.mxu1 %v7996_v43 }
 0x78a   :  { %2688 = vmatpush1.bf16.msra.mxu0 %v7989_v42 }
 0x78b   :  { %2689 = vmatprep.subr.bf16.mxu0 %v7998_v44 }
 0x78c   :  { %2647 = vmatpush1.bf16.msra.mxu1 %v7995_v49 }
 0x78d   :  { %2648 = vmatprep.subr.bf16.mxu1 %v8004_v50  ;;  %v1912_v50 = vld [vmem:[#allocation17 + $0x2a0] sm:$0xff] }
 0x78e   :  { %2690 = vmatpush1.bf16.msra.mxu0 %v7997_v41  ;;  %v1908_v41 = vld [vmem:[#allocation17 + $0x280] sm:$0xff] }
 0x78f   :  { %2691 = vmatprep.subr.bf16.mxu0 %v8006_v17  ;;  %v1909_v17 = vld [vmem:[#allocation17 + $0x288] sm:$0xff]  ;;  %v8044_v52 = vcombine.high %v1908_v41, %v1912_v50  ;;  %v8043_v54 = vcombine.low %v1908_v41, %v1912_v50  ;;  %v1830_v50 = vld [vmem:[#allocation17 + $0x10] sm:$0xff] }
 0x790   :  { %2649 = vmatpush1.bf16.msra.mxu1 %v8003_v3  ;;  %v8045_v2 = vcombine.low %v1909_v17, %v1913_v14  ;;  %v8046_v3 = vcombine.high %v1909_v17, %v1913_v14  ;;  %v1834_v17 = vld [vmem:[#allocation17 + $0x30] sm:$0xff] }
 0x791   :  { %2650 = vmatprep.subr.bf16.mxu1 %v8012_v58  ;;  %v1920_v58 = vld [vmem:[#allocation17 + $0x2e0] sm:$0xff]  ;;  %v7968_v14 = vcombine.high %v1830_v50, %v1834_v17 }
 0x792   :  { %2692 = vmatpush1.bf16.msra.mxu0 %v8005_v57  ;;  %v1916_v57 = vld [vmem:[#allocation17 + $0x2c0] sm:$0xff] }
 0x793   :  { %2693 = vmatprep.subr.bf16.mxu0 %v8014_v4  ;;  %v1917_v4 = vld [vmem:[#allocation17 + $0x2c8] sm:$0xff]  ;;  %v8052_v18 = vcombine.high %v1916_v57, %v1920_v58  ;;  %v8051_v61 = vcombine.low %v1916_v57, %v1920_v58 }
 0x794   :  { %2651 = vmatpush1.bf16.msra.mxu1 %v8011_v5  ;;  %v8053_v1 = vcombine.low %v1917_v4, %v1921_v60  ;;  %v8054_v5 = vcombine.high %v1917_v4, %v1921_v60 }
 0x795   :  { %2652 = vmatprep.subr.bf16.mxu1 %v8020_v7  ;;  %v1928_v7 = vld [vmem:[#allocation17 + $0x320] sm:$0xff] }
 0x796   :  { %2694 = vmatpush1.bf16.msra.mxu0 %v8013_v6  ;;  %v1924_v6 = vld [vmem:[#allocation17 + $0x300] sm:$0xff] }
 0x797   :  { %2695 = vmatprep.subr.bf16.mxu0 %v8022_v8  ;;  %v1925_v8 = vld [vmem:[#allocation17 + $0x308] sm:$0xff]  ;;  %v8060_v9 = vcombine.high %v1924_v6, %v1928_v7  ;;  %v8059_v13 = vcombine.low %v1924_v6, %v1928_v7  ;;  %v1763_v6 = vld [vmem:[#allocation16] sm:$0x3] }
 0x798   :  { %2653 = vmatpush1.bf16.msra.mxu1 %v8019_v15  ;;  %v8061_v11 = vcombine.low %v1925_v8, %v1929_v12  ;;  %v8062_v15 = vcombine.high %v1925_v8, %v1929_v12 }
 0x799   :  { %2654 = vmatprep.subr.bf16.mxu1 %v8028_v19  ;;  %v1936_v19 = vld [vmem:[#allocation17 + $0x360] sm:$0xff] }
 0x79a   :  { %2696 = vmatpush1.bf16.msra.mxu0 %v8021_v16  ;;  %v1932_v16 = vld [vmem:[#allocation17 + $0x340] sm:$0xff] }
 0x79b   :  { %2697 = vmatprep.subr.bf16.mxu0 %v8030_v21  ;;  %v1933_v21 = vld [vmem:[#allocation17 + $0x348] sm:$0xff]  ;;  %v8068_v22 = vcombine.high %v1932_v16, %v1936_v19  ;;  %v8067_v24 = vcombine.low %v1932_v16, %v1936_v19  ;;  %v1815_v16 = vrot.slane %v1763_v6, %v10545_v0 }
 0x79c   :  { %2655 = vmatpush1.bf16.msra.mxu1 %v8027_v26  ;;  %v8069_v25 = vcombine.low %v1933_v21, %v1937_v23  ;;  %v8070_v26 = vcombine.high %v1933_v21, %v1937_v23 }
 0x79d   :  { %2656 = vmatprep.subr.bf16.mxu1 %v8036_v29  ;;  %v1944_v29 = vld [vmem:[#allocation17 + $0x3a0] sm:$0xff] }
 0x79e   :  { %2698 = vmatpush1.bf16.msra.mxu0 %v8029_v28  ;;  %v1940_v28 = vld [vmem:[#allocation17 + $0x380] sm:$0xff] }
 0x79f   :  { %2699 = vmatprep.subr.bf16.mxu0 %v8038_v30  ;;  %v1941_v30 = vld [vmem:[#allocation17 + $0x388] sm:$0xff] }
 0x7a0   :  { %2657 = vmatpush1.bf16.msra.mxu1 %v8035_v59  ;;  %v8076_v59 = vcombine.high %v1940_v28, %v1944_v29 }
 0x7a1   :  { %2658 = vmatprep.subr.bf16.mxu1 %v8044_v52  ;;  %v1831_v52 = vld [vmem:[#allocation17 + $0x18] sm:$0xff] }
 0x7a2   :  { %2700 = vmatpush1.bf16.msra.mxu0 %v8037_v31  ;;  %v1945_v31 = vld [vmem:[#allocation17 + $0x3a8] sm:$0xff] }
 0x7a3   :  { %2701 = vmatprep.subr.bf16.mxu0 %v8046_v3 }
 0x7a4   :  { %2659 = vmatpush1.bf16.msra.mxu1 %v8043_v54  ;;  %v1835_v54 = vld [vmem:[#allocation17 + $0x38] sm:$0xff] }
 0x7a5   :  { %2660 = vmatprep.subr.bf16.mxu1 %v8052_v18  ;;  %v7969_v3 = vcombine.low %v1831_v52, %v1835_v54  ;;  %v7970_v57 = vcombine.high %v1831_v52, %v1835_v54  ;;  %v1859_v52 = vld [vmem:[#allocation17 + $0xf8] sm:$0xff] }
 0x7a6   :  { %2702 = vmatpush1.bf16.msra.mxu0 %v8045_v2  ;;  %v7967_v2 = vcombine.low %v1830_v50, %v1834_v17  ;;  %v1858_v50 = vld [vmem:[#allocation17 + $0xf0] sm:$0xff]  ;;  %v1855_v17 = vld [vmem:[#allocation17 + $0xd8] sm:$0xff] }
 0x7a7   :  { %2703 = vmatprep.subr.bf16.mxu0 %v8054_v5  ;;  %v1762_v5 = vld [vmem:[#allocation14] sm:$0x3] }
 0x7a8   :  { %2661 = vmatpush1.bf16.msra.mxu1 %v8051_v61  ;;  %v1804_v7 = vrot.slane %v1762_v5, %v10542_v63  ;;  %v1800_v8 = vrot.slane %v1762_v5, %v10545_v0 }
 0x7a9   :  { %2662 = vmatprep.subr.bf16.mxu1 %v8060_v9 }
 0x7aa   :  { %2704 = vmatpush1.bf16.msra.mxu0 %v8053_v1 }
 0x7ab   :  { %2705 = vmatprep.subr.bf16.mxu0 %v8062_v15  ;;  %v1819_v15 = vrot.slane %v1763_v6, %v10542_v63  ;;  %v1870_v6 = vld [vmem:[#allocation17 + $0x150] sm:$0xff] }
 0x7ac   :  { %2663 = vmatpush1.bf16.msra.mxu1 %v8059_v13 }
 0x7ad   :  { %2664 = vmatprep.subr.bf16.mxu1 %v8068_v22 }
 0x7ae   :  { %2706 = vmatpush1.bf16.msra.mxu0 %v8061_v11 }
 0x7af   :  { %2707 = vmatprep.subr.bf16.mxu0 %v8070_v26 }
 0x7b0   :  { %2665 = vmatpush1.bf16.msra.mxu1 %v8067_v24 }
 0x7b1   :  { %2666 = vmatprep.subr.bf16.mxu1 %v8076_v59  ;;  %v1842_v59 = vld [vmem:[#allocation17 + $0x70] sm:$0xff] }
 0x7b2   :  { %2708 = vmatpush1.bf16.msra.mxu0 %v8069_v25 }
 0x80c   :  { %v1766_v32 = vpop.xlane.xlu0 %1765 }
 0x80d   :  { %v1770_v33 = vmul.f32 0.00390625, %v1766_v32  ;;  %v8075_v32 = vcombine.low %v1940_v28, %v1944_v29 }
 0x80e   :  { %v1769_v34 = vpop.xlane.xlu1 %1768 }
 0x80f   :  { %v10680_v36 = vsub.f32 %v10665_v51, %v1770_v33  ;;  %v10683_v38 = vsub.f32 %v10668_v53, %v1770_v33  ;;  %v1771_v39 = vmul.f32 0.00390625, %v1769_v34  ;;  %v8077_v33 = vcombine.low %v1941_v30, %v1945_v31  ;;  %2667 = vmatpush1.bf16.msra.mxu1 %v8075_v32 }
 0x810   :  { %v8078_v34 = vcombine.high %v1941_v30, %v1945_v31  ;;  %v1843_v31 = vld [vmem:[#allocation17 + $0x78] sm:$0xff] }
 0x811   :  { %v10686_v42 = vsub.f32 %v10671_v55, %v1771_v39  ;;  %v10689_v43 = vsub.f32 %v10673_v56, %v1771_v39  ;;  %v1776_v44 = vmul.f32 %v10680_v36, %v10680_v36  ;;  %v1777_v45 = vmul.f32 %v10683_v38, %v10683_v38  ;;  %v1948_v39 = vld [vmem:[#allocation17 + $0x3c0] sm:$0xff] }
 0x812   :  { %2709 = vmatprep.subr.bf16.mxu0 %v8078_v34  ;;  %v1846_v34 = vld [vmem:[#allocation17 + $0x90] sm:$0xff] }
 0x813   :  { %v1780_v46 = vadd.f32 %v1777_v45, %v1776_v44  ;;  %v1778_v47 = vmul.f32 %v10686_v42, %v10686_v42  ;;  %v1779_v48 = vmul.f32 %v10689_v43, %v10689_v43  ;;  %v1952_v44 = vld [vmem:[#allocation17 + $0x3e0] sm:$0xff]  ;;  %v1949_v45 = vld [vmem:[#allocation17 + $0x3c8] sm:$0xff]  ;;  %2710 = vmatpush1.bf16.msra.mxu0 %v8077_v33 }
 0x815   :  { %1781 = vadd.xlane.f32.xlu0 %v1780_v46  ;;  %v1783_v49 = vadd.f32 %v1779_v48, %v1778_v47  ;;  %v8084_v46 = vcombine.high %v1948_v39, %v1952_v44  ;;  %v1953_v47 = vld [vmem:[#allocation17 + $0x3e8] sm:$0xff]  ;;  %v8083_v48 = vcombine.low %v1948_v39, %v1952_v44  ;;  %v1850_v39 = vld [vmem:[#allocation17 + $0xb0] sm:$0xff]  ;;  %v1847_v44 = vld [vmem:[#allocation17 + $0x98] sm:$0xff] }
 0x816   :  { %v8085_v41 = vcombine.low %v1949_v45, %v1953_v47 }
 0x817   :  { %1784 = vadd.xlane.f32.xlu1 %v1783_v49  ;;  %v8086_v49 = vcombine.high %v1949_v45, %v1953_v47  ;;  %2668 = vmatprep.subr.bf16.mxu1 %v8084_v46  ;;  %v1851_v45 = vld [vmem:[#allocation17 + $0xb8] sm:$0xff] }
 0x818   :  { %2669 = vmatpush1.bf16.msra.mxu1 %v8083_v48  ;;  %v7984_v48 = vcombine.high %v1846_v34, %v1850_v39  ;;  %v7985_v54 = vcombine.low %v1847_v44, %v1851_v45 }
 0x819   :  { %2711 = vmatprep.subr.bf16.mxu0 %v8086_v49  ;;  %2724 = vmatprep.subr.bf16.mxu1 %v7968_v14  ;;  %v7986_v49 = vcombine.high %v1847_v44, %v1851_v45  ;;  %v7983_v14 = vcombine.low %v1846_v34, %v1850_v39  ;;  %v1894_v34 = vld [vmem:[#allocation17 + $0x210] sm:$0xff]  ;;  %v1899_v39 = vld [vmem:[#allocation17 + $0x238] sm:$0xff] }
 0x81a   :  { %2712 = vmatpush1.bf16.msra.mxu0 %v8085_v41  ;;  %v1854_v41 = vld [vmem:[#allocation17 + $0xd0] sm:$0xff] }
 0x81b   :  { %2767 = vmatprep.subr.bf16.mxu0 %v7970_v57  ;;  %v1862_v57 = vld [vmem:[#allocation17 + $0x110] sm:$0xff] }
 0x8a2   :  { %v1782_v58 = vpop.xlane.xlu0 %1781 }
 0x8a3   :  { %v1786_v4 = vmul.f32 0.00390625, %v1782_v58  ;;  %v1866_v58 = vld [vmem:[#allocation17 + $0x130] sm:$0xff] }
 0x8a4   :  { %v1785_v18 = vpop.xlane.xlu1 %1784 }
 0x8a5   :  { %v1788_v60 = vadd.f32 1e-12, %v1786_v4  ;;  %v1787_v61 = vmul.f32 0.00390625, %v1785_v18  ;;  %v1863_v4 = vld [vmem:[#allocation17 + $0x118] sm:$0xff] }
 0x8a6   :  { %v1867_v18 = vld [vmem:[#allocation17 + $0x138] sm:$0xff] }
 0x8a7   :  { %9633 = vrsqrt.f32 %v1788_v60  ;;  %v1789_v1 = vadd.f32 1e-12, %v1787_v61  ;;  %v7991_v60 = vcombine.low %v1854_v41, %v1858_v50  ;;  %v7993_v61 = vcombine.low %v1855_v17, %v1859_v52 }
 0x8a8   :  { %v8002_v5 = vcombine.high %v1863_v4, %v1867_v18 }
 0x8a9   :  { %9635 = vrsqrt.f32 %v1789_v1  ;;  %v8000_v1 = vcombine.high %v1862_v57, %v1866_v58 }
 0x8b1   :  { %v9634_v9 = vpop.eup %9633 }
 0x8b2   :  { %v1792_v12 = vmul.f32 %v9634_v9, %v10680_v36  ;;  %v1793_v13 = vmul.f32 %v9634_v9, %v10683_v38  ;;  %v1838_v36 = vld [vmem:[#allocation17 + $0x50] sm:$0xff]  ;;  %v1839_v38 = vld [vmem:[#allocation17 + $0x58] sm:$0xff] }
 0x8b3   :  { %v9636_v11 = vpop.eup %9635  ;;  %v7975_v46 = vcombine.low %v1838_v36, %v1842_v59  ;;  %v7977_v47 = vcombine.low %v1839_v38, %v1843_v31  ;;  %v1875_v9 = vld [vmem:[#allocation17 + $0x178] sm:$0xff] }
 0x8b4   :  { %v1794_v19 = vmul.f32 %v9636_v11, %v10686_v42  ;;  %v1795_v21 = vmul.f32 %v9636_v11, %v10689_v43  ;;  %v1808_v22 = vmul.f32 %v1804_v7, %v1793_v13  ;;  %v1807_v23 = vmul.f32 %v1800_v8, %v1792_v12 }
 0x8b5   :  { %v7976_v42 = vcombine.high %v1838_v36, %v1842_v59  ;;  %v7978_v43 = vcombine.high %v1839_v38, %v1843_v31  ;;  %v7999_v12 = vcombine.low %v1862_v57, %v1866_v58  ;;  %v8001_v13 = vcombine.low %v1863_v4, %v1867_v18  ;;  %v1891_v36 = vld [vmem:[#allocation17 + $0x1f8] sm:$0xff] }
 0x8b6   :  { %v1810_v24 = vmul.f32 %v1804_v7, %v1795_v21  ;;  %v1809_v25 = vmul.f32 %v1800_v8, %v1794_v19  ;;  %v1823_v26 = vadd.f32 %v1819_v15, %v1808_v22  ;;  %v1822_v29 = vadd.f32 %v1815_v16, %v1807_v23  ;;  %v1874_v7 = vld [vmem:[#allocation17 + $0x170] sm:$0xff]  ;;  %v1871_v8 = vld [vmem:[#allocation17 + $0x158] sm:$0xff] }
 0x8b7   :  { %v8008_v11 = vcombine.high %v1870_v6, %v1874_v7  ;;  %v1882_v19 = vld [vmem:[#allocation17 + $0x1b0] sm:$0xff]  ;;  %v1879_v21 = vld [vmem:[#allocation17 + $0x198] sm:$0xff]  ;;  %v8007_v23 = vcombine.low %v1870_v6, %v1874_v7 }
 0x8b8   :  { %v1825_v28 = vadd.f32 %v1819_v15, %v1810_v24  ;;  %v1824_v30 = vadd.f32 %v1815_v16, %v1809_v25  ;;  %v8010_v15 = vcombine.high %v1871_v8, %v1875_v9  ;;  %v1878_v16 = vld [vmem:[#allocation17 + $0x190] sm:$0xff]  ;;  %v1883_v22 = vld [vmem:[#allocation17 + $0x1b8] sm:$0xff]  ;;  %v8009_v24 = vcombine.low %v1871_v8, %v1875_v9 }
 0x8b9   :  { %v8016_v25 = vcombine.high %v1878_v16, %v1882_v19  ;;  %v8015_v59 = vcombine.low %v1878_v16, %v1882_v19  ;;  %v8017_v38 = vcombine.low %v1879_v21, %v1883_v22  ;;  %v1911_v57 = vld [vmem:[#allocation17 + $0x298] sm:$0xff] }
 0x8ba   :  { %v1827_v32 = vpack.c.bf16 %v1825_v28, %v1823_v26  ;;  %v10707_v33 = vpack.c.bf16 %v1824_v30, %v1822_v29  ;;  %v8018_v26 = vcombine.high %v1879_v21, %v1883_v22  ;;  %v1886_v28 = vld [vmem:[#allocation17 + $0x1d0] sm:$0xff]  ;;  %v1887_v30 = vld [vmem:[#allocation17 + $0x1d8] sm:$0xff] }
 0x8bb   :  { %v1890_v29 = vld [vmem:[#allocation17 + $0x1f0] sm:$0xff]  ;;  %v8025_v45 = vcombine.low %v1887_v30, %v1891_v36  ;;  %v1915_v58 = vld [vmem:[#allocation17 + $0x2b8] sm:$0xff] }
 0x8bc   :  { %2670 = vmatprep.mubr.bf16.mxu1 %v1827_v32  ;;  %2713 = vmatprep.mubr.bf16.mxu0 %v1827_v32  ;;  %v8024_v31 = vcombine.high %v1886_v28, %v1890_v29  ;;  %v8023_v44 = vcombine.low %v1886_v28, %v1890_v29  ;;  %v1919_v6 = vld [vmem:[#allocation17 + $0x2d8] sm:$0xff]  ;;  %v8049_v9 = vcombine.low %v1911_v57, %v1915_v58 }
 0x8bd   :  { %2671 = vmatmul.mubr.bf16.vlgmr.msra.gmra.mrb[24].mxu1 %v10707_v33  ;;  %2714 = vmatmul.mubr.bf16.vlgmr.msra.gmra.mrb[24].mxu0 %v10707_v33  ;;  %v1923_v7 = vld [vmem:[#allocation17 + $0x2f8] sm:$0xff] }
 0x8be   :  { %2725 = vmatpush1.bf16.msra.mxu1 %v7967_v2  ;;  %2768 = vmatpush1.bf16.msra.mxu0 %v7969_v3  ;;  %v7992_v2 = vcombine.high %v1854_v41, %v1858_v50  ;;  %v7994_v3 = vcombine.high %v1855_v17, %v1859_v52  ;;  %v1903_v41 = vld [vmem:[#allocation17 + $0x258] sm:$0xff]  ;;  %v8057_v22 = vcombine.low %v1919_v6, %v1923_v7 }
 0x8bf   :  { %2756 = vmatprep.mubr.bf16.mxu1 %v1827_v32  ;;  %2799 = vmatprep.mubr.bf16.mxu0 %v1827_v32  ;;  %v8026_v32 = vcombine.high %v1887_v30, %v1891_v36  ;;  %v1907_v50 = vld [vmem:[#allocation17 + $0x278] sm:$0xff] }
 0x8c0   :  { %2726 = vmatprep.subr.bf16.mxu1 %v7976_v42  ;;  %2769 = vmatprep.subr.bf16.mxu0 %v7978_v43  ;;  %v1898_v42 = vld [vmem:[#allocation17 + $0x230] sm:$0xff]  ;;  %v1895_v43 = vld [vmem:[#allocation17 + $0x218] sm:$0xff]  ;;  %v8041_v18 = vcombine.low %v1903_v41, %v1907_v50 }
 0x8c1   :  { %v8031_v17 = vcombine.low %v1894_v34, %v1898_v42  ;;  %v8033_v52 = vcombine.low %v1895_v43, %v1899_v39  ;;  %v1927_v16 = vld [vmem:[#allocation17 + $0x318] sm:$0xff] }
 0x8c2   :  { %2727 = vmatpush1.bf16.msra.mxu1 %v7975_v46  ;;  %2770 = vmatpush1.bf16.msra.mxu0 %v7977_v47  ;;  %v8032_v46 = vcombine.high %v1894_v34, %v1898_v42  ;;  %v8034_v47 = vcombine.high %v1895_v43, %v1899_v39  ;;  %v1931_v19 = vld [vmem:[#allocation17 + $0x338] sm:$0xff] }
 0x8c3   :  { %2728 = vmatprep.subr.bf16.mxu1 %v7984_v48  ;;  %2771 = vmatprep.subr.bf16.mxu0 %v7986_v49  ;;  %v1902_v48 = vld [vmem:[#allocation17 + $0x250] sm:$0xff]  ;;  %v1935_v28 = vld [vmem:[#allocation17 + $0x358] sm:$0xff]  ;;  %v8065_v36 = vcombine.low %v1927_v16, %v1931_v19 }
 0x8c4   :  { %v1906_v49 = vld [vmem:[#allocation17 + $0x270] sm:$0xff]  ;;  %v1939_v29 = vld [vmem:[#allocation17 + $0x378] sm:$0xff] }
 0x8c5   :  { %v8039_v4 = vcombine.low %v1902_v48, %v1906_v49  ;;  %v1943_v34 = vld [vmem:[#allocation17 + $0x398] sm:$0xff]  ;;  %v8073_v39 = vcombine.low %v1935_v28, %v1939_v29 }
 0x8c6   :  { %2729 = vmatpush1.bf16.msra.mxu1 %v7983_v14  ;;  %2772 = vmatpush1.bf16.msra.mxu0 %v7985_v54  ;;  %v8040_v14 = vcombine.high %v1902_v48, %v1906_v49  ;;  %v8042_v54 = vcombine.high %v1903_v41, %v1907_v50  ;;  %v1947_v42 = vld [vmem:[#allocation17 + $0x3b8] sm:$0xff] }
 0x8c7   :  { %2730 = vmatprep.subr.bf16.mxu1 %v7992_v2  ;;  %2773 = vmatprep.subr.bf16.mxu0 %v7994_v3  ;;  %v1910_v2 = vld [vmem:[#allocation17 + $0x290] sm:$0xff]  ;;  %v1951_v48 = vld [vmem:[#allocation17 + $0x3d8] sm:$0xff]  ;;  %v8081_v50 = vcombine.low %v1943_v34, %v1947_v42 }
 0x8c8   :  { %v1914_v3 = vld [vmem:[#allocation17 + $0x2b0] sm:$0xff]  ;;  %v1955_v49 = vld [vmem:[#allocation17 + $0x3f8] sm:$0xff] }
 0x8c9   :  { %v8047_v8 = vcombine.low %v1910_v2, %v1914_v3 }
 0x8ca   :  { %2731 = vmatpush1.bf16.msra.mxu1 %v7991_v60  ;;  %2774 = vmatpush1.bf16.msra.mxu0 %v7993_v61  ;;  %v8048_v60 = vcombine.high %v1910_v2, %v1914_v3  ;;  %v8050_v61 = vcombine.high %v1911_v57, %v1915_v58  ;;  %v9023_v2 = vld [vmem:[#allocation20 + $0x4] ss:$8 sps:$4 sm:$0xff]   ;;  %v9021_v3 = vld [vmem:[#allocation20] ss:$8 sps:$4 sm:$0xff]   ;;  %v9026_v57 = vld [vmem:[#allocation20 + $0x14] ss:$8 sps:$4 sm:$0xff]  }
 0x8cb   :  { %2732 = vmatprep.subr.bf16.mxu1 %v8000_v1  ;;  %2775 = vmatprep.subr.bf16.mxu0 %v8002_v5  ;;  %v1918_v1 = vld [vmem:[#allocation17 + $0x2d0] sm:$0xff]  ;;  %v9024_v58 = vld [vmem:[#allocation20 + $0x10] ss:$8 sps:$4 sm:$0xff]  }
 0x8cc   :  { %v1922_v5 = vld [vmem:[#allocation17 + $0x2f0] sm:$0xff] }
 0x8cd   :  { %v8055_v21 = vcombine.low %v1918_v1, %v1922_v5 }
 0x8ce   :  { %2733 = vmatpush1.bf16.msra.mxu1 %v7999_v12  ;;  %2776 = vmatpush1.bf16.msra.mxu0 %v8001_v13  ;;  %v8056_v12 = vcombine.high %v1918_v1, %v1922_v5  ;;  %v8058_v13 = vcombine.high %v1919_v6, %v1923_v7  ;;  %v9035_v1 = vld [vmem:[#allocation20 + $0x44] ss:$8 sps:$4 sm:$0xff]   ;;  %v9033_v5 = vld [vmem:[#allocation20 + $0x40] ss:$8 sps:$4 sm:$0xff]   ;;  %v9038_v6 = vld [vmem:[#allocation20 + $0x54] ss:$8 sps:$4 sm:$0xff]  }
 0x8cf   :  { %2734 = vmatprep.subr.bf16.mxu1 %v8008_v11  ;;  %2777 = vmatprep.subr.bf16.mxu0 %v8010_v15  ;;  %v1926_v11 = vld [vmem:[#allocation17 + $0x310] sm:$0xff]  ;;  %v9036_v7 = vld [vmem:[#allocation20 + $0x50] ss:$8 sps:$4 sm:$0xff]  }
 0x8d0   :  { %v1930_v15 = vld [vmem:[#allocation17 + $0x330] sm:$0xff] }
 0x8d1   :  { %v8063_v30 = vcombine.low %v1926_v11, %v1930_v15 }
 0x8d2   :  { %2735 = vmatpush1.bf16.msra.mxu1 %v8007_v23  ;;  %2778 = vmatpush1.bf16.msra.mxu0 %v8009_v24  ;;  %v8064_v23 = vcombine.high %v1926_v11, %v1930_v15  ;;  %v8066_v24 = vcombine.high %v1927_v16, %v1931_v19  ;;  %v9045_v11 = vld [vmem:[#allocation20 + $0x80] ss:$8 sps:$4 sm:$0xff]   ;;  %v9050_v15 = vld [vmem:[#allocation20 + $0x94] ss:$8 sps:$4 sm:$0xff]   ;;  %v9048_v16 = vld [vmem:[#allocation20 + $0x90] ss:$8 sps:$4 sm:$0xff]  }
 0x8d3   :  { %2736 = vmatprep.subr.bf16.mxu1 %v8016_v25  ;;  %2779 = vmatprep.subr.bf16.mxu0 %v8018_v26  ;;  %v1934_v25 = vld [vmem:[#allocation17 + $0x350] sm:$0xff] }
 0x8d4   :  { %v1938_v26 = vld [vmem:[#allocation17 + $0x370] sm:$0xff] }
 0x8d5   :  { %v8071_v43 = vcombine.low %v1934_v25, %v1938_v26  ;;  %v9053_v19 = vld [vmem:[#allocation20 + $0xa4] ss:$8 sps:$4 sm:$0xff]  }
 0x8d6   :  { %2737 = vmatpush1.bf16.msra.mxu1 %v8015_v59  ;;  %2780 = vmatpush1.bf16.msra.mxu0 %v8017_v38  ;;  %v8072_v59 = vcombine.high %v1934_v25, %v1938_v26  ;;  %v8074_v38 = vcombine.high %v1935_v28, %v1939_v29  ;;  %v9057_v25 = vld [vmem:[#allocation20 + $0xc0] ss:$8 sps:$4 sm:$0xff]   ;;  %v9062_v26 = vld [vmem:[#allocation20 + $0xd4] ss:$8 sps:$4 sm:$0xff]   ;;  %v9060_v28 = vld [vmem:[#allocation20 + $0xd0] ss:$8 sps:$4 sm:$0xff]  }
 0x8d7   :  { %2738 = vmatprep.subr.bf16.mxu1 %v8024_v31  ;;  %2781 = vmatprep.subr.bf16.mxu0 %v8026_v32  ;;  %v1942_v31 = vld [vmem:[#allocation17 + $0x390] sm:$0xff] }
 0x8d8   :  { %v1946_v32 = vld [vmem:[#allocation17 + $0x3b0] sm:$0xff] }
 0x8d9   :  { %v8079_v41 = vcombine.low %v1942_v31, %v1946_v32  ;;  %v9065_v29 = vld [vmem:[#allocation20 + $0xe4] ss:$8 sps:$4 sm:$0xff]  }
 0x8da   :  { %2739 = vmatpush1.bf16.msra.mxu1 %v8023_v44  ;;  %2782 = vmatpush1.bf16.msra.mxu0 %v8025_v45  ;;  %v8080_v44 = vcombine.high %v1942_v31, %v1946_v32  ;;  %v8082_v45 = vcombine.high %v1943_v34, %v1947_v42  ;;  %v10713_v31 = vld [vmem:[#allocation19] sm:$0xff] }
 0x8db   :  { %2740 = vmatprep.subr.bf16.mxu1 %v8032_v46  ;;  %2783 = vmatprep.subr.bf16.mxu0 %v8034_v47  ;;  %v1950_v46 = vld [vmem:[#allocation17 + $0x3d0] sm:$0xff]  ;;  %v1961_v32 = vrot.slane %v10713_v31, %v10545_v0  ;;  %v1969_v34 = vrot.slane %v10713_v31, %v10568_v40  ;;  %v1965_v42 = vrot.slane %v10713_v31, %v10542_v63 }
 0x8dc   :  { %v1954_v47 = vld [vmem:[#allocation17 + $0x3f0] sm:$0xff] }
 0x8de   :  { %2741 = vmatpush1.bf16.msra.mxu1 %v8031_v17  ;;  %2784 = vmatpush1.bf16.msra.mxu0 %v8033_v52  ;;  %v8088_v17 = vcombine.high %v1950_v46, %v1954_v47  ;;  %v8090_v52 = vcombine.high %v1951_v48, %v1955_v49 }
 0x8df   :  { %2742 = vmatprep.subr.bf16.mxu1 %v8040_v14  ;;  %2785 = vmatprep.subr.bf16.mxu0 %v8042_v54  ;;  %v8087_v14 = vcombine.low %v1950_v46, %v1954_v47  ;;  %v8089_v54 = vcombine.low %v1951_v48, %v1955_v49 }
 0x8e2   :  { %2743 = vmatpush1.bf16.msra.mxu1 %v8039_v4  ;;  %2786 = vmatpush1.bf16.msra.mxu0 %v8041_v18  ;;  %v9029_v4 = vld [vmem:[#allocation20 + $0x24] ss:$8 sps:$4 sm:$0xff]   ;;  %v9027_v18 = vld [vmem:[#allocation20 + $0x20] ss:$8 sps:$4 sm:$0xff]  }
 0x8e3   :  { %2744 = vmatprep.subr.bf16.mxu1 %v8048_v60  ;;  %2787 = vmatprep.subr.bf16.mxu0 %v8050_v61  ;;  %v9032_v60 = vld [vmem:[#allocation20 + $0x34] ss:$8 sps:$4 sm:$0xff]   ;;  %v9030_v61 = vld [vmem:[#allocation20 + $0x30] ss:$8 sps:$4 sm:$0xff]  }
 0x8e6   :  { %2745 = vmatpush1.bf16.msra.mxu1 %v8047_v8  ;;  %2788 = vmatpush1.bf16.msra.mxu0 %v8049_v9  ;;  %v9039_v8 = vld [vmem:[#allocation20 + $0x60] ss:$8 sps:$4 sm:$0xff]   ;;  %v9044_v9 = vld [vmem:[#allocation20 + $0x74] ss:$8 sps:$4 sm:$0xff]  }
 0x8e7   :  { %2746 = vmatprep.subr.bf16.mxu1 %v8056_v12  ;;  %2789 = vmatprep.subr.bf16.mxu0 %v8058_v13  ;;  %v9042_v12 = vld [vmem:[#allocation20 + $0x70] ss:$8 sps:$4 sm:$0xff]   ;;  %v9047_v13 = vld [vmem:[#allocation20 + $0x84] ss:$8 sps:$4 sm:$0xff]  }
 0x8ea   :  { %2747 = vmatpush1.bf16.msra.mxu1 %v8055_v21  ;;  %2790 = vmatpush1.bf16.msra.mxu0 %v8057_v22  ;;  %v9051_v21 = vld [vmem:[#allocation20 + $0xa0] ss:$8 sps:$4 sm:$0xff]   ;;  %v9056_v22 = vld [vmem:[#allocation20 + $0xb4] ss:$8 sps:$4 sm:$0xff]  }
 0x8eb   :  { %2748 = vmatprep.subr.bf16.mxu1 %v8064_v23  ;;  %2791 = vmatprep.subr.bf16.mxu0 %v8066_v24  ;;  %v9054_v23 = vld [vmem:[#allocation20 + $0xb0] ss:$8 sps:$4 sm:$0xff]   ;;  %v9059_v24 = vld [vmem:[#allocation20 + $0xc4] ss:$8 sps:$4 sm:$0xff]  }
 0x8ee   :  { %2749 = vmatpush1.bf16.msra.mxu1 %v8063_v30  ;;  %2792 = vmatpush1.bf16.msra.mxu0 %v8065_v36  ;;  %v9063_v30 = vld [vmem:[#allocation20 + $0xe0] ss:$8 sps:$4 sm:$0xff]   ;;  %v9068_v36 = vld [vmem:[#allocation20 + $0xf4] ss:$8 sps:$4 sm:$0xff]  }
 0x8ef   :  { %2750 = vmatprep.subr.bf16.mxu1 %v8072_v59  ;;  %2793 = vmatprep.subr.bf16.mxu0 %v8074_v38  ;;  %v9066_v59 = vld [vmem:[#allocation20 + $0xf0] ss:$8 sps:$4 sm:$0xff]   ;;  %v9071_v38 = vld [vmem:[#allocation20 + $0x104] ss:$8 sps:$4 sm:$0xff]  }
 0x8f2   :  { %2751 = vmatpush1.bf16.msra.mxu1 %v8071_v43  ;;  %2794 = vmatpush1.bf16.msra.mxu0 %v8073_v39  ;;  %v1973_v43 = vrot.slane %v10713_v31, %v10571_v27 }
 0x8f3   :  { %2752 = vmatprep.subr.bf16.mxu1 %v8080_v44  ;;  %2795 = vmatprep.subr.bf16.mxu0 %v8082_v45 }
 0x8f6   :  { %2753 = vmatpush1.bf16.msra.mxu1 %v8079_v41  ;;  %2796 = vmatpush1.bf16.msra.mxu0 %v8081_v50 }
 0x8f7   :  { %2754 = vmatprep.subr.bf16.mxu1 %v8088_v17  ;;  %2797 = vmatprep.subr.bf16.mxu0 %v8090_v52 }
 0x8fa   :  { %2755 = vmatpush1.bf16.msra.mxu1 %v8087_v14  ;;  %2798 = vmatpush1.bf16.msra.mxu0 %v8089_v54 }
 0x8fb   :  { %3730 = vmatprep.subr.bf16.mxu1 %v9023_v2 }
 0x8fd   :  { %2757 = vmatmul.mubr.bf16.vlgmr.msra.gmra.mrb[28].mxu1 %v10707_v33  ;;  %2800 = vmatmul.mubr.bf16.vlgmr.msra.gmra.mrb[28].mxu0 %v10707_v33  ;;  %v9041_v33 = vld [vmem:[#allocation20 + $0x64] ss:$8 sps:$4 sm:$0xff]  }
 0x8fe   :  { %3731 = vmatpush1.bf16.msra.mxu1 %v9021_v3 }
 0x8ff   :  { %3732 = vmatprep.subr.bf16.mxu1 %v9026_v57 }
 0x902   :  { %3733 = vmatpush1.bf16.msra.mxu1 %v9024_v58 }
 0x903   :  { %3734 = vmatprep.subr.bf16.mxu1 %v9029_v4 }
 0x906   :  { %3735 = vmatpush1.bf16.msra.mxu1 %v9027_v18 }
 0x907   :  { %3736 = vmatprep.subr.bf16.mxu1 %v9032_v60 }
 0x90a   :  { %3737 = vmatpush1.bf16.msra.mxu1 %v9030_v61 }
 0x90b   :  { %3738 = vmatprep.subr.bf16.mxu1 %v9035_v1 }
 0x90e   :  { %3739 = vmatpush1.bf16.msra.mxu1 %v9033_v5 }
 0x90f   :  { %3740 = vmatprep.subr.bf16.mxu1 %v9038_v6 }
 0x912   :  { %3741 = vmatpush1.bf16.msra.mxu1 %v9036_v7 }
 0x913   :  { %3742 = vmatprep.subr.bf16.mxu1 %v9041_v33 }
 0x916   :  { %3743 = vmatpush1.bf16.msra.mxu1 %v9039_v8 }
 0x917   :  { %3744 = vmatprep.subr.bf16.mxu1 %v9044_v9 }
 0x91a   :  { %3745 = vmatpush1.bf16.msra.mxu1 %v9042_v12 }
 0x91b   :  { %3746 = vmatprep.subr.bf16.mxu1 %v9047_v13 }
 0x91e   :  { %3747 = vmatpush1.bf16.msra.mxu1 %v9045_v11 }
 0x91f   :  { %3748 = vmatprep.subr.bf16.mxu1 %v9050_v15 }
 0x922   :  { %3749 = vmatpush1.bf16.msra.mxu1 %v9048_v16 }
 0x923   :  { %3750 = vmatprep.subr.bf16.mxu1 %v9053_v19 }
 0x926   :  { %3751 = vmatpush1.bf16.msra.mxu1 %v9051_v21 }
 0x927   :  { %3752 = vmatprep.subr.bf16.mxu1 %v9056_v22 }
 0x92a   :  { %3753 = vmatpush1.bf16.msra.mxu1 %v9054_v23 }
 0x92b   :  { %3754 = vmatprep.subr.bf16.mxu1 %v9059_v24 }
 0x92e   :  { %3755 = vmatpush1.bf16.msra.mxu1 %v9057_v25 }
 0x92f   :  { %3756 = vmatprep.subr.bf16.mxu1 %v9062_v26 }
 0x932   :  { %3757 = vmatpush1.bf16.msra.mxu1 %v9060_v28 }
 0x933   :  { %3758 = vmatprep.subr.bf16.mxu1 %v9065_v29 }
 0x936   :  { %3759 = vmatpush1.bf16.msra.mxu1 %v9063_v30 }
 0x937   :  { %3760 = vmatprep.subr.bf16.mxu1 %v9068_v36 }
 0x93a   :  { %3761 = vmatpush1.bf16.msra.mxu1 %v9066_v59 }
 0x93b   :  { %3773 = vmatprep.subr.bf16.mxu1 %v9071_v38 }
 0x990   :  { %v2672_v39 = vpop.f32.mrb[24].mxu1  ;;  %v2715_v44 = vpop.f32.mrb[24].mxu0 }
 0x991   :  { %v10723_v45 = vadd.f32 %v2672_v39, %v1961_v32  ;;  %v10725_v46 = vadd.f32 %v2715_v44, %v1969_v34  ;;  %v2674_v47 = vpop.f32.mrb[25].mxu1  ;;  %v2717_v48 = vpop.f32.mrb[25].mxu0 }
 0x992   :  { %v10727_v49 = vadd.f32 %v2674_v47, %v1965_v42  ;;  %v10729_v41 = vadd.f32 %v2717_v48, %v1973_v43  ;;  %v2676_v50 = vpop.f32.mrb[26].mxu1  ;;  %v2719_v17 = vpop.f32.mrb[26].mxu0 }
 0x993   :  { %v2826_v52 = vmul.f32 0.044715, %v10723_v45  ;;  %v2828_v14 = vmul.f32 0.044715, %v10725_v46  ;;  %v2677_v54 = vadd.f32 %v2676_v50, %v1961_v32  ;;  %v2720_v2 = vadd.f32 %v2719_v17, %v1969_v34  ;;  %v2678_v3 = vpop.f32.mrb[27].mxu1  ;;  %v2721_v57 = vpop.f32.mrb[27].mxu0 }
 0x994   :  { %v2827_v58 = vmul.f32 0.044715, %v10727_v49  ;;  %v2829_v4 = vmul.f32 0.044715, %v10729_v41  ;;  %v10735_v18 = vadd.f32 %v2678_v3, %v1965_v42  ;;  %v10737_v60 = vadd.f32 %v2721_v57, %v1973_v43 }
 0x995   :  { %v2842_v61 = vmul.f32 %v2826_v52, %v10723_v45  ;;  %v2844_v1 = vmul.f32 %v2828_v14, %v10725_v46  ;;  %v2834_v5 = vmul.f32 0.044715, %v2677_v54  ;;  %v2836_v6 = vmul.f32 0.044715, %v2720_v2 }
 0x996   :  { %v2843_v7 = vmul.f32 %v2827_v58, %v10727_v49  ;;  %v2845_v33 = vmul.f32 %v2829_v4, %v10729_v41  ;;  %v2835_v8 = vmul.f32 0.044715, %v10735_v18  ;;  %v2837_v9 = vmul.f32 0.044715, %v10737_v60 }
 0x997   :  { %v2858_v12 = vmul.f32 %v2842_v61, %v10723_v45  ;;  %v2860_v13 = vmul.f32 %v2844_v1, %v10725_v46  ;;  %v2850_v11 = vmul.f32 %v2834_v5, %v2677_v54  ;;  %v2852_v15 = vmul.f32 %v2836_v6, %v2720_v2 }
 0x998   :  { %v2859_v16 = vmul.f32 %v2843_v7, %v10727_v49  ;;  %v2851_v19 = vmul.f32 %v2835_v8, %v10735_v18  ;;  %v2853_v21 = vmul.f32 %v2837_v9, %v10737_v60  ;;  %v2861_v26 = vmul.f32 %v2845_v33, %v10729_v41 }
 0x999   :  { %v2874_v22 = vadd.f32 %v2858_v12, %v10723_v45  ;;  %v2876_v23 = vadd.f32 %v2860_v13, %v10725_v46  ;;  %v2866_v24 = vmul.f32 %v2850_v11, %v2677_v54  ;;  %v2868_v25 = vmul.f32 %v2852_v15, %v2720_v2 }
 0x99a   :  { %v2867_v28 = vmul.f32 %v2851_v19, %v10735_v18  ;;  %v2869_v29 = vmul.f32 %v2853_v21, %v10737_v60  ;;  %v2875_v32 = vadd.f32 %v2859_v16, %v10727_v49  ;;  %v2877_v47 = vadd.f32 %v2861_v26, %v10729_v41 }
 0x99b   :  { %v2890_v30 = vmul.f32 0.7978846, %v2874_v22  ;;  %v2892_v36 = vmul.f32 0.7978846, %v2876_v23  ;;  %v2882_v59 = vadd.f32 %v2866_v24, %v2677_v54  ;;  %v2884_v38 = vadd.f32 %v2868_v25, %v2720_v2 }
 0x99c   :  { %v2883_v34 = vadd.f32 %v2867_v28, %v10735_v18  ;;  %v2891_v39 = vmul.f32 0.7978846, %v2875_v32  ;;  %v2885_v48 = vadd.f32 %v2869_v29, %v10737_v60  ;;  %v2893_v50 = vmul.f32 0.7978846, %v2877_v47  ;;  %v9075_v32 = vld [vmem:[#allocation20 + $0x120] ss:$8 sps:$4 sm:$0xff]  }
 0x99d   :  { %9637 = vtanh.f32 %v2890_v30  ;;  %v2898_v42 = vmul.f32 0.7978846, %v2882_v59  ;;  %v2900_v43 = vmul.f32 0.7978846, %v2884_v38  ;;  %v2810_v61 = vmul.f32 0.5, %v10723_v45 }
 0x99e   :  { %9639 = vtanh.f32 %v2892_v36  ;;  %v2899_v44 = vmul.f32 0.7978846, %v2883_v34  ;;  %v2901_v17 = vmul.f32 0.7978846, %v2885_v48  ;;  %v2818_v1 = vmul.f32 0.5, %v2677_v54 }
 0x99f   :  { %9641 = vtanh.f32 %v2898_v42  ;;  %v2812_v7 = vmul.f32 0.5, %v10725_v46  ;;  %v2820_v33 = vmul.f32 0.5, %v2720_v2  ;;  %v2811_v12 = vmul.f32 0.5, %v10727_v49  ;;  %v9074_v59 = vld [vmem:[#allocation20 + $0x114] ss:$8 sps:$4 sm:$0xff]  }
 0x9a0   :  { %9643 = vtanh.f32 %v2900_v43  ;;  %v2819_v19 = vmul.f32 0.5, %v10735_v18  ;;  %v2813_v46 = vmul.f32 0.5, %v10729_v41  ;;  %v2821_v2 = vmul.f32 0.5, %v10737_v60  ;;  %v9069_v18 = vld [vmem:[#allocation20 + $0x100] ss:$8 sps:$4 sm:$0xff]  }
 0x9a1   :  { %9645 = vtanh.f32 %v2891_v39  ;;  %v9072_v41 = vld [vmem:[#allocation20 + $0x110] ss:$8 sps:$4 sm:$0xff]   ;;  %v9077_v60 = vld [vmem:[#allocation20 + $0x124] ss:$8 sps:$4 sm:$0xff]   ;;  %v9080_v34 = vld [vmem:[#allocation20 + $0x134] ss:$8 sps:$4 sm:$0xff]  }
 0x9a2   :  { %9647 = vtanh.f32 %v2899_v44  ;;  %v9078_v42 = vld [vmem:[#allocation20 + $0x130] ss:$8 sps:$4 sm:$0xff]   ;;  %v9083_v43 = vld [vmem:[#allocation20 + $0x144] ss:$8 sps:$4 sm:$0xff]   ;;  %v9081_v39 = vld [vmem:[#allocation20 + $0x140] ss:$8 sps:$4 sm:$0xff]  }
 0x9a3   :  { %9649 = vtanh.f32 %v2893_v50  ;;  %v9086_v44 = vld [vmem:[#allocation20 + $0x154] ss:$8 sps:$4 sm:$0xff]   ;;  %v9084_v47 = vld [vmem:[#allocation20 + $0x150] ss:$8 sps:$4 sm:$0xff]   ;;  %v9089_v48 = vld [vmem:[#allocation20 + $0x164] ss:$8 sps:$4 sm:$0xff]  }
 0x9a4   :  { %9651 = vtanh.f32 %v2901_v17  ;;  %v9087_v50 = vld [vmem:[#allocation20 + $0x160] ss:$8 sps:$4 sm:$0xff]   ;;  %v1984_v17 = vsub.s32 6, %v10539_v62 }
 0x9a7   :  { %v9638_v52 = vpop.eup %9637 }
 0x9a8   :  { %v9640_v14 = vpop.eup %9639  ;;  %v2922_v3 = vadd.f32 1.0, %v9638_v52  ;;  %v9092_v52 = vld [vmem:[#allocation20 + $0x174] ss:$8 sps:$4 sm:$0xff]  }
 0x9a9   :  { %v9642_v57 = vpop.eup %9641  ;;  %v2924_v58 = vadd.f32 1.0, %v9640_v14  ;;  %v1988_v14 = vsub.s32 7, %v10539_v62  ;;  %v9482_v62 = vld [vmem:[#allocation20 + $0x594] ss:$8 sps:$4 sm:$0xff]  }
 0x9aa   :  { %v9644_v4 = vpop.eup %9643  ;;  %v2930_v5 = vadd.f32 1.0, %v9642_v57  ;;  %v2938_v11 = vmul.f32 %v2922_v3, %v2810_v61  ;;  %v9090_v3 = vld [vmem:[#allocation20 + $0x170] ss:$8 sps:$4 sm:$0xff]   ;;  %v1977_v57 = vrot.slane %v10713_v31, %v10593_v10 }
 0x9ab   :  { %v9646_v6 = vpop.eup %9645  ;;  %v2932_v8 = vadd.f32 1.0, %v9644_v4  ;;  %v10763_v22 = vmul.f32 %v2924_v58, %v2812_v7  ;;  %v1985_v58 = vrot.slane %v10713_v31, %v1984_v17  ;;  %v1981_v4 = vrot.slane %v10713_v31, %v10635_v37 }
 0x9ac   :  { %v9648_v9 = vpop.eup %9647  ;;  %v2923_v13 = vadd.f32 1.0, %v9646_v6  ;;  %v2946_v15 = vmul.f32 %v2930_v5, %v2818_v1  ;;  %v1989_v61 = vrot.slane %v10713_v31, %v1988_v14  ;;  %v9095_v1 = vld [vmem:[#allocation20 + $0x184] ss:$8 sps:$4 sm:$0xff]  }
 0x9ad   :  { %v9650_v16 = vpop.eup %9649  ;;  %v2931_v21 = vadd.f32 1.0, %v9648_v9  ;;  %v10765_v45 = vmul.f32 %v2932_v8, %v2820_v33 }
 0x9ae   :  { %v9652_v54 = vpop.eup %9651  ;;  %v2954_v23 = vpack.c.bf16 %v2946_v15, %v2938_v11  ;;  %v2925_v24 = vadd.f32 1.0, %v9650_v16  ;;  %v2939_v25 = vmul.f32 %v2923_v13, %v2811_v12  ;;  %v9093_v12 = vld [vmem:[#allocation20 + $0x180] ss:$8 sps:$4 sm:$0xff]  }
 0x9af   :  { %v2947_v49 = vmul.f32 %v2931_v21, %v2819_v19  ;;  %v2933_v26 = vadd.f32 1.0, %v9652_v54  ;;  %v2956_v28 = vpack.c.bf16 %v10765_v45, %v10763_v22  ;;  %v9098_v19 = vld [vmem:[#allocation20 + $0x194] ss:$8 sps:$4 sm:$0xff]   ;;  %v9132_v22 = vld [vmem:[#allocation20 + $0x250] ss:$8 sps:$4 sm:$0xff]  }
 0x9b0   :  { %v2941_v30 = vmul.f32 %v2925_v24, %v2813_v46  ;;  %v9137_v45 = vld [vmem:[#allocation20 + $0x264] ss:$8 sps:$4 sm:$0xff]  }
 0x9b1   :  { %v2955_v29 = vpack.c.bf16 %v2947_v49, %v2939_v25  ;;  %v2949_v36 = vmul.f32 %v2933_v26, %v2821_v2 }
 0x9b3   :  { %3762 = vmatprep.mubr.bf16.mxu1 %v2955_v29  ;;  %v2957_v38 = vpack.c.bf16 %v2949_v36, %v2941_v30 }
 0x9b4   :  { %3763 = vmatmul.mubr.bf16.vlgmr.msra.gmra.mrb[32].mxu1 %v2954_v23 }
 0x9b5   :  { %3774 = vmatpush1.bf16.msra.mxu1 %v9069_v18  ;;  %3805 = vmatprep.mubr.bf16.mxu1 %v2957_v38 }
 0x9b6   :  { %3775 = vmatprep.subr.bf16.mxu1 %v9074_v59  ;;  %v9096_v59 = vld [vmem:[#allocation20 + $0x190] ss:$8 sps:$4 sm:$0xff]  }
 0x9b9   :  { %3776 = vmatpush1.bf16.msra.mxu1 %v9072_v41 }
 0x9ba   :  { %3777 = vmatprep.subr.bf16.mxu1 %v9077_v60 }
 0x9bd   :  { %3778 = vmatpush1.bf16.msra.mxu1 %v9075_v32 }
 0x9be   :  { %3779 = vmatprep.subr.bf16.mxu1 %v9080_v34  ;;  %v9101_v34 = vld [vmem:[#allocation20 + $0x1a4] ss:$8 sps:$4 sm:$0xff]  }
 0x9c1   :  { %3780 = vmatpush1.bf16.msra.mxu1 %v9078_v42 }
 0x9c2   :  { %3781 = vmatprep.subr.bf16.mxu1 %v9083_v43 }
 0x9c5   :  { %3782 = vmatpush1.bf16.msra.mxu1 %v9081_v39 }
 0x9c6   :  { %3783 = vmatprep.subr.bf16.mxu1 %v9086_v44 }
 0x9c9   :  { %3784 = vmatpush1.bf16.msra.mxu1 %v9084_v47 }
 0x9ca   :  { %3785 = vmatprep.subr.bf16.mxu1 %v9089_v48 }
 0x9cd   :  { %3786 = vmatpush1.bf16.msra.mxu1 %v9087_v50 }
 0x9ce   :  { %3787 = vmatprep.subr.bf16.mxu1 %v9092_v52 }
 0x9d0   :  { %v2758_v5 = vpop.f32.mrb[28].mxu1  ;;  %v2801_v6 = vpop.f32.mrb[28].mxu0 }
 0x9d1   :  { %3788 = vmatpush1.bf16.msra.mxu1 %v9090_v3  ;;  %v10783_v7 = vadd.f32 %v2758_v5, %v1977_v57  ;;  %v10785_v33 = vadd.f32 %v2801_v6, %v1985_v58  ;;  %v2760_v8 = vpop.f32.mrb[29].mxu1  ;;  %v2803_v9 = vpop.f32.mrb[29].mxu0  ;;  %v9104_v6 = vld [vmem:[#allocation20 + $0x1b4] ss:$8 sps:$4 sm:$0xff]  }
 0x9d2   :  { %v10787_v13 = vadd.f32 %v2760_v8, %v1981_v4  ;;  %v10789_v11 = vadd.f32 %v2803_v9, %v1989_v61  ;;  %v2762_v15 = vpop.f32.mrb[30].mxu1  ;;  %v2805_v16 = vpop.f32.mrb[30].mxu0  ;;  %3789 = vmatprep.subr.bf16.mxu1 %v9095_v1 }
 0x9d3   :  { %v2830_v31 = vmul.f32 0.044715, %v10783_v7  ;;  %v2832_v21 = vmul.f32 0.044715, %v10785_v33  ;;  %v10793_v54 = vadd.f32 %v2762_v15, %v1977_v57  ;;  %v10795_v23 = vadd.f32 %v2805_v16, %v1985_v58  ;;  %v2764_v46 = vpop.f32.mrb[31].mxu1  ;;  %v2807_v2 = vpop.f32.mrb[31].mxu0 }
 0x9d4   :  { %v2831_v24 = vmul.f32 0.044715, %v10787_v13  ;;  %v2833_v25 = vmul.f32 0.044715, %v10789_v11  ;;  %v10799_v49 = vadd.f32 %v2764_v46, %v1981_v4  ;;  %v10801_v26 = vadd.f32 %v2807_v2, %v1989_v61  ;;  %v9099_v4 = vld [vmem:[#allocation20 + $0x1a0] ss:$8 sps:$4 sm:$0xff]  }
 0x9d5   :  { %v2846_v29 = vmul.f32 %v2830_v31, %v10783_v7  ;;  %v2848_v18 = vmul.f32 %v2832_v21, %v10785_v33  ;;  %v2838_v30 = vmul.f32 0.044715, %v10793_v54  ;;  %v2840_v36 = vmul.f32 0.044715, %v10795_v23  ;;  %3790 = vmatpush1.bf16.msra.mxu1 %v9093_v12  ;;  %v9102_v46 = vld [vmem:[#allocation20 + $0x1b0] ss:$8 sps:$4 sm:$0xff]  }
 0x9d6   :  { %v2847_v38 = vmul.f32 %v2831_v24, %v10787_v13  ;;  %v2849_v41 = vmul.f32 %v2833_v25, %v10789_v11  ;;  %v2839_v60 = vmul.f32 0.044715, %v10799_v49  ;;  %v2841_v32 = vmul.f32 0.044715, %v10801_v26  ;;  %3791 = vmatprep.subr.bf16.mxu1 %v9098_v19  ;;  %v9107_v2 = vld [vmem:[#allocation20 + $0x1c4] ss:$8 sps:$4 sm:$0xff]  }
 0x9d7   :  { %v2862_v42 = vmul.f32 %v2846_v29, %v10783_v7  ;;  %v2864_v43 = vmul.f32 %v2848_v18, %v10785_v33  ;;  %v2854_v39 = vmul.f32 %v2838_v30, %v10793_v54  ;;  %v2856_v44 = vmul.f32 %v2840_v36, %v10795_v23  ;;  %v9105_v30 = vld [vmem:[#allocation20 + $0x1c0] ss:$8 sps:$4 sm:$0xff]  }
 0x9d8   :  { %v2863_v47 = vmul.f32 %v2847_v38, %v10787_v13  ;;  %v2855_v48 = vmul.f32 %v2839_v60, %v10799_v49  ;;  %v2857_v50 = vmul.f32 %v2841_v32, %v10801_v26  ;;  %v2865_v61 = vmul.f32 %v2849_v41, %v10789_v11  ;;  %v9110_v38 = vld [vmem:[#allocation20 + $0x1d4] ss:$8 sps:$4 sm:$0xff]   ;;  %v9108_v41 = vld [vmem:[#allocation20 + $0x1d0] ss:$8 sps:$4 sm:$0xff]   ;;  %v9113_v60 = vld [vmem:[#allocation20 + $0x1e4] ss:$8 sps:$4 sm:$0xff]  }
 0x9d9   :  { %v2878_v52 = vadd.f32 %v2862_v42, %v10783_v7  ;;  %v2880_v3 = vadd.f32 %v2864_v43, %v10785_v33  ;;  %v2870_v57 = vmul.f32 %v2854_v39, %v10793_v54  ;;  %v2872_v58 = vmul.f32 %v2856_v44, %v10795_v23  ;;  %3792 = vmatpush1.bf16.msra.mxu1 %v9096_v59  ;;  %v9111_v39 = vld [vmem:[#allocation20 + $0x1e0] ss:$8 sps:$4 sm:$0xff]  }
 0x9da   :  { %v2871_v1 = vmul.f32 %v2855_v48, %v10799_v49  ;;  %v2873_v5 = vmul.f32 %v2857_v50, %v10801_v26  ;;  %3793 = vmatprep.subr.bf16.mxu1 %v9101_v34  ;;  %v2879_v16 = vadd.f32 %v2863_v47, %v10787_v13  ;;  %v2881_v29 = vadd.f32 %v2865_v61, %v10789_v11  ;;  %v9116_v48 = vld [vmem:[#allocation20 + $0x1f4] ss:$8 sps:$4 sm:$0xff]  }
 0x9db   :  { %v2894_v8 = vmul.f32 0.7978846, %v2878_v52  ;;  %v2896_v9 = vmul.f32 0.7978846, %v2880_v3  ;;  %v2886_v12 = vadd.f32 %v2870_v57, %v10793_v54  ;;  %v2888_v15 = vadd.f32 %v2872_v58, %v10795_v23 }
 0x9dc   :  { %v2887_v19 = vadd.f32 %v2871_v1, %v10799_v49  ;;  %v2895_v24 = vmul.f32 0.7978846, %v2879_v16  ;;  %v2889_v18 = vadd.f32 %v2873_v5, %v10801_v26  ;;  %v2897_v36 = vmul.f32 0.7978846, %v2881_v29  ;;  %v9117_v29 = vld [vmem:[#allocation20 + $0x200] ss:$8 sps:$4 sm:$0xff]  }
 0x9dd   :  { %9653 = vtanh.f32 %v2894_v8  ;;  %v2902_v31 = vmul.f32 0.7978846, %v2886_v12  ;;  %v2904_v21 = vmul.f32 0.7978846, %v2888_v15  ;;  %3794 = vmatpush1.bf16.msra.mxu1 %v9099_v4  ;;  %v2814_v50 = vmul.f32 0.5, %v10783_v7 }
 0x9de   :  { %9655 = vtanh.f32 %v2896_v9  ;;  %3795 = vmatprep.subr.bf16.mxu1 %v9104_v6  ;;  %v2903_v25 = vmul.f32 0.7978846, %v2887_v19  ;;  %v2905_v59 = vmul.f32 0.7978846, %v2889_v18  ;;  %v2822_v52 = vmul.f32 0.5, %v10793_v54 }
 0x9df   :  { %9657 = vtanh.f32 %v2902_v31  ;;  %v2816_v58 = vmul.f32 0.5, %v10785_v33  ;;  %v2824_v4 = vmul.f32 0.5, %v10795_v23  ;;  %v2815_v5 = vmul.f32 0.5, %v10787_v13  ;;  %v9114_v7 = vld [vmem:[#allocation20 + $0x1f0] ss:$8 sps:$4 sm:$0xff]  }
 0x9e0   :  { %9659 = vtanh.f32 %v2904_v21  ;;  %v2823_v54 = vmul.f32 0.5, %v10799_v49  ;;  %v9119_v19 = vld [vmem:[#allocation20 + $0x204] ss:$8 sps:$4 sm:$0xff]   ;;  %v2817_v31 = vmul.f32 0.5, %v10789_v11  ;;  %v2825_v21 = vmul.f32 0.5, %v10801_v26 }
 0x9e1   :  { %3796 = vmatpush1.bf16.msra.mxu1 %v9102_v46  ;;  %9661 = vtanh.f32 %v2895_v24  ;;  %v9120_v26 = vld [vmem:[#allocation20 + $0x210] ss:$8 sps:$4 sm:$0xff]  }
 0x9e2   :  { %3797 = vmatprep.subr.bf16.mxu1 %v9107_v2  ;;  %9663 = vtanh.f32 %v2903_v25 }
 0x9e3   :  { %9665 = vtanh.f32 %v2897_v36 }
 0x9e4   :  { %9667 = vtanh.f32 %v2905_v59  ;;  %v9122_v59 = vld [vmem:[#allocation20 + $0x214] ss:$8 sps:$4 sm:$0xff]  }
 0x9e5   :  { %3798 = vmatpush1.bf16.msra.mxu1 %v9105_v30 }
 0x9e6   :  { %3799 = vmatprep.subr.bf16.mxu1 %v9110_v38  ;;  %v9125_v38 = vld [vmem:[#allocation20 + $0x224] ss:$8 sps:$4 sm:$0xff]  }
 0x9e7   :  { %v9654_v32 = vpop.eup %9653 }
 0x9e8   :  { %v9656_v34 = vpop.eup %9655  ;;  %v2926_v42 = vadd.f32 1.0, %v9654_v32  ;;  %v9126_v32 = vld [vmem:[#allocation20 + $0x230] ss:$8 sps:$4 sm:$0xff]  }
 0x9e9   :  { %v9658_v43 = vpop.eup %9657  ;;  %3800 = vmatpush1.bf16.msra.mxu1 %v9108_v41  ;;  %v2928_v44 = vadd.f32 1.0, %v9656_v34  ;;  %v9123_v41 = vld [vmem:[#allocation20 + $0x220] ss:$8 sps:$4 sm:$0xff]   ;;  %v9131_v34 = vld [vmem:[#allocation20 + $0x244] ss:$8 sps:$4 sm:$0xff]  }
 0x9ea   :  { %v9660_v47 = vpop.eup %9659  ;;  %3801 = vmatprep.subr.bf16.mxu1 %v9113_v60  ;;  %v2934_v3 = vadd.f32 1.0, %v9658_v43  ;;  %v10836_v8 = vmul.f32 %v2926_v42, %v2814_v50  ;;  %v9128_v60 = vld [vmem:[#allocation20 + $0x234] ss:$8 sps:$4 sm:$0xff]   ;;  %v9129_v42 = vld [vmem:[#allocation20 + $0x240] ss:$8 sps:$4 sm:$0xff]  }
 0x9eb   :  { %v9662_v57 = vpop.eup %9661  ;;  %v2936_v61 = vadd.f32 1.0, %v9660_v47  ;;  %v10841_v16 = vmul.f32 %v2928_v44, %v2816_v58  ;;  %v9134_v43 = vld [vmem:[#allocation20 + $0x254] ss:$8 sps:$4 sm:$0xff]   ;;  %v9138_v44 = vld [vmem:[#allocation20 + $0x270] ss:$8 sps:$4 sm:$0xff]  }
 0x9ec   :  { %v9664_v1 = vpop.eup %9663  ;;  %v2927_v6 = vadd.f32 1.0, %v9662_v57  ;;  %v10838_v9 = vmul.f32 %v2934_v3, %v2822_v52  ;;  %v9143_v47 = vld [vmem:[#allocation20 + $0x284] ss:$8 sps:$4 sm:$0xff]   ;;  %v9146_v50 = vld [vmem:[#allocation20 + $0x294] ss:$8 sps:$4 sm:$0xff]  }
 0x9ed   :  { %v9666_v12 = vpop.eup %9665  ;;  %3802 = vmatpush1.bf16.msra.mxu1 %v9111_v39  ;;  %v2935_v15 = vadd.f32 1.0, %v9664_v1  ;;  %v10843_v33 = vmul.f32 %v2936_v61, %v2824_v4  ;;  %v9140_v39 = vld [vmem:[#allocation20 + $0x274] ss:$8 sps:$4 sm:$0xff]   ;;  %v9144_v52 = vld [vmem:[#allocation20 + $0x290] ss:$8 sps:$4 sm:$0xff]  }
 0x9ee   :  { %v9668_v23 = vpop.eup %9667  ;;  %3803 = vmatprep.subr.bf16.mxu1 %v9116_v48  ;;  %v2958_v13 = vpack.c.bf16 %v10838_v9, %v10836_v8  ;;  %v2929_v46 = vadd.f32 1.0, %v9666_v12  ;;  %v2943_v2 = vmul.f32 %v2927_v6, %v2815_v5  ;;  %v9141_v48 = vld [vmem:[#allocation20 + $0x280] ss:$8 sps:$4 sm:$0xff]   ;;  %v9149_v3 = vld [vmem:[#allocation20 + $0x2a4] ss:$8 sps:$4 sm:$0xff]  }
 0x9ef   :  { %v2951_v24 = vmul.f32 %v2935_v15, %v2823_v54  ;;  %v2937_v25 = vadd.f32 1.0, %v9668_v23  ;;  %v2960_v49 = vpack.c.bf16 %v10843_v33, %v10841_v16  ;;  %v9147_v57 = vld [vmem:[#allocation20 + $0x2a0] ss:$8 sps:$4 sm:$0xff]   ;;  %v9152_v58 = vld [vmem:[#allocation20 + $0x2b4] ss:$8 sps:$4 sm:$0xff]  }
 0x9f0   :  { %v10851_v30 = vmul.f32 %v2929_v46, %v2817_v31  ;;  %v9150_v4 = vld [vmem:[#allocation20 + $0x2b0] ss:$8 sps:$4 sm:$0xff]   ;;  %v9155_v61 = vld [vmem:[#allocation20 + $0x2c4] ss:$8 sps:$4 sm:$0xff]   ;;  %v9153_v1 = vld [vmem:[#allocation20 + $0x2c0] ss:$8 sps:$4 sm:$0xff]  }
 0x9f1   :  { %3804 = vmatpush1.bf16.msra.mxu1 %v9114_v7  ;;  %v2959_v18 = vpack.c.bf16 %v2951_v24, %v2943_v2  ;;  %v10853_v36 = vmul.f32 %v2937_v25, %v2825_v21  ;;  %v9158_v5 = vld [vmem:[#allocation20 + $0x2d4] ss:$8 sps:$4 sm:$0xff]   ;;  %v9156_v6 = vld [vmem:[#allocation20 + $0x2d0] ss:$8 sps:$4 sm:$0xff]   ;;  %v9161_v12 = vld [vmem:[#allocation20 + $0x2e4] ss:$8 sps:$4 sm:$0xff]  }
 0x9f2   :  { %3816 = vmatprep.subr.bf16.mxu1 %v9119_v19  ;;  %v9159_v7 = vld [vmem:[#allocation20 + $0x2e0] ss:$8 sps:$4 sm:$0xff]   ;;  %v9164_v54 = vld [vmem:[#allocation20 + $0x2f4] ss:$8 sps:$4 sm:$0xff]   ;;  %v9162_v15 = vld [vmem:[#allocation20 + $0x2f0] ss:$8 sps:$4 sm:$0xff]  }
 0x9f3   :  { %v2961_v11 = vpack.c.bf16 %v10853_v36, %v10851_v30  ;;  %v9167_v23 = vld [vmem:[#allocation20 + $0x304] ss:$8 sps:$4 sm:$0xff]   ;;  %v9165_v19 = vld [vmem:[#allocation20 + $0x300] ss:$8 sps:$4 sm:$0xff]   ;;  %v9170_v31 = vld [vmem:[#allocation20 + $0x314] ss:$8 sps:$4 sm:$0xff]  }
 0x9f4   :  { %3806 = vmatmul.mubr.bf16.vlgmr.msra.gmra.mrb[32].mxu1 %v2956_v28  ;;  %v9135_v28 = vld [vmem:[#allocation20 + $0x260] ss:$8 sps:$4 sm:$0xff]   ;;  %v9168_v21 = vld [vmem:[#allocation20 + $0x310] ss:$8 sps:$4 sm:$0xff]   ;;  %v9173_v46 = vld [vmem:[#allocation20 + $0x324] ss:$8 sps:$4 sm:$0xff]  }
 0x9f5   :  { %3817 = vmatpush1.bf16.msra.mxu1 %v9117_v29  ;;  %3848 = vmatprep.mubr.bf16.mxu1 %v2959_v18  ;;  %v9171_v2 = vld [vmem:[#allocation20 + $0x320] ss:$8 sps:$4 sm:$0xff]   ;;  %v9176_v24 = vld [vmem:[#allocation20 + $0x334] ss:$8 sps:$4 sm:$0xff]   ;;  %v9174_v25 = vld [vmem:[#allocation20 + $0x330] ss:$8 sps:$4 sm:$0xff]  }
 0x9f6   :  { %3818 = vmatprep.subr.bf16.mxu1 %v9122_v59  ;;  %v9179_v29 = vld [vmem:[#allocation20 + $0x344] ss:$8 sps:$4 sm:$0xff]   ;;  %v9177_v18 = vld [vmem:[#allocation20 + $0x340] ss:$8 sps:$4 sm:$0xff]   ;;  %v9182_v8 = vld [vmem:[#allocation20 + $0x354] ss:$8 sps:$4 sm:$0xff]  }
 0x9f7   :  { %v9180_v9 = vld [vmem:[#allocation20 + $0x350] ss:$8 sps:$4 sm:$0xff]   ;;  %v9183_v30 = vld [vmem:[#allocation20 + $0x360] ss:$8 sps:$4 sm:$0xff]   ;;  %v9188_v36 = vld [vmem:[#allocation20 + $0x374] ss:$8 sps:$4 sm:$0xff]  }
 0x9f8   :  { %v9186_v59 = vld [vmem:[#allocation20 + $0x370] ss:$8 sps:$4 sm:$0xff]  }
 0x9f9   :  { %3819 = vmatpush1.bf16.msra.mxu1 %v9120_v26  ;;  %v9189_v26 = vld [vmem:[#allocation20 + $0x380] ss:$8 sps:$4 sm:$0xff]  }
 0x9fa   :  { %3820 = vmatprep.subr.bf16.mxu1 %v9125_v38  ;;  %v9194_v38 = vld [vmem:[#allocation20 + $0x394] ss:$8 sps:$4 sm:$0xff]  }
 0x9fd   :  { %3821 = vmatpush1.bf16.msra.mxu1 %v9123_v41  ;;  %v9192_v41 = vld [vmem:[#allocation20 + $0x390] ss:$8 sps:$4 sm:$0xff]  }
 0x9fe   :  { %3822 = vmatprep.subr.bf16.mxu1 %v9128_v60  ;;  %v9197_v60 = vld [vmem:[#allocation20 + $0x3a4] ss:$8 sps:$4 sm:$0xff]  }
 0xa01   :  { %3823 = vmatpush1.bf16.msra.mxu1 %v9126_v32  ;;  %v9195_v32 = vld [vmem:[#allocation20 + $0x3a0] ss:$8 sps:$4 sm:$0xff]  }
 0xa02   :  { %3824 = vmatprep.subr.bf16.mxu1 %v9131_v34  ;;  %v9200_v34 = vld [vmem:[#allocation20 + $0x3b4] ss:$8 sps:$4 sm:$0xff]  }
 0xa05   :  { %3825 = vmatpush1.bf16.msra.mxu1 %v9129_v42  ;;  %v9198_v42 = vld [vmem:[#allocation20 + $0x3b0] ss:$8 sps:$4 sm:$0xff]  }
 0xa06   :  { %3826 = vmatprep.subr.bf16.mxu1 %v9134_v43  ;;  %v9203_v43 = vld [vmem:[#allocation20 + $0x3c4] ss:$8 sps:$4 sm:$0xff]  }
 0xa09   :  { %3827 = vmatpush1.bf16.msra.mxu1 %v9132_v22  ;;  %v9201_v22 = vld [vmem:[#allocation20 + $0x3c0] ss:$8 sps:$4 sm:$0xff]  }
 0xa0a   :  { %3828 = vmatprep.subr.bf16.mxu1 %v9137_v45  ;;  %v9206_v45 = vld [vmem:[#allocation20 + $0x3d4] ss:$8 sps:$4 sm:$0xff]  }
 0xa0d   :  { %3829 = vmatpush1.bf16.msra.mxu1 %v9135_v28  ;;  %v9204_v28 = vld [vmem:[#allocation20 + $0x3d0] ss:$8 sps:$4 sm:$0xff]  }
 0xa0e   :  { %3830 = vmatprep.subr.bf16.mxu1 %v9140_v39  ;;  %v9209_v39 = vld [vmem:[#allocation20 + $0x3e4] ss:$8 sps:$4 sm:$0xff]  }
 0xa11   :  { %3831 = vmatpush1.bf16.msra.mxu1 %v9138_v44  ;;  %v9207_v44 = vld [vmem:[#allocation20 + $0x3e0] ss:$8 sps:$4 sm:$0xff]  }
 0xa12   :  { %3832 = vmatprep.subr.bf16.mxu1 %v9143_v47  ;;  %v9212_v47 = vld [vmem:[#allocation20 + $0x3f4] ss:$8 sps:$4 sm:$0xff]  }
 0xa15   :  { %3833 = vmatpush1.bf16.msra.mxu1 %v9141_v48  ;;  %v9210_v48 = vld [vmem:[#allocation20 + $0x3f0] ss:$8 sps:$4 sm:$0xff]  }
 0xa16   :  { %3834 = vmatprep.subr.bf16.mxu1 %v9146_v50  ;;  %v3906_v50 = vld [vmem:[#allocation22] sm:$0x3] }
 0xa19   :  { %3835 = vmatpush1.bf16.msra.mxu1 %v9144_v52  ;;  %v3911_v52 = vrot.slane %v3906_v50, %v10545_v0 }
 0xa1a   :  { %3836 = vmatprep.subr.bf16.mxu1 %v9149_v3 }
 0xa1d   :  { %3837 = vmatpush1.bf16.msra.mxu1 %v9147_v57  ;;  %v3915_v57 = vrot.slane %v3906_v50, %v10542_v63  ;;  %v9248_v50 = vld [vmem:[#allocation8 + $0x514] ss:$24 sps:$4 sm:$0xff]  }
 0xa1e   :  { %3838 = vmatprep.subr.bf16.mxu1 %v9152_v58 }
 0xa21   :  { %3839 = vmatpush1.bf16.msra.mxu1 %v9150_v4 }
 0xa22   :  { %3840 = vmatprep.subr.bf16.mxu1 %v9155_v61 }
 0xa25   :  { %3841 = vmatpush1.bf16.msra.mxu1 %v9153_v1 }
 0xa26   :  { %3842 = vmatprep.subr.bf16.mxu1 %v9158_v5 }
 0xa29   :  { %3843 = vmatpush1.bf16.msra.mxu1 %v9156_v6 }
 0xa2a   :  { %3844 = vmatprep.subr.bf16.mxu1 %v9161_v12 }
 0xa2d   :  { %3845 = vmatpush1.bf16.msra.mxu1 %v9159_v7 }
 0xa2e   :  { %3846 = vmatprep.subr.bf16.mxu1 %v9164_v54  ;;  %v9213_v54 = vld [vmem:[#allocation8 + $0x300] ss:$24 sps:$4 sm:$0xff]  }
 0xa31   :  { %3847 = vmatpush1.bf16.msra.mxu1 %v9162_v15  ;;  %v9215_v15 = vld [vmem:[#allocation8 + $0x304] ss:$24 sps:$4 sm:$0xff]  }
 0xa32   :  { %3859 = vmatprep.subr.bf16.mxu1 %v9167_v23  ;;  %4600 = vmatprep.subr.bf16.mxu0 %v9215_v15  ;;  %v9216_v23 = vld [vmem:[#allocation8 + $0x330] ss:$24 sps:$4 sm:$0xff]  }
 0xa33   :  { %4601 = vmatpush1.bf16.msra.mxu0 %v9213_v54 }
 0xa34   :  { %3849 = vmatmul.mubr.bf16.vlgmr.msra.gmra.mrb[32].mxu1 %v2958_v13  ;;  %v9185_v13 = vld [vmem:[#allocation20 + $0x364] ss:$8 sps:$4 sm:$0xff]  }
 0xa35   :  { %3860 = vmatpush1.bf16.msra.mxu1 %v9165_v19  ;;  %3891 = vmatprep.mubr.bf16.mxu1 %v2961_v11  ;;  %v9191_v11 = vld [vmem:[#allocation20 + $0x384] ss:$8 sps:$4 sm:$0xff]   ;;  %v9219_v19 = vld [vmem:[#allocation8 + $0x360] ss:$24 sps:$4 sm:$0xff]  }
 0xa36   :  { %3861 = vmatprep.subr.bf16.mxu1 %v9170_v31  ;;  %v9224_v31 = vld [vmem:[#allocation8 + $0x394] ss:$24 sps:$4 sm:$0xff]  }
 0xa39   :  { %3862 = vmatpush1.bf16.msra.mxu1 %v9168_v21  ;;  %v9222_v21 = vld [vmem:[#allocation8 + $0x390] ss:$24 sps:$4 sm:$0xff]  }
 0xa3a   :  { %3863 = vmatprep.subr.bf16.mxu1 %v9173_v46  ;;  %v9227_v46 = vld [vmem:[#allocation8 + $0x3c4] ss:$24 sps:$4 sm:$0xff]  }
 0xa3d   :  { %3864 = vmatpush1.bf16.msra.mxu1 %v9171_v2  ;;  %v9225_v2 = vld [vmem:[#allocation8 + $0x3c0] ss:$24 sps:$4 sm:$0xff]  }
 0xa3e   :  { %3865 = vmatprep.subr.bf16.mxu1 %v9176_v24  ;;  %v9230_v24 = vld [vmem:[#allocation8 + $0x3f4] ss:$24 sps:$4 sm:$0xff]  }
 0xa41   :  { %3866 = vmatpush1.bf16.msra.mxu1 %v9174_v25  ;;  %v9228_v25 = vld [vmem:[#allocation8 + $0x3f0] ss:$24 sps:$4 sm:$0xff]  }
 0xa42   :  { %3867 = vmatprep.subr.bf16.mxu1 %v9179_v29  ;;  %v9233_v29 = vld [vmem:[#allocation8 + $0x424] ss:$24 sps:$4 sm:$0xff]  }
 0xa45   :  { %3868 = vmatpush1.bf16.msra.mxu1 %v9177_v18  ;;  %v9231_v18 = vld [vmem:[#allocation8 + $0x420] ss:$24 sps:$4 sm:$0xff]  }
 0xa46   :  { %3869 = vmatprep.subr.bf16.mxu1 %v9182_v8  ;;  %v9236_v8 = vld [vmem:[#allocation8 + $0x454] ss:$24 sps:$4 sm:$0xff]  }
 0xa49   :  { %3870 = vmatpush1.bf16.msra.mxu1 %v9180_v9  ;;  %v9234_v9 = vld [vmem:[#allocation8 + $0x450] ss:$24 sps:$4 sm:$0xff]  }
 0xa4a   :  { %3871 = vmatprep.subr.bf16.mxu1 %v9185_v13  ;;  %v9239_v13 = vld [vmem:[#allocation8 + $0x484] ss:$24 sps:$4 sm:$0xff]  }
 0xa4d   :  { %3872 = vmatpush1.bf16.msra.mxu1 %v9183_v30  ;;  %v9237_v30 = vld [vmem:[#allocation8 + $0x480] ss:$24 sps:$4 sm:$0xff]  }
 0xa4e   :  { %3873 = vmatprep.subr.bf16.mxu1 %v9188_v36  ;;  %v9242_v36 = vld [vmem:[#allocation8 + $0x4b4] ss:$24 sps:$4 sm:$0xff]  }
 0xa51   :  { %3874 = vmatpush1.bf16.msra.mxu1 %v9186_v59  ;;  %v9240_v59 = vld [vmem:[#allocation8 + $0x4b0] ss:$24 sps:$4 sm:$0xff]  }
 0xa52   :  { %3875 = vmatprep.subr.bf16.mxu1 %v9191_v11 }
 0xa55   :  { %3876 = vmatpush1.bf16.msra.mxu1 %v9189_v26 }
 0xa56   :  { %3877 = vmatprep.subr.bf16.mxu1 %v9194_v38 }
 0xa59   :  { %3878 = vmatpush1.bf16.msra.mxu1 %v9192_v41 }
 0xa5a   :  { %3879 = vmatprep.subr.bf16.mxu1 %v9197_v60 }
 0xa5d   :  { %3880 = vmatpush1.bf16.msra.mxu1 %v9195_v32 }
 0xa5e   :  { %3881 = vmatprep.subr.bf16.mxu1 %v9200_v34 }
 0xa61   :  { %3882 = vmatpush1.bf16.msra.mxu1 %v9198_v42 }
 0xa62   :  { %3883 = vmatprep.subr.bf16.mxu1 %v9203_v43 }
 0xa65   :  { %3884 = vmatpush1.bf16.msra.mxu1 %v9201_v22 }
 0xa66   :  { %3885 = vmatprep.subr.bf16.mxu1 %v9206_v45 }
 0xa69   :  { %3886 = vmatpush1.bf16.msra.mxu1 %v9204_v28 }
 0xa6a   :  { %3887 = vmatprep.subr.bf16.mxu1 %v9209_v39 }
 0xa6d   :  { %3888 = vmatpush1.bf16.msra.mxu1 %v9207_v44 }
 0xa6e   :  { %3889 = vmatprep.subr.bf16.mxu1 %v9212_v47  ;;  %v9245_v47 = vld [vmem:[#allocation8 + $0x4e4] ss:$24 sps:$4 sm:$0xff]  }
 0xa71   :  { %3890 = vmatpush1.bf16.msra.mxu1 %v9210_v48  ;;  %v9243_v48 = vld [vmem:[#allocation8 + $0x4e0] ss:$24 sps:$4 sm:$0xff]  }
 0xa72   :  { %8732 = vmatprep.subr.bf16.mxu1 %v10173_v35 }
 0xa74   :  { %3892 = vmatmul.mubr.bf16.vlgmr.msra.gmra.mrb[32].mxu1 %v2960_v49 }
 0xa75   :  { %8734 = vmatprep.mubr.msk.bf16.mxu1 %vm10174_vm0, %v10173_v35 }
 0xb47   :  { %v3893_v3 = vpop.f32.mrb[32].mxu1 }
 0xb48   :  { %v3902_v58 = vadd.f32 %v3893_v3, %v10665_v51  ;;  %v3895_v4 = vpop.f32.mrb[33].mxu1  ;;  %v9249_v3 = vld [vmem:[#allocation8 + $0x540] ss:$24 sps:$4 sm:$0xff]  }
 0xb49   :  { %v3903_v61 = vadd.f32 %v3895_v4, %v10668_v53  ;;  %v3897_v1 = vpop.f32.mrb[34].mxu1  ;;  %v9252_v4 = vld [vmem:[#allocation8 + $0x570] ss:$24 sps:$4 sm:$0xff]  }
 0xb4a   :  { %v10876_v5 = vadd.f32 %v3911_v52, %v3902_v58  ;;  %v3904_v16 = vadd.f32 %v3897_v1, %v10671_v55  ;;  %v3899_v33 = vpop.f32.mrb[35].mxu1  ;;  %v9218_v55 = vld [vmem:[#allocation8 + $0x334] ss:$24 sps:$4 sm:$0xff]   ;;  %v9255_v1 = vld [vmem:[#allocation8 + $0x5a0] ss:$24 sps:$4 sm:$0xff]  }
 0xb4b   :  { %v10879_v49 = vadd.f32 %v3915_v57, %v3903_v61  ;;  %v3905_v6 = vadd.f32 %v3899_v33, %v10673_v56  ;;  %4602 = vmatprep.subr.bf16.mxu0 %v9218_v55  ;;  %v9221_v56 = vld [vmem:[#allocation8 + $0x364] ss:$24 sps:$4 sm:$0xff]   ;;  %v9254_v58 = vld [vmem:[#allocation8 + $0x574] ss:$24 sps:$4 sm:$0xff]   ;;  %v9258_v33 = vld [vmem:[#allocation8 + $0x5d0] ss:$24 sps:$4 sm:$0xff]  }
 0xb4c   :  { %v10882_v12 = vadd.f32 %v3911_v52, %v3904_v16  ;;  %4603 = vmatpush1.bf16.msra.mxu0 %v9216_v23  ;;  %v9246_v52 = vld [vmem:[#allocation8 + $0x510] ss:$24 sps:$4 sm:$0xff]   ;;  %v9257_v61 = vld [vmem:[#allocation8 + $0x5a4] ss:$24 sps:$4 sm:$0xff]   ;;  %v9260_v16 = vld [vmem:[#allocation8 + $0x5d4] ss:$24 sps:$4 sm:$0xff]  }
 0xb4d   :  { %v10884_v7 = vadd.f32 %v3915_v57, %v3905_v6  ;;  %v3926_v51 = vadd.f32 %v10879_v49, %v10876_v5  ;;  %4604 = vmatprep.subr.bf16.mxu0 %v9221_v56  ;;  %v9251_v57 = vld [vmem:[#allocation8 + $0x544] ss:$24 sps:$4 sm:$0xff]   ;;  %v3923_v56 = vld [vmem:[#allocation5 + $0x2] sm:$0x3] }
 0xb4e   :  { %v9263_v6 = vld [vmem:[#allocation8 + $0x30c] ss:$24 sps:$4 sm:$0xff]  }
 0xb4f   :  { %3927 = vadd.xlane.f32.xlu0 %v3926_v51  ;;  %v3929_v53 = vadd.f32 %v10884_v7, %v10882_v12 }
 0xb50   :  { %4605 = vmatpush1.bf16.msra.mxu0 %v9219_v19  ;;  %v3925_v19 = vld [vmem:[#allocation7 + $0x2] sm:$0x3] }
 0xb51   :  { %3930 = vadd.xlane.f32.xlu1 %v3929_v53  ;;  %4606 = vmatprep.subr.bf16.mxu0 %v9224_v31  ;;  %v3962_v31 = vrot.slane %v3923_v56, %v10545_v0 }
 0xb54   :  { %4607 = vmatpush1.bf16.msra.mxu0 %v9222_v21  ;;  %v3966_v21 = vrot.slane %v3923_v56, %v10542_v63  ;;  %v9305_v56 = vld [vmem:[#allocation8 + $0x5ac] ss:$24 sps:$4 sm:$0xff]  }
 0xb55   :  { %4608 = vmatprep.subr.bf16.mxu0 %v9227_v46 }
 0xb58   :  { %4609 = vmatpush1.bf16.msra.mxu0 %v9225_v2 }
 0xb59   :  { %4610 = vmatprep.subr.bf16.mxu0 %v9230_v24 }
 0xb5c   :  { %4611 = vmatpush1.bf16.msra.mxu0 %v9228_v25 }
 0xb5d   :  { %4612 = vmatprep.subr.bf16.mxu0 %v9233_v29  ;;  %v3977_v29 = vrot.slane %v3925_v19, %v10545_v0 }
 0xb60   :  { %4613 = vmatpush1.bf16.msra.mxu0 %v9231_v18  ;;  %v3981_v18 = vrot.slane %v3925_v19, %v10542_v63  ;;  %v9303_v19 = vld [vmem:[#allocation8 + $0x5a8] ss:$24 sps:$4 sm:$0xff]  }
 0xb61   :  { %4614 = vmatprep.subr.bf16.mxu0 %v9236_v8 }
 0xb64   :  { %4615 = vmatpush1.bf16.msra.mxu0 %v9234_v9 }
 0xb65   :  { %4616 = vmatprep.subr.bf16.mxu0 %v9239_v13 }
 0xb68   :  { %4617 = vmatpush1.bf16.msra.mxu0 %v9237_v30 }
 0xb69   :  { %4618 = vmatprep.subr.bf16.mxu0 %v9242_v36 }
 0xb6c   :  { %4619 = vmatpush1.bf16.msra.mxu0 %v9240_v59 }
 0xb6d   :  { %4620 = vmatprep.subr.bf16.mxu0 %v9245_v47  ;;  %v9273_v47 = vld [vmem:[#allocation8 + $0x3c8] ss:$24 sps:$4 sm:$0xff]  }
 0xb70   :  { %4621 = vmatpush1.bf16.msra.mxu0 %v9243_v48  ;;  %v9278_v48 = vld [vmem:[#allocation8 + $0x3fc] ss:$24 sps:$4 sm:$0xff]  }
 0xb71   :  { %4622 = vmatprep.subr.bf16.mxu0 %v9248_v50  ;;  %v9276_v50 = vld [vmem:[#allocation8 + $0x3f8] ss:$24 sps:$4 sm:$0xff]  }
 0xb74   :  { %4623 = vmatpush1.bf16.msra.mxu0 %v9246_v52  ;;  %v9281_v52 = vld [vmem:[#allocation8 + $0x42c] ss:$24 sps:$4 sm:$0xff]  }
 0xb75   :  { %4624 = vmatprep.subr.bf16.mxu0 %v9251_v57  ;;  %v9284_v57 = vld [vmem:[#allocation8 + $0x45c] ss:$24 sps:$4 sm:$0xff]  }
 0xb78   :  { %4625 = vmatpush1.bf16.msra.mxu0 %v9249_v3  ;;  %v9279_v3 = vld [vmem:[#allocation8 + $0x428] ss:$24 sps:$4 sm:$0xff]  }
 0xb79   :  { %4626 = vmatprep.subr.bf16.mxu0 %v9254_v58  ;;  %v9282_v58 = vld [vmem:[#allocation8 + $0x458] ss:$24 sps:$4 sm:$0xff]  }
 0xb7c   :  { %4627 = vmatpush1.bf16.msra.mxu0 %v9252_v4  ;;  %v9287_v4 = vld [vmem:[#allocation8 + $0x48c] ss:$24 sps:$4 sm:$0xff]  }
 0xb7d   :  { %4628 = vmatprep.subr.bf16.mxu0 %v9257_v61  ;;  %v9285_v61 = vld [vmem:[#allocation8 + $0x488] ss:$24 sps:$4 sm:$0xff]  }
 0xb80   :  { %4629 = vmatpush1.bf16.msra.mxu0 %v9255_v1  ;;  %v9290_v1 = vld [vmem:[#allocation8 + $0x4bc] ss:$24 sps:$4 sm:$0xff]  }
 0xb81   :  { %4630 = vmatprep.subr.bf16.mxu0 %v9260_v16  ;;  %v9288_v16 = vld [vmem:[#allocation8 + $0x4b8] ss:$24 sps:$4 sm:$0xff]  }
 0xb84   :  { %4631 = vmatpush1.bf16.msra.mxu0 %v9258_v33  ;;  %v9293_v33 = vld [vmem:[#allocation8 + $0x4ec] ss:$24 sps:$4 sm:$0xff]  }
 0xb85   :  { %4643 = vmatprep.subr.bf16.mxu0 %v9263_v6  ;;  %v9291_v6 = vld [vmem:[#allocation8 + $0x4e8] ss:$24 sps:$4 sm:$0xff]  }
 0xbdc   :  { %v3928_v11 = vpop.xlane.xlu0 %3927 }
 0xbdd   :  { %v3932_v26 = vmul.f32 0.00390625, %v3928_v11 }
 0xbde   :  { %v3931_v38 = vpop.xlane.xlu1 %3930 }
 0xbdf   :  { %v3934_v41 = vsub.f32 %v10876_v5, %v3932_v26  ;;  %v3935_v60 = vsub.f32 %v10879_v49, %v3932_v26  ;;  %v3933_v32 = vmul.f32 0.00390625, %v3931_v38 }
 0xbe1   :  { %v3936_v34 = vsub.f32 %v10882_v12, %v3933_v32  ;;  %v3937_v42 = vsub.f32 %v10884_v7, %v3933_v32  ;;  %v3938_v43 = vmul.f32 %v3934_v41, %v3934_v41  ;;  %v3939_v22 = vmul.f32 %v3935_v60, %v3935_v60 }
 0xbe3   :  { %v3942_v45 = vadd.f32 %v3939_v22, %v3938_v43  ;;  %v3940_v28 = vmul.f32 %v3936_v34, %v3936_v34  ;;  %v3941_v39 = vmul.f32 %v3937_v42, %v3937_v42  ;;  %v9261_v22 = vld [vmem:[#allocation8 + $0x308] ss:$24 sps:$4 sm:$0xff]  }
 0xbe5   :  { %3943 = vadd.xlane.f32.xlu0 %v3942_v45  ;;  %v3945_v44 = vadd.f32 %v3941_v39, %v3940_v28  ;;  %v9267_v45 = vld [vmem:[#allocation8 + $0x368] ss:$24 sps:$4 sm:$0xff]   ;;  %v9272_v28 = vld [vmem:[#allocation8 + $0x39c] ss:$24 sps:$4 sm:$0xff]   ;;  %v9270_v39 = vld [vmem:[#allocation8 + $0x398] ss:$24 sps:$4 sm:$0xff]  }
 0xbe7   :  { %3946 = vadd.xlane.f32.xlu1 %v3945_v44  ;;  %v9275_v44 = vld [vmem:[#allocation8 + $0x3cc] ss:$24 sps:$4 sm:$0xff]  }
 0xc72   :  { %v3944_v51 = vpop.xlane.xlu0 %3943 }
 0xc73   :  { %v3948_v53 = vmul.f32 0.00390625, %v3944_v51  ;;  %v9296_v51 = vld [vmem:[#allocation8 + $0x51c] ss:$24 sps:$4 sm:$0xff]  }
 0xc74   :  { %v3947_v54 = vpop.xlane.xlu1 %3946 }
 0xc75   :  { %v3950_v15 = vadd.f32 1e-12, %v3948_v53  ;;  %v3949_v55 = vmul.f32 0.00390625, %v3947_v54  ;;  %v9294_v53 = vld [vmem:[#allocation8 + $0x518] ss:$24 sps:$4 sm:$0xff]  }
 0xc76   :  { %v9299_v54 = vld [vmem:[#allocation8 + $0x54c] ss:$24 sps:$4 sm:$0xff]  }
 0xc77   :  { %9669 = vrsqrt.f32 %v3950_v15  ;;  %v3951_v23 = vadd.f32 1e-12, %v3949_v55  ;;  %v9297_v15 = vld [vmem:[#allocation8 + $0x548] ss:$24 sps:$4 sm:$0xff]   ;;  %v9302_v55 = vld [vmem:[#allocation8 + $0x57c] ss:$24 sps:$4 sm:$0xff]  }
 0xc79   :  { %9671 = vrsqrt.f32 %v3951_v23  ;;  %v9300_v23 = vld [vmem:[#allocation8 + $0x578] ss:$24 sps:$4 sm:$0xff]  }
 0xc81   :  { %v9670_v46 = vpop.eup %9669 }
 0xc82   :  { %v3954_v2 = vmul.f32 %v9670_v46, %v3934_v41  ;;  %v3955_v24 = vmul.f32 %v9670_v46, %v3935_v60  ;;  %v9266_v60 = vld [vmem:[#allocation8 + $0x33c] ss:$24 sps:$4 sm:$0xff]  }
 0xc83   :  { %v9672_v25 = vpop.eup %9671  ;;  %v9311_v46 = vld [vmem:[#allocation8 + $0x314] ss:$24 sps:$4 sm:$0xff]  }
 0xc84   :  { %v3956_v8 = vmul.f32 %v9672_v25, %v3936_v34  ;;  %v3957_v9 = vmul.f32 %v9672_v25, %v3937_v42  ;;  %v3970_v13 = vmul.f32 %v3966_v21, %v3955_v24  ;;  %v3969_v30 = vmul.f32 %v3962_v31, %v3954_v2  ;;  %v9264_v34 = vld [vmem:[#allocation8 + $0x338] ss:$24 sps:$4 sm:$0xff]   ;;  %v9269_v42 = vld [vmem:[#allocation8 + $0x36c] ss:$24 sps:$4 sm:$0xff]  }
 0xc85   :  { %v9309_v2 = vld [vmem:[#allocation8 + $0x310] ss:$24 sps:$4 sm:$0xff]   ;;  %v9314_v24 = vld [vmem:[#allocation8 + $0x344] ss:$24 sps:$4 sm:$0xff]   ;;  %v9312_v25 = vld [vmem:[#allocation8 + $0x340] ss:$24 sps:$4 sm:$0xff]  }
 0xc86   :  { %v3972_v36 = vmul.f32 %v3966_v21, %v3957_v9  ;;  %v3971_v59 = vmul.f32 %v3962_v31, %v3956_v8  ;;  %v3985_v11 = vadd.f32 %v3981_v18, %v3970_v13  ;;  %v3984_v38 = vadd.f32 %v3977_v29, %v3969_v30  ;;  %v9308_v31 = vld [vmem:[#allocation8 + $0x5dc] ss:$24 sps:$4 sm:$0xff]   ;;  %v9306_v21 = vld [vmem:[#allocation8 + $0x5d8] ss:$24 sps:$4 sm:$0xff]  }
 0xc87   :  { %v9320_v8 = vld [vmem:[#allocation8 + $0x3a4] ss:$24 sps:$4 sm:$0xff]   ;;  %v9318_v9 = vld [vmem:[#allocation8 + $0x3a0] ss:$24 sps:$4 sm:$0xff]   ;;  %v9323_v13 = vld [vmem:[#allocation8 + $0x3d4] ss:$24 sps:$4 sm:$0xff]  }
 0xc88   :  { %v3987_v26 = vadd.f32 %v3981_v18, %v3972_v36  ;;  %v3986_v32 = vadd.f32 %v3977_v29, %v3971_v59  ;;  %v9317_v29 = vld [vmem:[#allocation8 + $0x374] ss:$24 sps:$4 sm:$0xff]   ;;  %v9315_v18 = vld [vmem:[#allocation8 + $0x370] ss:$24 sps:$4 sm:$0xff]   ;;  %v9326_v36 = vld [vmem:[#allocation8 + $0x404] ss:$24 sps:$4 sm:$0xff]  }
 0xc89   :  { %v9321_v30 = vld [vmem:[#allocation8 + $0x3d0] ss:$24 sps:$4 sm:$0xff]   ;;  %v9324_v59 = vld [vmem:[#allocation8 + $0x400] ss:$24 sps:$4 sm:$0xff]  }
 0xc8a   :  { %v10898_v43 = vpack.c.bf16 %v3987_v26, %v3985_v11  ;;  %v10900_v41 = vpack.c.bf16 %v3986_v32, %v3984_v38  ;;  %v9329_v11 = vld [vmem:[#allocation8 + $0x434] ss:$24 sps:$4 sm:$0xff]   ;;  %v9327_v26 = vld [vmem:[#allocation8 + $0x430] ss:$24 sps:$4 sm:$0xff]   ;;  %v9332_v38 = vld [vmem:[#allocation8 + $0x464] ss:$24 sps:$4 sm:$0xff]  }
 0xc8b   :  { %v9330_v32 = vld [vmem:[#allocation8 + $0x460] ss:$24 sps:$4 sm:$0xff]  }
 0xc8c   :  { %4632 = vmatprep.mubr.bf16.mxu0 %v10898_v43 }
 0xc8d   :  { %4633 = vmatmul.mubr.bf16.vlgmr.msra.gmra.mrb[32].mxu0 %v10900_v41 }
 0xc8e   :  { %4644 = vmatpush1.bf16.msra.mxu0 %v9261_v22  ;;  %4675 = vmatprep.mubr.bf16.mxu0 %v10898_v43  ;;  %v9333_v22 = vld [vmem:[#allocation8 + $0x490] ss:$24 sps:$4 sm:$0xff]  }
 0xc8f   :  { %4645 = vmatprep.subr.bf16.mxu0 %v9266_v60  ;;  %v9338_v60 = vld [vmem:[#allocation8 + $0x4c4] ss:$24 sps:$4 sm:$0xff]  }
 0xc92   :  { %4646 = vmatpush1.bf16.msra.mxu0 %v9264_v34  ;;  %v9336_v34 = vld [vmem:[#allocation8 + $0x4c0] ss:$24 sps:$4 sm:$0xff]  }
 0xc93   :  { %4647 = vmatprep.subr.bf16.mxu0 %v9269_v42  ;;  %v9341_v42 = vld [vmem:[#allocation8 + $0x4f4] ss:$24 sps:$4 sm:$0xff]  }
 0xc96   :  { %4648 = vmatpush1.bf16.msra.mxu0 %v9267_v45  ;;  %v9339_v45 = vld [vmem:[#allocation8 + $0x4f0] ss:$24 sps:$4 sm:$0xff]  }
 0xc97   :  { %4649 = vmatprep.subr.bf16.mxu0 %v9272_v28  ;;  %v9344_v28 = vld [vmem:[#allocation8 + $0x524] ss:$24 sps:$4 sm:$0xff]  }
 0xc9a   :  { %4650 = vmatpush1.bf16.msra.mxu0 %v9270_v39  ;;  %v9342_v39 = vld [vmem:[#allocation8 + $0x520] ss:$24 sps:$4 sm:$0xff]  }
 0xc9b   :  { %4651 = vmatprep.subr.bf16.mxu0 %v9275_v44  ;;  %v9347_v44 = vld [vmem:[#allocation8 + $0x554] ss:$24 sps:$4 sm:$0xff]  }
 0xc9e   :  { %4652 = vmatpush1.bf16.msra.mxu0 %v9273_v47  ;;  %v9345_v47 = vld [vmem:[#allocation8 + $0x550] ss:$24 sps:$4 sm:$0xff]  }
 0xc9f   :  { %4653 = vmatprep.subr.bf16.mxu0 %v9278_v48  ;;  %v9350_v48 = vld [vmem:[#allocation8 + $0x584] ss:$24 sps:$4 sm:$0xff]  }
 0xca2   :  { %4654 = vmatpush1.bf16.msra.mxu0 %v9276_v50  ;;  %v9348_v50 = vld [vmem:[#allocation8 + $0x580] ss:$24 sps:$4 sm:$0xff]  }
 0xca3   :  { %4655 = vmatprep.subr.bf16.mxu0 %v9281_v52  ;;  %v9353_v52 = vld [vmem:[#allocation8 + $0x5b4] ss:$24 sps:$4 sm:$0xff]  }
 0xca6   :  { %4656 = vmatpush1.bf16.msra.mxu0 %v9279_v3  ;;  %v9351_v3 = vld [vmem:[#allocation8 + $0x5b0] ss:$24 sps:$4 sm:$0xff]  }
 0xca7   :  { %4657 = vmatprep.subr.bf16.mxu0 %v9284_v57  ;;  %v9356_v57 = vld [vmem:[#allocation8 + $0x5e4] ss:$24 sps:$4 sm:$0xff]  }
 0xcaa   :  { %4658 = vmatpush1.bf16.msra.mxu0 %v9282_v58  ;;  %v9354_v58 = vld [vmem:[#allocation8 + $0x5e0] ss:$24 sps:$4 sm:$0xff]  }
 0xcab   :  { %4659 = vmatprep.subr.bf16.mxu0 %v9287_v4 }
 0xcae   :  { %4660 = vmatpush1.bf16.msra.mxu0 %v9285_v61 }
 0xcaf   :  { %4661 = vmatprep.subr.bf16.mxu0 %v9290_v1 }
 0xcb2   :  { %4662 = vmatpush1.bf16.msra.mxu0 %v9288_v16 }
 0xcb3   :  { %4663 = vmatprep.subr.bf16.mxu0 %v9293_v33  ;;  %v10911_v33 = vld [vmem:[#allocation10 + $0x6] sm:$0x3f] }
 0xcb6   :  { %4664 = vmatpush1.bf16.msra.mxu0 %v9291_v6  ;;  %v4101_v6 = vrot.slane %v10911_v33, %v10568_v40 }
 0xcb7   :  { %4665 = vmatprep.subr.bf16.mxu0 %v9296_v51 }
 0xcba   :  { %4666 = vmatpush1.bf16.msra.mxu0 %v9294_v53 }
 0xcbb   :  { %4667 = vmatprep.subr.bf16.mxu0 %v9299_v54 }
 0xcbe   :  { %4668 = vmatpush1.bf16.msra.mxu0 %v9297_v15  ;;  %v4093_v15 = vrot.slane %v10911_v33, %v10545_v0 }
 0xcbf   :  { %4669 = vmatprep.subr.bf16.mxu0 %v9302_v55 }
 0xcc2   :  { %4670 = vmatpush1.bf16.msra.mxu0 %v9300_v23  ;;  %v4105_v23 = vrot.slane %v10911_v33, %v10571_v27 }
 0xcc3   :  { %4671 = vmatprep.subr.bf16.mxu0 %v9305_v56 }
 0xcc6   :  { %4672 = vmatpush1.bf16.msra.mxu0 %v9303_v19 }
 0xcc7   :  { %4673 = vmatprep.subr.bf16.mxu0 %v9308_v31 }
 0xcca   :  { %4674 = vmatpush1.bf16.msra.mxu0 %v9306_v21 }
 0xccb   :  { %4686 = vmatprep.subr.bf16.mxu0 %v9311_v46 }
 0xccd   :  { %4676 = vmatmul.mubr.bf16.vlgmr.msra.gmra.mrb[36].mxu0 %v10900_v41 }
 0xcce   :  { %4687 = vmatpush1.bf16.msra.mxu0 %v9309_v2  ;;  %4718 = vmatprep.mubr.bf16.mxu0 %v10898_v43  ;;  %v9335_v43 = vld [vmem:[#allocation8 + $0x494] ss:$24 sps:$4 sm:$0xff]  }
 0xccf   :  { %4688 = vmatprep.subr.bf16.mxu0 %v9314_v24 }
 0xcd2   :  { %4689 = vmatpush1.bf16.msra.mxu0 %v9312_v25 }
 0xcd3   :  { %4690 = vmatprep.subr.bf16.mxu0 %v9317_v29  ;;  %v4097_v29 = vrot.slane %v10911_v33, %v10542_v63 }
 0xcd6   :  { %4691 = vmatpush1.bf16.msra.mxu0 %v9315_v18 }
 0xcd7   :  { %4692 = vmatprep.subr.bf16.mxu0 %v9320_v8 }
 0xcda   :  { %4693 = vmatpush1.bf16.msra.mxu0 %v9318_v9 }
 0xcdb   :  { %4694 = vmatprep.subr.bf16.mxu0 %v9323_v13 }
 0xcde   :  { %4695 = vmatpush1.bf16.msra.mxu0 %v9321_v30 }
 0xcdf   :  { %4696 = vmatprep.subr.bf16.mxu0 %v9326_v36 }
 0xce2   :  { %4697 = vmatpush1.bf16.msra.mxu0 %v9324_v59 }
 0xce3   :  { %4698 = vmatprep.subr.bf16.mxu0 %v9329_v11  ;;  %v4109_v11 = vrot.slane %v10911_v33, %v10593_v10 }
 0xce6   :  { %4699 = vmatpush1.bf16.msra.mxu0 %v9327_v26 }
 0xce7   :  { %4700 = vmatprep.subr.bf16.mxu0 %v9332_v38 }
 0xcea   :  { %4701 = vmatpush1.bf16.msra.mxu0 %v9330_v32 }
 0xceb   :  { %4702 = vmatprep.subr.bf16.mxu0 %v9335_v43 }
 0xcee   :  { %4703 = vmatpush1.bf16.msra.mxu0 %v9333_v22 }
 0xcef   :  { %4704 = vmatprep.subr.bf16.mxu0 %v9338_v60 }
 0xcf2   :  { %4705 = vmatpush1.bf16.msra.mxu0 %v9336_v34 }
 0xcf3   :  { %4706 = vmatprep.subr.bf16.mxu0 %v9341_v42 }
 0xcf6   :  { %4707 = vmatpush1.bf16.msra.mxu0 %v9339_v45 }
 0xcf7   :  { %4708 = vmatprep.subr.bf16.mxu0 %v9344_v28 }
 0xcfa   :  { %4709 = vmatpush1.bf16.msra.mxu0 %v9342_v39 }
 0xcfb   :  { %4710 = vmatprep.subr.bf16.mxu0 %v9347_v44 }
 0xcfe   :  { %4711 = vmatpush1.bf16.msra.mxu0 %v9345_v47 }
 0xcff   :  { %4712 = vmatprep.subr.bf16.mxu0 %v9350_v48 }
 0xd02   :  { %4713 = vmatpush1.bf16.msra.mxu0 %v9348_v50 }
 0xd03   :  { %4714 = vmatprep.subr.bf16.mxu0 %v9353_v52 }
 0xd06   :  { %4715 = vmatpush1.bf16.msra.mxu0 %v9351_v3 }
 0xd07   :  { %4716 = vmatprep.subr.bf16.mxu0 %v9356_v57 }
 0xd0a   :  { %4717 = vmatpush1.bf16.msra.mxu0 %v9354_v58 }
 0xd0b   :  { %8726 = vmatprep.subr.bf16.mxu0 %v10173_v35 }
 0xd0d   :  { %4719 = vmatmul.mubr.bf16.vlgmr.msra.gmra.mrb[40].mxu0 %v10900_v41 }
 0xd0e   :  { %8728 = vmatprep.mubr.msk.bf16.mxu0 %vm10174_vm0, %v10173_v35 }
 0xd60   :  { %v4634_v4 = vpop.f32.mrb[32].mxu0 }
 0xd61   :  { %v4636_v61 = vpop.f32.mrb[33].mxu0  ;;  %v4635_v21 = vadd.f32 %v4634_v4, %v4093_v15 }
 0xd62   :  { %v4638_v1 = vpop.f32.mrb[34].mxu0  ;;  %v4637_v13 = vadd.f32 %v4636_v61, %v4097_v29 }
 0xd63   :  { %v4640_v16 = vpop.f32.mrb[35].mxu0  ;;  %v4639_v2 = vadd.f32 %v4638_v1, %v4093_v15  ;;  %v4729_v25 = vpack.c.bf16 %v4635_v21, %v4635_v21 }
 0xd64   :  { %v4641_v30 = vadd.f32 %v4640_v16, %v4097_v29  ;;  %v4731_v36 = vpack.c.bf16 %v4637_v13, %v4637_v13 }
 0xd65   :  { %v4730_v8 = vpack.c.bf16 %v4639_v2, %v4639_v2 }
 0xd66   :  { %v4732_v59 = vpack.c.bf16 %v4641_v30, %v4641_v30 }
 0xda0   :  { %v4677_v51 = vpop.f32.mrb[36].mxu0 }
 0xda1   :  { %v4678_v53 = vadd.f32 %v4677_v51, %v4101_v6  ;;  %v4679_v54 = vpop.f32.mrb[37].mxu0 }
 0xda2   :  { %v4681_v55 = vpop.f32.mrb[38].mxu0  ;;  %v4680_v46 = vadd.f32 %v4679_v54, %v4105_v23 }
 0xda3   :  { %v4733_v41 = vpack.c.bf16 %v4678_v53, %v4678_v53  ;;  %v4682_v56 = vadd.f32 %v4681_v55, %v4101_v6  ;;  %v4683_v19 = vpop.f32.mrb[39].mxu0 }
 0xda4   :  { %v4684_v24 = vadd.f32 %v4683_v19, %v4105_v23  ;;  %v4735_v18 = vpack.c.bf16 %v4680_v46, %v4680_v46 }
 0xda5   :  { %v4734_v31 = vpack.c.bf16 %v4682_v56, %v4682_v56  ;;  %8727 = vmatpush3.bf16.xpose.msra.mxu0 %v4733_v41 }
 0xda6   :  { %8738 = vmatprep.subr.bf16.mxu0 %v10173_v35  ;;  %v4736_v9 = vpack.c.bf16 %v4684_v24, %v4684_v24 }
 0xda7   :  { %8733 = vmatpush3.bf16.xpose.msra.mxu1 %v4734_v31 }
 0xda8   :  { %8744 = vmatprep.subr.bf16.mxu1 %v10173_v35 }
 0xdac   :  { %8729 = vmatmul.mubr.bf16.vlgmr.msra.gmra.mrb[44].mxu0 %v4729_v25 }
 0xdad   :  { %8739 = vmatpush3.bf16.xpose.msra.mxu0 %v4735_v18  ;;  %8740 = vmatprep.mubr.msk.bf16.mxu0 %vm10174_vm0, %v10173_v35 }
 0xdae   :  { %8735 = vmatmul.mubr.bf16.vlgmr.msra.gmra.mrb[36].mxu1 %v4730_v8  ;;  %8750 = vmatprep.subr.bf16.mxu0 %v10173_v35 }
 0xdaf   :  { %8745 = vmatpush3.bf16.xpose.msra.mxu1 %v4736_v9  ;;  %8746 = vmatprep.mubr.msk.bf16.mxu1 %vm10174_vm0, %v10173_v35 }
 0xdb0   :  { %8756 = vmatprep.subr.bf16.mxu1 %v10173_v35 }
 0xdb4   :  { %8741 = vmatmul.mubr.bf16.vlgmr.msra.gmra.mrb[48].mxu0 %v4731_v36 }
 0xdb5   :  { %8752 = vmatprep.mubr.msk.bf16.mxu0 %vm10174_vm0, %v10173_v35 }
 0xdb6   :  { %8747 = vmatmul.mubr.bf16.vlgmr.msra.gmra.mrb[40].mxu1 %v4732_v59 }
 0xdb7   :  { %8758 = vmatprep.mubr.msk.bf16.mxu1 %vm10174_vm0, %v10173_v35 }
 0xde0   :  { %v4720_v26 = vpop.f32.mrb[40].mxu0 }
 0xde1   :  { %v4721_v38 = vadd.f32 %v4720_v26, %v4109_v11  ;;  %v10935_v32 = vpop.f32.mrb[41].mxu0 }
 0xde2   :  { %v4724_v43 = vpop.f32.mrb[42].mxu0 }
 0xde3   :  { %v4737_v22 = vpack.c.bf16 %v4721_v38, %v4721_v38  ;;  %v4725_v60 = vadd.f32 %v4724_v43, %v4109_v11  ;;  %v10937_v34 = vpop.f32.mrb[43].mxu0 }
 0xde5   :  { %v4957_v42 = vsel %vm1323_vm1, %v4737_v22, 0  ;;  %v4738_v45 = vpack.c.bf16 %v4725_v60, %v4725_v60 }
 0xde6   :  { %8751 = vmatpush3.bf16.msra.mxu0 %v4957_v42 }
 0xde7   :  { %v5003_v28 = vsel %vm1323_vm1, %v4738_v45, 0  ;;  %8762 = vmatprep.subr.bf16.mxu0 %v10173_v35 }
 0xde8   :  { %8757 = vmatpush3.bf16.msra.mxu1 %v5003_v28  ;;  %v4113_v28 = vrot.slane %v10911_v33, %v10635_v37 }
 0xde9   :  { %8768 = vmatprep.subr.bf16.mxu1 %v10173_v35 }
 0xe7f   :  { %v4775_v39 = vpop.f32.mrb[44].mxu0 }
 0xe80   :  { %v4901_v44 = vsel %vm290_vm2, %v4775_v39, -1e+30  ;;  %v8730_v47 = vpop.f32.mrb[45].mxu0  ;;  %v4723_v39 = vadd.f32 %v10935_v32, %v4113_v28 }
 0xe81   :  { %v4778_v48 = vpop.f32.mrb[46].mxu0  ;;  %v4815_v50 = vpop.f32.mrb[36].mxu1  ;;  %v4905_v52 = vsel %vm1271_vm3, %v4901_v44, -inf  ;;  %v4727_v47 = vadd.f32 %v10937_v34, %v4113_v28  ;;  %v9402_v28 = vld [vmem:[#allocation11 + $0x1f0] ss:$8 sps:$4 sm:$0xff]  }
 0xe82   :  { %v4902_v3 = vsel %vm290_vm2, %v4815_v50, -1e+30  ;;  %v8736_v57 = vpop.f32.mrb[37].mxu1  ;;  %4906 = vmax.xlane.f32.xlu0 %v4905_v52  ;;  %v8731_v58 = vpop.f32.mrb[47].mxu0  ;;  %v4739_v52 = vpack.c.bf16 %v4723_v39, %v4723_v39  ;;  %v9404_v39 = vld [vmem:[#allocation11 + $0x1f4] ss:$8 sps:$4 sm:$0xff]  }
 0xe83   :  { %v4818_v4 = vpop.f32.mrb[38].mxu1  ;;  %v4908_v61 = vsel %vm1271_vm3, %v4902_v3, -inf  ;;  %v4740_v58 = vpack.c.bf16 %v4727_v47, %v4727_v47 }
 0xe84   :  { %4909 = vmax.xlane.f32.xlu1 %v4908_v61  ;;  %v8737_v1 = vpop.f32.mrb[39].mxu1 }
 0xe85   :  { %v9359_v1 = vld [vmem:[#allocation11 + $0x104] ss:$8 sps:$4 sm:$0xff]   ;;  %v5095_v32 = vsel %vm1323_vm1, %v4740_v58, 0 }
 0xe87   :  { %v4855_v16 = vpop.f32.mrb[48].mxu0 }
 0xe88   :  { %v4903_v6 = vsel %vm290_vm2, %v4855_v16, -1e+30  ;;  %v8742_v51 = vpop.f32.mrb[49].mxu0  ;;  %v5049_v16 = vsel %vm1323_vm1, %v4739_v52, 0 }
 0xe89   :  { %v4858_v53 = vpop.f32.mrb[50].mxu0  ;;  %v4895_v54 = vpop.f32.mrb[40].mxu1  ;;  %v4911_v15 = vsel %vm1271_vm3, %v4903_v6, -inf }
 0xe8a   :  { %v4904_v55 = vsel %vm290_vm2, %v4895_v54, -1e+30  ;;  %v8748_v41 = vpop.f32.mrb[41].mxu1  ;;  %4912 = vmax.xlane.f32.xlu0 %v4911_v15  ;;  %v8743_v23 = vpop.f32.mrb[51].mxu0  ;;  %v9357_v53 = vld [vmem:[#allocation11 + $0x100] ss:$8 sps:$4 sm:$0xff]  }
 0xe8b   :  { %v4898_v56 = vpop.f32.mrb[42].mxu1  ;;  %v4914_v19 = vsel %vm1271_vm3, %v4904_v55, -inf  ;;  %v9360_v23 = vld [vmem:[#allocation11 + $0x110] ss:$8 sps:$4 sm:$0xff]  }
 0xe8c   :  { %4915 = vmax.xlane.f32.xlu1 %v4914_v19  ;;  %v8749_v31 = vpop.f32.mrb[43].mxu1  ;;  %v9365_v56 = vld [vmem:[#allocation11 + $0x124] ss:$8 sps:$4 sm:$0xff]   ;;  %v9363_v19 = vld [vmem:[#allocation11 + $0x120] ss:$8 sps:$4 sm:$0xff]  }
 0xe8d   :  { %v9368_v31 = vld [vmem:[#allocation11 + $0x134] ss:$8 sps:$4 sm:$0xff]  }
 0xf0f   :  { %v4907_v21 = vpop.xlane.xlu0 %4906 }
 0xf10   :  { %v4917_v46 = vsub.f32 %v4901_v44, %v4907_v21  ;;  %v9371_v21 = vld [vmem:[#allocation11 + $0x144] ss:$8 sps:$4 sm:$0xff]  }
 0xf11   :  { %v4910_v2 = vpop.xlane.xlu1 %4909 }
 0xf12   :  { %v4921_v24 = vmul.f32 1.442695, %v4917_v46  ;;  %v4918_v25 = vsub.f32 %v4902_v3, %v4910_v2  ;;  %v9369_v46 = vld [vmem:[#allocation11 + $0x140] ss:$8 sps:$4 sm:$0xff]   ;;  %v9374_v2 = vld [vmem:[#allocation11 + $0x154] ss:$8 sps:$4 sm:$0xff]  }
 0xf14   :  { %9673 = vpow2.f32 %v4921_v24  ;;  %v4923_v29 = vmul.f32 1.442695, %v4918_v25  ;;  %v9372_v24 = vld [vmem:[#allocation11 + $0x150] ss:$8 sps:$4 sm:$0xff]   ;;  %v9377_v25 = vld [vmem:[#allocation11 + $0x164] ss:$8 sps:$4 sm:$0xff]  }
 0xf16   :  { %9675 = vpow2.f32 %v4923_v29  ;;  %v9375_v29 = vld [vmem:[#allocation11 + $0x160] ss:$8 sps:$4 sm:$0xff]  }
 0xf17   :  { %v4913_v18 = vpop.xlane.xlu0 %4912 }
 0xf18   :  { %v4919_v8 = vsub.f32 %v4903_v6, %v4913_v18  ;;  %v9380_v18 = vld [vmem:[#allocation11 + $0x174] ss:$8 sps:$4 sm:$0xff]  }
 0xf19   :  { %v4916_v20 = vpop.xlane.xlu1 %4915 }
 0xf1a   :  { %v4925_v9 = vmul.f32 1.442695, %v4919_v8  ;;  %v4920_v13 = vsub.f32 %v4904_v55, %v4916_v20  ;;  %v9362_v55 = vld [vmem:[#allocation11 + $0x114] ss:$8 sps:$4 sm:$0xff]   ;;  %v9378_v8 = vld [vmem:[#allocation11 + $0x170] ss:$8 sps:$4 sm:$0xff]  }
 0xf1b   :  { %v9383_v20 = vld [vmem:[#allocation11 + $0x184] ss:$8 sps:$4 sm:$0xff]  }
 0xf1c   :  { %9677 = vpow2.f32 %v4925_v9  ;;  %v4927_v30 = vmul.f32 1.442695, %v4920_v13  ;;  %v9381_v9 = vld [vmem:[#allocation11 + $0x180] ss:$8 sps:$4 sm:$0xff]   ;;  %v9386_v13 = vld [vmem:[#allocation11 + $0x194] ss:$8 sps:$4 sm:$0xff]  }
 0xf1e   :  { %v9674_v36 = vpop.eup %9673  ;;  %9679 = vpow2.f32 %v4927_v30  ;;  %v9384_v30 = vld [vmem:[#allocation11 + $0x190] ss:$8 sps:$4 sm:$0xff]  }
 0xf1f   :  { %v4929_v59 = vsel %vm1271_vm3, %v9674_v36, 0.0 }
 0xf20   :  { %v9676_v11 = vpop.eup %9675  ;;  %4930 = vadd.xlane.f32.xlu0 %v4929_v59  ;;  %v9387_v59 = vld [vmem:[#allocation11 + $0x1a0] ss:$8 sps:$4 sm:$0xff]  }
 0xf21   :  { %v4932_v26 = vsel %vm1271_vm3, %v9676_v11, 0.0 }
 0xf22   :  { %4933 = vadd.xlane.f32.xlu1 %v4932_v26  ;;  %v9390_v26 = vld [vmem:[#allocation11 + $0x1b0] ss:$8 sps:$4 sm:$0xff]  }
 0xf26   :  { %v9678_v38 = vpop.eup %9677 }
 0xf27   :  { %v4935_v43 = vsel %vm1271_vm3, %v9678_v38, 0.0 }
 0xf28   :  { %v9680_v22 = vpop.eup %9679  ;;  %4936 = vadd.xlane.f32.xlu0 %v4935_v43  ;;  %v9393_v43 = vld [vmem:[#allocation11 + $0x1c0] ss:$8 sps:$4 sm:$0xff]  }
 0xf29   :  { %v4938_v60 = vsel %vm1271_vm3, %v9680_v22, 0.0 }
 0xf2a   :  { %4939 = vadd.xlane.f32.xlu1 %v4938_v60  ;;  %v9398_v60 = vld [vmem:[#allocation11 + $0x1d4] ss:$8 sps:$4 sm:$0xff]  }
 0xfad   :  { %v4931_v42 = vpop.xlane.xlu0 %4930 }
 0xfae   :  { %9681 = vrcp.f32 %v4931_v42  ;;  %v9401_v42 = vld [vmem:[#allocation11 + $0x1e4] ss:$8 sps:$4 sm:$0xff]  }
 0xfaf   :  { %v4934_v45 = vpop.xlane.xlu1 %4933 }
 0xfb0   :  { %9683 = vrcp.f32 %v4934_v45  ;;  %v9399_v45 = vld [vmem:[#allocation11 + $0x1e0] ss:$8 sps:$4 sm:$0xff]  }
 0xfb5   :  { %v4937_v44 = vpop.xlane.xlu0 %4936 }
 0xfb6   :  { %9685 = vrcp.f32 %v4937_v44 }
 0xfb7   :  { %v4940_v48 = vpop.xlane.xlu1 %4939 }
 0xfb8   :  { %v9682_v50 = vpop.eup %9681  ;;  %9687 = vrcp.f32 %v4940_v48 }
 0xfb9   :  { %v4945_v3 = vmul.f32 %v9682_v50, %v9674_v36  ;;  %v9389_v36 = vld [vmem:[#allocation11 + $0x1a4] ss:$8 sps:$4 sm:$0xff]  }
 0xfba   :  { %v9684_v57 = vpop.eup %9683 }
 0xfbb   :  { %v4946_v4 = vmul.f32 %v9684_v57, %v9676_v11  ;;  %v4949_v61 = vpack.c.bf16 %v4945_v3, %v4945_v3  ;;  %v9392_v11 = vld [vmem:[#allocation11 + $0x1b4] ss:$8 sps:$4 sm:$0xff]  }
 0xfbd   :  { %8753 = vmatmul.mubr.msk.bf16.vlgmr.msra.gmra.mrb[52].mxu0 %vm1271_vm3, %v4949_v61  ;;  %v4950_v33 = vpack.c.bf16 %v4946_v4, %v4946_v4 }
 0xfbe   :  { %8763 = vmatpush3.bf16.msra.mxu0 %v5049_v16  ;;  %8764 = vmatprep.mubr.msk.bf16.mxu0 %vm10174_vm0, %v10173_v35 }
 0xfbf   :  { %8759 = vmatmul.mubr.msk.bf16.vlgmr.msra.gmra.mrb[44].mxu1 %vm1271_vm3, %v4950_v33  ;;  %5332 = vmatprep.subr.bf16.mxu0 %v9359_v1 }
 0xfc0   :  { %v9686_v34 = vpop.eup %9685  ;;  %8769 = vmatpush3.bf16.msra.mxu1 %v5095_v32  ;;  %8770 = vmatprep.mubr.msk.bf16.mxu1 %vm10174_vm0, %v10173_v35  ;;  %v9366_v35 = vld [vmem:[#allocation11 + $0x130] ss:$8 sps:$4 sm:$0xff]  }
 0xfc1   :  { %v4947_v6 = vmul.f32 %v9686_v34, %v9678_v38  ;;  %v9395_v38 = vld [vmem:[#allocation11 + $0x1c4] ss:$8 sps:$4 sm:$0xff]  }
 0xfc2   :  { %v9688_v51 = vpop.eup %9687 }
 0xfc3   :  { %v4948_v54 = vmul.f32 %v9688_v51, %v9680_v22  ;;  %v4951_v15 = vpack.c.bf16 %v4947_v6, %v4947_v6  ;;  %v9396_v22 = vld [vmem:[#allocation11 + $0x1d0] ss:$8 sps:$4 sm:$0xff]  }
 0xfc5   :  { %8765 = vmatmul.mubr.msk.bf16.vlgmr.msra.gmra.mrb[56].mxu0 %vm1271_vm3, %v4951_v15  ;;  %v4952_v41 = vpack.c.bf16 %v4948_v54, %v4948_v54  ;;  %v5380_v54 = vld [vmem:[#allocation13 + $0x2] sm:$0x3] }
 0xfc6   :  { %5333 = vmatpush1.bf16.msra.mxu0 %v9357_v53  ;;  %v5385_v15 = vrot.slane %v5380_v54, %v10545_v0 }
 0xfc7   :  { %8771 = vmatmul.mubr.msk.bf16.vlgmr.msra.gmra.mrb[48].mxu1 %vm1271_vm3, %v4952_v41  ;;  %5334 = vmatprep.subr.bf16.mxu0 %v9362_v55  ;;  %v5389_v41 = vrot.slane %v5380_v54, %v10542_v63  ;;  %v5505_v54 = vld [vmem:[#allocation17 + $0x540] sm:$0xff] }
 0xfca   :  { %5335 = vmatpush1.bf16.msra.mxu0 %v9360_v23 }
 0xfcb   :  { %5336 = vmatprep.subr.bf16.mxu0 %v9365_v56 }
 0xfce   :  { %5337 = vmatpush1.bf16.msra.mxu0 %v9363_v19 }
 0xfcf   :  { %5338 = vmatprep.subr.bf16.mxu0 %v9368_v31 }
 0xfd2   :  { %5339 = vmatpush1.bf16.msra.mxu0 %v9366_v35 }
 0xfd3   :  { %5340 = vmatprep.subr.bf16.mxu0 %v9371_v21 }
 0xfd6   :  { %5341 = vmatpush1.bf16.msra.mxu0 %v9369_v46 }
 0xfd7   :  { %5342 = vmatprep.subr.bf16.mxu0 %v9374_v2 }
 0xfda   :  { %5343 = vmatpush1.bf16.msra.mxu0 %v9372_v24 }
 0xfdb   :  { %5344 = vmatprep.subr.bf16.mxu0 %v9377_v25 }
 0xfde   :  { %5345 = vmatpush1.bf16.msra.mxu0 %v9375_v29 }
 0xfdf   :  { %5346 = vmatprep.subr.bf16.mxu0 %v9380_v18  ;;  %v5465_v18 = vld [vmem:[#allocation17 + $0x400] sm:$0xff] }
 0xfe2   :  { %5347 = vmatpush1.bf16.msra.mxu0 %v9378_v8  ;;  %v5469_v8 = vld [vmem:[#allocation17 + $0x420] sm:$0xff] }
 0xfe3   :  { %5348 = vmatprep.subr.bf16.mxu0 %v9383_v20  ;;  %v8351_v20 = vcombine.low %v5465_v18, %v5469_v8 }
 0xfe6   :  { %5349 = vmatpush1.bf16.msra.mxu0 %v9381_v9  ;;  %v8352_v9 = vcombine.high %v5465_v18, %v5469_v8 }
 0xfe7   :  { %5350 = vmatprep.subr.bf16.mxu0 %v9386_v13  ;;  %v5470_v13 = vld [vmem:[#allocation17 + $0x428] sm:$0xff] }
 0xfe8   :  { %6276 = vmatprep.subr.bf16.mxu1 %v8352_v9  ;;  %v5525_v9 = vld [vmem:[#allocation17 + $0x5e0] sm:$0xff] }
 0xfe9   :  { %6277 = vmatpush1.bf16.msra.mxu1 %v8351_v20  ;;  %v5521_v20 = vld [vmem:[#allocation17 + $0x5c0] sm:$0xff] }
 0xfea   :  { %5351 = vmatpush1.bf16.msra.mxu0 %v9384_v30  ;;  %v5473_v30 = vld [vmem:[#allocation17 + $0x440] sm:$0xff] }
 0xfeb   :  { %5352 = vmatprep.subr.bf16.mxu0 %v9389_v36 }
 0xfee   :  { %5353 = vmatpush1.bf16.msra.mxu0 %v9387_v59 }
 0xfef   :  { %5354 = vmatprep.subr.bf16.mxu0 %v9392_v11 }
 0xff2   :  { %5355 = vmatpush1.bf16.msra.mxu0 %v9390_v26  ;;  %v5474_v26 = vld [vmem:[#allocation17 + $0x448] sm:$0xff] }
 0xff3   :  { %5356 = vmatprep.subr.bf16.mxu0 %v9395_v38  ;;  %v5478_v38 = vld [vmem:[#allocation17 + $0x468] sm:$0xff] }
 0xff6   :  { %5357 = vmatpush1.bf16.msra.mxu0 %v9393_v43  ;;  %v5481_v43 = vld [vmem:[#allocation17 + $0x480] sm:$0xff] }
 0xff7   :  { %5358 = vmatprep.subr.bf16.mxu0 %v9398_v60  ;;  %v5485_v60 = vld [vmem:[#allocation17 + $0x4a0] sm:$0xff] }
 0xffa   :  { %5359 = vmatpush1.bf16.msra.mxu0 %v9396_v22  ;;  %v8362_v22 = vcombine.high %v5474_v26, %v5478_v38 }
 0xffb   :  { %5360 = vmatprep.subr.bf16.mxu0 %v9401_v42  ;;  %v5482_v42 = vld [vmem:[#allocation17 + $0x488] sm:$0xff] }
 0xffe   :  { %5361 = vmatpush1.bf16.msra.mxu0 %v9399_v45  ;;  %v5486_v45 = vld [vmem:[#allocation17 + $0x4a8] sm:$0xff] }
 0xfff   :  { %5362 = vmatprep.subr.bf16.mxu0 %v9404_v39  ;;  %v8361_v39 = vcombine.low %v5474_v26, %v5478_v38  ;;  %v5529_v26 = vld [vmem:[#allocation17 + $0x600] sm:$0xff] }
0x1000   :  { %v5533_v38 = vld [vmem:[#allocation17 + $0x620] sm:$0xff] }
0x1002   :  { %5363 = vmatpush1.bf16.msra.mxu0 %v9402_v28 }
0x1090   :  { %v4993_v44 = vpop.f32.mrb[52].mxu0 }
0x1091   :  { %v8754_v47 = vpop.f32.mrb[53].mxu0 }
0x1092   :  { %v4996_v48 = vpop.f32.mrb[54].mxu0  ;;  %v5039_v50 = vpop.f32.mrb[44].mxu1  ;;  %v8370_v47 = vcombine.high %v5482_v42, %v5486_v45 }
0x1093   :  { %v5137_v52 = vpack.c.bf16 %v5039_v50, %v4993_v44  ;;  %v8755_v3 = vpop.f32.mrb[55].mxu0  ;;  %v8760_v57 = vpop.f32.mrb[45].mxu1  ;;  %v8368_v44 = vcombine.high %v5481_v43, %v5485_v60  ;;  %v5489_v48 = vld [vmem:[#allocation17 + $0x4c0] sm:$0xff] }
0x1094   :  { %v5042_v58 = vpop.f32.mrb[46].mxu1  ;;  %v5493_v50 = vld [vmem:[#allocation17 + $0x4e0] sm:$0xff]  ;;  %v5494_v3 = vld [vmem:[#allocation17 + $0x4e8] sm:$0xff]  ;;  %v8367_v57 = vcombine.low %v5481_v43, %v5485_v60  ;;  %v8407_v60 = vcombine.low %v5521_v20, %v5525_v9 }
0x1095   :  { %v8761_v4 = vpop.f32.mrb[47].mxu1  ;;  %v8369_v58 = vcombine.low %v5482_v42, %v5486_v45  ;;  %v5530_v43 = vld [vmem:[#allocation17 + $0x608] sm:$0xff]  ;;  %v8416_v45 = vcombine.high %v5529_v26, %v5533_v38 }
0x1096   :  { %v8376_v4 = vcombine.high %v5489_v48, %v5493_v50 }
0x1098   :  { %v5085_v61 = vpop.f32.mrb[56].mxu0 }
0x1099   :  { %v8766_v1 = vpop.f32.mrb[57].mxu0 }
0x109a   :  { %v5088_v16 = vpop.f32.mrb[58].mxu0  ;;  %v5131_v33 = vpop.f32.mrb[48].mxu1  ;;  %v5497_v1 = vld [vmem:[#allocation17 + $0x500] sm:$0xff] }
0x109b   :  { %v5138_v32 = vpack.c.bf16 %v5131_v33, %v5085_v61  ;;  %v8767_v34 = vpop.f32.mrb[59].mxu0  ;;  %v8772_v6 = vpop.f32.mrb[49].mxu1  ;;  %v5501_v16 = vld [vmem:[#allocation17 + $0x520] sm:$0xff]  ;;  %v5498_v33 = vld [vmem:[#allocation17 + $0x508] sm:$0xff] }
0x109c   :  { %v5134_v51 = vpop.f32.mrb[50].mxu1  ;;  %v8375_v34 = vcombine.low %v5489_v48, %v5493_v50  ;;  %v5542_v48 = vld [vmem:[#allocation17 + $0x668] sm:$0xff]  ;;  %v8415_v50 = vcombine.low %v5529_v26, %v5533_v38 }
0x109d   :  { %v8773_v53 = vpop.f32.mrb[51].mxu1  ;;  %5364 = vmatprep.mubr.bf16.mxu0 %v5138_v32  ;;  %v5502_v32 = vld [vmem:[#allocation17 + $0x528] sm:$0xff]  ;;  %v8384_v51 = vcombine.high %v5497_v1, %v5501_v16 }
0x109e   :  { %5365 = vmatmul.mubr.bf16.vlgmr.msra.gmra.mrb[60].mxu0 %v5137_v52  ;;  %v5490_v52 = vld [vmem:[#allocation17 + $0x4c8] sm:$0xff]  ;;  %v8386_v53 = vcombine.high %v5498_v33, %v5502_v32 }
0x109f   :  { %v8378_v61 = vcombine.high %v5490_v52, %v5494_v3  ;;  %v8377_v6 = vcombine.low %v5490_v52, %v5494_v3  ;;  %v5566_v38 = vld [vmem:[#allocation17 + $0x728] sm:$0xff] }
0x1171   :  { %v5366_v55 = vpop.f32.mrb[60].mxu0 }
0x1172   :  { %v5375_v23 = vadd.f32 %v5366_v55, %v10876_v5  ;;  %v5368_v56 = vpop.f32.mrb[61].mxu0  ;;  %v5506_v55 = vld [vmem:[#allocation17 + $0x548] sm:$0xff] }
0x1173   :  { %v5376_v19 = vadd.f32 %v5368_v56, %v10879_v49  ;;  %v5370_v31 = vpop.f32.mrb[62].mxu0  ;;  %v8385_v56 = vcombine.low %v5498_v33, %v5502_v32 }
0x1174   :  { %v10977_v35 = vadd.f32 %v5385_v15, %v5375_v23  ;;  %v5377_v21 = vadd.f32 %v5370_v31, %v10882_v12  ;;  %v5372_v46 = vpop.f32.mrb[63].mxu0  ;;  %v5466_v12 = vld [vmem:[#allocation17 + $0x408] sm:$0xff]  ;;  %v8383_v23 = vcombine.low %v5497_v1, %v5501_v16 }
0x1175   :  { %v10980_v2 = vadd.f32 %v5389_v41, %v5376_v19  ;;  %v5378_v24 = vadd.f32 %v5372_v46, %v10884_v7  ;;  %v5477_v7 = vld [vmem:[#allocation17 + $0x460] sm:$0xff]  ;;  %v8353_v36 = vcombine.low %v5466_v12, %v5470_v13  ;;  %v8354_v59 = vcombine.high %v5466_v12, %v5470_v13  ;;  %v5522_v13 = vld [vmem:[#allocation17 + $0x5c8] sm:$0xff] }
0x1176   :  { %v10983_v25 = vadd.f32 %v5385_v15, %v5377_v21  ;;  %v8360_v11 = vcombine.high %v5473_v30, %v5477_v7  ;;  %v8359_v28 = vcombine.low %v5473_v30, %v5477_v7  ;;  %v5509_v15 = vld [vmem:[#allocation17 + $0x560] sm:$0xff]  ;;  %v5526_v30 = vld [vmem:[#allocation17 + $0x5e8] sm:$0xff] }
0x1177   :  { %v10985_v29 = vadd.f32 %v5389_v41, %v5378_v24  ;;  %v5400_v5 = vadd.f32 %v10980_v2, %v10977_v35  ;;  %6319 = vmatprep.subr.bf16.mxu0 %v8354_v59  ;;  %v5510_v41 = vld [vmem:[#allocation17 + $0x568] sm:$0xff]  ;;  %v8392_v19 = vcombine.high %v5505_v54, %v5509_v15  ;;  %v5513_v21 = vld [vmem:[#allocation17 + $0x580] sm:$0xff]  ;;  %v8408_v59 = vcombine.high %v5521_v20, %v5525_v9 }
0x1178   :  { %6320 = vmatpush1.bf16.msra.mxu0 %v8353_v36  ;;  %6278 = vmatprep.subr.bf16.mxu1 %v8360_v11  ;;  %v8394_v31 = vcombine.high %v5506_v55, %v5510_v41  ;;  %v5517_v46 = vld [vmem:[#allocation17 + $0x5a0] sm:$0xff]  ;;  %v5514_v24 = vld [vmem:[#allocation17 + $0x588] sm:$0xff]  ;;  %v8393_v18 = vcombine.low %v5506_v55, %v5510_v41  ;;  %v8410_v11 = vcombine.high %v5522_v13, %v5526_v30 }
0x1179   :  { %5401 = vadd.xlane.f32.xlu0 %v5400_v5  ;;  %v5403_v49 = vadd.f32 %v10985_v29, %v10983_v25  ;;  %6321 = vmatprep.subr.bf16.mxu0 %v8362_v22  ;;  %v5518_v5 = vld [vmem:[#allocation17 + $0x5a8] sm:$0xff]  ;;  %v8400_v8 = vcombine.high %v5513_v21, %v5517_v46  ;;  %v8399_v7 = vcombine.low %v5513_v21, %v5517_v46 }
0x117a   :  { %6279 = vmatpush1.bf16.msra.mxu1 %v8359_v28  ;;  %v8402_v12 = vcombine.high %v5514_v24, %v5518_v5  ;;  %v8401_v36 = vcombine.low %v5514_v24, %v5518_v5  ;;  %v5534_v22 = vld [vmem:[#allocation17 + $0x628] sm:$0xff]  ;;  %v8409_v42 = vcombine.low %v5522_v13, %v5526_v30 }
0x117b   :  { %5404 = vadd.xlane.f32.xlu1 %v5403_v49  ;;  %6280 = vmatprep.subr.bf16.mxu1 %v8368_v44  ;;  %v8391_v49 = vcombine.low %v5505_v54, %v5509_v15  ;;  %v8418_v28 = vcombine.high %v5530_v43, %v5534_v22  ;;  %v5541_v44 = vld [vmem:[#allocation17 + $0x660] sm:$0xff]  ;;  %v8417_v52 = vcombine.low %v5530_v43, %v5534_v22  ;;  %v5550_v46 = vld [vmem:[#allocation17 + $0x6a8] sm:$0xff] }
0x117c   :  { %6322 = vmatpush1.bf16.msra.mxu0 %v8361_v39  ;;  %v5537_v39 = vld [vmem:[#allocation17 + $0x640] sm:$0xff]  ;;  %v5558_v9 = vld [vmem:[#allocation17 + $0x6e8] sm:$0xff] }
0x117d   :  { %6323 = vmatprep.subr.bf16.mxu0 %v8370_v47  ;;  %v5538_v47 = vld [vmem:[#allocation17 + $0x648] sm:$0xff]  ;;  %v8424_v3 = vcombine.high %v5537_v39, %v5541_v44 }
0x117e   :  { %6281 = vmatpush1.bf16.msra.mxu1 %v8367_v57  ;;  %v8426_v57 = vcombine.high %v5538_v47, %v5542_v48 }
0x117f   :  { %6282 = vmatprep.subr.bf16.mxu1 %v8376_v4  ;;  %v8425_v4 = vcombine.low %v5538_v47, %v5542_v48  ;;  %v5577_v47 = vld [vmem:[#allocation17 + $0x780] sm:$0xff] }
0x1180   :  { %6324 = vmatpush1.bf16.msra.mxu0 %v8369_v58  ;;  %v8423_v58 = vcombine.low %v5537_v39, %v5541_v44  ;;  %v5574_v44 = vld [vmem:[#allocation17 + $0x768] sm:$0xff]  ;;  %v5581_v48 = vld [vmem:[#allocation17 + $0x7a0] sm:$0xff] }
0x1181   :  { %6325 = vmatprep.subr.bf16.mxu0 %v8378_v61 }
0x1182   :  { %6283 = vmatpush1.bf16.msra.mxu1 %v8375_v34 }
0x1183   :  { %6284 = vmatprep.subr.bf16.mxu1 %v8384_v51 }
0x1184   :  { %6326 = vmatpush1.bf16.msra.mxu0 %v8377_v6 }
0x1185   :  { %6327 = vmatprep.subr.bf16.mxu0 %v8386_v53 }
0x1186   :  { %6285 = vmatpush1.bf16.msra.mxu1 %v8383_v23 }
0x1187   :  { %6286 = vmatprep.subr.bf16.mxu1 %v8392_v19  ;;  %v5549_v19 = vld [vmem:[#allocation17 + $0x6a0] sm:$0xff] }
0x1188   :  { %6328 = vmatpush1.bf16.msra.mxu0 %v8385_v56  ;;  %v5545_v56 = vld [vmem:[#allocation17 + $0x680] sm:$0xff] }
0x1189   :  { %6329 = vmatprep.subr.bf16.mxu0 %v8394_v31  ;;  %v5546_v31 = vld [vmem:[#allocation17 + $0x688] sm:$0xff]  ;;  %v8432_v21 = vcombine.high %v5545_v56, %v5549_v19  ;;  %v8431_v24 = vcombine.low %v5545_v56, %v5549_v19  ;;  %v5471_v56 = vld [vmem:[#allocation17 + $0x430] sm:$0xff]  ;;  %v5468_v19 = vld [vmem:[#allocation17 + $0x418] sm:$0xff] }
0x118a   :  { %6287 = vmatpush1.bf16.msra.mxu1 %v8391_v49  ;;  %v8433_v5 = vcombine.low %v5546_v31, %v5550_v46  ;;  %v8434_v49 = vcombine.high %v5546_v31, %v5550_v46 }
0x118b   :  { %6288 = vmatprep.subr.bf16.mxu1 %v8400_v8  ;;  %v5557_v8 = vld [vmem:[#allocation17 + $0x6e0] sm:$0xff] }
0x118c   :  { %6330 = vmatpush1.bf16.msra.mxu0 %v8393_v18  ;;  %v5553_v18 = vld [vmem:[#allocation17 + $0x6c0] sm:$0xff] }
0x118d   :  { %6331 = vmatprep.subr.bf16.mxu0 %v8402_v12  ;;  %v5554_v12 = vld [vmem:[#allocation17 + $0x6c8] sm:$0xff]  ;;  %v8440_v20 = vcombine.high %v5553_v18, %v5557_v8  ;;  %v8439_v13 = vcombine.low %v5553_v18, %v5557_v8 }
0x118e   :  { %6289 = vmatpush1.bf16.msra.mxu1 %v8399_v7  ;;  %v8441_v30 = vcombine.low %v5554_v12, %v5558_v9  ;;  %v8442_v7 = vcombine.high %v5554_v12, %v5558_v9 }
0x118f   :  { %6290 = vmatprep.subr.bf16.mxu1 %v8408_v59  ;;  %v5565_v59 = vld [vmem:[#allocation17 + $0x720] sm:$0xff] }
0x1190   :  { %6332 = vmatpush1.bf16.msra.mxu0 %v8401_v36  ;;  %v5561_v36 = vld [vmem:[#allocation17 + $0x700] sm:$0xff] }
0x1191   :  { %6333 = vmatprep.subr.bf16.mxu0 %v8410_v11  ;;  %v5562_v11 = vld [vmem:[#allocation17 + $0x708] sm:$0xff]  ;;  %v8448_v26 = vcombine.high %v5561_v36, %v5565_v59  ;;  %v8447_v43 = vcombine.low %v5561_v36, %v5565_v59  ;;  %v5399_v36 = vld [vmem:[#allocation16 + $0x2] sm:$0x3] }
0x1192   :  { %6291 = vmatpush1.bf16.msra.mxu1 %v8407_v60  ;;  %v8449_v22 = vcombine.low %v5562_v11, %v5566_v38  ;;  %v8450_v60 = vcombine.high %v5562_v11, %v5566_v38 }
0x1193   :  { %6292 = vmatprep.subr.bf16.mxu1 %v8416_v45  ;;  %v5573_v45 = vld [vmem:[#allocation17 + $0x760] sm:$0xff] }
0x1194   :  { %6334 = vmatpush1.bf16.msra.mxu0 %v8409_v42  ;;  %v5569_v42 = vld [vmem:[#allocation17 + $0x740] sm:$0xff] }
0x1195   :  { %6335 = vmatprep.subr.bf16.mxu0 %v8418_v28  ;;  %v5570_v28 = vld [vmem:[#allocation17 + $0x748] sm:$0xff]  ;;  %v8456_v39 = vcombine.high %v5569_v42, %v5573_v45 }
0x1196   :  { %6293 = vmatpush1.bf16.msra.mxu1 %v8415_v50  ;;  %v8455_v50 = vcombine.low %v5569_v42, %v5573_v45  ;;  %v5451_v42 = vrot.slane %v5399_v36, %v10545_v0 }
0x1197   :  { %6294 = vmatprep.subr.bf16.mxu1 %v8424_v3  ;;  %v5578_v3 = vld [vmem:[#allocation17 + $0x788] sm:$0xff] }
0x1198   :  { %6336 = vmatpush1.bf16.msra.mxu0 %v8417_v52  ;;  %v8458_v52 = vcombine.high %v5570_v28, %v5574_v44 }
0x1199   :  { %6337 = vmatprep.subr.bf16.mxu0 %v8426_v57  ;;  %v5582_v57 = vld [vmem:[#allocation17 + $0x7a8] sm:$0xff] }
0x119a   :  { %6295 = vmatpush1.bf16.msra.mxu1 %v8423_v58  ;;  %v8457_v58 = vcombine.low %v5570_v28, %v5574_v44 }
0x119b   :  { %6296 = vmatprep.subr.bf16.mxu1 %v8432_v21  ;;  %v5472_v21 = vld [vmem:[#allocation17 + $0x438] sm:$0xff] }
0x119c   :  { %6338 = vmatpush1.bf16.msra.mxu0 %v8425_v4  ;;  %v8464_v4 = vcombine.high %v5577_v47, %v5581_v48  ;;  %v8358_v18 = vcombine.high %v5468_v19, %v5472_v21 }
0x119d   :  { %6339 = vmatprep.subr.bf16.mxu0 %v8434_v49 }
0x119e   :  { %6297 = vmatpush1.bf16.msra.mxu1 %v8431_v24  ;;  %v8357_v24 = vcombine.low %v5468_v19, %v5472_v21  ;;  %v5495_v19 = vld [vmem:[#allocation17 + $0x4f0] sm:$0xff]  ;;  %v5492_v21 = vld [vmem:[#allocation17 + $0x4d8] sm:$0xff] }
0x119f   :  { %6298 = vmatprep.subr.bf16.mxu1 %v8440_v20 }
0x11a0   :  { %6340 = vmatpush1.bf16.msra.mxu0 %v8433_v5 }
0x11a1   :  { %6341 = vmatprep.subr.bf16.mxu0 %v8442_v7  ;;  %v5397_v7 = vld [vmem:[#allocation14 + $0x2] sm:$0x3] }
0x11a2   :  { %6299 = vmatpush1.bf16.msra.mxu1 %v8439_v13  ;;  %v5440_v59 = vrot.slane %v5397_v7, %v10542_v63  ;;  %v5436_v11 = vrot.slane %v5397_v7, %v10545_v0 }
0x11a3   :  { %6300 = vmatprep.subr.bf16.mxu1 %v8448_v26 }
0x11a4   :  { %6342 = vmatpush1.bf16.msra.mxu0 %v8441_v30 }
0x11a5   :  { %6343 = vmatprep.subr.bf16.mxu0 %v8450_v60  ;;  %v5455_v60 = vrot.slane %v5399_v36, %v10542_v63  ;;  %v5507_v36 = vld [vmem:[#allocation17 + $0x550] sm:$0xff] }
0x11a6   :  { %6301 = vmatpush1.bf16.msra.mxu1 %v8447_v43 }
0x11a7   :  { %6302 = vmatprep.subr.bf16.mxu1 %v8456_v39 }
0x11a8   :  { %6344 = vmatpush1.bf16.msra.mxu0 %v8449_v22 }
0x11a9   :  { %6345 = vmatprep.subr.bf16.mxu0 %v8458_v52 }
0x11aa   :  { %6303 = vmatpush1.bf16.msra.mxu1 %v8455_v50 }
0x11ab   :  { %6304 = vmatprep.subr.bf16.mxu1 %v8464_v4  ;;  %v5480_v4 = vld [vmem:[#allocation17 + $0x478] sm:$0xff] }
0x11ac   :  { %6346 = vmatpush1.bf16.msra.mxu0 %v8457_v58  ;;  %v5479_v58 = vld [vmem:[#allocation17 + $0x470] sm:$0xff] }
0x1206   :  { %v5402_v61 = vpop.xlane.xlu0 %5401 }
0x1207   :  { %v5406_v1 = vmul.f32 0.00390625, %v5402_v61  ;;  %v8466_v61 = vcombine.high %v5578_v3, %v5582_v57 }
0x1208   :  { %v5405_v16 = vpop.xlane.xlu1 %5404 }
0x1209   :  { %v10992_v33 = vsub.f32 %v10977_v35, %v5406_v1  ;;  %v10995_v32 = vsub.f32 %v10980_v2, %v5406_v1  ;;  %v5407_v34 = vmul.f32 0.00390625, %v5405_v16  ;;  %v5585_v1 = vld [vmem:[#allocation17 + $0x7c0] sm:$0xff]  ;;  %6347 = vmatprep.subr.bf16.mxu0 %v8466_v61 }
0x120a   :  { %v5589_v16 = vld [vmem:[#allocation17 + $0x7e0] sm:$0xff] }
0x120b   :  { %v10998_v6 = vsub.f32 %v10983_v25, %v5407_v34  ;;  %v11001_v51 = vsub.f32 %v10985_v29, %v5407_v34  ;;  %v5412_v53 = vmul.f32 %v10992_v33, %v10992_v33  ;;  %v5413_v54 = vmul.f32 %v10995_v32, %v10995_v32  ;;  %v5586_v34 = vld [vmem:[#allocation17 + $0x7c8] sm:$0xff] }
0x120c   :  { %v8471_v46 = vcombine.low %v5585_v1, %v5589_v16 }
0x120d   :  { %v5416_v15 = vadd.f32 %v5413_v54, %v5412_v53  ;;  %v5414_v55 = vmul.f32 %v10998_v6, %v10998_v6  ;;  %v5415_v41 = vmul.f32 %v11001_v51, %v11001_v51  ;;  %v5590_v53 = vld [vmem:[#allocation17 + $0x7e8] sm:$0xff]  ;;  %v8463_v54 = vcombine.low %v5577_v47, %v5581_v48 }
0x120e   :  { %v8473_v5 = vcombine.low %v5586_v34, %v5590_v53 }
0x120f   :  { %5417 = vadd.xlane.f32.xlu0 %v5416_v15  ;;  %v5419_v23 = vadd.f32 %v5415_v41, %v5414_v55  ;;  %v8465_v15 = vcombine.low %v5578_v3, %v5582_v57  ;;  %v8472_v55 = vcombine.high %v5585_v1, %v5589_v16  ;;  %v8474_v41 = vcombine.high %v5586_v34, %v5590_v53  ;;  %v5483_v16 = vld [vmem:[#allocation17 + $0x490] sm:$0xff]  ;;  %v5484_v53 = vld [vmem:[#allocation17 + $0x498] sm:$0xff] }
0x1210   :  { %6305 = vmatpush1.bf16.msra.mxu1 %v8463_v54  ;;  %v5487_v34 = vld [vmem:[#allocation17 + $0x4b0] sm:$0xff]  ;;  %v5488_v54 = vld [vmem:[#allocation17 + $0x4b8] sm:$0xff] }
0x1211   :  { %5420 = vadd.xlane.f32.xlu1 %v5419_v23  ;;  %v5467_v23 = vld [vmem:[#allocation17 + $0x410] sm:$0xff]  ;;  %6348 = vmatpush1.bf16.msra.mxu0 %v8465_v15 }
0x1212   :  { %v8355_v31 = vcombine.low %v5467_v23, %v5471_v56  ;;  %6306 = vmatprep.subr.bf16.mxu1 %v8472_v55  ;;  %v8356_v49 = vcombine.high %v5467_v23, %v5471_v56  ;;  %6349 = vmatprep.subr.bf16.mxu0 %v8474_v41  ;;  %v8372_v41 = vcombine.high %v5483_v16, %v5487_v34  ;;  %v5491_v56 = vld [vmem:[#allocation17 + $0x4d0] sm:$0xff] }
0x1213   :  { %v8374_v23 = vcombine.high %v5484_v53, %v5488_v54 }
0x1214   :  { %6307 = vmatpush1.bf16.msra.mxu1 %v8471_v46  ;;  %v5496_v46 = vld [vmem:[#allocation17 + $0x4f8] sm:$0xff] }
0x1215   :  { %6350 = vmatpush1.bf16.msra.mxu0 %v8473_v5  ;;  %6362 = vmatprep.subr.bf16.mxu1 %v8356_v49  ;;  %v8371_v5 = vcombine.low %v5483_v16, %v5487_v34  ;;  %v8373_v49 = vcombine.low %v5484_v53, %v5488_v54  ;;  %v5531_v16 = vld [vmem:[#allocation17 + $0x610] sm:$0xff]  ;;  %v5536_v34 = vld [vmem:[#allocation17 + $0x638] sm:$0xff] }
0x1216   :  { %6405 = vmatprep.subr.bf16.mxu0 %v8358_v18  ;;  %v5499_v18 = vld [vmem:[#allocation17 + $0x510] sm:$0xff] }
0x129c   :  { %v5418_v8 = vpop.xlane.xlu0 %5417 }
0x129d   :  { %v5422_v12 = vmul.f32 0.00390625, %v5418_v8  ;;  %v5503_v8 = vld [vmem:[#allocation17 + $0x530] sm:$0xff] }
0x129e   :  { %v5421_v20 = vpop.xlane.xlu1 %5420 }
0x129f   :  { %v5424_v9 = vadd.f32 1e-12, %v5422_v12  ;;  %v5423_v13 = vmul.f32 0.00390625, %v5421_v20  ;;  %v5500_v12 = vld [vmem:[#allocation17 + $0x518] sm:$0xff] }
0x12a0   :  { %v5504_v20 = vld [vmem:[#allocation17 + $0x538] sm:$0xff] }
0x12a1   :  { %9689 = vrsqrt.f32 %v5424_v9  ;;  %v5425_v30 = vadd.f32 1e-12, %v5423_v13  ;;  %v8379_v9 = vcombine.low %v5491_v56, %v5495_v19  ;;  %v8381_v13 = vcombine.low %v5492_v21, %v5496_v46 }
0x12a2   :  { %v8390_v7 = vcombine.high %v5500_v12, %v5504_v20 }
0x12a3   :  { %9691 = vrsqrt.f32 %v5425_v30  ;;  %v8388_v30 = vcombine.high %v5499_v18, %v5503_v8 }
0x12ab   :  { %v9690_v26 = vpop.eup %9689 }
0x12ac   :  { %v5428_v38 = vmul.f32 %v9690_v26, %v10992_v33  ;;  %v5429_v43 = vmul.f32 %v9690_v26, %v10995_v32  ;;  %v5475_v33 = vld [vmem:[#allocation17 + $0x450] sm:$0xff]  ;;  %v5476_v32 = vld [vmem:[#allocation17 + $0x458] sm:$0xff] }
0x12ad   :  { %v9692_v22 = vpop.eup %9691  ;;  %v8363_v15 = vcombine.low %v5475_v33, %v5479_v58  ;;  %v8365_v55 = vcombine.low %v5476_v32, %v5480_v4  ;;  %v5512_v26 = vld [vmem:[#allocation17 + $0x578] sm:$0xff] }
0x12ae   :  { %v5430_v45 = vmul.f32 %v9692_v22, %v10998_v6  ;;  %v5431_v28 = vmul.f32 %v9692_v22, %v11001_v51  ;;  %v5444_v39 = vmul.f32 %v5440_v59, %v5429_v43  ;;  %v5443_v44 = vmul.f32 %v5436_v11, %v5428_v38 }
0x12af   :  { %v8364_v6 = vcombine.high %v5475_v33, %v5479_v58  ;;  %v8366_v51 = vcombine.high %v5476_v32, %v5480_v4  ;;  %v8387_v38 = vcombine.low %v5499_v18, %v5503_v8  ;;  %v8389_v43 = vcombine.low %v5500_v12, %v5504_v20  ;;  %v5528_v33 = vld [vmem:[#allocation17 + $0x5f8] sm:$0xff] }
0x12b0   :  { %v5446_v47 = vmul.f32 %v5440_v59, %v5431_v28  ;;  %v5445_v48 = vmul.f32 %v5436_v11, %v5430_v45  ;;  %v5459_v50 = vadd.f32 %v5455_v60, %v5444_v39  ;;  %v5458_v3 = vadd.f32 %v5451_v42, %v5443_v44  ;;  %v5511_v59 = vld [vmem:[#allocation17 + $0x570] sm:$0xff]  ;;  %v5508_v11 = vld [vmem:[#allocation17 + $0x558] sm:$0xff] }
0x12b1   :  { %v8396_v22 = vcombine.high %v5507_v36, %v5511_v59  ;;  %v5519_v45 = vld [vmem:[#allocation17 + $0x5b0] sm:$0xff]  ;;  %v5516_v28 = vld [vmem:[#allocation17 + $0x598] sm:$0xff]  ;;  %v8395_v44 = vcombine.low %v5507_v36, %v5511_v59 }
0x12b2   :  { %v5461_v52 = vadd.f32 %v5455_v60, %v5446_v47  ;;  %v5460_v57 = vadd.f32 %v5451_v42, %v5445_v48  ;;  %v8398_v60 = vcombine.high %v5508_v11, %v5512_v26  ;;  %v5515_v42 = vld [vmem:[#allocation17 + $0x590] sm:$0xff]  ;;  %v5520_v39 = vld [vmem:[#allocation17 + $0x5b8] sm:$0xff]  ;;  %v8397_v47 = vcombine.low %v5508_v11, %v5512_v26 }
0x12b3   :  { %v8404_v48 = vcombine.high %v5515_v42, %v5519_v45  ;;  %v8403_v58 = vcombine.low %v5515_v42, %v5519_v45  ;;  %v8405_v32 = vcombine.low %v5516_v28, %v5520_v39  ;;  %v5548_v18 = vld [vmem:[#allocation17 + $0x698] sm:$0xff] }
0x12b4   :  { %v5463_v61 = vpack.c.bf16 %v5461_v52, %v5459_v50  ;;  %v11019_v1 = vpack.c.bf16 %v5460_v57, %v5458_v3  ;;  %v8406_v50 = vcombine.high %v5516_v28, %v5520_v39  ;;  %v5523_v52 = vld [vmem:[#allocation17 + $0x5d0] sm:$0xff]  ;;  %v5524_v57 = vld [vmem:[#allocation17 + $0x5d8] sm:$0xff] }
0x12b5   :  { %v5527_v3 = vld [vmem:[#allocation17 + $0x5f0] sm:$0xff]  ;;  %v8413_v54 = vcombine.low %v5524_v57, %v5528_v33  ;;  %v5552_v8 = vld [vmem:[#allocation17 + $0x6b8] sm:$0xff] }
0x12b6   :  { %6308 = vmatprep.mubr.bf16.mxu1 %v5463_v61  ;;  %6351 = vmatprep.mubr.bf16.mxu0 %v5463_v61  ;;  %v8412_v4 = vcombine.high %v5523_v52, %v5527_v3  ;;  %v8411_v53 = vcombine.low %v5523_v52, %v5527_v3  ;;  %v5556_v36 = vld [vmem:[#allocation17 + $0x6d8] sm:$0xff]  ;;  %v8437_v26 = vcombine.low %v5548_v18, %v5552_v8 }
0x12b7   :  { %6309 = vmatmul.mubr.bf16.vlgmr.msra.gmra.mrb[52].mxu1 %v11019_v1  ;;  %6352 = vmatmul.mubr.bf16.vlgmr.msra.gmra.mrb[64].mxu0 %v11019_v1  ;;  %v5560_v59 = vld [vmem:[#allocation17 + $0x6f8] sm:$0xff] }
0x12b8   :  { %6363 = vmatpush1.bf16.msra.mxu1 %v8355_v31  ;;  %6406 = vmatpush1.bf16.msra.mxu0 %v8357_v24  ;;  %v8380_v31 = vcombine.high %v5491_v56, %v5495_v19  ;;  %v8382_v24 = vcombine.high %v5492_v21, %v5496_v46  ;;  %v5540_v56 = vld [vmem:[#allocation17 + $0x658] sm:$0xff]  ;;  %v8445_v39 = vcombine.low %v5556_v36, %v5560_v59 }
0x12b9   :  { %6394 = vmatprep.mubr.bf16.mxu1 %v5463_v61  ;;  %6437 = vmatprep.mubr.bf16.mxu0 %v5463_v61  ;;  %v8414_v61 = vcombine.high %v5524_v57, %v5528_v33  ;;  %v5544_v19 = vld [vmem:[#allocation17 + $0x678] sm:$0xff] }
0x12ba   :  { %6364 = vmatprep.subr.bf16.mxu1 %v8364_v6  ;;  %6407 = vmatprep.subr.bf16.mxu0 %v8366_v51  ;;  %v5535_v6 = vld [vmem:[#allocation17 + $0x630] sm:$0xff]  ;;  %v5532_v51 = vld [vmem:[#allocation17 + $0x618] sm:$0xff]  ;;  %v8429_v20 = vcombine.low %v5540_v56, %v5544_v19 }
0x12bb   :  { %v8419_v21 = vcombine.low %v5531_v16, %v5535_v6  ;;  %v8421_v46 = vcombine.low %v5532_v51, %v5536_v34  ;;  %v5564_v42 = vld [vmem:[#allocation17 + $0x718] sm:$0xff] }
0x12bc   :  { %6365 = vmatpush1.bf16.msra.mxu1 %v8363_v15  ;;  %6408 = vmatpush1.bf16.msra.mxu0 %v8365_v55  ;;  %v8420_v15 = vcombine.high %v5531_v16, %v5535_v6  ;;  %v8422_v55 = vcombine.high %v5532_v51, %v5536_v34  ;;  %v5568_v45 = vld [vmem:[#allocation17 + $0x738] sm:$0xff] }
0x12bd   :  { %6366 = vmatprep.subr.bf16.mxu1 %v8372_v41  ;;  %6409 = vmatprep.subr.bf16.mxu0 %v8374_v23  ;;  %v5539_v41 = vld [vmem:[#allocation17 + $0x650] sm:$0xff]  ;;  %v5572_v52 = vld [vmem:[#allocation17 + $0x758] sm:$0xff]  ;;  %v8453_v33 = vcombine.low %v5564_v42, %v5568_v45 }
0x12be   :  { %v5543_v23 = vld [vmem:[#allocation17 + $0x670] sm:$0xff]  ;;  %v5576_v3 = vld [vmem:[#allocation17 + $0x778] sm:$0xff] }
0x12bf   :  { %v8427_v12 = vcombine.low %v5539_v41, %v5543_v23  ;;  %v5580_v16 = vld [vmem:[#allocation17 + $0x798] sm:$0xff]  ;;  %v8461_v34 = vcombine.low %v5572_v52, %v5576_v3 }
0x12c0   :  { %6367 = vmatpush1.bf16.msra.mxu1 %v8371_v5  ;;  %6410 = vmatpush1.bf16.msra.mxu0 %v8373_v49  ;;  %v8428_v5 = vcombine.high %v5539_v41, %v5543_v23  ;;  %v8430_v49 = vcombine.high %v5540_v56, %v5544_v19  ;;  %v5584_v6 = vld [vmem:[#allocation17 + $0x7b8] sm:$0xff] }
0x12c1   :  { %6368 = vmatprep.subr.bf16.mxu1 %v8380_v31  ;;  %6411 = vmatprep.subr.bf16.mxu0 %v8382_v24  ;;  %v5547_v31 = vld [vmem:[#allocation17 + $0x690] sm:$0xff]  ;;  %v5588_v41 = vld [vmem:[#allocation17 + $0x7d8] sm:$0xff]  ;;  %v8469_v19 = vcombine.low %v5580_v16, %v5584_v6 }
0x12c2   :  { %v5551_v24 = vld [vmem:[#allocation17 + $0x6b0] sm:$0xff]  ;;  %v5592_v23 = vld [vmem:[#allocation17 + $0x7f8] sm:$0xff] }
0x12c3   :  { %v8435_v11 = vcombine.low %v5547_v31, %v5551_v24 }
0x12c4   :  { %6369 = vmatpush1.bf16.msra.mxu1 %v8379_v9  ;;  %6412 = vmatpush1.bf16.msra.mxu0 %v8381_v13  ;;  %v8436_v9 = vcombine.high %v5547_v31, %v5551_v24  ;;  %v8438_v13 = vcombine.high %v5548_v18, %v5552_v8  ;;  %v9407_v31 = vld [vmem:[#allocation20 + $0x404] ss:$8 sps:$4 sm:$0xff]   ;;  %v9405_v24 = vld [vmem:[#allocation20 + $0x400] ss:$8 sps:$4 sm:$0xff]   ;;  %v9410_v18 = vld [vmem:[#allocation20 + $0x414] ss:$8 sps:$4 sm:$0xff]  }
0x12c5   :  { %6370 = vmatprep.subr.bf16.mxu1 %v8388_v30  ;;  %6413 = vmatprep.subr.bf16.mxu0 %v8390_v7  ;;  %v5555_v30 = vld [vmem:[#allocation17 + $0x6d0] sm:$0xff]  ;;  %v9408_v8 = vld [vmem:[#allocation20 + $0x410] ss:$8 sps:$4 sm:$0xff]  }
0x12c6   :  { %v5559_v7 = vld [vmem:[#allocation17 + $0x6f0] sm:$0xff] }
0x12c7   :  { %v8443_v28 = vcombine.low %v5555_v30, %v5559_v7 }
0x12c8   :  { %6371 = vmatpush1.bf16.msra.mxu1 %v8387_v38  ;;  %6414 = vmatpush1.bf16.msra.mxu0 %v8389_v43  ;;  %v8444_v38 = vcombine.high %v5555_v30, %v5559_v7  ;;  %v8446_v43 = vcombine.high %v5556_v36, %v5560_v59  ;;  %v9419_v30 = vld [vmem:[#allocation20 + $0x444] ss:$8 sps:$4 sm:$0xff]   ;;  %v9417_v7 = vld [vmem:[#allocation20 + $0x440] ss:$8 sps:$4 sm:$0xff]   ;;  %v9422_v36 = vld [vmem:[#allocation20 + $0x454] ss:$8 sps:$4 sm:$0xff]  }
0x12c9   :  { %6372 = vmatprep.subr.bf16.mxu1 %v8396_v22  ;;  %6415 = vmatprep.subr.bf16.mxu0 %v8398_v60  ;;  %v5563_v22 = vld [vmem:[#allocation17 + $0x710] sm:$0xff]  ;;  %v9420_v59 = vld [vmem:[#allocation20 + $0x450] ss:$8 sps:$4 sm:$0xff]  }
0x12ca   :  { %v5567_v60 = vld [vmem:[#allocation17 + $0x730] sm:$0xff] }
0x12cb   :  { %v8451_v57 = vcombine.low %v5563_v22, %v5567_v60 }
0x12cc   :  { %6373 = vmatpush1.bf16.msra.mxu1 %v8395_v44  ;;  %6416 = vmatpush1.bf16.msra.mxu0 %v8397_v47  ;;  %v8452_v44 = vcombine.high %v5563_v22, %v5567_v60  ;;  %v8454_v47 = vcombine.high %v5564_v42, %v5568_v45  ;;  %v9429_v22 = vld [vmem:[#allocation20 + $0x480] ss:$8 sps:$4 sm:$0xff]   ;;  %v9434_v60 = vld [vmem:[#allocation20 + $0x494] ss:$8 sps:$4 sm:$0xff]   ;;  %v9432_v42 = vld [vmem:[#allocation20 + $0x490] ss:$8 sps:$4 sm:$0xff]  }
0x12cd   :  { %6374 = vmatprep.subr.bf16.mxu1 %v8404_v48  ;;  %6417 = vmatprep.subr.bf16.mxu0 %v8406_v50  ;;  %v5571_v48 = vld [vmem:[#allocation17 + $0x750] sm:$0xff] }
0x12ce   :  { %v5575_v50 = vld [vmem:[#allocation17 + $0x770] sm:$0xff] }
0x12cf   :  { %v8459_v51 = vcombine.low %v5571_v48, %v5575_v50  ;;  %v9437_v45 = vld [vmem:[#allocation20 + $0x4a4] ss:$8 sps:$4 sm:$0xff]  }
0x12d0   :  { %6375 = vmatpush1.bf16.msra.mxu1 %v8403_v58  ;;  %6418 = vmatpush1.bf16.msra.mxu0 %v8405_v32  ;;  %v8460_v58 = vcombine.high %v5571_v48, %v5575_v50  ;;  %v8462_v32 = vcombine.high %v5572_v52, %v5576_v3  ;;  %v9441_v48 = vld [vmem:[#allocation20 + $0x4c0] ss:$8 sps:$4 sm:$0xff]   ;;  %v9446_v50 = vld [vmem:[#allocation20 + $0x4d4] ss:$8 sps:$4 sm:$0xff]   ;;  %v9444_v52 = vld [vmem:[#allocation20 + $0x4d0] ss:$8 sps:$4 sm:$0xff]  }
0x12d1   :  { %6376 = vmatprep.subr.bf16.mxu1 %v8412_v4  ;;  %6419 = vmatprep.subr.bf16.mxu0 %v8414_v61  ;;  %v5579_v4 = vld [vmem:[#allocation17 + $0x790] sm:$0xff] }
0x12d2   :  { %v5583_v61 = vld [vmem:[#allocation17 + $0x7b0] sm:$0xff] }
0x12d3   :  { %v8467_v56 = vcombine.low %v5579_v4, %v5583_v61  ;;  %v9449_v3 = vld [vmem:[#allocation20 + $0x4e4] ss:$8 sps:$4 sm:$0xff]  }
0x12d4   :  { %6377 = vmatpush1.bf16.msra.mxu1 %v8411_v53  ;;  %6420 = vmatpush1.bf16.msra.mxu0 %v8413_v54  ;;  %v8468_v53 = vcombine.high %v5579_v4, %v5583_v61  ;;  %v8470_v54 = vcombine.high %v5580_v16, %v5584_v6  ;;  %v11025_v4 = vld [vmem:[#allocation19 + $0x8] sm:$0xff] }
0x12d5   :  { %6378 = vmatprep.subr.bf16.mxu1 %v8420_v15  ;;  %6421 = vmatprep.subr.bf16.mxu0 %v8422_v55  ;;  %v5587_v15 = vld [vmem:[#allocation17 + $0x7d0] sm:$0xff]  ;;  %v5599_v61 = vrot.slane %v11025_v4, %v10545_v0  ;;  %v5607_v16 = vrot.slane %v11025_v4, %v10568_v40  ;;  %v5603_v6 = vrot.slane %v11025_v4, %v10542_v63 }
0x12d6   :  { %v5591_v55 = vld [vmem:[#allocation17 + $0x7f0] sm:$0xff] }
0x12d8   :  { %6379 = vmatpush1.bf16.msra.mxu1 %v8419_v21  ;;  %6422 = vmatpush1.bf16.msra.mxu0 %v8421_v46  ;;  %v8476_v21 = vcombine.high %v5587_v15, %v5591_v55  ;;  %v8478_v46 = vcombine.high %v5588_v41, %v5592_v23 }
0x12d9   :  { %6380 = vmatprep.subr.bf16.mxu1 %v8428_v5  ;;  %6423 = vmatprep.subr.bf16.mxu0 %v8430_v49  ;;  %v8475_v5 = vcombine.low %v5587_v15, %v5591_v55  ;;  %v8477_v49 = vcombine.low %v5588_v41, %v5592_v23 }
0x12dc   :  { %6381 = vmatpush1.bf16.msra.mxu1 %v8427_v12  ;;  %6424 = vmatpush1.bf16.msra.mxu0 %v8429_v20  ;;  %v9413_v12 = vld [vmem:[#allocation20 + $0x424] ss:$8 sps:$4 sm:$0xff]   ;;  %v9411_v20 = vld [vmem:[#allocation20 + $0x420] ss:$8 sps:$4 sm:$0xff]  }
0x12dd   :  { %6382 = vmatprep.subr.bf16.mxu1 %v8436_v9  ;;  %6425 = vmatprep.subr.bf16.mxu0 %v8438_v13  ;;  %v9416_v9 = vld [vmem:[#allocation20 + $0x434] ss:$8 sps:$4 sm:$0xff]   ;;  %v9414_v13 = vld [vmem:[#allocation20 + $0x430] ss:$8 sps:$4 sm:$0xff]  }
0x12e0   :  { %6383 = vmatpush1.bf16.msra.mxu1 %v8435_v11  ;;  %6426 = vmatpush1.bf16.msra.mxu0 %v8437_v26  ;;  %v9423_v11 = vld [vmem:[#allocation20 + $0x460] ss:$8 sps:$4 sm:$0xff]   ;;  %v9428_v26 = vld [vmem:[#allocation20 + $0x474] ss:$8 sps:$4 sm:$0xff]  }
0x12e1   :  { %6384 = vmatprep.subr.bf16.mxu1 %v8444_v38  ;;  %6427 = vmatprep.subr.bf16.mxu0 %v8446_v43  ;;  %v9426_v38 = vld [vmem:[#allocation20 + $0x470] ss:$8 sps:$4 sm:$0xff]   ;;  %v9431_v43 = vld [vmem:[#allocation20 + $0x484] ss:$8 sps:$4 sm:$0xff]  }
0x12e4   :  { %6385 = vmatpush1.bf16.msra.mxu1 %v8443_v28  ;;  %6428 = vmatpush1.bf16.msra.mxu0 %v8445_v39  ;;  %v9435_v28 = vld [vmem:[#allocation20 + $0x4a0] ss:$8 sps:$4 sm:$0xff]   ;;  %v9440_v39 = vld [vmem:[#allocation20 + $0x4b4] ss:$8 sps:$4 sm:$0xff]  }
0x12e5   :  { %6386 = vmatprep.subr.bf16.mxu1 %v8452_v44  ;;  %6429 = vmatprep.subr.bf16.mxu0 %v8454_v47  ;;  %v9438_v44 = vld [vmem:[#allocation20 + $0x4b0] ss:$8 sps:$4 sm:$0xff]   ;;  %v9443_v47 = vld [vmem:[#allocation20 + $0x4c4] ss:$8 sps:$4 sm:$0xff]  }
0x12e8   :  { %6387 = vmatpush1.bf16.msra.mxu1 %v8451_v57  ;;  %6430 = vmatpush1.bf16.msra.mxu0 %v8453_v33  ;;  %v9447_v57 = vld [vmem:[#allocation20 + $0x4e0] ss:$8 sps:$4 sm:$0xff]   ;;  %v9452_v33 = vld [vmem:[#allocation20 + $0x4f4] ss:$8 sps:$4 sm:$0xff]  }
0x12e9   :  { %6388 = vmatprep.subr.bf16.mxu1 %v8460_v58  ;;  %6431 = vmatprep.subr.bf16.mxu0 %v8462_v32  ;;  %v9450_v58 = vld [vmem:[#allocation20 + $0x4f0] ss:$8 sps:$4 sm:$0xff]   ;;  %v9455_v32 = vld [vmem:[#allocation20 + $0x504] ss:$8 sps:$4 sm:$0xff]  }
0x12ec   :  { %6389 = vmatpush1.bf16.msra.mxu1 %v8459_v51  ;;  %6432 = vmatpush1.bf16.msra.mxu0 %v8461_v34  ;;  %v5611_v51 = vrot.slane %v11025_v4, %v10571_v27 }
0x12ed   :  { %6390 = vmatprep.subr.bf16.mxu1 %v8468_v53  ;;  %6433 = vmatprep.subr.bf16.mxu0 %v8470_v54 }
0x12f0   :  { %6391 = vmatpush1.bf16.msra.mxu1 %v8467_v56  ;;  %6434 = vmatpush1.bf16.msra.mxu0 %v8469_v19 }
0x12f1   :  { %6392 = vmatprep.subr.bf16.mxu1 %v8476_v21  ;;  %6435 = vmatprep.subr.bf16.mxu0 %v8478_v46 }
0x12f4   :  { %6393 = vmatpush1.bf16.msra.mxu1 %v8475_v5  ;;  %6436 = vmatpush1.bf16.msra.mxu0 %v8477_v49 }
0x12f5   :  { %7369 = vmatprep.subr.bf16.mxu1 %v9407_v31 }
0x12f7   :  { %6395 = vmatmul.mubr.bf16.vlgmr.msra.gmra.mrb[56].mxu1 %v11019_v1  ;;  %6438 = vmatmul.mubr.bf16.vlgmr.msra.gmra.mrb[68].mxu0 %v11019_v1  ;;  %v9425_v1 = vld [vmem:[#allocation20 + $0x464] ss:$8 sps:$4 sm:$0xff]  }
0x12f8   :  { %7370 = vmatpush1.bf16.msra.mxu1 %v9405_v24 }
0x12f9   :  { %7371 = vmatprep.subr.bf16.mxu1 %v9410_v18 }
0x12fc   :  { %7372 = vmatpush1.bf16.msra.mxu1 %v9408_v8 }
0x12fd   :  { %7373 = vmatprep.subr.bf16.mxu1 %v9413_v12 }
0x1300   :  { %7374 = vmatpush1.bf16.msra.mxu1 %v9411_v20 }
0x1301   :  { %7375 = vmatprep.subr.bf16.mxu1 %v9416_v9 }
0x1304   :  { %7376 = vmatpush1.bf16.msra.mxu1 %v9414_v13 }
0x1305   :  { %7377 = vmatprep.subr.bf16.mxu1 %v9419_v30 }
0x1308   :  { %7378 = vmatpush1.bf16.msra.mxu1 %v9417_v7 }
0x1309   :  { %7379 = vmatprep.subr.bf16.mxu1 %v9422_v36 }
0x130c   :  { %7380 = vmatpush1.bf16.msra.mxu1 %v9420_v59 }
0x130d   :  { %7381 = vmatprep.subr.bf16.mxu1 %v9425_v1 }
0x1310   :  { %7382 = vmatpush1.bf16.msra.mxu1 %v9423_v11 }
0x1311   :  { %7383 = vmatprep.subr.bf16.mxu1 %v9428_v26 }
0x1314   :  { %7384 = vmatpush1.bf16.msra.mxu1 %v9426_v38 }
0x1315   :  { %7385 = vmatprep.subr.bf16.mxu1 %v9431_v43 }
0x1318   :  { %7386 = vmatpush1.bf16.msra.mxu1 %v9429_v22 }
0x1319   :  { %7387 = vmatprep.subr.bf16.mxu1 %v9434_v60 }
0x131c   :  { %7388 = vmatpush1.bf16.msra.mxu1 %v9432_v42 }
0x131d   :  { %7389 = vmatprep.subr.bf16.mxu1 %v9437_v45 }
0x1320   :  { %7390 = vmatpush1.bf16.msra.mxu1 %v9435_v28 }
0x1321   :  { %7391 = vmatprep.subr.bf16.mxu1 %v9440_v39 }
0x1324   :  { %7392 = vmatpush1.bf16.msra.mxu1 %v9438_v44 }
0x1325   :  { %7393 = vmatprep.subr.bf16.mxu1 %v9443_v47 }
0x1328   :  { %7394 = vmatpush1.bf16.msra.mxu1 %v9441_v48 }
0x1329   :  { %7395 = vmatprep.subr.bf16.mxu1 %v9446_v50 }
0x132c   :  { %7396 = vmatpush1.bf16.msra.mxu1 %v9444_v52 }
0x132d   :  { %7397 = vmatprep.subr.bf16.mxu1 %v9449_v3 }
0x1330   :  { %7398 = vmatpush1.bf16.msra.mxu1 %v9447_v57 }
0x1331   :  { %7399 = vmatprep.subr.bf16.mxu1 %v9452_v33 }
0x1334   :  { %7400 = vmatpush1.bf16.msra.mxu1 %v9450_v58 }
0x1335   :  { %7412 = vmatprep.subr.bf16.mxu1 %v9455_v32 }
0x138a   :  { %v6310_v34 = vpop.f32.mrb[52].mxu1  ;;  %v6353_v53 = vpop.f32.mrb[64].mxu0 }
0x138b   :  { %v11035_v54 = vadd.f32 %v6310_v34, %v5599_v61  ;;  %v11037_v15 = vadd.f32 %v6353_v53, %v5607_v16  ;;  %v6312_v55 = vpop.f32.mrb[53].mxu1  ;;  %v6355_v41 = vpop.f32.mrb[65].mxu0 }
0x138c   :  { %v11039_v23 = vadd.f32 %v6312_v55, %v5603_v6  ;;  %v11041_v56 = vadd.f32 %v6355_v41, %v5611_v51  ;;  %v6314_v19 = vpop.f32.mrb[54].mxu1  ;;  %v6357_v40 = vpop.f32.mrb[66].mxu0 }
0x138d   :  { %v6464_v21 = vmul.f32 0.044715, %v11035_v54  ;;  %v6466_v46 = vmul.f32 0.044715, %v11037_v15  ;;  %v6315_v5 = vadd.f32 %v6314_v19, %v5599_v61  ;;  %v6358_v27 = vadd.f32 %v6357_v40, %v5607_v16  ;;  %v6316_v49 = vpop.f32.mrb[55].mxu1  ;;  %v6359_v31 = vpop.f32.mrb[67].mxu0 }
0x138e   :  { %v6465_v24 = vmul.f32 0.044715, %v11039_v23  ;;  %v6467_v18 = vmul.f32 0.044715, %v11041_v56  ;;  %v11047_v8 = vadd.f32 %v6316_v49, %v5603_v6  ;;  %v11049_v12 = vadd.f32 %v6359_v31, %v5611_v51 }
0x138f   :  { %v6480_v20 = vmul.f32 %v6464_v21, %v11035_v54  ;;  %v6482_v9 = vmul.f32 %v6466_v46, %v11037_v15  ;;  %v6472_v13 = vmul.f32 0.044715, %v6315_v5  ;;  %v6474_v30 = vmul.f32 0.044715, %v6358_v27 }
0x1390   :  { %v6481_v7 = vmul.f32 %v6465_v24, %v11039_v23  ;;  %v6483_v36 = vmul.f32 %v6467_v18, %v11041_v56  ;;  %v6473_v59 = vmul.f32 0.044715, %v11047_v8  ;;  %v6475_v1 = vmul.f32 0.044715, %v11049_v12 }
0x1391   :  { %v6496_v11 = vmul.f32 %v6480_v20, %v11035_v54  ;;  %v6498_v26 = vmul.f32 %v6482_v9, %v11037_v15  ;;  %v6488_v38 = vmul.f32 %v6472_v13, %v6315_v5  ;;  %v6490_v43 = vmul.f32 %v6474_v30, %v6358_v27 }
0x1392   :  { %v6497_v22 = vmul.f32 %v6481_v7, %v11039_v23  ;;  %v6489_v60 = vmul.f32 %v6473_v59, %v11047_v8  ;;  %v6491_v42 = vmul.f32 %v6475_v1, %v11049_v12  ;;  %v6499_v47 = vmul.f32 %v6483_v36, %v11041_v56 }
0x1393   :  { %v6512_v45 = vadd.f32 %v6496_v11, %v11035_v54  ;;  %v6514_v28 = vadd.f32 %v6498_v26, %v11037_v15  ;;  %v6504_v39 = vmul.f32 %v6488_v38, %v6315_v5  ;;  %v6506_v44 = vmul.f32 %v6490_v43, %v6358_v27 }
0x1394   :  { %v6505_v48 = vmul.f32 %v6489_v60, %v11047_v8  ;;  %v6507_v50 = vmul.f32 %v6491_v42, %v11049_v12  ;;  %v6513_v58 = vadd.f32 %v6497_v22, %v11039_v23  ;;  %v6515_v34 = vadd.f32 %v6499_v47, %v11041_v56 }
0x1395   :  { %v6528_v52 = vmul.f32 0.7978846, %v6512_v45  ;;  %v6530_v3 = vmul.f32 0.7978846, %v6514_v28  ;;  %v6520_v57 = vadd.f32 %v6504_v39, %v6315_v5  ;;  %v6522_v33 = vadd.f32 %v6506_v44, %v6358_v27 }
0x1396   :  { %v6521_v32 = vadd.f32 %v6505_v48, %v11047_v8  ;;  %v6529_v6 = vmul.f32 0.7978846, %v6513_v58  ;;  %v6523_v53 = vadd.f32 %v6507_v50, %v11049_v12  ;;  %v6531_v55 = vmul.f32 0.7978846, %v6515_v34  ;;  %v9462_v58 = vld [vmem:[#allocation20 + $0x530] ss:$8 sps:$4 sm:$0xff]  }
0x1397   :  { %9693 = vtanh.f32 %v6528_v52  ;;  %v6536_v61 = vmul.f32 0.7978846, %v6520_v57  ;;  %v6538_v16 = vmul.f32 0.7978846, %v6522_v33  ;;  %v6448_v24 = vmul.f32 0.5, %v11035_v54 }
0x1398   :  { %9695 = vtanh.f32 %v6530_v3  ;;  %v6537_v51 = vmul.f32 0.7978846, %v6521_v32  ;;  %v6539_v41 = vmul.f32 0.7978846, %v6523_v53  ;;  %v6456_v18 = vmul.f32 0.5, %v6315_v5 }
0x1399   :  { %9697 = vtanh.f32 %v6536_v61  ;;  %v6450_v13 = vmul.f32 0.5, %v11037_v15  ;;  %v6458_v30 = vmul.f32 0.5, %v6358_v27  ;;  %v6449_v59 = vmul.f32 0.5, %v11039_v23  ;;  %v9458_v52 = vld [vmem:[#allocation20 + $0x514] ss:$8 sps:$4 sm:$0xff]  }
0x139a   :  { %9699 = vtanh.f32 %v6538_v16  ;;  %v6457_v43 = vmul.f32 0.5, %v11047_v8  ;;  %v6451_v15 = vmul.f32 0.5, %v11041_v56  ;;  %v6459_v27 = vmul.f32 0.5, %v11049_v12  ;;  %v9453_v8 = vld [vmem:[#allocation20 + $0x500] ss:$8 sps:$4 sm:$0xff]  }
0x139b   :  { %9701 = vtanh.f32 %v6529_v6  ;;  %v9456_v56 = vld [vmem:[#allocation20 + $0x510] ss:$8 sps:$4 sm:$0xff]   ;;  %v9461_v12 = vld [vmem:[#allocation20 + $0x524] ss:$8 sps:$4 sm:$0xff]   ;;  %v9459_v57 = vld [vmem:[#allocation20 + $0x520] ss:$8 sps:$4 sm:$0xff]  }
0x139c   :  { %9703 = vtanh.f32 %v6537_v51  ;;  %v9464_v33 = vld [vmem:[#allocation20 + $0x534] ss:$8 sps:$4 sm:$0xff]   ;;  %v9467_v32 = vld [vmem:[#allocation20 + $0x544] ss:$8 sps:$4 sm:$0xff]   ;;  %v9465_v61 = vld [vmem:[#allocation20 + $0x540] ss:$8 sps:$4 sm:$0xff]  }
0x139d   :  { %9705 = vtanh.f32 %v6531_v55  ;;  %v9470_v16 = vld [vmem:[#allocation20 + $0x554] ss:$8 sps:$4 sm:$0xff]   ;;  %v9468_v6 = vld [vmem:[#allocation20 + $0x550] ss:$8 sps:$4 sm:$0xff]   ;;  %v9473_v51 = vld [vmem:[#allocation20 + $0x564] ss:$8 sps:$4 sm:$0xff]  }
0x139e   :  { %9707 = vtanh.f32 %v6539_v41  ;;  %v9471_v34 = vld [vmem:[#allocation20 + $0x560] ss:$8 sps:$4 sm:$0xff]   ;;  %v9476_v53 = vld [vmem:[#allocation20 + $0x574] ss:$8 sps:$4 sm:$0xff]   ;;  %v9474_v55 = vld [vmem:[#allocation20 + $0x570] ss:$8 sps:$4 sm:$0xff]   ;;  %v5615_v41 = vrot.slane %v11025_v4, %v10593_v10 }
0x13a1   :  { %v9694_v19 = vpop.eup %9693 }
0x13a2   :  { %v9696_v40 = vpop.eup %9695  ;;  %v6560_v21 = vadd.f32 1.0, %v9694_v19  ;;  %v5623_v19 = vrot.slane %v11025_v4, %v1984_v17 }
0x13a3   :  { %v9698_v46 = vpop.eup %9697  ;;  %v6562_v49 = vadd.f32 1.0, %v9696_v40  ;;  %v5619_v40 = vrot.slane %v11025_v4, %v10635_v37 }
0x13a4   :  { %v9700_v31 = vpop.eup %9699  ;;  %v6568_v20 = vadd.f32 1.0, %v9698_v46  ;;  %v6576_v11 = vmul.f32 %v6560_v21, %v6448_v24  ;;  %v5627_v21 = vrot.slane %v11025_v4, %v1988_v14  ;;  %v9479_v46 = vld [vmem:[#allocation20 + $0x584] ss:$8 sps:$4 sm:$0xff]  }
0x13a5   :  { %v9702_v9 = vpop.eup %9701  ;;  %v6570_v7 = vadd.f32 1.0, %v9700_v31  ;;  %v11075_v60 = vmul.f32 %v6562_v49, %v6450_v13 }
0x13a6   :  { %v9704_v36 = vpop.eup %9703  ;;  %v6561_v1 = vadd.f32 1.0, %v9702_v9  ;;  %v6584_v26 = vmul.f32 %v6568_v20, %v6456_v18  ;;  %v9477_v9 = vld [vmem:[#allocation20 + $0x580] ss:$8 sps:$4 sm:$0xff]  }
0x13a7   :  { %v9706_v38 = vpop.eup %9705  ;;  %v6569_v22 = vadd.f32 1.0, %v9704_v36  ;;  %v11077_v54 = vmul.f32 %v6570_v7, %v6458_v30 }
0x13a8   :  { %v9708_v5 = vpop.eup %9707  ;;  %v6592_v42 = vpack.c.bf16 %v6584_v26, %v6576_v11  ;;  %v6563_v45 = vadd.f32 1.0, %v9706_v38  ;;  %v6577_v28 = vmul.f32 %v6561_v1, %v6449_v59 }
0x13a9   :  { %v6585_v23 = vmul.f32 %v6569_v22, %v6457_v43  ;;  %v6571_v39 = vadd.f32 1.0, %v9708_v5  ;;  %v6594_v44 = vpack.c.bf16 %v11077_v54, %v11075_v60  ;;  %v9516_v60 = vld [vmem:[#allocation20 + $0x650] ss:$8 sps:$4 sm:$0xff]   ;;  %v9521_v54 = vld [vmem:[#allocation20 + $0x664] ss:$8 sps:$4 sm:$0xff]  }
0x13aa   :  { %v6579_v48 = vmul.f32 %v6563_v45, %v6451_v15 }
0x13ab   :  { %v6593_v47 = vpack.c.bf16 %v6585_v23, %v6577_v28  ;;  %v6587_v50 = vmul.f32 %v6571_v39, %v6459_v27  ;;  %v9480_v27 = vld [vmem:[#allocation20 + $0x590] ss:$8 sps:$4 sm:$0xff]  }
0x13ad   :  { %7401 = vmatprep.mubr.bf16.mxu1 %v6593_v47  ;;  %v6595_v3 = vpack.c.bf16 %v6587_v50, %v6579_v48  ;;  %v9485_v47 = vld [vmem:[#allocation20 + $0x5a4] ss:$8 sps:$4 sm:$0xff]  }
0x13ae   :  { %7402 = vmatmul.mubr.bf16.vlgmr.msra.gmra.mrb[60].mxu1 %v6592_v42 }
0x13af   :  { %7413 = vmatpush1.bf16.msra.mxu1 %v9453_v8  ;;  %7444 = vmatprep.mubr.bf16.mxu1 %v6595_v3 }
0x13b0   :  { %7414 = vmatprep.subr.bf16.mxu1 %v9458_v52 }
0x13b3   :  { %7415 = vmatpush1.bf16.msra.mxu1 %v9456_v56 }
0x13b4   :  { %7416 = vmatprep.subr.bf16.mxu1 %v9461_v12 }
0x13b7   :  { %7417 = vmatpush1.bf16.msra.mxu1 %v9459_v57 }
0x13b8   :  { %7418 = vmatprep.subr.bf16.mxu1 %v9464_v33 }
0x13bb   :  { %7419 = vmatpush1.bf16.msra.mxu1 %v9462_v58 }
0x13bc   :  { %7420 = vmatprep.subr.bf16.mxu1 %v9467_v32 }
0x13bf   :  { %7421 = vmatpush1.bf16.msra.mxu1 %v9465_v61  ;;  %v9483_v61 = vld [vmem:[#allocation20 + $0x5a0] ss:$8 sps:$4 sm:$0xff]  }
0x13c0   :  { %7422 = vmatprep.subr.bf16.mxu1 %v9470_v16 }
0x13c3   :  { %7423 = vmatpush1.bf16.msra.mxu1 %v9468_v6 }
0x13c4   :  { %7424 = vmatprep.subr.bf16.mxu1 %v9473_v51 }
0x13c7   :  { %7425 = vmatpush1.bf16.msra.mxu1 %v9471_v34  ;;  %v9488_v34 = vld [vmem:[#allocation20 + $0x5b4] ss:$8 sps:$4 sm:$0xff]  }
0x13c8   :  { %7426 = vmatprep.subr.bf16.mxu1 %v9476_v53 }
0x13ca   :  { %v6396_v49 = vpop.f32.mrb[56].mxu1  ;;  %v6439_v31 = vpop.f32.mrb[68].mxu0 }
0x13cb   :  { %7427 = vmatpush1.bf16.msra.mxu1 %v9474_v55  ;;  %v11093_v24 = vadd.f32 %v6396_v49, %v5615_v41  ;;  %v11095_v18 = vadd.f32 %v6439_v31, %v5623_v19  ;;  %v6398_v10 = vpop.f32.mrb[57].mxu1  ;;  %v6441_v20 = vpop.f32.mrb[69].mxu0  ;;  %v9486_v31 = vld [vmem:[#allocation20 + $0x5b0] ss:$8 sps:$4 sm:$0xff]  }
0x13cc   :  { %v11097_v17 = vadd.f32 %v6398_v10, %v5619_v40  ;;  %v11099_v13 = vadd.f32 %v6441_v20, %v5627_v21  ;;  %v6400_v37 = vpop.f32.mrb[58].mxu1  ;;  %v6443_v30 = vpop.f32.mrb[70].mxu0  ;;  %7428 = vmatprep.subr.bf16.mxu1 %v9479_v46  ;;  %v9491_v10 = vld [vmem:[#allocation20 + $0x5c4] ss:$8 sps:$4 sm:$0xff]  }
0x13cd   :  { %v6468_v14 = vmul.f32 0.044715, %v11093_v24  ;;  %v6470_v4 = vmul.f32 0.044715, %v11095_v18  ;;  %v11103_v7 = vadd.f32 %v6400_v37, %v5615_v41  ;;  %v11105_v36 = vadd.f32 %v6443_v30, %v5623_v19  ;;  %v6402_v59 = vpop.f32.mrb[59].mxu1  ;;  %v6445_v1 = vpop.f32.mrb[71].mxu0 }
0x13ce   :  { %v6469_v11 = vmul.f32 0.044715, %v11097_v17  ;;  %v6471_v26 = vmul.f32 0.044715, %v11099_v13  ;;  %v11109_v38 = vadd.f32 %v6402_v59, %v5619_v40  ;;  %v11111_v43 = vadd.f32 %v6445_v1, %v5627_v21  ;;  %v9494_v59 = vld [vmem:[#allocation20 + $0x5d4] ss:$8 sps:$4 sm:$0xff]  }
0x13cf   :  { %v6484_v22 = vmul.f32 %v6468_v14, %v11093_v24  ;;  %v6486_v5 = vmul.f32 %v6470_v4, %v11095_v18  ;;  %v6476_v42 = vmul.f32 0.044715, %v11103_v7  ;;  %v6478_v15 = vmul.f32 0.044715, %v11105_v36  ;;  %7429 = vmatpush1.bf16.msra.mxu1 %v9477_v9  ;;  %v9492_v1 = vld [vmem:[#allocation20 + $0x5d0] ss:$8 sps:$4 sm:$0xff]  }
0x13d0   :  { %v6485_v45 = vmul.f32 %v6469_v11, %v11097_v17  ;;  %v6487_v28 = vmul.f32 %v6471_v26, %v11099_v13  ;;  %v6477_v23 = vmul.f32 0.044715, %v11109_v38  ;;  %v6479_v39 = vmul.f32 0.044715, %v11111_v43  ;;  %7430 = vmatprep.subr.bf16.mxu1 %v9482_v62  ;;  %v9489_v62 = vld [vmem:[#allocation20 + $0x5c0] ss:$8 sps:$4 sm:$0xff]  }
0x13d1   :  { %v6500_v8 = vmul.f32 %v6484_v22, %v11093_v24  ;;  %v6502_v48 = vmul.f32 %v6486_v5, %v11095_v18  ;;  %v6492_v50 = vmul.f32 %v6476_v42, %v11103_v7  ;;  %v6494_v52 = vmul.f32 %v6478_v15, %v11105_v36  ;;  %v9497_v11 = vld [vmem:[#allocation20 + $0x5e4] ss:$8 sps:$4 sm:$0xff]   ;;  %v9495_v15 = vld [vmem:[#allocation20 + $0x5e0] ss:$8 sps:$4 sm:$0xff]  }
0x13d2   :  { %v6501_v3 = vmul.f32 %v6485_v45, %v11097_v17  ;;  %v6493_v56 = vmul.f32 %v6477_v23, %v11109_v38  ;;  %v6495_v12 = vmul.f32 %v6479_v39, %v11111_v43  ;;  %v6503_v16 = vmul.f32 %v6487_v28, %v11099_v13  ;;  %v9500_v28 = vld [vmem:[#allocation20 + $0x5f4] ss:$8 sps:$4 sm:$0xff]  }
0x13d3   :  { %v6516_v57 = vadd.f32 %v6500_v8, %v11093_v24  ;;  %v6518_v33 = vadd.f32 %v6502_v48, %v11095_v18  ;;  %v6508_v58 = vmul.f32 %v6492_v50, %v11103_v7  ;;  %v6510_v32 = vmul.f32 %v6494_v52, %v11105_v36  ;;  %7431 = vmatpush1.bf16.msra.mxu1 %v9480_v27 }
0x13d4   :  { %v6509_v6 = vmul.f32 %v6493_v56, %v11109_v38  ;;  %v6511_v51 = vmul.f32 %v6495_v12, %v11111_v43  ;;  %7432 = vmatprep.subr.bf16.mxu1 %v9485_v47  ;;  %v6517_v40 = vadd.f32 %v6501_v3, %v11097_v17  ;;  %v6519_v37 = vadd.f32 %v6503_v16, %v11099_v13  ;;  %v9503_v16 = vld [vmem:[#allocation20 + $0x604] ss:$8 sps:$4 sm:$0xff]  }
0x13d5   :  { %v6532_v53 = vmul.f32 0.7978846, %v6516_v57  ;;  %v6534_v55 = vmul.f32 0.7978846, %v6518_v33  ;;  %v6524_v41 = vadd.f32 %v6508_v58, %v11103_v7  ;;  %v6526_v19 = vadd.f32 %v6510_v32, %v11105_v36 }
0x13d6   :  { %v6525_v21 = vadd.f32 %v6509_v6, %v11109_v38  ;;  %v6533_v20 = vmul.f32 0.7978846, %v6517_v40  ;;  %v6527_v30 = vadd.f32 %v6511_v51, %v11111_v43  ;;  %v6535_v14 = vmul.f32 0.7978846, %v6519_v37  ;;  %v9515_v37 = vld [vmem:[#allocation20 + $0x644] ss:$8 sps:$4 sm:$0xff]  }
0x13d7   :  { %9709 = vtanh.f32 %v6532_v53  ;;  %v6540_v46 = vmul.f32 0.7978846, %v6524_v41  ;;  %v6542_v49 = vmul.f32 0.7978846, %v6526_v19  ;;  %7433 = vmatpush1.bf16.msra.mxu1 %v9483_v61  ;;  %v6452_v23 = vmul.f32 0.5, %v11093_v24 }
0x13d8   :  { %9711 = vtanh.f32 %v6534_v55  ;;  %7434 = vmatprep.subr.bf16.mxu1 %v9488_v34  ;;  %v6541_v9 = vmul.f32 0.7978846, %v6525_v21  ;;  %v6543_v4 = vmul.f32 0.7978846, %v6527_v30  ;;  %v6460_v39 = vmul.f32 0.5, %v11103_v7 }
0x13d9   :  { %9713 = vtanh.f32 %v6540_v46  ;;  %v6454_v48 = vmul.f32 0.5, %v11095_v18  ;;  %v6462_v50 = vmul.f32 0.5, %v11105_v36  ;;  %v6453_v56 = vmul.f32 0.5, %v11097_v17  ;;  %v9498_v24 = vld [vmem:[#allocation20 + $0x5f0] ss:$8 sps:$4 sm:$0xff]  }
0x13da   :  { %9715 = vtanh.f32 %v6542_v49  ;;  %v6461_v7 = vmul.f32 0.5, %v11109_v38  ;;  %v6455_v6 = vmul.f32 0.5, %v11099_v13  ;;  %v6463_v51 = vmul.f32 0.5, %v11111_v43  ;;  %v9501_v19 = vld [vmem:[#allocation20 + $0x600] ss:$8 sps:$4 sm:$0xff]  }
0x13db   :  { %7435 = vmatpush1.bf16.msra.mxu1 %v9486_v31  ;;  %9717 = vtanh.f32 %v6533_v20  ;;  %v9506_v49 = vld [vmem:[#allocation20 + $0x614] ss:$8 sps:$4 sm:$0xff]   ;;  %v9504_v43 = vld [vmem:[#allocation20 + $0x610] ss:$8 sps:$4 sm:$0xff]   ;;  %v9509_v31 = vld [vmem:[#allocation20 + $0x624] ss:$8 sps:$4 sm:$0xff]  }
0x13dc   :  { %7436 = vmatprep.subr.bf16.mxu1 %v9491_v10  ;;  %9719 = vtanh.f32 %v6541_v9  ;;  %v9507_v10 = vld [vmem:[#allocation20 + $0x620] ss:$8 sps:$4 sm:$0xff]   ;;  %v9512_v20 = vld [vmem:[#allocation20 + $0x634] ss:$8 sps:$4 sm:$0xff]   ;;  %v9510_v9 = vld [vmem:[#allocation20 + $0x630] ss:$8 sps:$4 sm:$0xff]  }
0x13dd   :  { %9721 = vtanh.f32 %v6535_v14  ;;  %v9513_v30 = vld [vmem:[#allocation20 + $0x640] ss:$8 sps:$4 sm:$0xff]   ;;  %v9524_v14 = vld [vmem:[#allocation20 + $0x674] ss:$8 sps:$4 sm:$0xff]  }
0x13de   :  { %9723 = vtanh.f32 %v6543_v4  ;;  %v9522_v4 = vld [vmem:[#allocation20 + $0x670] ss:$8 sps:$4 sm:$0xff]  }
0x13df   :  { %7437 = vmatpush1.bf16.msra.mxu1 %v9489_v62  ;;  %v9518_v62 = vld [vmem:[#allocation20 + $0x654] ss:$8 sps:$4 sm:$0xff]  }
0x13e0   :  { %7438 = vmatprep.subr.bf16.mxu1 %v9494_v59  ;;  %v9527_v59 = vld [vmem:[#allocation20 + $0x684] ss:$8 sps:$4 sm:$0xff]  }
0x13e1   :  { %v9710_v26 = vpop.eup %9709 }
0x13e2   :  { %v9712_v22 = vpop.eup %9711  ;;  %v6564_v5 = vadd.f32 1.0, %v9710_v26  ;;  %v9528_v26 = vld [vmem:[#allocation20 + $0x690] ss:$8 sps:$4 sm:$0xff]  }
0x13e3   :  { %v9714_v42 = vpop.eup %9713  ;;  %7439 = vmatpush1.bf16.msra.mxu1 %v9492_v1  ;;  %v6566_v27 = vadd.f32 1.0, %v9712_v22  ;;  %v9525_v1 = vld [vmem:[#allocation20 + $0x680] ss:$8 sps:$4 sm:$0xff]   ;;  %v9533_v22 = vld [vmem:[#allocation20 + $0x6a4] ss:$8 sps:$4 sm:$0xff]  }
0x13e4   :  { %v9716_v45 = vpop.eup %9715  ;;  %7440 = vmatprep.subr.bf16.mxu1 %v9497_v11  ;;  %v6572_v47 = vadd.f32 1.0, %v9714_v42  ;;  %v11146_v57 = vmul.f32 %v6564_v5, %v6452_v23  ;;  %v9530_v11 = vld [vmem:[#allocation20 + $0x694] ss:$8 sps:$4 sm:$0xff]   ;;  %v9531_v5 = vld [vmem:[#allocation20 + $0x6a0] ss:$8 sps:$4 sm:$0xff]  }
0x13e5   :  { %v9718_v8 = vpop.eup %9717  ;;  %v6574_v52 = vadd.f32 1.0, %v9716_v45  ;;  %v11151_v61 = vmul.f32 %v6566_v27, %v6454_v48  ;;  %v9536_v42 = vld [vmem:[#allocation20 + $0x6b4] ss:$8 sps:$4 sm:$0xff]   ;;  %v9539_v27 = vld [vmem:[#allocation20 + $0x6c4] ss:$8 sps:$4 sm:$0xff]  }
0x13e6   :  { %v9720_v3 = vpop.eup %9719  ;;  %v6565_v12 = vadd.f32 1.0, %v9718_v8  ;;  %v11148_v33 = vmul.f32 %v6572_v47, %v6460_v39  ;;  %v9537_v45 = vld [vmem:[#allocation20 + $0x6c0] ss:$8 sps:$4 sm:$0xff]   ;;  %v9540_v23 = vld [vmem:[#allocation20 + $0x6d0] ss:$8 sps:$4 sm:$0xff]  }
0x13e7   :  { %v9722_v58 = vpop.eup %9721  ;;  %7441 = vmatpush1.bf16.msra.mxu1 %v9495_v15  ;;  %v6573_v32 = vadd.f32 1.0, %v9720_v3  ;;  %v11153_v18 = vmul.f32 %v6574_v52, %v6462_v50  ;;  %v9534_v15 = vld [vmem:[#allocation20 + $0x6b0] ss:$8 sps:$4 sm:$0xff]   ;;  %v9545_v39 = vld [vmem:[#allocation20 + $0x6e4] ss:$8 sps:$4 sm:$0xff]  }
0x13e8   :  { %v9724_v36 = vpop.eup %9723  ;;  %7442 = vmatprep.subr.bf16.mxu1 %v9500_v28  ;;  %v6596_v17 = vpack.c.bf16 %v11148_v33, %v11146_v57  ;;  %v6567_v34 = vadd.f32 1.0, %v9722_v58  ;;  %v6581_v53 = vmul.f32 %v6565_v12, %v6453_v56  ;;  %v9542_v28 = vld [vmem:[#allocation20 + $0x6d4] ss:$8 sps:$4 sm:$0xff]   ;;  %v9543_v47 = vld [vmem:[#allocation20 + $0x6e0] ss:$8 sps:$4 sm:$0xff]  }
0x13e9   :  { %v6589_v55 = vmul.f32 %v6573_v32, %v6461_v7  ;;  %v6575_v41 = vadd.f32 1.0, %v9724_v36  ;;  %v6598_v38 = vpack.c.bf16 %v11153_v18, %v11151_v61  ;;  %v9548_v8 = vld [vmem:[#allocation20 + $0x6f4] ss:$8 sps:$4 sm:$0xff]   ;;  %v9546_v48 = vld [vmem:[#allocation20 + $0x6f0] ss:$8 sps:$4 sm:$0xff]  }
0x13ea   :  { %v11161_v21 = vmul.f32 %v6567_v34, %v6455_v6  ;;  %v9551_v50 = vld [vmem:[#allocation20 + $0x704] ss:$8 sps:$4 sm:$0xff]   ;;  %v9549_v52 = vld [vmem:[#allocation20 + $0x700] ss:$8 sps:$4 sm:$0xff]   ;;  %v9554_v3 = vld [vmem:[#allocation20 + $0x714] ss:$8 sps:$4 sm:$0xff]  }
0x13eb   :  { %7443 = vmatpush1.bf16.msra.mxu1 %v9498_v24  ;;  %v6597_v40 = vpack.c.bf16 %v6589_v55, %v6581_v53  ;;  %v11163_v46 = vmul.f32 %v6575_v41, %v6463_v51  ;;  %v9552_v56 = vld [vmem:[#allocation20 + $0x710] ss:$8 sps:$4 sm:$0xff]   ;;  %v9557_v12 = vld [vmem:[#allocation20 + $0x724] ss:$8 sps:$4 sm:$0xff]   ;;  %v9555_v58 = vld [vmem:[#allocation20 + $0x720] ss:$8 sps:$4 sm:$0xff]  }
0x13ec   :  { %7455 = vmatprep.subr.bf16.mxu1 %v9503_v16  ;;  %v9560_v24 = vld [vmem:[#allocation20 + $0x734] ss:$8 sps:$4 sm:$0xff]   ;;  %v9558_v7 = vld [vmem:[#allocation20 + $0x730] ss:$8 sps:$4 sm:$0xff]   ;;  %v9563_v32 = vld [vmem:[#allocation20 + $0x744] ss:$8 sps:$4 sm:$0xff]  }
0x13ed   :  { %v6599_v13 = vpack.c.bf16 %v11163_v46, %v11161_v21  ;;  %v9561_v36 = vld [vmem:[#allocation20 + $0x740] ss:$8 sps:$4 sm:$0xff]   ;;  %v9566_v57 = vld [vmem:[#allocation20 + $0x754] ss:$8 sps:$4 sm:$0xff]   ;;  %v9564_v33 = vld [vmem:[#allocation20 + $0x750] ss:$8 sps:$4 sm:$0xff]  }
0x13ee   :  { %7445 = vmatmul.mubr.bf16.vlgmr.msra.gmra.mrb[60].mxu1 %v6594_v44  ;;  %v9519_v44 = vld [vmem:[#allocation20 + $0x660] ss:$8 sps:$4 sm:$0xff]   ;;  %v9569_v16 = vld [vmem:[#allocation20 + $0x764] ss:$8 sps:$4 sm:$0xff]   ;;  %v9572_v6 = vld [vmem:[#allocation20 + $0x774] ss:$8 sps:$4 sm:$0xff]  }
0x13ef   :  { %7456 = vmatpush1.bf16.msra.mxu1 %v9501_v19  ;;  %7487 = vmatprep.mubr.bf16.mxu1 %v6597_v40  ;;  %v9570_v51 = vld [vmem:[#allocation20 + $0x770] ss:$8 sps:$4 sm:$0xff]   ;;  %v9575_v34 = vld [vmem:[#allocation20 + $0x784] ss:$8 sps:$4 sm:$0xff]   ;;  %v9573_v53 = vld [vmem:[#allocation20 + $0x780] ss:$8 sps:$4 sm:$0xff]  }
0x13f0   :  { %7457 = vmatprep.subr.bf16.mxu1 %v9506_v49  ;;  %v9578_v55 = vld [vmem:[#allocation20 + $0x794] ss:$8 sps:$4 sm:$0xff]   ;;  %v9576_v41 = vld [vmem:[#allocation20 + $0x790] ss:$8 sps:$4 sm:$0xff]   ;;  %v9581_v19 = vld [vmem:[#allocation20 + $0x7a4] ss:$8 sps:$4 sm:$0xff]  }
0x13f1   :  { %v9579_v40 = vld [vmem:[#allocation20 + $0x7a0] ss:$8 sps:$4 sm:$0xff]   ;;  %v9584_v21 = vld [vmem:[#allocation20 + $0x7b4] ss:$8 sps:$4 sm:$0xff]   ;;  %v9582_v46 = vld [vmem:[#allocation20 + $0x7b0] ss:$8 sps:$4 sm:$0xff]  }
0x13f2   :  { %v9587_v49 = vld [vmem:[#allocation20 + $0x7c4] ss:$8 sps:$4 sm:$0xff]  }
0x13f3   :  { %7458 = vmatpush1.bf16.msra.mxu1 %v9504_v43  ;;  %v9590_v43 = vld [vmem:[#allocation20 + $0x7d4] ss:$8 sps:$4 sm:$0xff]  }
0x13f4   :  { %7459 = vmatprep.subr.bf16.mxu1 %v9509_v31  ;;  %v9588_v31 = vld [vmem:[#allocation20 + $0x7d0] ss:$8 sps:$4 sm:$0xff]  }
0x13f7   :  { %7460 = vmatpush1.bf16.msra.mxu1 %v9507_v10  ;;  %v9593_v10 = vld [vmem:[#allocation20 + $0x7e4] ss:$8 sps:$4 sm:$0xff]  }
0x13f8   :  { %7461 = vmatprep.subr.bf16.mxu1 %v9512_v20  ;;  %v9591_v20 = vld [vmem:[#allocation20 + $0x7e0] ss:$8 sps:$4 sm:$0xff]  }
0x13fb   :  { %7462 = vmatpush1.bf16.msra.mxu1 %v9510_v9  ;;  %v9596_v9 = vld [vmem:[#allocation20 + $0x7f4] ss:$8 sps:$4 sm:$0xff]  }
0x13fc   :  { %7463 = vmatprep.subr.bf16.mxu1 %v9515_v37  ;;  %v9594_v37 = vld [vmem:[#allocation20 + $0x7f0] ss:$8 sps:$4 sm:$0xff]  }
0x13ff   :  { %7464 = vmatpush1.bf16.msra.mxu1 %v9513_v30  ;;  %v7546_v30 = vld [vmem:[#allocation22 + $0x2] sm:$0x3] }
0x1400   :  { %7465 = vmatprep.subr.bf16.mxu1 %v9518_v62  ;;  %v7551_v62 = vrot.slane %v7546_v30, %v10545_v0 }
0x1403   :  { %7466 = vmatpush1.bf16.msra.mxu1 %v9516_v60 }
0x1404   :  { %7467 = vmatprep.subr.bf16.mxu1 %v9521_v54  ;;  %v7555_v54 = vrot.slane %v7546_v30, %v10542_v63 }
0x1407   :  { %7468 = vmatpush1.bf16.msra.mxu1 %v9519_v44 }
0x1408   :  { %7469 = vmatprep.subr.bf16.mxu1 %v9524_v14 }
0x140b   :  { %7470 = vmatpush1.bf16.msra.mxu1 %v9522_v4 }
0x140c   :  { %7471 = vmatprep.subr.bf16.mxu1 %v9527_v59 }
0x140f   :  { %7472 = vmatpush1.bf16.msra.mxu1 %v9525_v1 }
0x1410   :  { %7473 = vmatprep.subr.bf16.mxu1 %v9530_v11 }
0x1413   :  { %7474 = vmatpush1.bf16.msra.mxu1 %v9528_v26 }
0x1414   :  { %7475 = vmatprep.subr.bf16.mxu1 %v9533_v22 }
0x1417   :  { %7476 = vmatpush1.bf16.msra.mxu1 %v9531_v5 }
0x1418   :  { %7477 = vmatprep.subr.bf16.mxu1 %v9536_v42 }
0x141b   :  { %7478 = vmatpush1.bf16.msra.mxu1 %v9534_v15  ;;  %v9597_v15 = vld [vmem:[#allocation26 + $0x40] sm:$0xff]  }
0x141c   :  { %7479 = vmatprep.subr.bf16.mxu1 %v9539_v27  ;;  %v9598_v27 = vld [vmem:[#allocation26] sm:$0xff]   ;;  %8656 = vmatprep.subr.bf16.mxu0 %v9597_v15 }
0x141d   :  { %8657 = vmatpush3.bf16.msra.mxu0 %v9598_v27 }
0x141f   :  { %7480 = vmatpush1.bf16.msra.mxu1 %v9537_v45 }
0x1420   :  { %7481 = vmatprep.subr.bf16.mxu1 %v9542_v28 }
0x1423   :  { %7482 = vmatpush1.bf16.msra.mxu1 %v9540_v23 }
0x1424   :  { %7483 = vmatprep.subr.bf16.mxu1 %v9545_v39 }
0x1427   :  { %7484 = vmatpush1.bf16.msra.mxu1 %v9543_v47 }
0x1428   :  { %7485 = vmatprep.subr.bf16.mxu1 %v9548_v8 }
0x142b   :  { %7486 = vmatpush1.bf16.msra.mxu1 %v9546_v48 }
0x142c   :  { %7498 = vmatprep.subr.bf16.mxu1 %v9551_v50 }
0x142e   :  { %7488 = vmatmul.mubr.bf16.vlgmr.msra.gmra.mrb[60].mxu1 %v6596_v17  ;;  %v9567_v17 = vld [vmem:[#allocation20 + $0x760] ss:$8 sps:$4 sm:$0xff]  }
0x142f   :  { %7499 = vmatpush1.bf16.msra.mxu1 %v9549_v52  ;;  %7530 = vmatprep.mubr.bf16.mxu1 %v6599_v13  ;;  %v9585_v13 = vld [vmem:[#allocation20 + $0x7c0] ss:$8 sps:$4 sm:$0xff]  }
0x1430   :  { %7500 = vmatprep.subr.bf16.mxu1 %v9554_v3 }
0x1433   :  { %7501 = vmatpush1.bf16.msra.mxu1 %v9552_v56 }
0x1434   :  { %7502 = vmatprep.subr.bf16.mxu1 %v9557_v12 }
0x1437   :  { %7503 = vmatpush1.bf16.msra.mxu1 %v9555_v58  ;;  %v9601_v58 = vld [vmem:[#allocation26 + $0x50] sm:$0xff]  }
0x1438   :  { %7504 = vmatprep.subr.bf16.mxu1 %v9560_v24  ;;  %v9602_v24 = vld [vmem:[#allocation26 + $0x10] sm:$0xff]  }
0x143b   :  { %7505 = vmatpush1.bf16.msra.mxu1 %v9558_v7  ;;  %v9603_v7 = vld [vmem:[#allocation26 + $0x58] sm:$0xff]  }
0x143c   :  { %7506 = vmatprep.subr.bf16.mxu1 %v9563_v32  ;;  %v9604_v32 = vld [vmem:[#allocation26 + $0x18] sm:$0xff]  }
0x143f   :  { %7507 = vmatpush1.bf16.msra.mxu1 %v9561_v36  ;;  %v9605_v36 = vld [vmem:[#allocation26 + $0x60] sm:$0xff]  }
0x1440   :  { %7508 = vmatprep.subr.bf16.mxu1 %v9566_v57  ;;  %v9606_v57 = vld [vmem:[#allocation26 + $0x20] sm:$0xff]  }
0x1443   :  { %7509 = vmatpush1.bf16.msra.mxu1 %v9564_v33  ;;  %v9607_v33 = vld [vmem:[#allocation26 + $0x68] sm:$0xff]  }
0x1444   :  { %7510 = vmatprep.subr.bf16.mxu1 %v9569_v16  ;;  %v9608_v16 = vld [vmem:[#allocation26 + $0x28] sm:$0xff]  }
0x1447   :  { %7511 = vmatpush1.bf16.msra.mxu1 %v9567_v17  ;;  %v9609_v17 = vld [vmem:[#allocation26 + $0x70] sm:$0xff]  }
0x1448   :  { %7512 = vmatprep.subr.bf16.mxu1 %v9572_v6  ;;  %v9610_v6 = vld [vmem:[#allocation26 + $0x30] sm:$0xff]  }
0x144b   :  { %7513 = vmatpush1.bf16.msra.mxu1 %v9570_v51  ;;  %v9611_v51 = vld [vmem:[#allocation26 + $0x78] sm:$0xff]  }
0x144c   :  { %7514 = vmatprep.subr.bf16.mxu1 %v9575_v34  ;;  %v9612_v34 = vld [vmem:[#allocation26 + $0x38] sm:$0xff]  }
0x144f   :  { %7515 = vmatpush1.bf16.msra.mxu1 %v9573_v53 }
0x1450   :  { %7516 = vmatprep.subr.bf16.mxu1 %v9578_v55 }
0x1453   :  { %7517 = vmatpush1.bf16.msra.mxu1 %v9576_v41 }
0x1454   :  { %7518 = vmatprep.subr.bf16.mxu1 %v9581_v19 }
0x1457   :  { %7519 = vmatpush1.bf16.msra.mxu1 %v9579_v40 }
0x1458   :  { %7520 = vmatprep.subr.bf16.mxu1 %v9584_v21 }
0x145b   :  { %7521 = vmatpush1.bf16.msra.mxu1 %v9582_v46  ;;  %v7562_v46 = vld [vmem:[#allocation23] sm:$0x3] }
0x145c   :  { %7522 = vmatprep.subr.bf16.mxu1 %v9587_v49  ;;  %v7563_v49 = vld [vmem:[#allocation25] sm:$0x3] }
0x145d   :  { %v7619_v30 = vrot.slane %v7563_v49, %v10542_v63 }
0x145f   :  { %7523 = vmatpush1.bf16.msra.mxu1 %v9585_v13  ;;  %v7600_v13 = vrot.slane %v7562_v46, %v10545_v0 }
0x1460   :  { %7524 = vmatprep.subr.bf16.mxu1 %v9590_v43  ;;  %v7604_v43 = vrot.slane %v7562_v46, %v10542_v63 }
0x1463   :  { %7525 = vmatpush1.bf16.msra.mxu1 %v9588_v31 }
0x1464   :  { %7526 = vmatprep.subr.bf16.mxu1 %v9593_v10 }
0x1467   :  { %7527 = vmatpush1.bf16.msra.mxu1 %v9591_v20 }
0x1468   :  { %7528 = vmatprep.subr.bf16.mxu1 %v9596_v9 }
0x146b   :  { %7529 = vmatpush1.bf16.msra.mxu1 %v9594_v37  ;;  %v7615_v37 = vrot.slane %v7563_v49, %v10545_v0 }
0x146e   :  { %7531 = vmatmul.mubr.bf16.vlgmr.msra.gmra.mrb[60].mxu1 %v6598_v38 }
0x1541   :  { %v7532_v60 = vpop.f32.mrb[60].mxu1 }
0x1542   :  { %v7541_v44 = vadd.f32 %v7532_v60, %v10977_v35  ;;  %v7534_v14 = vpop.f32.mrb[61].mxu1  ;;  %v9599_v35 = vld [vmem:[#allocation26 + $0x48] sm:$0xff]  }
0x1543   :  { %v7542_v4 = vadd.f32 %v7534_v14, %v10980_v2  ;;  %v7536_v59 = vpop.f32.mrb[62].mxu1  ;;  %v9600_v2 = vld [vmem:[#allocation26 + $0x8] sm:$0xff]   ;;  %8658 = vmatprep.subr.bf16.mxu0 %v9599_v35 }
0x1544   :  { %v7558_v1 = vadd.f32 %v7551_v62, %v7541_v44  ;;  %v7543_v11 = vadd.f32 %v7536_v59, %v10983_v25  ;;  %v7538_v26 = vpop.f32.mrb[63].mxu1  ;;  %8659 = vmatpush3.bf16.msra.mxu0 %v9600_v2 }
0x1545   :  { %v7559_v22 = vadd.f32 %v7555_v54, %v7542_v4  ;;  %v7544_v61 = vadd.f32 %v7538_v26, %v10985_v29  ;;  %8660 = vmatprep.subr.bf16.mxu0 %v9601_v58 }
0x1546   :  { %v7560_v18 = vadd.f32 %v7551_v62, %v7543_v11 }
0x1547   :  { %v7561_v38 = vadd.f32 %v7555_v54, %v7544_v61  ;;  %v7564_v5 = vadd.f32 %v7559_v22, %v7558_v1 }
0x1548   :  { %8661 = vmatpush3.bf16.msra.mxu0 %v9602_v24 }
0x1549   :  { %7565 = vadd.xlane.f32.xlu0 %v7564_v5  ;;  %v7567_v42 = vadd.f32 %v7561_v38, %v7560_v18  ;;  %8662 = vmatprep.subr.bf16.mxu0 %v9603_v7 }
0x154b   :  { %7568 = vadd.xlane.f32.xlu1 %v7567_v42 }
0x154c   :  { %8663 = vmatpush3.bf16.msra.mxu0 %v9604_v32 }
0x154d   :  { %8664 = vmatprep.subr.bf16.mxu0 %v9605_v36 }
0x1550   :  { %8665 = vmatpush3.bf16.msra.mxu0 %v9606_v57 }
0x1551   :  { %8666 = vmatprep.subr.bf16.mxu0 %v9607_v33 }
0x1554   :  { %8667 = vmatpush3.bf16.msra.mxu0 %v9608_v16 }
0x1555   :  { %8668 = vmatprep.subr.bf16.mxu0 %v9609_v17 }
0x1558   :  { %8669 = vmatpush3.bf16.msra.mxu0 %v9610_v6 }
0x1559   :  { %8670 = vmatprep.subr.bf16.mxu0 %v9611_v51 }
0x155c   :  { %8671 = vmatpush3.bf16.msra.mxu0 %v9612_v34 }
0x15d6   :  { %v7566_v45 = vpop.xlane.xlu0 %7565 }
0x15d7   :  { %v7570_v25 = vmul.f32 0.00390625, %v7566_v45 }
0x15d8   :  { %v7569_v28 = vpop.xlane.xlu1 %7568 }
0x15d9   :  { %v7572_v23 = vsub.f32 %v7558_v1, %v7570_v25  ;;  %v7573_v39 = vsub.f32 %v7559_v22, %v7570_v25  ;;  %v7571_v29 = vmul.f32 0.00390625, %v7569_v28 }
0x15db   :  { %v7574_v47 = vsub.f32 %v7560_v18, %v7571_v29  ;;  %v7575_v8 = vsub.f32 %v7561_v38, %v7571_v29  ;;  %v7576_v48 = vmul.f32 %v7572_v23, %v7572_v23  ;;  %v7577_v50 = vmul.f32 %v7573_v39, %v7573_v39  ;;  %v8607_v38 = vld [vmem:[#allocation28] ss:$0 sm:$0xff] }
0x15dd   :  { %v7580_v52 = vadd.f32 %v7577_v50, %v7576_v48  ;;  %v7578_v3 = vmul.f32 %v7574_v47, %v7574_v47  ;;  %v7579_v56 = vmul.f32 %v7575_v8, %v7575_v8 }
0x15df   :  { %7581 = vadd.xlane.f32.xlu0 %v7580_v52  ;;  %v7583_v12 = vadd.f32 %v7579_v56, %v7578_v3 }
0x15e1   :  { %7584 = vadd.xlane.f32.xlu1 %v7583_v12 }
0x166c   :  { %v7582_v53 = vpop.xlane.xlu0 %7581 }
0x166d   :  { %v7586_v55 = vmul.f32 0.00390625, %v7582_v53 }
0x166e   :  { %v7585_v41 = vpop.xlane.xlu1 %7584 }
0x166f   :  { %v7588_v19 = vadd.f32 1e-12, %v7586_v55  ;;  %v7587_v40 = vmul.f32 0.00390625, %v7585_v41 }
0x1671   :  { %9725 = vrsqrt.f32 %v7588_v19  ;;  %v7589_v21 = vadd.f32 1e-12, %v7587_v40 }
0x1673   :  { %9727 = vrsqrt.f32 %v7589_v21 }
0x167b   :  { %v9726_v31 = vpop.eup %9725 }
0x167c   :  { %v7592_v10 = vmul.f32 %v9726_v31, %v7572_v23  ;;  %v7593_v20 = vmul.f32 %v9726_v31, %v7573_v39 }
0x167d   :  { %v9728_v9 = vpop.eup %9727 }
0x167e   :  { %v7594_v62 = vmul.f32 %v9728_v9, %v7574_v47  ;;  %v7595_v60 = vmul.f32 %v9728_v9, %v7575_v8  ;;  %v7608_v54 = vmul.f32 %v7604_v43, %v7593_v20  ;;  %v7607_v44 = vmul.f32 %v7600_v13, %v7592_v10 }
0x1680   :  { %v7610_v14 = vmul.f32 %v7604_v43, %v7595_v60  ;;  %v7609_v4 = vmul.f32 %v7600_v13, %v7594_v62  ;;  %v7623_v59 = vadd.f32 %v7619_v30, %v7608_v54  ;;  %v7622_v11 = vadd.f32 %v7615_v37, %v7607_v44 }
0x1682   :  { %v7625_v1 = vadd.f32 %v7619_v30, %v7610_v14  ;;  %v7624_v26 = vadd.f32 %v7615_v37, %v7609_v4 }
0x1684   :  { %v7627_v22 = vpack.c.bf16 %v7625_v1, %v7623_v59  ;;  %v7626_v61 = vpack.c.bf16 %v7624_v26, %v7622_v11 }
0x1686   :  { %7795 = vmatprep.mubr.bf16.mxu0 %v7627_v22 }
0x1687   :  { %7796 = vmatmul.mubr.bf16.vlgmr.msra.gmra.mrb[72].mxu0 %v7626_v61 }
0x175a   :  { %v8672_v18 = vpop.f32.mrb[72].mxu0 }
0x175b   :  { %v8673_v5 = vpop.f32.mrb[73].mxu0 }
0x175c   :  { %v8674_v0 = vadd.f32 %v8673_v5, %v8672_v18  ;;  %v8675_v42 = vpop.f32.mrb[74].mxu0 }
0x175d   :  { %v8676_v63 = vpop.f32.mrb[75].mxu0 }
0x175e   :  { %v7798_v15 = vadd.f32 %v8674_v0, %v8607_v38  ;;  %v8677_v27 = vadd.f32 %v8676_v63, %v8675_v42 }
0x1760   :  { %7804 = vst [vmem:[#allocation29] sm:$0xff] %v7798_v15  ;;  %v7801_v35 = vadd.f32 %v8677_v27, %v8607_v38 }
0x1762   :  { %7805 = vst [vmem:[#allocation29 + $0x8] sm:$0xff] %v7801_v35 }
0x1763   :  { %10114 = shalt.err (!%p10111_p0)
}
0x1764   :  { %s11236_s29 = sld [smem:[#allocation42_spill]] }
0x176a   :  { %s10115_s9 = scalar_lea.hbm %s11236_s29, 256 }
0x176b   :  { %p10116_p1 = scmp.ne.s32.totalorder %s11236_s29, %s10115_s9  ;;  %p10119_p2 = scmp.lt.u32.totalorder %s10115_s9, %s11236_s29 }
0x176d   :  { %p10121_p3 = pnand %p10119_p2, %p10116_p1 }
0x176f   :  { %10124 = shalt.err (!%p10121_p3)
}
0x1770   :  { %7817 = dma.vmem_to_hbm [thread:$0]  %s7812_s6, 256, %s11236_s29, [#allocation4], %s10153_s26, %s10153_s26, %s10154_s25  }
0x1771   :  { %10143 = dma.done.wait [#allocation4], 256  }
0x1772   :  { %10144 = vsyncadd [#allocation4], 4294967040 }
0x1773   :  { %7821 = vsyncpa [#allocation3], 1 }
0x1774   :  { %7822 = vsyncpa [#allocation6], 1 }
0x1775   :  { %7823 = vsyncpa [#allocation9], 1 }
0x1776   :  { %7824 = vsyncpa [#allocation12], 1 }
0x1777   :  { %7825 = vsyncpa [#allocation15], 1 }
0x1778   :  { %7826 = vsyncpa [#allocation18], 1 }
0x1779   :  { %7827 = vsyncpa [#allocation21], 1 }
0x177a   :  { %7828 = vsyncpa [#allocation24], 1 }
0x177b   :  { %7829 = vsyncpa [#allocation27], 1 }
0x177c   :  { %7830 = vsyncpa [#allocation4], 1 }

</bundles_post_ra>
